<compile_context>
chip_gen: v6e
topology: v6e:2x2x1
jax: 0.10.0
libtpu: 0.0.40
codegen_flags: <defaults>
</compile_context>

<pallas_src>
import functools
import math

import jax
import jax.numpy as jnp
from jax.experimental import pallas as pl
from jax.experimental.pallas import tpu as pltpu

NEG_INF = -1e30   # additive-mask value, softmax-equivalent to float('-inf')
LN_EPS = 1e-5


# ------------------------------ fused kernel -------------------------------

def _make_transformer_kernel(S, T, d_model, num_heads, n_enc, n_dec):
    assert d_model % num_heads == 0
    D = d_model
    H = num_heads
    Dh = D // H
    scale = 1.0 / math.sqrt(Dh)

    def kernel(*refs):
        out_ref = refs[-1]                 # (T, P) block for this batch element
        it = iter(refs[:-1])

        def nxt():
            return next(it)[...]           # load full VMEM-resident array

        src = nxt()        # (S, F)
        tgt = nxt()        # (T, F)
        pe_src = nxt()     # (S, D)
        pe_tgt = nxt()     # (T, D)
        tgt_mask = nxt()   # (T, T) additive causal mask
        mem_mask = nxt()   # (T, S) additive memory mask (as in the torch code)
        enc_w, enc_b = nxt(), nxt()
        dec_w, dec_b = nxt(), nxt()
        proj_w, proj_b = nxt(), nxt()

        def mm(a, b):
            return jnp.dot(a, b, preferred_element_type=jnp.float32)

        def attend(q2, k2, v2, wo, bo, mask):
            # q2:(Tq,D), k2/v2:(Tk,D). Per-head attention with the output
            # projection folded into the epilogue: out = sum_h (p_h @ v_h) @ wo_h.
            acc = None
            for h in range(H):
                sl = slice(h * Dh, (h + 1) * Dh)
                s = jax.lax.dot_general(
                    q2[:, sl], k2[:, sl],
                    (((1,), (1,)), ((), ())),       # contract last dims, no k.T
                    preferred_element_type=jnp.float32) * scale
                if mask is not None:
                    s = s + mask
                s = s - jnp.max(s, axis=-1, keepdims=True)
                p = jnp.exp(s)
                p = p * pl.reciprocal(jnp.sum(p, axis=-1, keepdims=True),
                                      approx=True)
                o_h = mm(p, v2[:, sl])              # (Tq, Dh)
                c_h = mm(o_h, wo[sl, :])            # (Tq, D)
                acc = c_h if acc is None else acc + c_h
            return acc + bo

        def self_attn(x, wqkv, bqkv, wo, bo, mask):
            qkv = mm(x, wqkv) + bqkv                # fused Q/K/V projection
            return attend(qkv[:, :D], qkv[:, D:2 * D], qkv[:, 2 * D:],
                          wo, bo, mask)

        def cross_attn(xq, xkv, wq, bq, wkv, bkv, wo, bo, mask):
            q2 = mm(xq, wq) + bq
            kv = mm(xkv, wkv) + bkv                 # fused K/V projection
            return attend(q2, kv[:, :D], kv[:, D:], wo, bo, mask)

        def ffn(x, w1, b1, w2, b2):
            h1 = jnp.maximum(mm(x, w1) + b1, 0.0)   # linear1 -> relu
            return mm(h1, w2) + b2                  # -> linear2

        def add_norm(x, sub, g, b):                 # fused residual + LayerNorm
            y = x + sub
            mu = jnp.mean(y, axis=-1, keepdims=True)
            yc = y - mu
            var = jnp.mean(yc * yc, axis=-1, keepdims=True)
            return yc * jax.lax.rsqrt(var + LN_EPS) * g + b

        # ------------------------------ encoder ------------------------------
        x = mm(src, enc_w) + enc_b + pe_src
        for _ in range(n_enc):
            wqkv, bqkv, wo, bo = nxt(), nxt(), nxt(), nxt()
            w1, b1, w2, b2 = nxt(), nxt(), nxt(), nxt()
            g1, be1, g2, be2 = nxt(), nxt(), nxt(), nxt()
            x = add_norm(x, self_attn(x, wqkv, bqkv, wo, bo, None), g1, be1)
            x = add_norm(x, ffn(x, w1, b1, w2, b2), g2, be2)
        memory = x

        # ------------------------------ decoder ------------------------------
        y = mm(tgt, dec_w) + dec_b + pe_tgt
        for _ in range(n_dec):
            s_wqkv, s_bqkv, s_wo, s_bo = nxt(), nxt(), nxt(), nxt()
            c_wq, c_bq, c_wkv, c_bkv, c_wo, c_bo = (
                nxt(), nxt(), nxt(), nxt(), nxt(), nxt())
            w1, b1, w2, b2 = nxt(), nxt(), nxt(), nxt()
            g1, be1, g2, be2, g3, be3 = nxt(), nxt(), nxt(), nxt(), nxt(), nxt()
            y = add_norm(y, self_attn(y, s_wqkv, s_bqkv, s_wo, s_bo, tgt_mask),
                         g1, be1)
            y = add_norm(y, cross_attn(y, memory, c_wq, c_bq, c_wkv, c_bkv,
                                       c_wo, c_bo, mem_mask), g2, be2)
            y = add_norm(y, ffn(y, w1, b1, w2, b2), g3, be3)

        out_ref[...] = mm(y, proj_w) + proj_b

    return kernel


# --------------------------- wrapper / parameters ---------------------------

def sinusoidal_pe(length, d_model):
    pos = jnp.arange(length, dtype=jnp.float32)[:, None]
    div = jnp.exp(jnp.arange(0, d_model, 2, dtype=jnp.float32)
                  * (-math.log(10000.0) / d_model))
    pe = jnp.zeros((length, d_model), jnp.float32)
    pe = pe.at[:, 0::2].set(jnp.sin(pos * div))
    pe = pe.at[:, 1::2].set(jnp.cos(pos * div))
    return pe


def square_subsequent_mask(d1, d2):
    i = jnp.arange(d1)[:, None]
    j = jnp.arange(d2)[None, :]
    return jnp.where(j > i, NEG_INF, 0.0).astype(jnp.float32)


def _row(v):
    return v.reshape(1, -1)


def _flatten_params(params):
    flat = [params["enc_emb"]["w"], _row(params["enc_emb"]["b"]),
            params["dec_emb"]["w"], _row(params["dec_emb"]["b"]),
            params["proj_w"], _row(params["proj_b"])]
    for lp in params["encoder"]:
        flat += [lp["wqkv"], _row(lp["bqkv"]), lp["wo"], _row(lp["bo"]),
                 lp["w1"], _row(lp["b1"]), lp["w2"], _row(lp["b2"]),
                 _row(lp["norm1_g"]), _row(lp["norm1_b"]),
                 _row(lp["norm2_g"]), _row(lp["norm2_b"])]
    for lp in params["decoder"]:
        flat += [lp["s_wqkv"], _row(lp["s_bqkv"]), lp["s_wo"], _row(lp["s_bo"]),
                 lp["c_wq"], _row(lp["c_bq"]), lp["c_wkv"], _row(lp["c_bkv"]),
                 lp["c_wo"], _row(lp["c_bo"]),
                 lp["w1"], _row(lp["b1"]), lp["w2"], _row(lp["b2"]),
                 _row(lp["norm1_g"]), _row(lp["norm1_b"]),
                 _row(lp["norm2_g"]), _row(lp["norm2_b"]),
                 _row(lp["norm3_g"]), _row(lp["norm3_b"])]
    return flat


@functools.partial(jax.jit, static_argnames=("num_heads",))
def transformer_forward(params, src, tgt, *, num_heads):
    S, B, F = src.shape
    T = tgt.shape[0]
    D = params["enc_emb"]["w"].shape[1]
    P = params["proj_w"].shape[1]
    n_enc = len(params["encoder"])
    n_dec = len(params["decoder"])

    pe = params["pe"]                       # precomputed once at init (hoisted)
    assert pe.shape[0] >= max(S, T)

    # Batch-major views (only 3 tiny XLA transposes remain in the whole forward).
    src_bm = jnp.transpose(src, (1, 0, 2))  # (B, S, F)
    tgt_bm = jnp.transpose(tgt, (1, 0, 2))  # (B, T, F)

    tgt_mask = square_subsequent_mask(T, T)
    mem_mask = square_subsequent_mask(T, S)  # memory_mask, as in the torch code

    bcast_args = [pe[:S], pe[:T], tgt_mask, mem_mask] + _flatten_params(params)

    def bcast_spec(a):
        zeros = (0,) * a.ndim
        return pl.BlockSpec(a.shape, lambda b, _z=zeros: _z)

    in_specs = ([pl.BlockSpec((None, S, F), lambda b: (b, 0, 0)),
                 pl.BlockSpec((None, T, F), lambda b: (b, 0, 0))]
                + [bcast_spec(a) for a in bcast_args])

    kernel = _make_transformer_kernel(S, T, D, num_heads, n_enc, n_dec)

    out_bm = pl.pallas_call(
        kernel,
        out_shape=jax.ShapeDtypeStruct((B, T, P), jnp.float32),
        grid=(B,),
        in_specs=in_specs,
        out_specs=pl.BlockSpec((None, T, P), lambda b: (b, 0, 0)),
        compiler_params=pltpu.CompilerParams(
            dimension_semantics=("parallel",)),   # 2 TCs on v7x split the batch
    )(src_bm, tgt_bm, *bcast_args)

    return jnp.transpose(out_bm, (1, 0, 2))       # back to [T, B, P]


def init_transformer_params(key, input_size, d_model, num_encoder_layers,
                            num_decoder_layers, d_ff_enc, d_ff_dec,
                            num_predicted_features, max_seq_len=64):
    keys = iter(jax.random.split(key, 1024))

    def dense(n_in, n_out):
        return (jax.random.normal(next(keys), (n_in, n_out), jnp.float32) * 0.02,
                jnp.zeros((n_out,), jnp.float32))

    def ln(d):
        return jnp.ones((d,), jnp.float32), jnp.zeros((d,), jnp.float32)

    def enc_layer():
        wqkv, bqkv = dense(d_model, 3 * d_model)
        wo, bo = dense(d_model, d_model)
        w1, b1 = dense(d_model, d_ff_enc)
        w2, b2 = dense(d_ff_enc, d_model)
        g1, be1 = ln(d_model)
        g2, be2 = ln(d_model)
        return dict(wqkv=wqkv, bqkv=bqkv, wo=wo, bo=bo, w1=w1, b1=b1, w2=w2,
                    b2=b2, norm1_g=g1, norm1_b=be1, norm2_g=g2, norm2_b=be2)

    def dec_layer():
        s_wqkv, s_bqkv = dense(d_model, 3 * d_model)
        s_wo, s_bo = dense(d_model, d_model)
        c_wq, c_bq = dense(d_model, d_model)
        c_wkv, c_bkv = dense(d_model, 2 * d_model)
        c_wo, c_bo = dense(d_model, d_model)
        w1, b1 = dense(d_model, d_ff_dec)
        w2, b2 = dense(d_ff_dec, d_model)
        g1, be1 = ln(d_model)
        g2, be2 = ln(d_model)
        g3, be3 = ln(d_model)
        return dict(s_wqkv=s_wqkv, s_bqkv=s_bqkv, s_wo=s_wo, s_bo=s_bo,
                    c_wq=c_wq, c_bq=c_bq, c_wkv=c_wkv, c_bkv=c_bkv,
                    c_wo=c_wo, c_bo=c_bo, w1=w1, b1=b1, w2=w2, b2=b2,
                    norm1_g=g1, norm1_b=be1, norm2_g=g2, norm2_b=be2,
                    norm3_g=g3, norm3_b=be3)

    enc_emb_w, enc_emb_b = dense(input_size, d_model)
    dec_emb_w, dec_emb_b = dense(input_size, d_model)
    proj_w, proj_b = dense(d_model, num_predicted_features)

    # TODO(synk): DataEmbedding is not defined in the provided source; modeled as
    # Linear value-embedding + sinusoidal positional encoding (dropout = identity).
    return dict(
        enc_emb=dict(w=enc_emb_w, b=enc_emb_b),
        dec_emb=dict(w=dec_emb_w, b=dec_emb_b),
        encoder=[enc_layer() for _ in range(num_encoder_layers)],
        decoder=[dec_layer() for _ in range(num_decoder_layers)],
        proj_w=proj_w, proj_b=proj_b,
        pe=sinusoidal_pe(max_seq_len, d_model),   # computed once, not per forward
    )


# ---------------------------------- main ------------------------------------

if __name__ == "__main__":
    input_size = 4
    d_model = 32
    num_heads = 4                 # head_dim = 8
    num_encoder_layers = 2
    num_decoder_layers = 2
    d_ff_enc = 64
    d_ff_dec = 64
    num_predicted_features = 1
    S, T, B = 16, 8, 2            # src_len, tgt_len, batch

    key = jax.random.PRNGKey(0)
    k_param, k_src, k_tgt = jax.random.split(key, 3)

    params = init_transformer_params(
        k_param, input_size, d_model, num_encoder_layers, num_decoder_layers,
        d_ff_enc, d_ff_dec, num_predicted_features, max_seq_len=max(S, T))

    src = jax.random.normal(k_src, (S, B, input_size), jnp.float32)
    tgt = jax.random.normal(k_tgt, (T, B, input_size), jnp.float32)

    out = transformer_forward(params, src, tgt, num_heads=num_heads)
    out = jax.block_until_ready(out)

    assert out.shape == (T, B, num_predicted_features), out.shape
    assert bool(jnp.all(jnp.isfinite(out)))
    print("KERNEL_OK")
</pallas_src>

<mosaic_0001>
module attributes {stable_mosaic.version = 11 : i64} {
  func.func @kernel(%arg0: i32, %arg1: memref<1x16x4xf32, #tpu.memory_space<vmem>>, %arg2: memref<1x8x4xf32, #tpu.memory_space<vmem>>, %arg3: memref<16x32xf32, #tpu.memory_space<vmem>>, %arg4: memref<8x32xf32, #tpu.memory_space<vmem>>, %arg5: memref<8x8xf32, #tpu.memory_space<vmem>>, %arg6: memref<8x16xf32, #tpu.memory_space<vmem>>, %arg7: memref<4x32xf32, #tpu.memory_space<vmem>>, %arg8: memref<1x32xf32, #tpu.memory_space<vmem>>, %arg9: memref<4x32xf32, #tpu.memory_space<vmem>>, %arg10: memref<1x32xf32, #tpu.memory_space<vmem>>, %arg11: memref<32x1xf32, #tpu.memory_space<vmem>>, %arg12: memref<1x1xf32, #tpu.memory_space<vmem>>, %arg13: memref<32x96xf32, #tpu.memory_space<vmem>>, %arg14: memref<1x96xf32, #tpu.memory_space<vmem>>, %arg15: memref<32x32xf32, #tpu.memory_space<vmem>>, %arg16: memref<1x32xf32, #tpu.memory_space<vmem>>, %arg17: memref<32x64xf32, #tpu.memory_space<vmem>>, %arg18: memref<1x64xf32, #tpu.memory_space<vmem>>, %arg19: memref<64x32xf32, #tpu.memory_space<vmem>>, %arg20: memref<1x32xf32, #tpu.memory_space<vmem>>, %arg21: memref<1x32xf32, #tpu.memory_space<vmem>>, %arg22: memref<1x32xf32, #tpu.memory_space<vmem>>, %arg23: memref<1x32xf32, #tpu.memory_space<vmem>>, %arg24: memref<1x32xf32, #tpu.memory_space<vmem>>, %arg25: memref<32x96xf32, #tpu.memory_space<vmem>>, %arg26: memref<1x96xf32, #tpu.memory_space<vmem>>, %arg27: memref<32x32xf32, #tpu.memory_space<vmem>>, %arg28: memref<1x32xf32, #tpu.memory_space<vmem>>, %arg29: memref<32x64xf32, #tpu.memory_space<vmem>>, %arg30: memref<1x64xf32, #tpu.memory_space<vmem>>, %arg31: memref<64x32xf32, #tpu.memory_space<vmem>>, %arg32: memref<1x32xf32, #tpu.memory_space<vmem>>, %arg33: memref<1x32xf32, #tpu.memory_space<vmem>>, %arg34: memref<1x32xf32, #tpu.memory_space<vmem>>, %arg35: memref<1x32xf32, #tpu.memory_space<vmem>>, %arg36: memref<1x32xf32, #tpu.memory_space<vmem>>, %arg37: memref<32x96xf32, #tpu.memory_space<vmem>>, %arg38: memref<1x96xf32, #tpu.memory_space<vmem>>, %arg39: memref<32x32xf32, #tpu.memory_space<vmem>>, %arg40: memref<1x32xf32, #tpu.memory_space<vmem>>, %arg41: memref<32x32xf32, #tpu.memory_space<vmem>>, %arg42: memref<1x32xf32, #tpu.memory_space<vmem>>, %arg43: memref<32x64xf32, #tpu.memory_space<vmem>>, %arg44: memref<1x64xf32, #tpu.memory_space<vmem>>, %arg45: memref<32x32xf32, #tpu.memory_space<vmem>>, %arg46: memref<1x32xf32, #tpu.memory_space<vmem>>, %arg47: memref<32x64xf32, #tpu.memory_space<vmem>>, %arg48: memref<1x64xf32, #tpu.memory_space<vmem>>, %arg49: memref<64x32xf32, #tpu.memory_space<vmem>>, %arg50: memref<1x32xf32, #tpu.memory_space<vmem>>, %arg51: memref<1x32xf32, #tpu.memory_space<vmem>>, %arg52: memref<1x32xf32, #tpu.memory_space<vmem>>, %arg53: memref<1x32xf32, #tpu.memory_space<vmem>>, %arg54: memref<1x32xf32, #tpu.memory_space<vmem>>, %arg55: memref<1x32xf32, #tpu.memory_space<vmem>>, %arg56: memref<1x32xf32, #tpu.memory_space<vmem>>, %arg57: memref<32x96xf32, #tpu.memory_space<vmem>>, %arg58: memref<1x96xf32, #tpu.memory_space<vmem>>, %arg59: memref<32x32xf32, #tpu.memory_space<vmem>>, %arg60: memref<1x32xf32, #tpu.memory_space<vmem>>, %arg61: memref<32x32xf32, #tpu.memory_space<vmem>>, %arg62: memref<1x32xf32, #tpu.memory_space<vmem>>, %arg63: memref<32x64xf32, #tpu.memory_space<vmem>>, %arg64: memref<1x64xf32, #tpu.memory_space<vmem>>, %arg65: memref<32x32xf32, #tpu.memory_space<vmem>>, %arg66: memref<1x32xf32, #tpu.memory_space<vmem>>, %arg67: memref<32x64xf32, #tpu.memory_space<vmem>>, %arg68: memref<1x64xf32, #tpu.memory_space<vmem>>, %arg69: memref<64x32xf32, #tpu.memory_space<vmem>>, %arg70: memref<1x32xf32, #tpu.memory_space<vmem>>, %arg71: memref<1x32xf32, #tpu.memory_space<vmem>>, %arg72: memref<1x32xf32, #tpu.memory_space<vmem>>, %arg73: memref<1x32xf32, #tpu.memory_space<vmem>>, %arg74: memref<1x32xf32, #tpu.memory_space<vmem>>, %arg75: memref<1x32xf32, #tpu.memory_space<vmem>>, %arg76: memref<1x32xf32, #tpu.memory_space<vmem>>, %arg77: memref<1x8x1xf32, #tpu.memory_space<vmem>>) attributes {dimension_semantics = [#tpu.dimension_semantics<parallel>], iteration_bounds = array<i64: 2>, scalar_prefetch = 0 : i64, scratch_operands = 0 : i64, tpu.core_type = #tpu.core_type<tc>, window_params = [{transform_indices = @transform_0, window_bounds = array<i64: 1, 16, 4>}, {transform_indices = @transform_1, window_bounds = array<i64: 1, 8, 4>}, {pipeline_mode = #tpu.pipeline_mode<synchronous>, transform_indices = @transform_2, window_bounds = array<i64: 16, 32>}, {pipeline_mode = #tpu.pipeline_mode<synchronous>, transform_indices = @transform_3, window_bounds = array<i64: 8, 32>}, {pipeline_mode = #tpu.pipeline_mode<synchronous>, transform_indices = @transform_4, window_bounds = array<i64: 8, 8>}, {pipeline_mode = #tpu.pipeline_mode<synchronous>, transform_indices = @transform_5, window_bounds = array<i64: 8, 16>}, {pipeline_mode = #tpu.pipeline_mode<synchronous>, transform_indices = @transform_6, window_bounds = array<i64: 4, 32>}, {pipeline_mode = #tpu.pipeline_mode<synchronous>, transform_indices = @transform_7, window_bounds = array<i64: 1, 32>}, {pipeline_mode = #tpu.pipeline_mode<synchronous>, transform_indices = @transform_8, window_bounds = array<i64: 4, 32>}, {pipeline_mode = #tpu.pipeline_mode<synchronous>, transform_indices = @transform_9, window_bounds = array<i64: 1, 32>}, {pipeline_mode = #tpu.pipeline_mode<synchronous>, transform_indices = @transform_10, window_bounds = array<i64: 32, 1>}, {pipeline_mode = #tpu.pipeline_mode<synchronous>, transform_indices = @transform_11, window_bounds = array<i64: 1, 1>}, {pipeline_mode = #tpu.pipeline_mode<synchronous>, transform_indices = @transform_12, window_bounds = array<i64: 32, 96>}, {pipeline_mode = #tpu.pipeline_mode<synchronous>, transform_indices = @transform_13, window_bounds = array<i64: 1, 96>}, {pipeline_mode = #tpu.pipeline_mode<synchronous>, transform_indices = @transform_14, window_bounds = array<i64: 32, 32>}, {pipeline_mode = #tpu.pipeline_mode<synchronous>, transform_indices = @transform_15, window_bounds = array<i64: 1, 32>}, {pipeline_mode = #tpu.pipeline_mode<synchronous>, transform_indices = @transform_16, window_bounds = array<i64: 32, 64>}, {pipeline_mode = #tpu.pipeline_mode<synchronous>, transform_indices = @transform_17, window_bounds = array<i64: 1, 64>}, {pipeline_mode = #tpu.pipeline_mode<synchronous>, transform_indices = @transform_18, window_bounds = array<i64: 64, 32>}, {pipeline_mode = #tpu.pipeline_mode<synchronous>, transform_indices = @transform_19, window_bounds = array<i64: 1, 32>}, {pipeline_mode = #tpu.pipeline_mode<synchronous>, transform_indices = @transform_20, window_bounds = array<i64: 1, 32>}, {pipeline_mode = #tpu.pipeline_mode<synchronous>, transform_indices = @transform_21, window_bounds = array<i64: 1, 32>}, {pipeline_mode = #tpu.pipeline_mode<synchronous>, transform_indices = @transform_22, window_bounds = array<i64: 1, 32>}, {pipeline_mode = #tpu.pipeline_mode<synchronous>, transform_indices = @transform_23, window_bounds = array<i64: 1, 32>}, {pipeline_mode = #tpu.pipeline_mode<synchronous>, transform_indices = @transform_24, window_bounds = array<i64: 32, 96>}, {pipeline_mode = #tpu.pipeline_mode<synchronous>, transform_indices = @transform_25, window_bounds = array<i64: 1, 96>}, {pipeline_mode = #tpu.pipeline_mode<synchronous>, transform_indices = @transform_26, window_bounds = array<i64: 32, 32>}, {pipeline_mode = #tpu.pipeline_mode<synchronous>, transform_indices = @transform_27, window_bounds = array<i64: 1, 32>}, {pipeline_mode = #tpu.pipeline_mode<synchronous>, transform_indices = @transform_28, window_bounds = array<i64: 32, 64>}, {pipeline_mode = #tpu.pipeline_mode<synchronous>, transform_indices = @transform_29, window_bounds = array<i64: 1, 64>}, {pipeline_mode = #tpu.pipeline_mode<synchronous>, transform_indices = @transform_30, window_bounds = array<i64: 64, 32>}, {pipeline_mode = #tpu.pipeline_mode<synchronous>, transform_indices = @transform_31, window_bounds = array<i64: 1, 32>}, {pipeline_mode = #tpu.pipeline_mode<synchronous>, transform_indices = @transform_32, window_bounds = array<i64: 1, 32>}, {pipeline_mode = #tpu.pipeline_mode<synchronous>, transform_indices = @transform_33, window_bounds = array<i64: 1, 32>}, {pipeline_mode = #tpu.pipeline_mode<synchronous>, transform_indices = @transform_34, window_bounds = array<i64: 1, 32>}, {pipeline_mode = #tpu.pipeline_mode<synchronous>, transform_indices = @transform_35, window_bounds = array<i64: 1, 32>}, {pipeline_mode = #tpu.pipeline_mode<synchronous>, transform_indices = @transform_36, window_bounds = array<i64: 32, 96>}, {pipeline_mode = #tpu.pipeline_mode<synchronous>, transform_indices = @transform_37, window_bounds = array<i64: 1, 96>}, {pipeline_mode = #tpu.pipeline_mode<synchronous>, transform_indices = @transform_38, window_bounds = array<i64: 32, 32>}, {pipeline_mode = #tpu.pipeline_mode<synchronous>, transform_indices = @transform_39, window_bounds = array<i64: 1, 32>}, {pipeline_mode = #tpu.pipeline_mode<synchronous>, transform_indices = @transform_40, window_bounds = array<i64: 32, 32>}, {pipeline_mode = #tpu.pipeline_mode<synchronous>, transform_indices = @transform_41, window_bounds = array<i64: 1, 32>}, {pipeline_mode = #tpu.pipeline_mode<synchronous>, transform_indices = @transform_42, window_bounds = array<i64: 32, 64>}, {pipeline_mode = #tpu.pipeline_mode<synchronous>, transform_indices = @transform_43, window_bounds = array<i64: 1, 64>}, {pipeline_mode = #tpu.pipeline_mode<synchronous>, transform_indices = @transform_44, window_bounds = array<i64: 32, 32>}, {pipeline_mode = #tpu.pipeline_mode<synchronous>, transform_indices = @transform_45, window_bounds = array<i64: 1, 32>}, {pipeline_mode = #tpu.pipeline_mode<synchronous>, transform_indices = @transform_46, window_bounds = array<i64: 32, 64>}, {pipeline_mode = #tpu.pipeline_mode<synchronous>, transform_indices = @transform_47, window_bounds = array<i64: 1, 64>}, {pipeline_mode = #tpu.pipeline_mode<synchronous>, transform_indices = @transform_48, window_bounds = array<i64: 64, 32>}, {pipeline_mode = #tpu.pipeline_mode<synchronous>, transform_indices = @transform_49, window_bounds = array<i64: 1, 32>}, {pipeline_mode = #tpu.pipeline_mode<synchronous>, transform_indices = @transform_50, window_bounds = array<i64: 1, 32>}, {pipeline_mode = #tpu.pipeline_mode<synchronous>, transform_indices = @transform_51, window_bounds = array<i64: 1, 32>}, {pipeline_mode = #tpu.pipeline_mode<synchronous>, transform_indices = @transform_52, window_bounds = array<i64: 1, 32>}, {pipeline_mode = #tpu.pipeline_mode<synchronous>, transform_indices = @transform_53, window_bounds = array<i64: 1, 32>}, {pipeline_mode = #tpu.pipeline_mode<synchronous>, transform_indices = @transform_54, window_bounds = array<i64: 1, 32>}, {pipeline_mode = #tpu.pipeline_mode<synchronous>, transform_indices = @transform_55, window_bounds = array<i64: 1, 32>}, {pipeline_mode = #tpu.pipeline_mode<synchronous>, transform_indices = @transform_56, window_bounds = array<i64: 32, 96>}, {pipeline_mode = #tpu.pipeline_mode<synchronous>, transform_indices = @transform_57, window_bounds = array<i64: 1, 96>}, {pipeline_mode = #tpu.pipeline_mode<synchronous>, transform_indices = @transform_58, window_bounds = array<i64: 32, 32>}, {pipeline_mode = #tpu.pipeline_mode<synchronous>, transform_indices = @transform_59, window_bounds = array<i64: 1, 32>}, {pipeline_mode = #tpu.pipeline_mode<synchronous>, transform_indices = @transform_60, window_bounds = array<i64: 32, 32>}, {pipeline_mode = #tpu.pipeline_mode<synchronous>, transform_indices = @transform_61, window_bounds = array<i64: 1, 32>}, {pipeline_mode = #tpu.pipeline_mode<synchronous>, transform_indices = @transform_62, window_bounds = array<i64: 32, 64>}, {pipeline_mode = #tpu.pipeline_mode<synchronous>, transform_indices = @transform_63, window_bounds = array<i64: 1, 64>}, {pipeline_mode = #tpu.pipeline_mode<synchronous>, transform_indices = @transform_64, window_bounds = array<i64: 32, 32>}, {pipeline_mode = #tpu.pipeline_mode<synchronous>, transform_indices = @transform_65, window_bounds = array<i64: 1, 32>}, {pipeline_mode = #tpu.pipeline_mode<synchronous>, transform_indices = @transform_66, window_bounds = array<i64: 32, 64>}, {pipeline_mode = #tpu.pipeline_mode<synchronous>, transform_indices = @transform_67, window_bounds = array<i64: 1, 64>}, {pipeline_mode = #tpu.pipeline_mode<synchronous>, transform_indices = @transform_68, window_bounds = array<i64: 64, 32>}, {pipeline_mode = #tpu.pipeline_mode<synchronous>, transform_indices = @transform_69, window_bounds = array<i64: 1, 32>}, {pipeline_mode = #tpu.pipeline_mode<synchronous>, transform_indices = @transform_70, window_bounds = array<i64: 1, 32>}, {pipeline_mode = #tpu.pipeline_mode<synchronous>, transform_indices = @transform_71, window_bounds = array<i64: 1, 32>}, {pipeline_mode = #tpu.pipeline_mode<synchronous>, transform_indices = @transform_72, window_bounds = array<i64: 1, 32>}, {pipeline_mode = #tpu.pipeline_mode<synchronous>, transform_indices = @transform_73, window_bounds = array<i64: 1, 32>}, {pipeline_mode = #tpu.pipeline_mode<synchronous>, transform_indices = @transform_74, window_bounds = array<i64: 1, 32>}, {pipeline_mode = #tpu.pipeline_mode<synchronous>, transform_indices = @transform_75, window_bounds = array<i64: 1, 32>}, {transform_indices = @transform_76, window_bounds = array<i64: 1, 8, 1>}]} {
    %c0 = arith.constant 0 : index
    %c0_0 = arith.constant 0 : index
    %c0_1 = arith.constant 0 : index
    %0 = vector.load %arg1[%c0, %c0_0, %c0_1] : memref<1x16x4xf32, #tpu.memory_space<vmem>>, vector<1x16x4xf32>
    %1 = vector.shape_cast %0 : vector<1x16x4xf32> to vector<16x4xf32>
    %c0_2 = arith.constant 0 : index
    %c0_3 = arith.constant 0 : index
    %c0_4 = arith.constant 0 : index
    %2 = vector.load %arg2[%c0_2, %c0_3, %c0_4] : memref<1x8x4xf32, #tpu.memory_space<vmem>>, vector<1x8x4xf32>
    %3 = vector.shape_cast %2 : vector<1x8x4xf32> to vector<8x4xf32>
    %c0_5 = arith.constant 0 : index
    %c0_6 = arith.constant 0 : index
    %4 = vector.load %arg3[%c0_5, %c0_6] : memref<16x32xf32, #tpu.memory_space<vmem>>, vector<16x32xf32>
    %c0_7 = arith.constant 0 : index
    %c0_8 = arith.constant 0 : index
    %5 = vector.load %arg4[%c0_7, %c0_8] : memref<8x32xf32, #tpu.memory_space<vmem>>, vector<8x32xf32>
    %c0_9 = arith.constant 0 : index
    %c0_10 = arith.constant 0 : index
    %6 = vector.load %arg5[%c0_9, %c0_10] : memref<8x8xf32, #tpu.memory_space<vmem>>, vector<8x8xf32>
    %c0_11 = arith.constant 0 : index
    %c0_12 = arith.constant 0 : index
    %7 = vector.load %arg6[%c0_11, %c0_12] : memref<8x16xf32, #tpu.memory_space<vmem>>, vector<8x16xf32>
    %c0_13 = arith.constant 0 : index
    %c0_14 = arith.constant 0 : index
    %8 = vector.load %arg7[%c0_13, %c0_14] : memref<4x32xf32, #tpu.memory_space<vmem>>, vector<4x32xf32>
    %c0_15 = arith.constant 0 : index
    %c0_16 = arith.constant 0 : index
    %9 = vector.load %arg8[%c0_15, %c0_16] : memref<1x32xf32, #tpu.memory_space<vmem>>, vector<1x32xf32>
    %c0_17 = arith.constant 0 : index
    %c0_18 = arith.constant 0 : index
    %10 = vector.load %arg9[%c0_17, %c0_18] : memref<4x32xf32, #tpu.memory_space<vmem>>, vector<4x32xf32>
    %c0_19 = arith.constant 0 : index
    %c0_20 = arith.constant 0 : index
    %11 = vector.load %arg10[%c0_19, %c0_20] : memref<1x32xf32, #tpu.memory_space<vmem>>, vector<1x32xf32>
    %c0_21 = arith.constant 0 : index
    %c0_22 = arith.constant 0 : index
    %12 = vector.load %arg11[%c0_21, %c0_22] : memref<32x1xf32, #tpu.memory_space<vmem>>, vector<32x1xf32>
    %c0_23 = arith.constant 0 : index
    %c0_24 = arith.constant 0 : index
    %13 = vector.load %arg12[%c0_23, %c0_24] : memref<1x1xf32, #tpu.memory_space<vmem>>, vector<1x1xf32>
    %cst = arith.constant dense<0.000000e+00> : vector<16x32xf32>
    %14 = tpu.matmul %1, %8, %cst {dimension_numbers = #tpu.dot_dimension_numbers<[1], [0], [0], [1], [0, 0, 1, 1], [], []>} : vector<16x4xf32>, vector<4x32xf32>, vector<16x32xf32> -> vector<16x32xf32>
    %15 = vector.broadcast %9 : vector<1x32xf32> to vector<16x32xf32>
    %16 = arith.addf %14, %15 : vector<16x32xf32>
    %17 = arith.addf %16, %4 : vector<16x32xf32>
    %c0_25 = arith.constant 0 : index
    %c0_26 = arith.constant 0 : index
    %18 = vector.load %arg13[%c0_25, %c0_26] : memref<32x96xf32, #tpu.memory_space<vmem>>, vector<32x96xf32>
    %c0_27 = arith.constant 0 : index
    %c0_28 = arith.constant 0 : index
    %19 = vector.load %arg14[%c0_27, %c0_28] : memref<1x96xf32, #tpu.memory_space<vmem>>, vector<1x96xf32>
    %c0_29 = arith.constant 0 : index
    %c0_30 = arith.constant 0 : index
    %20 = vector.load %arg15[%c0_29, %c0_30] : memref<32x32xf32, #tpu.memory_space<vmem>>, vector<32x32xf32>
    %c0_31 = arith.constant 0 : index
    %c0_32 = arith.constant 0 : index
    %21 = vector.load %arg16[%c0_31, %c0_32] : memref<1x32xf32, #tpu.memory_space<vmem>>, vector<1x32xf32>
    %c0_33 = arith.constant 0 : index
    %c0_34 = arith.constant 0 : index
    %22 = vector.load %arg17[%c0_33, %c0_34] : memref<32x64xf32, #tpu.memory_space<vmem>>, vector<32x64xf32>
    %c0_35 = arith.constant 0 : index
    %c0_36 = arith.constant 0 : index
    %23 = vector.load %arg18[%c0_35, %c0_36] : memref<1x64xf32, #tpu.memory_space<vmem>>, vector<1x64xf32>
    %c0_37 = arith.constant 0 : index
    %c0_38 = arith.constant 0 : index
    %24 = vector.load %arg19[%c0_37, %c0_38] : memref<64x32xf32, #tpu.memory_space<vmem>>, vector<64x32xf32>
    %c0_39 = arith.constant 0 : index
    %c0_40 = arith.constant 0 : index
    %25 = vector.load %arg20[%c0_39, %c0_40] : memref<1x32xf32, #tpu.memory_space<vmem>>, vector<1x32xf32>
    %c0_41 = arith.constant 0 : index
    %c0_42 = arith.constant 0 : index
    %26 = vector.load %arg21[%c0_41, %c0_42] : memref<1x32xf32, #tpu.memory_space<vmem>>, vector<1x32xf32>
    %c0_43 = arith.constant 0 : index
    %c0_44 = arith.constant 0 : index
    %27 = vector.load %arg22[%c0_43, %c0_44] : memref<1x32xf32, #tpu.memory_space<vmem>>, vector<1x32xf32>
    %c0_45 = arith.constant 0 : index
    %c0_46 = arith.constant 0 : index
    %28 = vector.load %arg23[%c0_45, %c0_46] : memref<1x32xf32, #tpu.memory_space<vmem>>, vector<1x32xf32>
    %c0_47 = arith.constant 0 : index
    %c0_48 = arith.constant 0 : index
    %29 = vector.load %arg24[%c0_47, %c0_48] : memref<1x32xf32, #tpu.memory_space<vmem>>, vector<1x32xf32>
    %cst_49 = arith.constant dense<0.000000e+00> : vector<16x96xf32>
    %30 = tpu.matmul %17, %18, %cst_49 {dimension_numbers = #tpu.dot_dimension_numbers<[1], [0], [0], [1], [0, 0, 1, 1], [], []>} : vector<16x32xf32>, vector<32x96xf32>, vector<16x96xf32> -> vector<16x96xf32>
    %31 = vector.broadcast %19 : vector<1x96xf32> to vector<16x96xf32>
    %32 = arith.addf %30, %31 : vector<16x96xf32>
    %33 = vector.extract_strided_slice %32 {offsets = [0, 0], sizes = [16, 32], strides = [1, 1]} : vector<16x96xf32> to vector<16x32xf32>
    %34 = vector.extract_strided_slice %32 {offsets = [0, 32], sizes = [16, 32], strides = [1, 1]} : vector<16x96xf32> to vector<16x32xf32>
    %35 = vector.extract_strided_slice %32 {offsets = [0, 64], sizes = [16, 32], strides = [1, 1]} : vector<16x96xf32> to vector<16x32xf32>
    %36 = vector.extract_strided_slice %33 {offsets = [0, 0], sizes = [16, 8], strides = [1, 1]} : vector<16x32xf32> to vector<16x8xf32>
    %37 = vector.extract_strided_slice %34 {offsets = [0, 0], sizes = [16, 8], strides = [1, 1]} : vector<16x32xf32> to vector<16x8xf32>
    %cst_50 = arith.constant dense<0.000000e+00> : vector<16x16xf32>
    %38 = tpu.matmul %36, %37, %cst_50 {dimension_numbers = #tpu.dot_dimension_numbers<[1], [1], [0], [0], [0, 0, 1, 0], [], []>} : vector<16x8xf32>, vector<16x8xf32>, vector<16x16xf32> -> vector<16x16xf32>
    %cst_51 = arith.constant 0.353553385 : f32
    %39 = vector.broadcast %cst_51 : f32 to vector<16x16xf32>
    %40 = arith.mulf %38, %39 : vector<16x16xf32>
    %cst_52 = arith.constant dense<0xFF800000> : vector<16xf32>
    %41 = vector.multi_reduction <maximumf>, %40, %cst_52 [1] : vector<16x16xf32> to vector<16xf32>
    %42 = vector.shape_cast %41 : vector<16xf32> to vector<16x1xf32>
    %43 = vector.broadcast %42 : vector<16x1xf32> to vector<16x16xf32>
    %44 = arith.subf %40, %43 : vector<16x16xf32>
    %45 = math.exp %44 : vector<16x16xf32>
    %cst_53 = arith.constant dense<0.000000e+00> : vector<16xf32>
    %46 = vector.multi_reduction <add>, %45, %cst_53 [1] : vector<16x16xf32> to vector<16xf32>
    %47 = vector.shape_cast %46 : vector<16xf32> to vector<16x1xf32>
    %48 = tpu.reciprocal %47 {approx = true} : vector<16x1xf32> -> vector<16x1xf32>
    %49 = vector.broadcast %48 : vector<16x1xf32> to vector<16x16xf32>
    %50 = arith.mulf %45, %49 : vector<16x16xf32>
    %51 = vector.extract_strided_slice %35 {offsets = [0, 0], sizes = [16, 8], strides = [1, 1]} : vector<16x32xf32> to vector<16x8xf32>
    %cst_54 = arith.constant dense<0.000000e+00> : vector<16x8xf32>
    %52 = tpu.matmul %50, %51, %cst_54 {dimension_numbers = #tpu.dot_dimension_numbers<[1], [0], [0], [1], [0, 0, 1, 1], [], []>} : vector<16x16xf32>, vector<16x8xf32>, vector<16x8xf32> -> vector<16x8xf32>
    %53 = vector.extract_strided_slice %20 {offsets = [0, 0], sizes = [8, 32], strides = [1, 1]} : vector<32x32xf32> to vector<8x32xf32>
    %cst_55 = arith.constant dense<0.000000e+00> : vector<16x32xf32>
    %54 = tpu.matmul %52, %53, %cst_55 {dimension_numbers = #tpu.dot_dimension_numbers<[1], [0], [0], [1], [0, 0, 1, 1], [], []>} : vector<16x8xf32>, vector<8x32xf32>, vector<16x32xf32> -> vector<16x32xf32>
    %55 = vector.extract_strided_slice %33 {offsets = [0, 8], sizes = [16, 8], strides = [1, 1]} : vector<16x32xf32> to vector<16x8xf32>
    %56 = vector.extract_strided_slice %34 {offsets = [0, 8], sizes = [16, 8], strides = [1, 1]} : vector<16x32xf32> to vector<16x8xf32>
    %cst_56 = arith.constant dense<0.000000e+00> : vector<16x16xf32>
    %57 = tpu.matmul %55, %56, %cst_56 {dimension_numbers = #tpu.dot_dimension_numbers<[1], [1], [0], [0], [0, 0, 1, 0], [], []>} : vector<16x8xf32>, vector<16x8xf32>, vector<16x16xf32> -> vector<16x16xf32>
    %cst_57 = arith.constant 0.353553385 : f32
    %58 = vector.broadcast %cst_57 : f32 to vector<16x16xf32>
    %59 = arith.mulf %57, %58 : vector<16x16xf32>
    %cst_58 = arith.constant dense<0xFF800000> : vector<16xf32>
    %60 = vector.multi_reduction <maximumf>, %59, %cst_58 [1] : vector<16x16xf32> to vector<16xf32>
    %61 = vector.shape_cast %60 : vector<16xf32> to vector<16x1xf32>
    %62 = vector.broadcast %61 : vector<16x1xf32> to vector<16x16xf32>
    %63 = arith.subf %59, %62 : vector<16x16xf32>
    %64 = math.exp %63 : vector<16x16xf32>
    %cst_59 = arith.constant dense<0.000000e+00> : vector<16xf32>
    %65 = vector.multi_reduction <add>, %64, %cst_59 [1] : vector<16x16xf32> to vector<16xf32>
    %66 = vector.shape_cast %65 : vector<16xf32> to vector<16x1xf32>
    %67 = tpu.reciprocal %66 {approx = true} : vector<16x1xf32> -> vector<16x1xf32>
    %68 = vector.broadcast %67 : vector<16x1xf32> to vector<16x16xf32>
    %69 = arith.mulf %64, %68 : vector<16x16xf32>
    %70 = vector.extract_strided_slice %35 {offsets = [0, 8], sizes = [16, 8], strides = [1, 1]} : vector<16x32xf32> to vector<16x8xf32>
    %cst_60 = arith.constant dense<0.000000e+00> : vector<16x8xf32>
    %71 = tpu.matmul %69, %70, %cst_60 {dimension_numbers = #tpu.dot_dimension_numbers<[1], [0], [0], [1], [0, 0, 1, 1], [], []>} : vector<16x16xf32>, vector<16x8xf32>, vector<16x8xf32> -> vector<16x8xf32>
    %72 = vector.extract_strided_slice %20 {offsets = [8, 0], sizes = [8, 32], strides = [1, 1]} : vector<32x32xf32> to vector<8x32xf32>
    %cst_61 = arith.constant dense<0.000000e+00> : vector<16x32xf32>
    %73 = tpu.matmul %71, %72, %cst_61 {dimension_numbers = #tpu.dot_dimension_numbers<[1], [0], [0], [1], [0, 0, 1, 1], [], []>} : vector<16x8xf32>, vector<8x32xf32>, vector<16x32xf32> -> vector<16x32xf32>
    %74 = arith.addf %54, %73 : vector<16x32xf32>
    %75 = vector.extract_strided_slice %33 {offsets = [0, 16], sizes = [16, 8], strides = [1, 1]} : vector<16x32xf32> to vector<16x8xf32>
    %76 = vector.extract_strided_slice %34 {offsets = [0, 16], sizes = [16, 8], strides = [1, 1]} : vector<16x32xf32> to vector<16x8xf32>
    %cst_62 = arith.constant dense<0.000000e+00> : vector<16x16xf32>
    %77 = tpu.matmul %75, %76, %cst_62 {dimension_numbers = #tpu.dot_dimension_numbers<[1], [1], [0], [0], [0, 0, 1, 0], [], []>} : vector<16x8xf32>, vector<16x8xf32>, vector<16x16xf32> -> vector<16x16xf32>
    %cst_63 = arith.constant 0.353553385 : f32
    %78 = vector.broadcast %cst_63 : f32 to vector<16x16xf32>
    %79 = arith.mulf %77, %78 : vector<16x16xf32>
    %cst_64 = arith.constant dense<0xFF800000> : vector<16xf32>
    %80 = vector.multi_reduction <maximumf>, %79, %cst_64 [1] : vector<16x16xf32> to vector<16xf32>
    %81 = vector.shape_cast %80 : vector<16xf32> to vector<16x1xf32>
    %82 = vector.broadcast %81 : vector<16x1xf32> to vector<16x16xf32>
    %83 = arith.subf %79, %82 : vector<16x16xf32>
    %84 = math.exp %83 : vector<16x16xf32>
    %cst_65 = arith.constant dense<0.000000e+00> : vector<16xf32>
    %85 = vector.multi_reduction <add>, %84, %cst_65 [1] : vector<16x16xf32> to vector<16xf32>
    %86 = vector.shape_cast %85 : vector<16xf32> to vector<16x1xf32>
    %87 = tpu.reciprocal %86 {approx = true} : vector<16x1xf32> -> vector<16x1xf32>
    %88 = vector.broadcast %87 : vector<16x1xf32> to vector<16x16xf32>
    %89 = arith.mulf %84, %88 : vector<16x16xf32>
    %90 = vector.extract_strided_slice %35 {offsets = [0, 16], sizes = [16, 8], strides = [1, 1]} : vector<16x32xf32> to vector<16x8xf32>
    %cst_66 = arith.constant dense<0.000000e+00> : vector<16x8xf32>
    %91 = tpu.matmul %89, %90, %cst_66 {dimension_numbers = #tpu.dot_dimension_numbers<[1], [0], [0], [1], [0, 0, 1, 1], [], []>} : vector<16x16xf32>, vector<16x8xf32>, vector<16x8xf32> -> vector<16x8xf32>
    %92 = vector.extract_strided_slice %20 {offsets = [16, 0], sizes = [8, 32], strides = [1, 1]} : vector<32x32xf32> to vector<8x32xf32>
    %cst_67 = arith.constant dense<0.000000e+00> : vector<16x32xf32>
    %93 = tpu.matmul %91, %92, %cst_67 {dimension_numbers = #tpu.dot_dimension_numbers<[1], [0], [0], [1], [0, 0, 1, 1], [], []>} : vector<16x8xf32>, vector<8x32xf32>, vector<16x32xf32> -> vector<16x32xf32>
    %94 = arith.addf %74, %93 : vector<16x32xf32>
    %95 = vector.extract_strided_slice %33 {offsets = [0, 24], sizes = [16, 8], strides = [1, 1]} : vector<16x32xf32> to vector<16x8xf32>
    %96 = vector.extract_strided_slice %34 {offsets = [0, 24], sizes = [16, 8], strides = [1, 1]} : vector<16x32xf32> to vector<16x8xf32>
    %cst_68 = arith.constant dense<0.000000e+00> : vector<16x16xf32>
    %97 = tpu.matmul %95, %96, %cst_68 {dimension_numbers = #tpu.dot_dimension_numbers<[1], [1], [0], [0], [0, 0, 1, 0], [], []>} : vector<16x8xf32>, vector<16x8xf32>, vector<16x16xf32> -> vector<16x16xf32>
    %cst_69 = arith.constant 0.353553385 : f32
    %98 = vector.broadcast %cst_69 : f32 to vector<16x16xf32>
    %99 = arith.mulf %97, %98 : vector<16x16xf32>
    %cst_70 = arith.constant dense<0xFF800000> : vector<16xf32>
    %100 = vector.multi_reduction <maximumf>, %99, %cst_70 [1] : vector<16x16xf32> to vector<16xf32>
    %101 = vector.shape_cast %100 : vector<16xf32> to vector<16x1xf32>
    %102 = vector.broadcast %101 : vector<16x1xf32> to vector<16x16xf32>
    %103 = arith.subf %99, %102 : vector<16x16xf32>
    %104 = math.exp %103 : vector<16x16xf32>
    %cst_71 = arith.constant dense<0.000000e+00> : vector<16xf32>
    %105 = vector.multi_reduction <add>, %104, %cst_71 [1] : vector<16x16xf32> to vector<16xf32>
    %106 = vector.shape_cast %105 : vector<16xf32> to vector<16x1xf32>
    %107 = tpu.reciprocal %106 {approx = true} : vector<16x1xf32> -> vector<16x1xf32>
    %108 = vector.broadcast %107 : vector<16x1xf32> to vector<16x16xf32>
    %109 = arith.mulf %104, %108 : vector<16x16xf32>
    %110 = vector.extract_strided_slice %35 {offsets = [0, 24], sizes = [16, 8], strides = [1, 1]} : vector<16x32xf32> to vector<16x8xf32>
    %cst_72 = arith.constant dense<0.000000e+00> : vector<16x8xf32>
    %111 = tpu.matmul %109, %110, %cst_72 {dimension_numbers = #tpu.dot_dimension_numbers<[1], [0], [0], [1], [0, 0, 1, 1], [], []>} : vector<16x16xf32>, vector<16x8xf32>, vector<16x8xf32> -> vector<16x8xf32>
    %112 = vector.extract_strided_slice %20 {offsets = [24, 0], sizes = [8, 32], strides = [1, 1]} : vector<32x32xf32> to vector<8x32xf32>
    %cst_73 = arith.constant dense<0.000000e+00> : vector<16x32xf32>
    %113 = tpu.matmul %111, %112, %cst_73 {dimension_numbers = #tpu.dot_dimension_numbers<[1], [0], [0], [1], [0, 0, 1, 1], [], []>} : vector<16x8xf32>, vector<8x32xf32>, vector<16x32xf32> -> vector<16x32xf32>
    %114 = arith.addf %94, %113 : vector<16x32xf32>
    %115 = vector.broadcast %21 : vector<1x32xf32> to vector<16x32xf32>
    %116 = arith.addf %114, %115 : vector<16x32xf32>
    %117 = arith.addf %17, %116 : vector<16x32xf32>
    %cst_74 = arith.constant dense<0.000000e+00> : vector<16xf32>
    %118 = vector.multi_reduction <add>, %117, %cst_74 [1] : vector<16x32xf32> to vector<16xf32>
    %119 = vector.shape_cast %118 : vector<16xf32> to vector<16x1xf32>
    %cst_75 = arith.constant 3.200000e+01 : f32
    %120 = vector.broadcast %cst_75 : f32 to vector<16x1xf32>
    %121 = arith.divf %119, %120 : vector<16x1xf32>
    %122 = vector.broadcast %121 : vector<16x1xf32> to vector<16x32xf32>
    %123 = arith.subf %117, %122 : vector<16x32xf32>
    %124 = arith.mulf %123, %123 : vector<16x32xf32>
    %cst_76 = arith.constant dense<0.000000e+00> : vector<16xf32>
    %125 = vector.multi_reduction <add>, %124, %cst_76 [1] : vector<16x32xf32> to vector<16xf32>
    %126 = vector.shape_cast %125 : vector<16xf32> to vector<16x1xf32>
    %cst_77 = arith.constant 3.200000e+01 : f32
    %127 = vector.broadcast %cst_77 : f32 to vector<16x1xf32>
    %128 = arith.divf %126, %127 : vector<16x1xf32>
    %cst_78 = arith.constant 9.99999974E-6 : f32
    %129 = vector.broadcast %cst_78 : f32 to vector<16x1xf32>
    %130 = arith.addf %128, %129 : vector<16x1xf32>
    %131 = math.rsqrt %130 : vector<16x1xf32>
    %132 = vector.broadcast %131 : vector<16x1xf32> to vector<16x32xf32>
    %133 = arith.mulf %123, %132 : vector<16x32xf32>
    %134 = vector.broadcast %26 : vector<1x32xf32> to vector<16x32xf32>
    %135 = arith.mulf %133, %134 : vector<16x32xf32>
    %136 = vector.broadcast %27 : vector<1x32xf32> to vector<16x32xf32>
    %137 = arith.addf %135, %136 : vector<16x32xf32>
    %cst_79 = arith.constant dense<0.000000e+00> : vector<16x64xf32>
    %138 = tpu.matmul %137, %22, %cst_79 {dimension_numbers = #tpu.dot_dimension_numbers<[1], [0], [0], [1], [0, 0, 1, 1], [], []>} : vector<16x32xf32>, vector<32x64xf32>, vector<16x64xf32> -> vector<16x64xf32>
    %139 = vector.broadcast %23 : vector<1x64xf32> to vector<16x64xf32>
    %140 = arith.addf %138, %139 : vector<16x64xf32>
    %cst_80 = arith.constant 0.000000e+00 : f32
    %141 = vector.broadcast %cst_80 : f32 to vector<16x64xf32>
    %142 = arith.maximumf %140, %141 : vector<16x64xf32>
    %cst_81 = arith.constant dense<0.000000e+00> : vector<16x32xf32>
    %143 = tpu.matmul %142, %24, %cst_81 {dimension_numbers = #tpu.dot_dimension_numbers<[1], [0], [0], [1], [0, 0, 1, 1], [], []>} : vector<16x64xf32>, vector<64x32xf32>, vector<16x32xf32> -> vector<16x32xf32>
    %144 = vector.broadcast %25 : vector<1x32xf32> to vector<16x32xf32>
    %145 = arith.addf %143, %144 : vector<16x32xf32>
    %146 = arith.addf %137, %145 : vector<16x32xf32>
    %cst_82 = arith.constant dense<0.000000e+00> : vector<16xf32>
    %147 = vector.multi_reduction <add>, %146, %cst_82 [1] : vector<16x32xf32> to vector<16xf32>
    %148 = vector.shape_cast %147 : vector<16xf32> to vector<16x1xf32>
    %cst_83 = arith.constant 3.200000e+01 : f32
    %149 = vector.broadcast %cst_83 : f32 to vector<16x1xf32>
    %150 = arith.divf %148, %149 : vector<16x1xf32>
    %151 = vector.broadcast %150 : vector<16x1xf32> to vector<16x32xf32>
    %152 = arith.subf %146, %151 : vector<16x32xf32>
    %153 = arith.mulf %152, %152 : vector<16x32xf32>
    %cst_84 = arith.constant dense<0.000000e+00> : vector<16xf32>
    %154 = vector.multi_reduction <add>, %153, %cst_84 [1] : vector<16x32xf32> to vector<16xf32>
    %155 = vector.shape_cast %154 : vector<16xf32> to vector<16x1xf32>
    %cst_85 = arith.constant 3.200000e+01 : f32
    %156 = vector.broadcast %cst_85 : f32 to vector<16x1xf32>
    %157 = arith.divf %155, %156 : vector<16x1xf32>
    %cst_86 = arith.constant 9.99999974E-6 : f32
    %158 = vector.broadcast %cst_86 : f32 to vector<16x1xf32>
    %159 = arith.addf %157, %158 : vector<16x1xf32>
    %160 = math.rsqrt %159 : vector<16x1xf32>
    %161 = vector.broadcast %160 : vector<16x1xf32> to vector<16x32xf32>
    %162 = arith.mulf %152, %161 : vector<16x32xf32>
    %163 = vector.broadcast %28 : vector<1x32xf32> to vector<16x32xf32>
    %164 = arith.mulf %162, %163 : vector<16x32xf32>
    %165 = vector.broadcast %29 : vector<1x32xf32> to vector<16x32xf32>
    %166 = arith.addf %164, %165 : vector<16x32xf32>
    %c0_87 = arith.constant 0 : index
    %c0_88 = arith.constant 0 : index
    %167 = vector.load %arg25[%c0_87, %c0_88] : memref<32x96xf32, #tpu.memory_space<vmem>>, vector<32x96xf32>
    %c0_89 = arith.constant 0 : index
    %c0_90 = arith.constant 0 : index
    %168 = vector.load %arg26[%c0_89, %c0_90] : memref<1x96xf32, #tpu.memory_space<vmem>>, vector<1x96xf32>
    %c0_91 = arith.constant 0 : index
    %c0_92 = arith.constant 0 : index
    %169 = vector.load %arg27[%c0_91, %c0_92] : memref<32x32xf32, #tpu.memory_space<vmem>>, vector<32x32xf32>
    %c0_93 = arith.constant 0 : index
    %c0_94 = arith.constant 0 : index
    %170 = vector.load %arg28[%c0_93, %c0_94] : memref<1x32xf32, #tpu.memory_space<vmem>>, vector<1x32xf32>
    %c0_95 = arith.constant 0 : index
    %c0_96 = arith.constant 0 : index
    %171 = vector.load %arg29[%c0_95, %c0_96] : memref<32x64xf32, #tpu.memory_space<vmem>>, vector<32x64xf32>
    %c0_97 = arith.constant 0 : index
    %c0_98 = arith.constant 0 : index
    %172 = vector.load %arg30[%c0_97, %c0_98] : memref<1x64xf32, #tpu.memory_space<vmem>>, vector<1x64xf32>
    %c0_99 = arith.constant 0 : index
    %c0_100 = arith.constant 0 : index
    %173 = vector.load %arg31[%c0_99, %c0_100] : memref<64x32xf32, #tpu.memory_space<vmem>>, vector<64x32xf32>
    %c0_101 = arith.constant 0 : index
    %c0_102 = arith.constant 0 : index
    %174 = vector.load %arg32[%c0_101, %c0_102] : memref<1x32xf32, #tpu.memory_space<vmem>>, vector<1x32xf32>
    %c0_103 = arith.constant 0 : index
    %c0_104 = arith.constant 0 : index
    %175 = vector.load %arg33[%c0_103, %c0_104] : memref<1x32xf32, #tpu.memory_space<vmem>>, vector<1x32xf32>
    %c0_105 = arith.constant 0 : index
    %c0_106 = arith.constant 0 : index
    %176 = vector.load %arg34[%c0_105, %c0_106] : memref<1x32xf32, #tpu.memory_space<vmem>>, vector<1x32xf32>
    %c0_107 = arith.constant 0 : index
    %c0_108 = arith.constant 0 : index
    %177 = vector.load %arg35[%c0_107, %c0_108] : memref<1x32xf32, #tpu.memory_space<vmem>>, vector<1x32xf32>
    %c0_109 = arith.constant 0 : index
    %c0_110 = arith.constant 0 : index
    %178 = vector.load %arg36[%c0_109, %c0_110] : memref<1x32xf32, #tpu.memory_space<vmem>>, vector<1x32xf32>
    %cst_111 = arith.constant dense<0.000000e+00> : vector<16x96xf32>
    %179 = tpu.matmul %166, %167, %cst_111 {dimension_numbers = #tpu.dot_dimension_numbers<[1], [0], [0], [1], [0, 0, 1, 1], [], []>} : vector<16x32xf32>, vector<32x96xf32>, vector<16x96xf32> -> vector<16x96xf32>
    %180 = vector.broadcast %168 : vector<1x96xf32> to vector<16x96xf32>
    %181 = arith.addf %179, %180 : vector<16x96xf32>
    %182 = vector.extract_strided_slice %181 {offsets = [0, 0], sizes = [16, 32], strides = [1, 1]} : vector<16x96xf32> to vector<16x32xf32>
    %183 = vector.extract_strided_slice %181 {offsets = [0, 32], sizes = [16, 32], strides = [1, 1]} : vector<16x96xf32> to vector<16x32xf32>
    %184 = vector.extract_strided_slice %181 {offsets = [0, 64], sizes = [16, 32], strides = [1, 1]} : vector<16x96xf32> to vector<16x32xf32>
    %185 = vector.extract_strided_slice %182 {offsets = [0, 0], sizes = [16, 8], strides = [1, 1]} : vector<16x32xf32> to vector<16x8xf32>
    %186 = vector.extract_strided_slice %183 {offsets = [0, 0], sizes = [16, 8], strides = [1, 1]} : vector<16x32xf32> to vector<16x8xf32>
    %cst_112 = arith.constant dense<0.000000e+00> : vector<16x16xf32>
    %187 = tpu.matmul %185, %186, %cst_112 {dimension_numbers = #tpu.dot_dimension_numbers<[1], [1], [0], [0], [0, 0, 1, 0], [], []>} : vector<16x8xf32>, vector<16x8xf32>, vector<16x16xf32> -> vector<16x16xf32>
    %cst_113 = arith.constant 0.353553385 : f32
    %188 = vector.broadcast %cst_113 : f32 to vector<16x16xf32>
    %189 = arith.mulf %187, %188 : vector<16x16xf32>
    %cst_114 = arith.constant dense<0xFF800000> : vector<16xf32>
    %190 = vector.multi_reduction <maximumf>, %189, %cst_114 [1] : vector<16x16xf32> to vector<16xf32>
    %191 = vector.shape_cast %190 : vector<16xf32> to vector<16x1xf32>
    %192 = vector.broadcast %191 : vector<16x1xf32> to vector<16x16xf32>
    %193 = arith.subf %189, %192 : vector<16x16xf32>
    %194 = math.exp %193 : vector<16x16xf32>
    %cst_115 = arith.constant dense<0.000000e+00> : vector<16xf32>
    %195 = vector.multi_reduction <add>, %194, %cst_115 [1] : vector<16x16xf32> to vector<16xf32>
    %196 = vector.shape_cast %195 : vector<16xf32> to vector<16x1xf32>
    %197 = tpu.reciprocal %196 {approx = true} : vector<16x1xf32> -> vector<16x1xf32>
    %198 = vector.broadcast %197 : vector<16x1xf32> to vector<16x16xf32>
    %199 = arith.mulf %194, %198 : vector<16x16xf32>
    %200 = vector.extract_strided_slice %184 {offsets = [0, 0], sizes = [16, 8], strides = [1, 1]} : vector<16x32xf32> to vector<16x8xf32>
    %cst_116 = arith.constant dense<0.000000e+00> : vector<16x8xf32>
    %201 = tpu.matmul %199, %200, %cst_116 {dimension_numbers = #tpu.dot_dimension_numbers<[1], [0], [0], [1], [0, 0, 1, 1], [], []>} : vector<16x16xf32>, vector<16x8xf32>, vector<16x8xf32> -> vector<16x8xf32>
    %202 = vector.extract_strided_slice %169 {offsets = [0, 0], sizes = [8, 32], strides = [1, 1]} : vector<32x32xf32> to vector<8x32xf32>
    %cst_117 = arith.constant dense<0.000000e+00> : vector<16x32xf32>
    %203 = tpu.matmul %201, %202, %cst_117 {dimension_numbers = #tpu.dot_dimension_numbers<[1], [0], [0], [1], [0, 0, 1, 1], [], []>} : vector<16x8xf32>, vector<8x32xf32>, vector<16x32xf32> -> vector<16x32xf32>
    %204 = vector.extract_strided_slice %182 {offsets = [0, 8], sizes = [16, 8], strides = [1, 1]} : vector<16x32xf32> to vector<16x8xf32>
    %205 = vector.extract_strided_slice %183 {offsets = [0, 8], sizes = [16, 8], strides = [1, 1]} : vector<16x32xf32> to vector<16x8xf32>
    %cst_118 = arith.constant dense<0.000000e+00> : vector<16x16xf32>
    %206 = tpu.matmul %204, %205, %cst_118 {dimension_numbers = #tpu.dot_dimension_numbers<[1], [1], [0], [0], [0, 0, 1, 0], [], []>} : vector<16x8xf32>, vector<16x8xf32>, vector<16x16xf32> -> vector<16x16xf32>
    %cst_119 = arith.constant 0.353553385 : f32
    %207 = vector.broadcast %cst_119 : f32 to vector<16x16xf32>
    %208 = arith.mulf %206, %207 : vector<16x16xf32>
    %cst_120 = arith.constant dense<0xFF800000> : vector<16xf32>
    %209 = vector.multi_reduction <maximumf>, %208, %cst_120 [1] : vector<16x16xf32> to vector<16xf32>
    %210 = vector.shape_cast %209 : vector<16xf32> to vector<16x1xf32>
    %211 = vector.broadcast %210 : vector<16x1xf32> to vector<16x16xf32>
    %212 = arith.subf %208, %211 : vector<16x16xf32>
    %213 = math.exp %212 : vector<16x16xf32>
    %cst_121 = arith.constant dense<0.000000e+00> : vector<16xf32>
    %214 = vector.multi_reduction <add>, %213, %cst_121 [1] : vector<16x16xf32> to vector<16xf32>
    %215 = vector.shape_cast %214 : vector<16xf32> to vector<16x1xf32>
    %216 = tpu.reciprocal %215 {approx = true} : vector<16x1xf32> -> vector<16x1xf32>
    %217 = vector.broadcast %216 : vector<16x1xf32> to vector<16x16xf32>
    %218 = arith.mulf %213, %217 : vector<16x16xf32>
    %219 = vector.extract_strided_slice %184 {offsets = [0, 8], sizes = [16, 8], strides = [1, 1]} : vector<16x32xf32> to vector<16x8xf32>
    %cst_122 = arith.constant dense<0.000000e+00> : vector<16x8xf32>
    %220 = tpu.matmul %218, %219, %cst_122 {dimension_numbers = #tpu.dot_dimension_numbers<[1], [0], [0], [1], [0, 0, 1, 1], [], []>} : vector<16x16xf32>, vector<16x8xf32>, vector<16x8xf32> -> vector<16x8xf32>
    %221 = vector.extract_strided_slice %169 {offsets = [8, 0], sizes = [8, 32], strides = [1, 1]} : vector<32x32xf32> to vector<8x32xf32>
    %cst_123 = arith.constant dense<0.000000e+00> : vector<16x32xf32>
    %222 = tpu.matmul %220, %221, %cst_123 {dimension_numbers = #tpu.dot_dimension_numbers<[1], [0], [0], [1], [0, 0, 1, 1], [], []>} : vector<16x8xf32>, vector<8x32xf32>, vector<16x32xf32> -> vector<16x32xf32>
    %223 = arith.addf %203, %222 : vector<16x32xf32>
    %224 = vector.extract_strided_slice %182 {offsets = [0, 16], sizes = [16, 8], strides = [1, 1]} : vector<16x32xf32> to vector<16x8xf32>
    %225 = vector.extract_strided_slice %183 {offsets = [0, 16], sizes = [16, 8], strides = [1, 1]} : vector<16x32xf32> to vector<16x8xf32>
    %cst_124 = arith.constant dense<0.000000e+00> : vector<16x16xf32>
    %226 = tpu.matmul %224, %225, %cst_124 {dimension_numbers = #tpu.dot_dimension_numbers<[1], [1], [0], [0], [0, 0, 1, 0], [], []>} : vector<16x8xf32>, vector<16x8xf32>, vector<16x16xf32> -> vector<16x16xf32>
    %cst_125 = arith.constant 0.353553385 : f32
    %227 = vector.broadcast %cst_125 : f32 to vector<16x16xf32>
    %228 = arith.mulf %226, %227 : vector<16x16xf32>
    %cst_126 = arith.constant dense<0xFF800000> : vector<16xf32>
    %229 = vector.multi_reduction <maximumf>, %228, %cst_126 [1] : vector<16x16xf32> to vector<16xf32>
    %230 = vector.shape_cast %229 : vector<16xf32> to vector<16x1xf32>
    %231 = vector.broadcast %230 : vector<16x1xf32> to vector<16x16xf32>
    %232 = arith.subf %228, %231 : vector<16x16xf32>
    %233 = math.exp %232 : vector<16x16xf32>
    %cst_127 = arith.constant dense<0.000000e+00> : vector<16xf32>
    %234 = vector.multi_reduction <add>, %233, %cst_127 [1] : vector<16x16xf32> to vector<16xf32>
    %235 = vector.shape_cast %234 : vector<16xf32> to vector<16x1xf32>
    %236 = tpu.reciprocal %235 {approx = true} : vector<16x1xf32> -> vector<16x1xf32>
    %237 = vector.broadcast %236 : vector<16x1xf32> to vector<16x16xf32>
    %238 = arith.mulf %233, %237 : vector<16x16xf32>
    %239 = vector.extract_strided_slice %184 {offsets = [0, 16], sizes = [16, 8], strides = [1, 1]} : vector<16x32xf32> to vector<16x8xf32>
    %cst_128 = arith.constant dense<0.000000e+00> : vector<16x8xf32>
    %240 = tpu.matmul %238, %239, %cst_128 {dimension_numbers = #tpu.dot_dimension_numbers<[1], [0], [0], [1], [0, 0, 1, 1], [], []>} : vector<16x16xf32>, vector<16x8xf32>, vector<16x8xf32> -> vector<16x8xf32>
    %241 = vector.extract_strided_slice %169 {offsets = [16, 0], sizes = [8, 32], strides = [1, 1]} : vector<32x32xf32> to vector<8x32xf32>
    %cst_129 = arith.constant dense<0.000000e+00> : vector<16x32xf32>
    %242 = tpu.matmul %240, %241, %cst_129 {dimension_numbers = #tpu.dot_dimension_numbers<[1], [0], [0], [1], [0, 0, 1, 1], [], []>} : vector<16x8xf32>, vector<8x32xf32>, vector<16x32xf32> -> vector<16x32xf32>
    %243 = arith.addf %223, %242 : vector<16x32xf32>
    %244 = vector.extract_strided_slice %182 {offsets = [0, 24], sizes = [16, 8], strides = [1, 1]} : vector<16x32xf32> to vector<16x8xf32>
    %245 = vector.extract_strided_slice %183 {offsets = [0, 24], sizes = [16, 8], strides = [1, 1]} : vector<16x32xf32> to vector<16x8xf32>
    %cst_130 = arith.constant dense<0.000000e+00> : vector<16x16xf32>
    %246 = tpu.matmul %244, %245, %cst_130 {dimension_numbers = #tpu.dot_dimension_numbers<[1], [1], [0], [0], [0, 0, 1, 0], [], []>} : vector<16x8xf32>, vector<16x8xf32>, vector<16x16xf32> -> vector<16x16xf32>
    %cst_131 = arith.constant 0.353553385 : f32
    %247 = vector.broadcast %cst_131 : f32 to vector<16x16xf32>
    %248 = arith.mulf %246, %247 : vector<16x16xf32>
    %cst_132 = arith.constant dense<0xFF800000> : vector<16xf32>
    %249 = vector.multi_reduction <maximumf>, %248, %cst_132 [1] : vector<16x16xf32> to vector<16xf32>
    %250 = vector.shape_cast %249 : vector<16xf32> to vector<16x1xf32>
    %251 = vector.broadcast %250 : vector<16x1xf32> to vector<16x16xf32>
    %252 = arith.subf %248, %251 : vector<16x16xf32>
    %253 = math.exp %252 : vector<16x16xf32>
    %cst_133 = arith.constant dense<0.000000e+00> : vector<16xf32>
    %254 = vector.multi_reduction <add>, %253, %cst_133 [1] : vector<16x16xf32> to vector<16xf32>
    %255 = vector.shape_cast %254 : vector<16xf32> to vector<16x1xf32>
    %256 = tpu.reciprocal %255 {approx = true} : vector<16x1xf32> -> vector<16x1xf32>
    %257 = vector.broadcast %256 : vector<16x1xf32> to vector<16x16xf32>
    %258 = arith.mulf %253, %257 : vector<16x16xf32>
    %259 = vector.extract_strided_slice %184 {offsets = [0, 24], sizes = [16, 8], strides = [1, 1]} : vector<16x32xf32> to vector<16x8xf32>
    %cst_134 = arith.constant dense<0.000000e+00> : vector<16x8xf32>
    %260 = tpu.matmul %258, %259, %cst_134 {dimension_numbers = #tpu.dot_dimension_numbers<[1], [0], [0], [1], [0, 0, 1, 1], [], []>} : vector<16x16xf32>, vector<16x8xf32>, vector<16x8xf32> -> vector<16x8xf32>
    %261 = vector.extract_strided_slice %169 {offsets = [24, 0], sizes = [8, 32], strides = [1, 1]} : vector<32x32xf32> to vector<8x32xf32>
    %cst_135 = arith.constant dense<0.000000e+00> : vector<16x32xf32>
    %262 = tpu.matmul %260, %261, %cst_135 {dimension_numbers = #tpu.dot_dimension_numbers<[1], [0], [0], [1], [0, 0, 1, 1], [], []>} : vector<16x8xf32>, vector<8x32xf32>, vector<16x32xf32> -> vector<16x32xf32>
    %263 = arith.addf %243, %262 : vector<16x32xf32>
    %264 = vector.broadcast %170 : vector<1x32xf32> to vector<16x32xf32>
    %265 = arith.addf %263, %264 : vector<16x32xf32>
    %266 = arith.addf %166, %265 : vector<16x32xf32>
    %cst_136 = arith.constant dense<0.000000e+00> : vector<16xf32>
    %267 = vector.multi_reduction <add>, %266, %cst_136 [1] : vector<16x32xf32> to vector<16xf32>
    %268 = vector.shape_cast %267 : vector<16xf32> to vector<16x1xf32>
    %cst_137 = arith.constant 3.200000e+01 : f32
    %269 = vector.broadcast %cst_137 : f32 to vector<16x1xf32>
    %270 = arith.divf %268, %269 : vector<16x1xf32>
    %271 = vector.broadcast %270 : vector<16x1xf32> to vector<16x32xf32>
    %272 = arith.subf %266, %271 : vector<16x32xf32>
    %273 = arith.mulf %272, %272 : vector<16x32xf32>
    %cst_138 = arith.constant dense<0.000000e+00> : vector<16xf32>
    %274 = vector.multi_reduction <add>, %273, %cst_138 [1] : vector<16x32xf32> to vector<16xf32>
    %275 = vector.shape_cast %274 : vector<16xf32> to vector<16x1xf32>
    %cst_139 = arith.constant 3.200000e+01 : f32
    %276 = vector.broadcast %cst_139 : f32 to vector<16x1xf32>
    %277 = arith.divf %275, %276 : vector<16x1xf32>
    %cst_140 = arith.constant 9.99999974E-6 : f32
    %278 = vector.broadcast %cst_140 : f32 to vector<16x1xf32>
    %279 = arith.addf %277, %278 : vector<16x1xf32>
    %280 = math.rsqrt %279 : vector<16x1xf32>
    %281 = vector.broadcast %280 : vector<16x1xf32> to vector<16x32xf32>
    %282 = arith.mulf %272, %281 : vector<16x32xf32>
    %283 = vector.broadcast %175 : vector<1x32xf32> to vector<16x32xf32>
    %284 = arith.mulf %282, %283 : vector<16x32xf32>
    %285 = vector.broadcast %176 : vector<1x32xf32> to vector<16x32xf32>
    %286 = arith.addf %284, %285 : vector<16x32xf32>
    %cst_141 = arith.constant dense<0.000000e+00> : vector<16x64xf32>
    %287 = tpu.matmul %286, %171, %cst_141 {dimension_numbers = #tpu.dot_dimension_numbers<[1], [0], [0], [1], [0, 0, 1, 1], [], []>} : vector<16x32xf32>, vector<32x64xf32>, vector<16x64xf32> -> vector<16x64xf32>
    %288 = vector.broadcast %172 : vector<1x64xf32> to vector<16x64xf32>
    %289 = arith.addf %287, %288 : vector<16x64xf32>
    %cst_142 = arith.constant 0.000000e+00 : f32
    %290 = vector.broadcast %cst_142 : f32 to vector<16x64xf32>
    %291 = arith.maximumf %289, %290 : vector<16x64xf32>
    %cst_143 = arith.constant dense<0.000000e+00> : vector<16x32xf32>
    %292 = tpu.matmul %291, %173, %cst_143 {dimension_numbers = #tpu.dot_dimension_numbers<[1], [0], [0], [1], [0, 0, 1, 1], [], []>} : vector<16x64xf32>, vector<64x32xf32>, vector<16x32xf32> -> vector<16x32xf32>
    %293 = vector.broadcast %174 : vector<1x32xf32> to vector<16x32xf32>
    %294 = arith.addf %292, %293 : vector<16x32xf32>
    %295 = arith.addf %286, %294 : vector<16x32xf32>
    %cst_144 = arith.constant dense<0.000000e+00> : vector<16xf32>
    %296 = vector.multi_reduction <add>, %295, %cst_144 [1] : vector<16x32xf32> to vector<16xf32>
    %297 = vector.shape_cast %296 : vector<16xf32> to vector<16x1xf32>
    %cst_145 = arith.constant 3.200000e+01 : f32
    %298 = vector.broadcast %cst_145 : f32 to vector<16x1xf32>
    %299 = arith.divf %297, %298 : vector<16x1xf32>
    %300 = vector.broadcast %299 : vector<16x1xf32> to vector<16x32xf32>
    %301 = arith.subf %295, %300 : vector<16x32xf32>
    %302 = arith.mulf %301, %301 : vector<16x32xf32>
    %cst_146 = arith.constant dense<0.000000e+00> : vector<16xf32>
    %303 = vector.multi_reduction <add>, %302, %cst_146 [1] : vector<16x32xf32> to vector<16xf32>
    %304 = vector.shape_cast %303 : vector<16xf32> to vector<16x1xf32>
    %cst_147 = arith.constant 3.200000e+01 : f32
    %305 = vector.broadcast %cst_147 : f32 to vector<16x1xf32>
    %306 = arith.divf %304, %305 : vector<16x1xf32>
    %cst_148 = arith.constant 9.99999974E-6 : f32
    %307 = vector.broadcast %cst_148 : f32 to vector<16x1xf32>
    %308 = arith.addf %306, %307 : vector<16x1xf32>
    %309 = math.rsqrt %308 : vector<16x1xf32>
    %310 = vector.broadcast %309 : vector<16x1xf32> to vector<16x32xf32>
    %311 = arith.mulf %301, %310 : vector<16x32xf32>
    %312 = vector.broadcast %177 : vector<1x32xf32> to vector<16x32xf32>
    %313 = arith.mulf %311, %312 : vector<16x32xf32>
    %314 = vector.broadcast %178 : vector<1x32xf32> to vector<16x32xf32>
    %315 = arith.addf %313, %314 : vector<16x32xf32>
    %cst_149 = arith.constant dense<0.000000e+00> : vector<8x32xf32>
    %316 = tpu.matmul %3, %10, %cst_149 {dimension_numbers = #tpu.dot_dimension_numbers<[1], [0], [0], [1], [0, 0, 1, 1], [], []>} : vector<8x4xf32>, vector<4x32xf32>, vector<8x32xf32> -> vector<8x32xf32>
    %317 = vector.broadcast %11 : vector<1x32xf32> to vector<8x32xf32>
    %318 = arith.addf %316, %317 : vector<8x32xf32>
    %319 = arith.addf %318, %5 : vector<8x32xf32>
    %c0_150 = arith.constant 0 : index
    %c0_151 = arith.constant 0 : index
    %320 = vector.load %arg37[%c0_150, %c0_151] : memref<32x96xf32, #tpu.memory_space<vmem>>, vector<32x96xf32>
    %c0_152 = arith.constant 0 : index
    %c0_153 = arith.constant 0 : index
    %321 = vector.load %arg38[%c0_152, %c0_153] : memref<1x96xf32, #tpu.memory_space<vmem>>, vector<1x96xf32>
    %c0_154 = arith.constant 0 : index
    %c0_155 = arith.constant 0 : index
    %322 = vector.load %arg39[%c0_154, %c0_155] : memref<32x32xf32, #tpu.memory_space<vmem>>, vector<32x32xf32>
    %c0_156 = arith.constant 0 : index
    %c0_157 = arith.constant 0 : index
    %323 = vector.load %arg40[%c0_156, %c0_157] : memref<1x32xf32, #tpu.memory_space<vmem>>, vector<1x32xf32>
    %c0_158 = arith.constant 0 : index
    %c0_159 = arith.constant 0 : index
    %324 = vector.load %arg41[%c0_158, %c0_159] : memref<32x32xf32, #tpu.memory_space<vmem>>, vector<32x32xf32>
    %c0_160 = arith.constant 0 : index
    %c0_161 = arith.constant 0 : index
    %325 = vector.load %arg42[%c0_160, %c0_161] : memref<1x32xf32, #tpu.memory_space<vmem>>, vector<1x32xf32>
    %c0_162 = arith.constant 0 : index
    %c0_163 = arith.constant 0 : index
    %326 = vector.load %arg43[%c0_162, %c0_163] : memref<32x64xf32, #tpu.memory_space<vmem>>, vector<32x64xf32>
    %c0_164 = arith.constant 0 : index
    %c0_165 = arith.constant 0 : index
    %327 = vector.load %arg44[%c0_164, %c0_165] : memref<1x64xf32, #tpu.memory_space<vmem>>, vector<1x64xf32>
    %c0_166 = arith.constant 0 : index
    %c0_167 = arith.constant 0 : index
    %328 = vector.load %arg45[%c0_166, %c0_167] : memref<32x32xf32, #tpu.memory_space<vmem>>, vector<32x32xf32>
    %c0_168 = arith.constant 0 : index
    %c0_169 = arith.constant 0 : index
    %329 = vector.load %arg46[%c0_168, %c0_169] : memref<1x32xf32, #tpu.memory_space<vmem>>, vector<1x32xf32>
    %c0_170 = arith.constant 0 : index
    %c0_171 = arith.constant 0 : index
    %330 = vector.load %arg47[%c0_170, %c0_171] : memref<32x64xf32, #tpu.memory_space<vmem>>, vector<32x64xf32>
    %c0_172 = arith.constant 0 : index
    %c0_173 = arith.constant 0 : index
    %331 = vector.load %arg48[%c0_172, %c0_173] : memref<1x64xf32, #tpu.memory_space<vmem>>, vector<1x64xf32>
    %c0_174 = arith.constant 0 : index
    %c0_175 = arith.constant 0 : index
    %332 = vector.load %arg49[%c0_174, %c0_175] : memref<64x32xf32, #tpu.memory_space<vmem>>, vector<64x32xf32>
    %c0_176 = arith.constant 0 : index
    %c0_177 = arith.constant 0 : index
    %333 = vector.load %arg50[%c0_176, %c0_177] : memref<1x32xf32, #tpu.memory_space<vmem>>, vector<1x32xf32>
    %c0_178 = arith.constant 0 : index
    %c0_179 = arith.constant 0 : index
    %334 = vector.load %arg51[%c0_178, %c0_179] : memref<1x32xf32, #tpu.memory_space<vmem>>, vector<1x32xf32>
    %c0_180 = arith.constant 0 : index
    %c0_181 = arith.constant 0 : index
    %335 = vector.load %arg52[%c0_180, %c0_181] : memref<1x32xf32, #tpu.memory_space<vmem>>, vector<1x32xf32>
    %c0_182 = arith.constant 0 : index
    %c0_183 = arith.constant 0 : index
    %336 = vector.load %arg53[%c0_182, %c0_183] : memref<1x32xf32, #tpu.memory_space<vmem>>, vector<1x32xf32>
    %c0_184 = arith.constant 0 : index
    %c0_185 = arith.constant 0 : index
    %337 = vector.load %arg54[%c0_184, %c0_185] : memref<1x32xf32, #tpu.memory_space<vmem>>, vector<1x32xf32>
    %c0_186 = arith.constant 0 : index
    %c0_187 = arith.constant 0 : index
    %338 = vector.load %arg55[%c0_186, %c0_187] : memref<1x32xf32, #tpu.memory_space<vmem>>, vector<1x32xf32>
    %c0_188 = arith.constant 0 : index
    %c0_189 = arith.constant 0 : index
    %339 = vector.load %arg56[%c0_188, %c0_189] : memref<1x32xf32, #tpu.memory_space<vmem>>, vector<1x32xf32>
    %cst_190 = arith.constant dense<0.000000e+00> : vector<8x96xf32>
    %340 = tpu.matmul %319, %320, %cst_190 {dimension_numbers = #tpu.dot_dimension_numbers<[1], [0], [0], [1], [0, 0, 1, 1], [], []>} : vector<8x32xf32>, vector<32x96xf32>, vector<8x96xf32> -> vector<8x96xf32>
    %341 = vector.broadcast %321 : vector<1x96xf32> to vector<8x96xf32>
    %342 = arith.addf %340, %341 : vector<8x96xf32>
    %343 = vector.extract_strided_slice %342 {offsets = [0, 0], sizes = [8, 32], strides = [1, 1]} : vector<8x96xf32> to vector<8x32xf32>
    %344 = vector.extract_strided_slice %342 {offsets = [0, 32], sizes = [8, 32], strides = [1, 1]} : vector<8x96xf32> to vector<8x32xf32>
    %345 = vector.extract_strided_slice %342 {offsets = [0, 64], sizes = [8, 32], strides = [1, 1]} : vector<8x96xf32> to vector<8x32xf32>
    %346 = vector.extract_strided_slice %343 {offsets = [0, 0], sizes = [8, 8], strides = [1, 1]} : vector<8x32xf32> to vector<8x8xf32>
    %347 = vector.extract_strided_slice %344 {offsets = [0, 0], sizes = [8, 8], strides = [1, 1]} : vector<8x32xf32> to vector<8x8xf32>
    %cst_191 = arith.constant dense<0.000000e+00> : vector<8x8xf32>
    %348 = tpu.matmul %346, %347, %cst_191 {dimension_numbers = #tpu.dot_dimension_numbers<[1], [1], [0], [0], [0, 0, 1, 0], [], []>} : vector<8x8xf32>, vector<8x8xf32>, vector<8x8xf32> -> vector<8x8xf32>
    %cst_192 = arith.constant 0.353553385 : f32
    %349 = vector.broadcast %cst_192 : f32 to vector<8x8xf32>
    %350 = arith.mulf %348, %349 : vector<8x8xf32>
    %351 = arith.addf %350, %6 : vector<8x8xf32>
    %cst_193 = arith.constant dense<0xFF800000> : vector<8xf32>
    %352 = vector.multi_reduction <maximumf>, %351, %cst_193 [1] : vector<8x8xf32> to vector<8xf32>
    %353 = vector.shape_cast %352 : vector<8xf32> to vector<8x1xf32>
    %354 = vector.broadcast %353 : vector<8x1xf32> to vector<8x8xf32>
    %355 = arith.subf %351, %354 : vector<8x8xf32>
    %356 = math.exp %355 : vector<8x8xf32>
    %cst_194 = arith.constant dense<0.000000e+00> : vector<8xf32>
    %357 = vector.multi_reduction <add>, %356, %cst_194 [1] : vector<8x8xf32> to vector<8xf32>
    %358 = vector.shape_cast %357 : vector<8xf32> to vector<8x1xf32>
    %359 = tpu.reciprocal %358 {approx = true} : vector<8x1xf32> -> vector<8x1xf32>
    %360 = vector.broadcast %359 : vector<8x1xf32> to vector<8x8xf32>
    %361 = arith.mulf %356, %360 : vector<8x8xf32>
    %362 = vector.extract_strided_slice %345 {offsets = [0, 0], sizes = [8, 8], strides = [1, 1]} : vector<8x32xf32> to vector<8x8xf32>
    %cst_195 = arith.constant dense<0.000000e+00> : vector<8x8xf32>
    %363 = tpu.matmul %361, %362, %cst_195 {dimension_numbers = #tpu.dot_dimension_numbers<[1], [0], [0], [1], [0, 0, 1, 1], [], []>} : vector<8x8xf32>, vector<8x8xf32>, vector<8x8xf32> -> vector<8x8xf32>
    %364 = vector.extract_strided_slice %322 {offsets = [0, 0], sizes = [8, 32], strides = [1, 1]} : vector<32x32xf32> to vector<8x32xf32>
    %cst_196 = arith.constant dense<0.000000e+00> : vector<8x32xf32>
    %365 = tpu.matmul %363, %364, %cst_196 {dimension_numbers = #tpu.dot_dimension_numbers<[1], [0], [0], [1], [0, 0, 1, 1], [], []>} : vector<8x8xf32>, vector<8x32xf32>, vector<8x32xf32> -> vector<8x32xf32>
    %366 = vector.extract_strided_slice %343 {offsets = [0, 8], sizes = [8, 8], strides = [1, 1]} : vector<8x32xf32> to vector<8x8xf32>
    %367 = vector.extract_strided_slice %344 {offsets = [0, 8], sizes = [8, 8], strides = [1, 1]} : vector<8x32xf32> to vector<8x8xf32>
    %cst_197 = arith.constant dense<0.000000e+00> : vector<8x8xf32>
    %368 = tpu.matmul %366, %367, %cst_197 {dimension_numbers = #tpu.dot_dimension_numbers<[1], [1], [0], [0], [0, 0, 1, 0], [], []>} : vector<8x8xf32>, vector<8x8xf32>, vector<8x8xf32> -> vector<8x8xf32>
    %cst_198 = arith.constant 0.353553385 : f32
    %369 = vector.broadcast %cst_198 : f32 to vector<8x8xf32>
    %370 = arith.mulf %368, %369 : vector<8x8xf32>
    %371 = arith.addf %370, %6 : vector<8x8xf32>
    %cst_199 = arith.constant dense<0xFF800000> : vector<8xf32>
    %372 = vector.multi_reduction <maximumf>, %371, %cst_199 [1] : vector<8x8xf32> to vector<8xf32>
    %373 = vector.shape_cast %372 : vector<8xf32> to vector<8x1xf32>
    %374 = vector.broadcast %373 : vector<8x1xf32> to vector<8x8xf32>
    %375 = arith.subf %371, %374 : vector<8x8xf32>
    %376 = math.exp %375 : vector<8x8xf32>
    %cst_200 = arith.constant dense<0.000000e+00> : vector<8xf32>
    %377 = vector.multi_reduction <add>, %376, %cst_200 [1] : vector<8x8xf32> to vector<8xf32>
    %378 = vector.shape_cast %377 : vector<8xf32> to vector<8x1xf32>
    %379 = tpu.reciprocal %378 {approx = true} : vector<8x1xf32> -> vector<8x1xf32>
    %380 = vector.broadcast %379 : vector<8x1xf32> to vector<8x8xf32>
    %381 = arith.mulf %376, %380 : vector<8x8xf32>
    %382 = vector.extract_strided_slice %345 {offsets = [0, 8], sizes = [8, 8], strides = [1, 1]} : vector<8x32xf32> to vector<8x8xf32>
    %cst_201 = arith.constant dense<0.000000e+00> : vector<8x8xf32>
    %383 = tpu.matmul %381, %382, %cst_201 {dimension_numbers = #tpu.dot_dimension_numbers<[1], [0], [0], [1], [0, 0, 1, 1], [], []>} : vector<8x8xf32>, vector<8x8xf32>, vector<8x8xf32> -> vector<8x8xf32>
    %384 = vector.extract_strided_slice %322 {offsets = [8, 0], sizes = [8, 32], strides = [1, 1]} : vector<32x32xf32> to vector<8x32xf32>
    %cst_202 = arith.constant dense<0.000000e+00> : vector<8x32xf32>
    %385 = tpu.matmul %383, %384, %cst_202 {dimension_numbers = #tpu.dot_dimension_numbers<[1], [0], [0], [1], [0, 0, 1, 1], [], []>} : vector<8x8xf32>, vector<8x32xf32>, vector<8x32xf32> -> vector<8x32xf32>
    %386 = arith.addf %365, %385 : vector<8x32xf32>
    %387 = vector.extract_strided_slice %343 {offsets = [0, 16], sizes = [8, 8], strides = [1, 1]} : vector<8x32xf32> to vector<8x8xf32>
    %388 = vector.extract_strided_slice %344 {offsets = [0, 16], sizes = [8, 8], strides = [1, 1]} : vector<8x32xf32> to vector<8x8xf32>
    %cst_203 = arith.constant dense<0.000000e+00> : vector<8x8xf32>
    %389 = tpu.matmul %387, %388, %cst_203 {dimension_numbers = #tpu.dot_dimension_numbers<[1], [1], [0], [0], [0, 0, 1, 0], [], []>} : vector<8x8xf32>, vector<8x8xf32>, vector<8x8xf32> -> vector<8x8xf32>
    %cst_204 = arith.constant 0.353553385 : f32
    %390 = vector.broadcast %cst_204 : f32 to vector<8x8xf32>
    %391 = arith.mulf %389, %390 : vector<8x8xf32>
    %392 = arith.addf %391, %6 : vector<8x8xf32>
    %cst_205 = arith.constant dense<0xFF800000> : vector<8xf32>
    %393 = vector.multi_reduction <maximumf>, %392, %cst_205 [1] : vector<8x8xf32> to vector<8xf32>
    %394 = vector.shape_cast %393 : vector<8xf32> to vector<8x1xf32>
    %395 = vector.broadcast %394 : vector<8x1xf32> to vector<8x8xf32>
    %396 = arith.subf %392, %395 : vector<8x8xf32>
    %397 = math.exp %396 : vector<8x8xf32>
    %cst_206 = arith.constant dense<0.000000e+00> : vector<8xf32>
    %398 = vector.multi_reduction <add>, %397, %cst_206 [1] : vector<8x8xf32> to vector<8xf32>
    %399 = vector.shape_cast %398 : vector<8xf32> to vector<8x1xf32>
    %400 = tpu.reciprocal %399 {approx = true} : vector<8x1xf32> -> vector<8x1xf32>
    %401 = vector.broadcast %400 : vector<8x1xf32> to vector<8x8xf32>
    %402 = arith.mulf %397, %401 : vector<8x8xf32>
    %403 = vector.extract_strided_slice %345 {offsets = [0, 16], sizes = [8, 8], strides = [1, 1]} : vector<8x32xf32> to vector<8x8xf32>
    %cst_207 = arith.constant dense<0.000000e+00> : vector<8x8xf32>
    %404 = tpu.matmul %402, %403, %cst_207 {dimension_numbers = #tpu.dot_dimension_numbers<[1], [0], [0], [1], [0, 0, 1, 1], [], []>} : vector<8x8xf32>, vector<8x8xf32>, vector<8x8xf32> -> vector<8x8xf32>
    %405 = vector.extract_strided_slice %322 {offsets = [16, 0], sizes = [8, 32], strides = [1, 1]} : vector<32x32xf32> to vector<8x32xf32>
    %cst_208 = arith.constant dense<0.000000e+00> : vector<8x32xf32>
    %406 = tpu.matmul %404, %405, %cst_208 {dimension_numbers = #tpu.dot_dimension_numbers<[1], [0], [0], [1], [0, 0, 1, 1], [], []>} : vector<8x8xf32>, vector<8x32xf32>, vector<8x32xf32> -> vector<8x32xf32>
    %407 = arith.addf %386, %406 : vector<8x32xf32>
    %408 = vector.extract_strided_slice %343 {offsets = [0, 24], sizes = [8, 8], strides = [1, 1]} : vector<8x32xf32> to vector<8x8xf32>
    %409 = vector.extract_strided_slice %344 {offsets = [0, 24], sizes = [8, 8], strides = [1, 1]} : vector<8x32xf32> to vector<8x8xf32>
    %cst_209 = arith.constant dense<0.000000e+00> : vector<8x8xf32>
    %410 = tpu.matmul %408, %409, %cst_209 {dimension_numbers = #tpu.dot_dimension_numbers<[1], [1], [0], [0], [0, 0, 1, 0], [], []>} : vector<8x8xf32>, vector<8x8xf32>, vector<8x8xf32> -> vector<8x8xf32>
    %cst_210 = arith.constant 0.353553385 : f32
    %411 = vector.broadcast %cst_210 : f32 to vector<8x8xf32>
    %412 = arith.mulf %410, %411 : vector<8x8xf32>
    %413 = arith.addf %412, %6 : vector<8x8xf32>
    %cst_211 = arith.constant dense<0xFF800000> : vector<8xf32>
    %414 = vector.multi_reduction <maximumf>, %413, %cst_211 [1] : vector<8x8xf32> to vector<8xf32>
    %415 = vector.shape_cast %414 : vector<8xf32> to vector<8x1xf32>
    %416 = vector.broadcast %415 : vector<8x1xf32> to vector<8x8xf32>
    %417 = arith.subf %413, %416 : vector<8x8xf32>
    %418 = math.exp %417 : vector<8x8xf32>
    %cst_212 = arith.constant dense<0.000000e+00> : vector<8xf32>
    %419 = vector.multi_reduction <add>, %418, %cst_212 [1] : vector<8x8xf32> to vector<8xf32>
    %420 = vector.shape_cast %419 : vector<8xf32> to vector<8x1xf32>
    %421 = tpu.reciprocal %420 {approx = true} : vector<8x1xf32> -> vector<8x1xf32>
    %422 = vector.broadcast %421 : vector<8x1xf32> to vector<8x8xf32>
    %423 = arith.mulf %418, %422 : vector<8x8xf32>
    %424 = vector.extract_strided_slice %345 {offsets = [0, 24], sizes = [8, 8], strides = [1, 1]} : vector<8x32xf32> to vector<8x8xf32>
    %cst_213 = arith.constant dense<0.000000e+00> : vector<8x8xf32>
    %425 = tpu.matmul %423, %424, %cst_213 {dimension_numbers = #tpu.dot_dimension_numbers<[1], [0], [0], [1], [0, 0, 1, 1], [], []>} : vector<8x8xf32>, vector<8x8xf32>, vector<8x8xf32> -> vector<8x8xf32>
    %426 = vector.extract_strided_slice %322 {offsets = [24, 0], sizes = [8, 32], strides = [1, 1]} : vector<32x32xf32> to vector<8x32xf32>
    %cst_214 = arith.constant dense<0.000000e+00> : vector<8x32xf32>
    %427 = tpu.matmul %425, %426, %cst_214 {dimension_numbers = #tpu.dot_dimension_numbers<[1], [0], [0], [1], [0, 0, 1, 1], [], []>} : vector<8x8xf32>, vector<8x32xf32>, vector<8x32xf32> -> vector<8x32xf32>
    %428 = arith.addf %407, %427 : vector<8x32xf32>
    %429 = vector.broadcast %323 : vector<1x32xf32> to vector<8x32xf32>
    %430 = arith.addf %428, %429 : vector<8x32xf32>
    %431 = arith.addf %319, %430 : vector<8x32xf32>
    %cst_215 = arith.constant dense<0.000000e+00> : vector<8xf32>
    %432 = vector.multi_reduction <add>, %431, %cst_215 [1] : vector<8x32xf32> to vector<8xf32>
    %433 = vector.shape_cast %432 : vector<8xf32> to vector<8x1xf32>
    %cst_216 = arith.constant 3.200000e+01 : f32
    %434 = vector.broadcast %cst_216 : f32 to vector<8x1xf32>
    %435 = arith.divf %433, %434 : vector<8x1xf32>
    %436 = vector.broadcast %435 : vector<8x1xf32> to vector<8x32xf32>
    %437 = arith.subf %431, %436 : vector<8x32xf32>
    %438 = arith.mulf %437, %437 : vector<8x32xf32>
    %cst_217 = arith.constant dense<0.000000e+00> : vector<8xf32>
    %439 = vector.multi_reduction <add>, %438, %cst_217 [1] : vector<8x32xf32> to vector<8xf32>
    %440 = vector.shape_cast %439 : vector<8xf32> to vector<8x1xf32>
    %cst_218 = arith.constant 3.200000e+01 : f32
    %441 = vector.broadcast %cst_218 : f32 to vector<8x1xf32>
    %442 = arith.divf %440, %441 : vector<8x1xf32>
    %cst_219 = arith.constant 9.99999974E-6 : f32
    %443 = vector.broadcast %cst_219 : f32 to vector<8x1xf32>
    %444 = arith.addf %442, %443 : vector<8x1xf32>
    %445 = math.rsqrt %444 : vector<8x1xf32>
    %446 = vector.broadcast %445 : vector<8x1xf32> to vector<8x32xf32>
    %447 = arith.mulf %437, %446 : vector<8x32xf32>
    %448 = vector.broadcast %334 : vector<1x32xf32> to vector<8x32xf32>
    %449 = arith.mulf %447, %448 : vector<8x32xf32>
    %450 = vector.broadcast %335 : vector<1x32xf32> to vector<8x32xf32>
    %451 = arith.addf %449, %450 : vector<8x32xf32>
    %cst_220 = arith.constant dense<0.000000e+00> : vector<8x32xf32>
    %452 = tpu.matmul %451, %324, %cst_220 {dimension_numbers = #tpu.dot_dimension_numbers<[1], [0], [0], [1], [0, 0, 1, 1], [], []>} : vector<8x32xf32>, vector<32x32xf32>, vector<8x32xf32> -> vector<8x32xf32>
    %453 = vector.broadcast %325 : vector<1x32xf32> to vector<8x32xf32>
    %454 = arith.addf %452, %453 : vector<8x32xf32>
    %cst_221 = arith.constant dense<0.000000e+00> : vector<16x64xf32>
    %455 = tpu.matmul %315, %326, %cst_221 {dimension_numbers = #tpu.dot_dimension_numbers<[1], [0], [0], [1], [0, 0, 1, 1], [], []>} : vector<16x32xf32>, vector<32x64xf32>, vector<16x64xf32> -> vector<16x64xf32>
    %456 = vector.broadcast %327 : vector<1x64xf32> to vector<16x64xf32>
    %457 = arith.addf %455, %456 : vector<16x64xf32>
    %458 = vector.extract_strided_slice %457 {offsets = [0, 0], sizes = [16, 32], strides = [1, 1]} : vector<16x64xf32> to vector<16x32xf32>
    %459 = vector.extract_strided_slice %457 {offsets = [0, 32], sizes = [16, 32], strides = [1, 1]} : vector<16x64xf32> to vector<16x32xf32>
    %460 = vector.extract_strided_slice %454 {offsets = [0, 0], sizes = [8, 8], strides = [1, 1]} : vector<8x32xf32> to vector<8x8xf32>
    %461 = vector.extract_strided_slice %458 {offsets = [0, 0], sizes = [16, 8], strides = [1, 1]} : vector<16x32xf32> to vector<16x8xf32>
    %cst_222 = arith.constant dense<0.000000e+00> : vector<8x16xf32>
    %462 = tpu.matmul %460, %461, %cst_222 {dimension_numbers = #tpu.dot_dimension_numbers<[1], [1], [0], [0], [0, 0, 1, 0], [], []>} : vector<8x8xf32>, vector<16x8xf32>, vector<8x16xf32> -> vector<8x16xf32>
    %cst_223 = arith.constant 0.353553385 : f32
    %463 = vector.broadcast %cst_223 : f32 to vector<8x16xf32>
    %464 = arith.mulf %462, %463 : vector<8x16xf32>
    %465 = arith.addf %464, %7 : vector<8x16xf32>
    %cst_224 = arith.constant dense<0xFF800000> : vector<8xf32>
    %466 = vector.multi_reduction <maximumf>, %465, %cst_224 [1] : vector<8x16xf32> to vector<8xf32>
    %467 = vector.shape_cast %466 : vector<8xf32> to vector<8x1xf32>
    %468 = vector.broadcast %467 : vector<8x1xf32> to vector<8x16xf32>
    %469 = arith.subf %465, %468 : vector<8x16xf32>
    %470 = math.exp %469 : vector<8x16xf32>
    %cst_225 = arith.constant dense<0.000000e+00> : vector<8xf32>
    %471 = vector.multi_reduction <add>, %470, %cst_225 [1] : vector<8x16xf32> to vector<8xf32>
    %472 = vector.shape_cast %471 : vector<8xf32> to vector<8x1xf32>
    %473 = tpu.reciprocal %472 {approx = true} : vector<8x1xf32> -> vector<8x1xf32>
    %474 = vector.broadcast %473 : vector<8x1xf32> to vector<8x16xf32>
    %475 = arith.mulf %470, %474 : vector<8x16xf32>
    %476 = vector.extract_strided_slice %459 {offsets = [0, 0], sizes = [16, 8], strides = [1, 1]} : vector<16x32xf32> to vector<16x8xf32>
    %cst_226 = arith.constant dense<0.000000e+00> : vector<8x8xf32>
    %477 = tpu.matmul %475, %476, %cst_226 {dimension_numbers = #tpu.dot_dimension_numbers<[1], [0], [0], [1], [0, 0, 1, 1], [], []>} : vector<8x16xf32>, vector<16x8xf32>, vector<8x8xf32> -> vector<8x8xf32>
    %478 = vector.extract_strided_slice %328 {offsets = [0, 0], sizes = [8, 32], strides = [1, 1]} : vector<32x32xf32> to vector<8x32xf32>
    %cst_227 = arith.constant dense<0.000000e+00> : vector<8x32xf32>
    %479 = tpu.matmul %477, %478, %cst_227 {dimension_numbers = #tpu.dot_dimension_numbers<[1], [0], [0], [1], [0, 0, 1, 1], [], []>} : vector<8x8xf32>, vector<8x32xf32>, vector<8x32xf32> -> vector<8x32xf32>
    %480 = vector.extract_strided_slice %454 {offsets = [0, 8], sizes = [8, 8], strides = [1, 1]} : vector<8x32xf32> to vector<8x8xf32>
    %481 = vector.extract_strided_slice %458 {offsets = [0, 8], sizes = [16, 8], strides = [1, 1]} : vector<16x32xf32> to vector<16x8xf32>
    %cst_228 = arith.constant dense<0.000000e+00> : vector<8x16xf32>
    %482 = tpu.matmul %480, %481, %cst_228 {dimension_numbers = #tpu.dot_dimension_numbers<[1], [1], [0], [0], [0, 0, 1, 0], [], []>} : vector<8x8xf32>, vector<16x8xf32>, vector<8x16xf32> -> vector<8x16xf32>
    %cst_229 = arith.constant 0.353553385 : f32
    %483 = vector.broadcast %cst_229 : f32 to vector<8x16xf32>
    %484 = arith.mulf %482, %483 : vector<8x16xf32>
    %485 = arith.addf %484, %7 : vector<8x16xf32>
    %cst_230 = arith.constant dense<0xFF800000> : vector<8xf32>
    %486 = vector.multi_reduction <maximumf>, %485, %cst_230 [1] : vector<8x16xf32> to vector<8xf32>
    %487 = vector.shape_cast %486 : vector<8xf32> to vector<8x1xf32>
    %488 = vector.broadcast %487 : vector<8x1xf32> to vector<8x16xf32>
    %489 = arith.subf %485, %488 : vector<8x16xf32>
    %490 = math.exp %489 : vector<8x16xf32>
    %cst_231 = arith.constant dense<0.000000e+00> : vector<8xf32>
    %491 = vector.multi_reduction <add>, %490, %cst_231 [1] : vector<8x16xf32> to vector<8xf32>
    %492 = vector.shape_cast %491 : vector<8xf32> to vector<8x1xf32>
    %493 = tpu.reciprocal %492 {approx = true} : vector<8x1xf32> -> vector<8x1xf32>
    %494 = vector.broadcast %493 : vector<8x1xf32> to vector<8x16xf32>
    %495 = arith.mulf %490, %494 : vector<8x16xf32>
    %496 = vector.extract_strided_slice %459 {offsets = [0, 8], sizes = [16, 8], strides = [1, 1]} : vector<16x32xf32> to vector<16x8xf32>
    %cst_232 = arith.constant dense<0.000000e+00> : vector<8x8xf32>
    %497 = tpu.matmul %495, %496, %cst_232 {dimension_numbers = #tpu.dot_dimension_numbers<[1], [0], [0], [1], [0, 0, 1, 1], [], []>} : vector<8x16xf32>, vector<16x8xf32>, vector<8x8xf32> -> vector<8x8xf32>
    %498 = vector.extract_strided_slice %328 {offsets = [8, 0], sizes = [8, 32], strides = [1, 1]} : vector<32x32xf32> to vector<8x32xf32>
    %cst_233 = arith.constant dense<0.000000e+00> : vector<8x32xf32>
    %499 = tpu.matmul %497, %498, %cst_233 {dimension_numbers = #tpu.dot_dimension_numbers<[1], [0], [0], [1], [0, 0, 1, 1], [], []>} : vector<8x8xf32>, vector<8x32xf32>, vector<8x32xf32> -> vector<8x32xf32>
    %500 = arith.addf %479, %499 : vector<8x32xf32>
    %501 = vector.extract_strided_slice %454 {offsets = [0, 16], sizes = [8, 8], strides = [1, 1]} : vector<8x32xf32> to vector<8x8xf32>
    %502 = vector.extract_strided_slice %458 {offsets = [0, 16], sizes = [16, 8], strides = [1, 1]} : vector<16x32xf32> to vector<16x8xf32>
    %cst_234 = arith.constant dense<0.000000e+00> : vector<8x16xf32>
    %503 = tpu.matmul %501, %502, %cst_234 {dimension_numbers = #tpu.dot_dimension_numbers<[1], [1], [0], [0], [0, 0, 1, 0], [], []>} : vector<8x8xf32>, vector<16x8xf32>, vector<8x16xf32> -> vector<8x16xf32>
    %cst_235 = arith.constant 0.353553385 : f32
    %504 = vector.broadcast %cst_235 : f32 to vector<8x16xf32>
    %505 = arith.mulf %503, %504 : vector<8x16xf32>
    %506 = arith.addf %505, %7 : vector<8x16xf32>
    %cst_236 = arith.constant dense<0xFF800000> : vector<8xf32>
    %507 = vector.multi_reduction <maximumf>, %506, %cst_236 [1] : vector<8x16xf32> to vector<8xf32>
    %508 = vector.shape_cast %507 : vector<8xf32> to vector<8x1xf32>
    %509 = vector.broadcast %508 : vector<8x1xf32> to vector<8x16xf32>
    %510 = arith.subf %506, %509 : vector<8x16xf32>
    %511 = math.exp %510 : vector<8x16xf32>
    %cst_237 = arith.constant dense<0.000000e+00> : vector<8xf32>
    %512 = vector.multi_reduction <add>, %511, %cst_237 [1] : vector<8x16xf32> to vector<8xf32>
    %513 = vector.shape_cast %512 : vector<8xf32> to vector<8x1xf32>
    %514 = tpu.reciprocal %513 {approx = true} : vector<8x1xf32> -> vector<8x1xf32>
    %515 = vector.broadcast %514 : vector<8x1xf32> to vector<8x16xf32>
    %516 = arith.mulf %511, %515 : vector<8x16xf32>
    %517 = vector.extract_strided_slice %459 {offsets = [0, 16], sizes = [16, 8], strides = [1, 1]} : vector<16x32xf32> to vector<16x8xf32>
    %cst_238 = arith.constant dense<0.000000e+00> : vector<8x8xf32>
    %518 = tpu.matmul %516, %517, %cst_238 {dimension_numbers = #tpu.dot_dimension_numbers<[1], [0], [0], [1], [0, 0, 1, 1], [], []>} : vector<8x16xf32>, vector<16x8xf32>, vector<8x8xf32> -> vector<8x8xf32>
    %519 = vector.extract_strided_slice %328 {offsets = [16, 0], sizes = [8, 32], strides = [1, 1]} : vector<32x32xf32> to vector<8x32xf32>
    %cst_239 = arith.constant dense<0.000000e+00> : vector<8x32xf32>
    %520 = tpu.matmul %518, %519, %cst_239 {dimension_numbers = #tpu.dot_dimension_numbers<[1], [0], [0], [1], [0, 0, 1, 1], [], []>} : vector<8x8xf32>, vector<8x32xf32>, vector<8x32xf32> -> vector<8x32xf32>
    %521 = arith.addf %500, %520 : vector<8x32xf32>
    %522 = vector.extract_strided_slice %454 {offsets = [0, 24], sizes = [8, 8], strides = [1, 1]} : vector<8x32xf32> to vector<8x8xf32>
    %523 = vector.extract_strided_slice %458 {offsets = [0, 24], sizes = [16, 8], strides = [1, 1]} : vector<16x32xf32> to vector<16x8xf32>
    %cst_240 = arith.constant dense<0.000000e+00> : vector<8x16xf32>
    %524 = tpu.matmul %522, %523, %cst_240 {dimension_numbers = #tpu.dot_dimension_numbers<[1], [1], [0], [0], [0, 0, 1, 0], [], []>} : vector<8x8xf32>, vector<16x8xf32>, vector<8x16xf32> -> vector<8x16xf32>
    %cst_241 = arith.constant 0.353553385 : f32
    %525 = vector.broadcast %cst_241 : f32 to vector<8x16xf32>
    %526 = arith.mulf %524, %525 : vector<8x16xf32>
    %527 = arith.addf %526, %7 : vector<8x16xf32>
    %cst_242 = arith.constant dense<0xFF800000> : vector<8xf32>
    %528 = vector.multi_reduction <maximumf>, %527, %cst_242 [1] : vector<8x16xf32> to vector<8xf32>
    %529 = vector.shape_cast %528 : vector<8xf32> to vector<8x1xf32>
    %530 = vector.broadcast %529 : vector<8x1xf32> to vector<8x16xf32>
    %531 = arith.subf %527, %530 : vector<8x16xf32>
    %532 = math.exp %531 : vector<8x16xf32>
    %cst_243 = arith.constant dense<0.000000e+00> : vector<8xf32>
    %533 = vector.multi_reduction <add>, %532, %cst_243 [1] : vector<8x16xf32> to vector<8xf32>
    %534 = vector.shape_cast %533 : vector<8xf32> to vector<8x1xf32>
    %535 = tpu.reciprocal %534 {approx = true} : vector<8x1xf32> -> vector<8x1xf32>
    %536 = vector.broadcast %535 : vector<8x1xf32> to vector<8x16xf32>
    %537 = arith.mulf %532, %536 : vector<8x16xf32>
    %538 = vector.extract_strided_slice %459 {offsets = [0, 24], sizes = [16, 8], strides = [1, 1]} : vector<16x32xf32> to vector<16x8xf32>
    %cst_244 = arith.constant dense<0.000000e+00> : vector<8x8xf32>
    %539 = tpu.matmul %537, %538, %cst_244 {dimension_numbers = #tpu.dot_dimension_numbers<[1], [0], [0], [1], [0, 0, 1, 1], [], []>} : vector<8x16xf32>, vector<16x8xf32>, vector<8x8xf32> -> vector<8x8xf32>
    %540 = vector.extract_strided_slice %328 {offsets = [24, 0], sizes = [8, 32], strides = [1, 1]} : vector<32x32xf32> to vector<8x32xf32>
    %cst_245 = arith.constant dense<0.000000e+00> : vector<8x32xf32>
    %541 = tpu.matmul %539, %540, %cst_245 {dimension_numbers = #tpu.dot_dimension_numbers<[1], [0], [0], [1], [0, 0, 1, 1], [], []>} : vector<8x8xf32>, vector<8x32xf32>, vector<8x32xf32> -> vector<8x32xf32>
    %542 = arith.addf %521, %541 : vector<8x32xf32>
    %543 = vector.broadcast %329 : vector<1x32xf32> to vector<8x32xf32>
    %544 = arith.addf %542, %543 : vector<8x32xf32>
    %545 = arith.addf %451, %544 : vector<8x32xf32>
    %cst_246 = arith.constant dense<0.000000e+00> : vector<8xf32>
    %546 = vector.multi_reduction <add>, %545, %cst_246 [1] : vector<8x32xf32> to vector<8xf32>
    %547 = vector.shape_cast %546 : vector<8xf32> to vector<8x1xf32>
    %cst_247 = arith.constant 3.200000e+01 : f32
    %548 = vector.broadcast %cst_247 : f32 to vector<8x1xf32>
    %549 = arith.divf %547, %548 : vector<8x1xf32>
    %550 = vector.broadcast %549 : vector<8x1xf32> to vector<8x32xf32>
    %551 = arith.subf %545, %550 : vector<8x32xf32>
    %552 = arith.mulf %551, %551 : vector<8x32xf32>
    %cst_248 = arith.constant dense<0.000000e+00> : vector<8xf32>
    %553 = vector.multi_reduction <add>, %552, %cst_248 [1] : vector<8x32xf32> to vector<8xf32>
    %554 = vector.shape_cast %553 : vector<8xf32> to vector<8x1xf32>
    %cst_249 = arith.constant 3.200000e+01 : f32
    %555 = vector.broadcast %cst_249 : f32 to vector<8x1xf32>
    %556 = arith.divf %554, %555 : vector<8x1xf32>
    %cst_250 = arith.constant 9.99999974E-6 : f32
    %557 = vector.broadcast %cst_250 : f32 to vector<8x1xf32>
    %558 = arith.addf %556, %557 : vector<8x1xf32>
    %559 = math.rsqrt %558 : vector<8x1xf32>
    %560 = vector.broadcast %559 : vector<8x1xf32> to vector<8x32xf32>
    %561 = arith.mulf %551, %560 : vector<8x32xf32>
    %562 = vector.broadcast %336 : vector<1x32xf32> to vector<8x32xf32>
    %563 = arith.mulf %561, %562 : vector<8x32xf32>
    %564 = vector.broadcast %337 : vector<1x32xf32> to vector<8x32xf32>
    %565 = arith.addf %563, %564 : vector<8x32xf32>
    %cst_251 = arith.constant dense<0.000000e+00> : vector<8x64xf32>
    %566 = tpu.matmul %565, %330, %cst_251 {dimension_numbers = #tpu.dot_dimension_numbers<[1], [0], [0], [1], [0, 0, 1, 1], [], []>} : vector<8x32xf32>, vector<32x64xf32>, vector<8x64xf32> -> vector<8x64xf32>
    %567 = vector.broadcast %331 : vector<1x64xf32> to vector<8x64xf32>
    %568 = arith.addf %566, %567 : vector<8x64xf32>
    %cst_252 = arith.constant 0.000000e+00 : f32
    %569 = vector.broadcast %cst_252 : f32 to vector<8x64xf32>
    %570 = arith.maximumf %568, %569 : vector<8x64xf32>
    %cst_253 = arith.constant dense<0.000000e+00> : vector<8x32xf32>
    %571 = tpu.matmul %570, %332, %cst_253 {dimension_numbers = #tpu.dot_dimension_numbers<[1], [0], [0], [1], [0, 0, 1, 1], [], []>} : vector<8x64xf32>, vector<64x32xf32>, vector<8x32xf32> -> vector<8x32xf32>
    %572 = vector.broadcast %333 : vector<1x32xf32> to vector<8x32xf32>
    %573 = arith.addf %571, %572 : vector<8x32xf32>
    %574 = arith.addf %565, %573 : vector<8x32xf32>
    %cst_254 = arith.constant dense<0.000000e+00> : vector<8xf32>
    %575 = vector.multi_reduction <add>, %574, %cst_254 [1] : vector<8x32xf32> to vector<8xf32>
    %576 = vector.shape_cast %575 : vector<8xf32> to vector<8x1xf32>
    %cst_255 = arith.constant 3.200000e+01 : f32
    %577 = vector.broadcast %cst_255 : f32 to vector<8x1xf32>
    %578 = arith.divf %576, %577 : vector<8x1xf32>
    %579 = vector.broadcast %578 : vector<8x1xf32> to vector<8x32xf32>
    %580 = arith.subf %574, %579 : vector<8x32xf32>
    %581 = arith.mulf %580, %580 : vector<8x32xf32>
    %cst_256 = arith.constant dense<0.000000e+00> : vector<8xf32>
    %582 = vector.multi_reduction <add>, %581, %cst_256 [1] : vector<8x32xf32> to vector<8xf32>
    %583 = vector.shape_cast %582 : vector<8xf32> to vector<8x1xf32>
    %cst_257 = arith.constant 3.200000e+01 : f32
    %584 = vector.broadcast %cst_257 : f32 to vector<8x1xf32>
    %585 = arith.divf %583, %584 : vector<8x1xf32>
    %cst_258 = arith.constant 9.99999974E-6 : f32
    %586 = vector.broadcast %cst_258 : f32 to vector<8x1xf32>
    %587 = arith.addf %585, %586 : vector<8x1xf32>
    %588 = math.rsqrt %587 : vector<8x1xf32>
    %589 = vector.broadcast %588 : vector<8x1xf32> to vector<8x32xf32>
    %590 = arith.mulf %580, %589 : vector<8x32xf32>
    %591 = vector.broadcast %338 : vector<1x32xf32> to vector<8x32xf32>
    %592 = arith.mulf %590, %591 : vector<8x32xf32>
    %593 = vector.broadcast %339 : vector<1x32xf32> to vector<8x32xf32>
    %594 = arith.addf %592, %593 : vector<8x32xf32>
    %c0_259 = arith.constant 0 : index
    %c0_260 = arith.constant 0 : index
    %595 = vector.load %arg57[%c0_259, %c0_260] : memref<32x96xf32, #tpu.memory_space<vmem>>, vector<32x96xf32>
    %c0_261 = arith.constant 0 : index
    %c0_262 = arith.constant 0 : index
    %596 = vector.load %arg58[%c0_261, %c0_262] : memref<1x96xf32, #tpu.memory_space<vmem>>, vector<1x96xf32>
    %c0_263 = arith.constant 0 : index
    %c0_264 = arith.constant 0 : index
    %597 = vector.load %arg59[%c0_263, %c0_264] : memref<32x32xf32, #tpu.memory_space<vmem>>, vector<32x32xf32>
    %c0_265 = arith.constant 0 : index
    %c0_266 = arith.constant 0 : index
    %598 = vector.load %arg60[%c0_265, %c0_266] : memref<1x32xf32, #tpu.memory_space<vmem>>, vector<1x32xf32>
    %c0_267 = arith.constant 0 : index
    %c0_268 = arith.constant 0 : index
    %599 = vector.load %arg61[%c0_267, %c0_268] : memref<32x32xf32, #tpu.memory_space<vmem>>, vector<32x32xf32>
    %c0_269 = arith.constant 0 : index
    %c0_270 = arith.constant 0 : index
    %600 = vector.load %arg62[%c0_269, %c0_270] : memref<1x32xf32, #tpu.memory_space<vmem>>, vector<1x32xf32>
    %c0_271 = arith.constant 0 : index
    %c0_272 = arith.constant 0 : index
    %601 = vector.load %arg63[%c0_271, %c0_272] : memref<32x64xf32, #tpu.memory_space<vmem>>, vector<32x64xf32>
    %c0_273 = arith.constant 0 : index
    %c0_274 = arith.constant 0 : index
    %602 = vector.load %arg64[%c0_273, %c0_274] : memref<1x64xf32, #tpu.memory_space<vmem>>, vector<1x64xf32>
    %c0_275 = arith.constant 0 : index
    %c0_276 = arith.constant 0 : index
    %603 = vector.load %arg65[%c0_275, %c0_276] : memref<32x32xf32, #tpu.memory_space<vmem>>, vector<32x32xf32>
    %c0_277 = arith.constant 0 : index
    %c0_278 = arith.constant 0 : index
    %604 = vector.load %arg66[%c0_277, %c0_278] : memref<1x32xf32, #tpu.memory_space<vmem>>, vector<1x32xf32>
    %c0_279 = arith.constant 0 : index
    %c0_280 = arith.constant 0 : index
    %605 = vector.load %arg67[%c0_279, %c0_280] : memref<32x64xf32, #tpu.memory_space<vmem>>, vector<32x64xf32>
    %c0_281 = arith.constant 0 : index
    %c0_282 = arith.constant 0 : index
    %606 = vector.load %arg68[%c0_281, %c0_282] : memref<1x64xf32, #tpu.memory_space<vmem>>, vector<1x64xf32>
    %c0_283 = arith.constant 0 : index
    %c0_284 = arith.constant 0 : index
    %607 = vector.load %arg69[%c0_283, %c0_284] : memref<64x32xf32, #tpu.memory_space<vmem>>, vector<64x32xf32>
    %c0_285 = arith.constant 0 : index
    %c0_286 = arith.constant 0 : index
    %608 = vector.load %arg70[%c0_285, %c0_286] : memref<1x32xf32, #tpu.memory_space<vmem>>, vector<1x32xf32>
    %c0_287 = arith.constant 0 : index
    %c0_288 = arith.constant 0 : index
    %609 = vector.load %arg71[%c0_287, %c0_288] : memref<1x32xf32, #tpu.memory_space<vmem>>, vector<1x32xf32>
    %c0_289 = arith.constant 0 : index
    %c0_290 = arith.constant 0 : index
    %610 = vector.load %arg72[%c0_289, %c0_290] : memref<1x32xf32, #tpu.memory_space<vmem>>, vector<1x32xf32>
    %c0_291 = arith.constant 0 : index
    %c0_292 = arith.constant 0 : index
    %611 = vector.load %arg73[%c0_291, %c0_292] : memref<1x32xf32, #tpu.memory_space<vmem>>, vector<1x32xf32>
    %c0_293 = arith.constant 0 : index
    %c0_294 = arith.constant 0 : index
    %612 = vector.load %arg74[%c0_293, %c0_294] : memref<1x32xf32, #tpu.memory_space<vmem>>, vector<1x32xf32>
    %c0_295 = arith.constant 0 : index
    %c0_296 = arith.constant 0 : index
    %613 = vector.load %arg75[%c0_295, %c0_296] : memref<1x32xf32, #tpu.memory_space<vmem>>, vector<1x32xf32>
    %c0_297 = arith.constant 0 : index
    %c0_298 = arith.constant 0 : index
    %614 = vector.load %arg76[%c0_297, %c0_298] : memref<1x32xf32, #tpu.memory_space<vmem>>, vector<1x32xf32>
    %cst_299 = arith.constant dense<0.000000e+00> : vector<8x96xf32>
    %615 = tpu.matmul %594, %595, %cst_299 {dimension_numbers = #tpu.dot_dimension_numbers<[1], [0], [0], [1], [0, 0, 1, 1], [], []>} : vector<8x32xf32>, vector<32x96xf32>, vector<8x96xf32> -> vector<8x96xf32>
    %616 = vector.broadcast %596 : vector<1x96xf32> to vector<8x96xf32>
    %617 = arith.addf %615, %616 : vector<8x96xf32>
    %618 = vector.extract_strided_slice %617 {offsets = [0, 0], sizes = [8, 32], strides = [1, 1]} : vector<8x96xf32> to vector<8x32xf32>
    %619 = vector.extract_strided_slice %617 {offsets = [0, 32], sizes = [8, 32], strides = [1, 1]} : vector<8x96xf32> to vector<8x32xf32>
    %620 = vector.extract_strided_slice %617 {offsets = [0, 64], sizes = [8, 32], strides = [1, 1]} : vector<8x96xf32> to vector<8x32xf32>
    %621 = vector.extract_strided_slice %618 {offsets = [0, 0], sizes = [8, 8], strides = [1, 1]} : vector<8x32xf32> to vector<8x8xf32>
    %622 = vector.extract_strided_slice %619 {offsets = [0, 0], sizes = [8, 8], strides = [1, 1]} : vector<8x32xf32> to vector<8x8xf32>
    %cst_300 = arith.constant dense<0.000000e+00> : vector<8x8xf32>
    %623 = tpu.matmul %621, %622, %cst_300 {dimension_numbers = #tpu.dot_dimension_numbers<[1], [1], [0], [0], [0, 0, 1, 0], [], []>} : vector<8x8xf32>, vector<8x8xf32>, vector<8x8xf32> -> vector<8x8xf32>
    %cst_301 = arith.constant 0.353553385 : f32
    %624 = vector.broadcast %cst_301 : f32 to vector<8x8xf32>
    %625 = arith.mulf %623, %624 : vector<8x8xf32>
    %626 = arith.addf %625, %6 : vector<8x8xf32>
    %cst_302 = arith.constant dense<0xFF800000> : vector<8xf32>
    %627 = vector.multi_reduction <maximumf>, %626, %cst_302 [1] : vector<8x8xf32> to vector<8xf32>
    %628 = vector.shape_cast %627 : vector<8xf32> to vector<8x1xf32>
    %629 = vector.broadcast %628 : vector<8x1xf32> to vector<8x8xf32>
    %630 = arith.subf %626, %629 : vector<8x8xf32>
    %631 = math.exp %630 : vector<8x8xf32>
    %cst_303 = arith.constant dense<0.000000e+00> : vector<8xf32>
    %632 = vector.multi_reduction <add>, %631, %cst_303 [1] : vector<8x8xf32> to vector<8xf32>
    %633 = vector.shape_cast %632 : vector<8xf32> to vector<8x1xf32>
    %634 = tpu.reciprocal %633 {approx = true} : vector<8x1xf32> -> vector<8x1xf32>
    %635 = vector.broadcast %634 : vector<8x1xf32> to vector<8x8xf32>
    %636 = arith.mulf %631, %635 : vector<8x8xf32>
    %637 = vector.extract_strided_slice %620 {offsets = [0, 0], sizes = [8, 8], strides = [1, 1]} : vector<8x32xf32> to vector<8x8xf32>
    %cst_304 = arith.constant dense<0.000000e+00> : vector<8x8xf32>
    %638 = tpu.matmul %636, %637, %cst_304 {dimension_numbers = #tpu.dot_dimension_numbers<[1], [0], [0], [1], [0, 0, 1, 1], [], []>} : vector<8x8xf32>, vector<8x8xf32>, vector<8x8xf32> -> vector<8x8xf32>
    %639 = vector.extract_strided_slice %597 {offsets = [0, 0], sizes = [8, 32], strides = [1, 1]} : vector<32x32xf32> to vector<8x32xf32>
    %cst_305 = arith.constant dense<0.000000e+00> : vector<8x32xf32>
    %640 = tpu.matmul %638, %639, %cst_305 {dimension_numbers = #tpu.dot_dimension_numbers<[1], [0], [0], [1], [0, 0, 1, 1], [], []>} : vector<8x8xf32>, vector<8x32xf32>, vector<8x32xf32> -> vector<8x32xf32>
    %641 = vector.extract_strided_slice %618 {offsets = [0, 8], sizes = [8, 8], strides = [1, 1]} : vector<8x32xf32> to vector<8x8xf32>
    %642 = vector.extract_strided_slice %619 {offsets = [0, 8], sizes = [8, 8], strides = [1, 1]} : vector<8x32xf32> to vector<8x8xf32>
    %cst_306 = arith.constant dense<0.000000e+00> : vector<8x8xf32>
    %643 = tpu.matmul %641, %642, %cst_306 {dimension_numbers = #tpu.dot_dimension_numbers<[1], [1], [0], [0], [0, 0, 1, 0], [], []>} : vector<8x8xf32>, vector<8x8xf32>, vector<8x8xf32> -> vector<8x8xf32>
    %cst_307 = arith.constant 0.353553385 : f32
    %644 = vector.broadcast %cst_307 : f32 to vector<8x8xf32>
    %645 = arith.mulf %643, %644 : vector<8x8xf32>
    %646 = arith.addf %645, %6 : vector<8x8xf32>
    %cst_308 = arith.constant dense<0xFF800000> : vector<8xf32>
    %647 = vector.multi_reduction <maximumf>, %646, %cst_308 [1] : vector<8x8xf32> to vector<8xf32>
    %648 = vector.shape_cast %647 : vector<8xf32> to vector<8x1xf32>
    %649 = vector.broadcast %648 : vector<8x1xf32> to vector<8x8xf32>
    %650 = arith.subf %646, %649 : vector<8x8xf32>
    %651 = math.exp %650 : vector<8x8xf32>
    %cst_309 = arith.constant dense<0.000000e+00> : vector<8xf32>
    %652 = vector.multi_reduction <add>, %651, %cst_309 [1] : vector<8x8xf32> to vector<8xf32>
    %653 = vector.shape_cast %652 : vector<8xf32> to vector<8x1xf32>
    %654 = tpu.reciprocal %653 {approx = true} : vector<8x1xf32> -> vector<8x1xf32>
    %655 = vector.broadcast %654 : vector<8x1xf32> to vector<8x8xf32>
    %656 = arith.mulf %651, %655 : vector<8x8xf32>
    %657 = vector.extract_strided_slice %620 {offsets = [0, 8], sizes = [8, 8], strides = [1, 1]} : vector<8x32xf32> to vector<8x8xf32>
    %cst_310 = arith.constant dense<0.000000e+00> : vector<8x8xf32>
    %658 = tpu.matmul %656, %657, %cst_310 {dimension_numbers = #tpu.dot_dimension_numbers<[1], [0], [0], [1], [0, 0, 1, 1], [], []>} : vector<8x8xf32>, vector<8x8xf32>, vector<8x8xf32> -> vector<8x8xf32>
    %659 = vector.extract_strided_slice %597 {offsets = [8, 0], sizes = [8, 32], strides = [1, 1]} : vector<32x32xf32> to vector<8x32xf32>
    %cst_311 = arith.constant dense<0.000000e+00> : vector<8x32xf32>
    %660 = tpu.matmul %658, %659, %cst_311 {dimension_numbers = #tpu.dot_dimension_numbers<[1], [0], [0], [1], [0, 0, 1, 1], [], []>} : vector<8x8xf32>, vector<8x32xf32>, vector<8x32xf32> -> vector<8x32xf32>
    %661 = arith.addf %640, %660 : vector<8x32xf32>
    %662 = vector.extract_strided_slice %618 {offsets = [0, 16], sizes = [8, 8], strides = [1, 1]} : vector<8x32xf32> to vector<8x8xf32>
    %663 = vector.extract_strided_slice %619 {offsets = [0, 16], sizes = [8, 8], strides = [1, 1]} : vector<8x32xf32> to vector<8x8xf32>
    %cst_312 = arith.constant dense<0.000000e+00> : vector<8x8xf32>
    %664 = tpu.matmul %662, %663, %cst_312 {dimension_numbers = #tpu.dot_dimension_numbers<[1], [1], [0], [0], [0, 0, 1, 0], [], []>} : vector<8x8xf32>, vector<8x8xf32>, vector<8x8xf32> -> vector<8x8xf32>
    %cst_313 = arith.constant 0.353553385 : f32
    %665 = vector.broadcast %cst_313 : f32 to vector<8x8xf32>
    %666 = arith.mulf %664, %665 : vector<8x8xf32>
    %667 = arith.addf %666, %6 : vector<8x8xf32>
    %cst_314 = arith.constant dense<0xFF800000> : vector<8xf32>
    %668 = vector.multi_reduction <maximumf>, %667, %cst_314 [1] : vector<8x8xf32> to vector<8xf32>
    %669 = vector.shape_cast %668 : vector<8xf32> to vector<8x1xf32>
    %670 = vector.broadcast %669 : vector<8x1xf32> to vector<8x8xf32>
    %671 = arith.subf %667, %670 : vector<8x8xf32>
    %672 = math.exp %671 : vector<8x8xf32>
    %cst_315 = arith.constant dense<0.000000e+00> : vector<8xf32>
    %673 = vector.multi_reduction <add>, %672, %cst_315 [1] : vector<8x8xf32> to vector<8xf32>
    %674 = vector.shape_cast %673 : vector<8xf32> to vector<8x1xf32>
    %675 = tpu.reciprocal %674 {approx = true} : vector<8x1xf32> -> vector<8x1xf32>
    %676 = vector.broadcast %675 : vector<8x1xf32> to vector<8x8xf32>
    %677 = arith.mulf %672, %676 : vector<8x8xf32>
    %678 = vector.extract_strided_slice %620 {offsets = [0, 16], sizes = [8, 8], strides = [1, 1]} : vector<8x32xf32> to vector<8x8xf32>
    %cst_316 = arith.constant dense<0.000000e+00> : vector<8x8xf32>
    %679 = tpu.matmul %677, %678, %cst_316 {dimension_numbers = #tpu.dot_dimension_numbers<[1], [0], [0], [1], [0, 0, 1, 1], [], []>} : vector<8x8xf32>, vector<8x8xf32>, vector<8x8xf32> -> vector<8x8xf32>
    %680 = vector.extract_strided_slice %597 {offsets = [16, 0], sizes = [8, 32], strides = [1, 1]} : vector<32x32xf32> to vector<8x32xf32>
    %cst_317 = arith.constant dense<0.000000e+00> : vector<8x32xf32>
    %681 = tpu.matmul %679, %680, %cst_317 {dimension_numbers = #tpu.dot_dimension_numbers<[1], [0], [0], [1], [0, 0, 1, 1], [], []>} : vector<8x8xf32>, vector<8x32xf32>, vector<8x32xf32> -> vector<8x32xf32>
    %682 = arith.addf %661, %681 : vector<8x32xf32>
    %683 = vector.extract_strided_slice %618 {offsets = [0, 24], sizes = [8, 8], strides = [1, 1]} : vector<8x32xf32> to vector<8x8xf32>
    %684 = vector.extract_strided_slice %619 {offsets = [0, 24], sizes = [8, 8], strides = [1, 1]} : vector<8x32xf32> to vector<8x8xf32>
    %cst_318 = arith.constant dense<0.000000e+00> : vector<8x8xf32>
    %685 = tpu.matmul %683, %684, %cst_318 {dimension_numbers = #tpu.dot_dimension_numbers<[1], [1], [0], [0], [0, 0, 1, 0], [], []>} : vector<8x8xf32>, vector<8x8xf32>, vector<8x8xf32> -> vector<8x8xf32>
    %cst_319 = arith.constant 0.353553385 : f32
    %686 = vector.broadcast %cst_319 : f32 to vector<8x8xf32>
    %687 = arith.mulf %685, %686 : vector<8x8xf32>
    %688 = arith.addf %687, %6 : vector<8x8xf32>
    %cst_320 = arith.constant dense<0xFF800000> : vector<8xf32>
    %689 = vector.multi_reduction <maximumf>, %688, %cst_320 [1] : vector<8x8xf32> to vector<8xf32>
    %690 = vector.shape_cast %689 : vector<8xf32> to vector<8x1xf32>
    %691 = vector.broadcast %690 : vector<8x1xf32> to vector<8x8xf32>
    %692 = arith.subf %688, %691 : vector<8x8xf32>
    %693 = math.exp %692 : vector<8x8xf32>
    %cst_321 = arith.constant dense<0.000000e+00> : vector<8xf32>
    %694 = vector.multi_reduction <add>, %693, %cst_321 [1] : vector<8x8xf32> to vector<8xf32>
    %695 = vector.shape_cast %694 : vector<8xf32> to vector<8x1xf32>
    %696 = tpu.reciprocal %695 {approx = true} : vector<8x1xf32> -> vector<8x1xf32>
    %697 = vector.broadcast %696 : vector<8x1xf32> to vector<8x8xf32>
    %698 = arith.mulf %693, %697 : vector<8x8xf32>
    %699 = vector.extract_strided_slice %620 {offsets = [0, 24], sizes = [8, 8], strides = [1, 1]} : vector<8x32xf32> to vector<8x8xf32>
    %cst_322 = arith.constant dense<0.000000e+00> : vector<8x8xf32>
    %700 = tpu.matmul %698, %699, %cst_322 {dimension_numbers = #tpu.dot_dimension_numbers<[1], [0], [0], [1], [0, 0, 1, 1], [], []>} : vector<8x8xf32>, vector<8x8xf32>, vector<8x8xf32> -> vector<8x8xf32>
    %701 = vector.extract_strided_slice %597 {offsets = [24, 0], sizes = [8, 32], strides = [1, 1]} : vector<32x32xf32> to vector<8x32xf32>
    %cst_323 = arith.constant dense<0.000000e+00> : vector<8x32xf32>
    %702 = tpu.matmul %700, %701, %cst_323 {dimension_numbers = #tpu.dot_dimension_numbers<[1], [0], [0], [1], [0, 0, 1, 1], [], []>} : vector<8x8xf32>, vector<8x32xf32>, vector<8x32xf32> -> vector<8x32xf32>
    %703 = arith.addf %682, %702 : vector<8x32xf32>
    %704 = vector.broadcast %598 : vector<1x32xf32> to vector<8x32xf32>
    %705 = arith.addf %703, %704 : vector<8x32xf32>
    %706 = arith.addf %594, %705 : vector<8x32xf32>
    %cst_324 = arith.constant dense<0.000000e+00> : vector<8xf32>
    %707 = vector.multi_reduction <add>, %706, %cst_324 [1] : vector<8x32xf32> to vector<8xf32>
    %708 = vector.shape_cast %707 : vector<8xf32> to vector<8x1xf32>
    %cst_325 = arith.constant 3.200000e+01 : f32
    %709 = vector.broadcast %cst_325 : f32 to vector<8x1xf32>
    %710 = arith.divf %708, %709 : vector<8x1xf32>
    %711 = vector.broadcast %710 : vector<8x1xf32> to vector<8x32xf32>
    %712 = arith.subf %706, %711 : vector<8x32xf32>
    %713 = arith.mulf %712, %712 : vector<8x32xf32>
    %cst_326 = arith.constant dense<0.000000e+00> : vector<8xf32>
    %714 = vector.multi_reduction <add>, %713, %cst_326 [1] : vector<8x32xf32> to vector<8xf32>
    %715 = vector.shape_cast %714 : vector<8xf32> to vector<8x1xf32>
    %cst_327 = arith.constant 3.200000e+01 : f32
    %716 = vector.broadcast %cst_327 : f32 to vector<8x1xf32>
    %717 = arith.divf %715, %716 : vector<8x1xf32>
    %cst_328 = arith.constant 9.99999974E-6 : f32
    %718 = vector.broadcast %cst_328 : f32 to vector<8x1xf32>
    %719 = arith.addf %717, %718 : vector<8x1xf32>
    %720 = math.rsqrt %719 : vector<8x1xf32>
    %721 = vector.broadcast %720 : vector<8x1xf32> to vector<8x32xf32>
    %722 = arith.mulf %712, %721 : vector<8x32xf32>
    %723 = vector.broadcast %609 : vector<1x32xf32> to vector<8x32xf32>
    %724 = arith.mulf %722, %723 : vector<8x32xf32>
    %725 = vector.broadcast %610 : vector<1x32xf32> to vector<8x32xf32>
    %726 = arith.addf %724, %725 : vector<8x32xf32>
    %cst_329 = arith.constant dense<0.000000e+00> : vector<8x32xf32>
    %727 = tpu.matmul %726, %599, %cst_329 {dimension_numbers = #tpu.dot_dimension_numbers<[1], [0], [0], [1], [0, 0, 1, 1], [], []>} : vector<8x32xf32>, vector<32x32xf32>, vector<8x32xf32> -> vector<8x32xf32>
    %728 = vector.broadcast %600 : vector<1x32xf32> to vector<8x32xf32>
    %729 = arith.addf %727, %728 : vector<8x32xf32>
    %cst_330 = arith.constant dense<0.000000e+00> : vector<16x64xf32>
    %730 = tpu.matmul %315, %601, %cst_330 {dimension_numbers = #tpu.dot_dimension_numbers<[1], [0], [0], [1], [0, 0, 1, 1], [], []>} : vector<16x32xf32>, vector<32x64xf32>, vector<16x64xf32> -> vector<16x64xf32>
    %731 = vector.broadcast %602 : vector<1x64xf32> to vector<16x64xf32>
    %732 = arith.addf %730, %731 : vector<16x64xf32>
    %733 = vector.extract_strided_slice %732 {offsets = [0, 0], sizes = [16, 32], strides = [1, 1]} : vector<16x64xf32> to vector<16x32xf32>
    %734 = vector.extract_strided_slice %732 {offsets = [0, 32], sizes = [16, 32], strides = [1, 1]} : vector<16x64xf32> to vector<16x32xf32>
    %735 = vector.extract_strided_slice %729 {offsets = [0, 0], sizes = [8, 8], strides = [1, 1]} : vector<8x32xf32> to vector<8x8xf32>
    %736 = vector.extract_strided_slice %733 {offsets = [0, 0], sizes = [16, 8], strides = [1, 1]} : vector<16x32xf32> to vector<16x8xf32>
    %cst_331 = arith.constant dense<0.000000e+00> : vector<8x16xf32>
    %737 = tpu.matmul %735, %736, %cst_331 {dimension_numbers = #tpu.dot_dimension_numbers<[1], [1], [0], [0], [0, 0, 1, 0], [], []>} : vector<8x8xf32>, vector<16x8xf32>, vector<8x16xf32> -> vector<8x16xf32>
    %cst_332 = arith.constant 0.353553385 : f32
    %738 = vector.broadcast %cst_332 : f32 to vector<8x16xf32>
    %739 = arith.mulf %737, %738 : vector<8x16xf32>
    %740 = arith.addf %739, %7 : vector<8x16xf32>
    %cst_333 = arith.constant dense<0xFF800000> : vector<8xf32>
    %741 = vector.multi_reduction <maximumf>, %740, %cst_333 [1] : vector<8x16xf32> to vector<8xf32>
    %742 = vector.shape_cast %741 : vector<8xf32> to vector<8x1xf32>
    %743 = vector.broadcast %742 : vector<8x1xf32> to vector<8x16xf32>
    %744 = arith.subf %740, %743 : vector<8x16xf32>
    %745 = math.exp %744 : vector<8x16xf32>
    %cst_334 = arith.constant dense<0.000000e+00> : vector<8xf32>
    %746 = vector.multi_reduction <add>, %745, %cst_334 [1] : vector<8x16xf32> to vector<8xf32>
    %747 = vector.shape_cast %746 : vector<8xf32> to vector<8x1xf32>
    %748 = tpu.reciprocal %747 {approx = true} : vector<8x1xf32> -> vector<8x1xf32>
    %749 = vector.broadcast %748 : vector<8x1xf32> to vector<8x16xf32>
    %750 = arith.mulf %745, %749 : vector<8x16xf32>
    %751 = vector.extract_strided_slice %734 {offsets = [0, 0], sizes = [16, 8], strides = [1, 1]} : vector<16x32xf32> to vector<16x8xf32>
    %cst_335 = arith.constant dense<0.000000e+00> : vector<8x8xf32>
    %752 = tpu.matmul %750, %751, %cst_335 {dimension_numbers = #tpu.dot_dimension_numbers<[1], [0], [0], [1], [0, 0, 1, 1], [], []>} : vector<8x16xf32>, vector<16x8xf32>, vector<8x8xf32> -> vector<8x8xf32>
    %753 = vector.extract_strided_slice %603 {offsets = [0, 0], sizes = [8, 32], strides = [1, 1]} : vector<32x32xf32> to vector<8x32xf32>
    %cst_336 = arith.constant dense<0.000000e+00> : vector<8x32xf32>
    %754 = tpu.matmul %752, %753, %cst_336 {dimension_numbers = #tpu.dot_dimension_numbers<[1], [0], [0], [1], [0, 0, 1, 1], [], []>} : vector<8x8xf32>, vector<8x32xf32>, vector<8x32xf32> -> vector<8x32xf32>
    %755 = vector.extract_strided_slice %729 {offsets = [0, 8], sizes = [8, 8], strides = [1, 1]} : vector<8x32xf32> to vector<8x8xf32>
    %756 = vector.extract_strided_slice %733 {offsets = [0, 8], sizes = [16, 8], strides = [1, 1]} : vector<16x32xf32> to vector<16x8xf32>
    %cst_337 = arith.constant dense<0.000000e+00> : vector<8x16xf32>
    %757 = tpu.matmul %755, %756, %cst_337 {dimension_numbers = #tpu.dot_dimension_numbers<[1], [1], [0], [0], [0, 0, 1, 0], [], []>} : vector<8x8xf32>, vector<16x8xf32>, vector<8x16xf32> -> vector<8x16xf32>
    %cst_338 = arith.constant 0.353553385 : f32
    %758 = vector.broadcast %cst_338 : f32 to vector<8x16xf32>
    %759 = arith.mulf %757, %758 : vector<8x16xf32>
    %760 = arith.addf %759, %7 : vector<8x16xf32>
    %cst_339 = arith.constant dense<0xFF800000> : vector<8xf32>
    %761 = vector.multi_reduction <maximumf>, %760, %cst_339 [1] : vector<8x16xf32> to vector<8xf32>
    %762 = vector.shape_cast %761 : vector<8xf32> to vector<8x1xf32>
    %763 = vector.broadcast %762 : vector<8x1xf32> to vector<8x16xf32>
    %764 = arith.subf %760, %763 : vector<8x16xf32>
    %765 = math.exp %764 : vector<8x16xf32>
    %cst_340 = arith.constant dense<0.000000e+00> : vector<8xf32>
    %766 = vector.multi_reduction <add>, %765, %cst_340 [1] : vector<8x16xf32> to vector<8xf32>
    %767 = vector.shape_cast %766 : vector<8xf32> to vector<8x1xf32>
    %768 = tpu.reciprocal %767 {approx = true} : vector<8x1xf32> -> vector<8x1xf32>
    %769 = vector.broadcast %768 : vector<8x1xf32> to vector<8x16xf32>
    %770 = arith.mulf %765, %769 : vector<8x16xf32>
    %771 = vector.extract_strided_slice %734 {offsets = [0, 8], sizes = [16, 8], strides = [1, 1]} : vector<16x32xf32> to vector<16x8xf32>
    %cst_341 = arith.constant dense<0.000000e+00> : vector<8x8xf32>
    %772 = tpu.matmul %770, %771, %cst_341 {dimension_numbers = #tpu.dot_dimension_numbers<[1], [0], [0], [1], [0, 0, 1, 1], [], []>} : vector<8x16xf32>, vector<16x8xf32>, vector<8x8xf32> -> vector<8x8xf32>
    %773 = vector.extract_strided_slice %603 {offsets = [8, 0], sizes = [8, 32], strides = [1, 1]} : vector<32x32xf32> to vector<8x32xf32>
    %cst_342 = arith.constant dense<0.000000e+00> : vector<8x32xf32>
    %774 = tpu.matmul %772, %773, %cst_342 {dimension_numbers = #tpu.dot_dimension_numbers<[1], [0], [0], [1], [0, 0, 1, 1], [], []>} : vector<8x8xf32>, vector<8x32xf32>, vector<8x32xf32> -> vector<8x32xf32>
    %775 = arith.addf %754, %774 : vector<8x32xf32>
    %776 = vector.extract_strided_slice %729 {offsets = [0, 16], sizes = [8, 8], strides = [1, 1]} : vector<8x32xf32> to vector<8x8xf32>
    %777 = vector.extract_strided_slice %733 {offsets = [0, 16], sizes = [16, 8], strides = [1, 1]} : vector<16x32xf32> to vector<16x8xf32>
    %cst_343 = arith.constant dense<0.000000e+00> : vector<8x16xf32>
    %778 = tpu.matmul %776, %777, %cst_343 {dimension_numbers = #tpu.dot_dimension_numbers<[1], [1], [0], [0], [0, 0, 1, 0], [], []>} : vector<8x8xf32>, vector<16x8xf32>, vector<8x16xf32> -> vector<8x16xf32>
    %cst_344 = arith.constant 0.353553385 : f32
    %779 = vector.broadcast %cst_344 : f32 to vector<8x16xf32>
    %780 = arith.mulf %778, %779 : vector<8x16xf32>
    %781 = arith.addf %780, %7 : vector<8x16xf32>
    %cst_345 = arith.constant dense<0xFF800000> : vector<8xf32>
    %782 = vector.multi_reduction <maximumf>, %781, %cst_345 [1] : vector<8x16xf32> to vector<8xf32>
    %783 = vector.shape_cast %782 : vector<8xf32> to vector<8x1xf32>
    %784 = vector.broadcast %783 : vector<8x1xf32> to vector<8x16xf32>
    %785 = arith.subf %781, %784 : vector<8x16xf32>
    %786 = math.exp %785 : vector<8x16xf32>
    %cst_346 = arith.constant dense<0.000000e+00> : vector<8xf32>
    %787 = vector.multi_reduction <add>, %786, %cst_346 [1] : vector<8x16xf32> to vector<8xf32>
    %788 = vector.shape_cast %787 : vector<8xf32> to vector<8x1xf32>
    %789 = tpu.reciprocal %788 {approx = true} : vector<8x1xf32> -> vector<8x1xf32>
    %790 = vector.broadcast %789 : vector<8x1xf32> to vector<8x16xf32>
    %791 = arith.mulf %786, %790 : vector<8x16xf32>
    %792 = vector.extract_strided_slice %734 {offsets = [0, 16], sizes = [16, 8], strides = [1, 1]} : vector<16x32xf32> to vector<16x8xf32>
    %cst_347 = arith.constant dense<0.000000e+00> : vector<8x8xf32>
    %793 = tpu.matmul %791, %792, %cst_347 {dimension_numbers = #tpu.dot_dimension_numbers<[1], [0], [0], [1], [0, 0, 1, 1], [], []>} : vector<8x16xf32>, vector<16x8xf32>, vector<8x8xf32> -> vector<8x8xf32>
    %794 = vector.extract_strided_slice %603 {offsets = [16, 0], sizes = [8, 32], strides = [1, 1]} : vector<32x32xf32> to vector<8x32xf32>
    %cst_348 = arith.constant dense<0.000000e+00> : vector<8x32xf32>
    %795 = tpu.matmul %793, %794, %cst_348 {dimension_numbers = #tpu.dot_dimension_numbers<[1], [0], [0], [1], [0, 0, 1, 1], [], []>} : vector<8x8xf32>, vector<8x32xf32>, vector<8x32xf32> -> vector<8x32xf32>
    %796 = arith.addf %775, %795 : vector<8x32xf32>
    %797 = vector.extract_strided_slice %729 {offsets = [0, 24], sizes = [8, 8], strides = [1, 1]} : vector<8x32xf32> to vector<8x8xf32>
    %798 = vector.extract_strided_slice %733 {offsets = [0, 24], sizes = [16, 8], strides = [1, 1]} : vector<16x32xf32> to vector<16x8xf32>
    %cst_349 = arith.constant dense<0.000000e+00> : vector<8x16xf32>
    %799 = tpu.matmul %797, %798, %cst_349 {dimension_numbers = #tpu.dot_dimension_numbers<[1], [1], [0], [0], [0, 0, 1, 0], [], []>} : vector<8x8xf32>, vector<16x8xf32>, vector<8x16xf32> -> vector<8x16xf32>
    %cst_350 = arith.constant 0.353553385 : f32
    %800 = vector.broadcast %cst_350 : f32 to vector<8x16xf32>
    %801 = arith.mulf %799, %800 : vector<8x16xf32>
    %802 = arith.addf %801, %7 : vector<8x16xf32>
    %cst_351 = arith.constant dense<0xFF800000> : vector<8xf32>
    %803 = vector.multi_reduction <maximumf>, %802, %cst_351 [1] : vector<8x16xf32> to vector<8xf32>
    %804 = vector.shape_cast %803 : vector<8xf32> to vector<8x1xf32>
    %805 = vector.broadcast %804 : vector<8x1xf32> to vector<8x16xf32>
    %806 = arith.subf %802, %805 : vector<8x16xf32>
    %807 = math.exp %806 : vector<8x16xf32>
    %cst_352 = arith.constant dense<0.000000e+00> : vector<8xf32>
    %808 = vector.multi_reduction <add>, %807, %cst_352 [1] : vector<8x16xf32> to vector<8xf32>
    %809 = vector.shape_cast %808 : vector<8xf32> to vector<8x1xf32>
    %810 = tpu.reciprocal %809 {approx = true} : vector<8x1xf32> -> vector<8x1xf32>
    %811 = vector.broadcast %810 : vector<8x1xf32> to vector<8x16xf32>
    %812 = arith.mulf %807, %811 : vector<8x16xf32>
    %813 = vector.extract_strided_slice %734 {offsets = [0, 24], sizes = [16, 8], strides = [1, 1]} : vector<16x32xf32> to vector<16x8xf32>
    %cst_353 = arith.constant dense<0.000000e+00> : vector<8x8xf32>
    %814 = tpu.matmul %812, %813, %cst_353 {dimension_numbers = #tpu.dot_dimension_numbers<[1], [0], [0], [1], [0, 0, 1, 1], [], []>} : vector<8x16xf32>, vector<16x8xf32>, vector<8x8xf32> -> vector<8x8xf32>
    %815 = vector.extract_strided_slice %603 {offsets = [24, 0], sizes = [8, 32], strides = [1, 1]} : vector<32x32xf32> to vector<8x32xf32>
    %cst_354 = arith.constant dense<0.000000e+00> : vector<8x32xf32>
    %816 = tpu.matmul %814, %815, %cst_354 {dimension_numbers = #tpu.dot_dimension_numbers<[1], [0], [0], [1], [0, 0, 1, 1], [], []>} : vector<8x8xf32>, vector<8x32xf32>, vector<8x32xf32> -> vector<8x32xf32>
    %817 = arith.addf %796, %816 : vector<8x32xf32>
    %818 = vector.broadcast %604 : vector<1x32xf32> to vector<8x32xf32>
    %819 = arith.addf %817, %818 : vector<8x32xf32>
    %820 = arith.addf %726, %819 : vector<8x32xf32>
    %cst_355 = arith.constant dense<0.000000e+00> : vector<8xf32>
    %821 = vector.multi_reduction <add>, %820, %cst_355 [1] : vector<8x32xf32> to vector<8xf32>
    %822 = vector.shape_cast %821 : vector<8xf32> to vector<8x1xf32>
    %cst_356 = arith.constant 3.200000e+01 : f32
    %823 = vector.broadcast %cst_356 : f32 to vector<8x1xf32>
    %824 = arith.divf %822, %823 : vector<8x1xf32>
    %825 = vector.broadcast %824 : vector<8x1xf32> to vector<8x32xf32>
    %826 = arith.subf %820, %825 : vector<8x32xf32>
    %827 = arith.mulf %826, %826 : vector<8x32xf32>
    %cst_357 = arith.constant dense<0.000000e+00> : vector<8xf32>
    %828 = vector.multi_reduction <add>, %827, %cst_357 [1] : vector<8x32xf32> to vector<8xf32>
    %829 = vector.shape_cast %828 : vector<8xf32> to vector<8x1xf32>
    %cst_358 = arith.constant 3.200000e+01 : f32
    %830 = vector.broadcast %cst_358 : f32 to vector<8x1xf32>
    %831 = arith.divf %829, %830 : vector<8x1xf32>
    %cst_359 = arith.constant 9.99999974E-6 : f32
    %832 = vector.broadcast %cst_359 : f32 to vector<8x1xf32>
    %833 = arith.addf %831, %832 : vector<8x1xf32>
    %834 = math.rsqrt %833 : vector<8x1xf32>
    %835 = vector.broadcast %834 : vector<8x1xf32> to vector<8x32xf32>
    %836 = arith.mulf %826, %835 : vector<8x32xf32>
    %837 = vector.broadcast %611 : vector<1x32xf32> to vector<8x32xf32>
    %838 = arith.mulf %836, %837 : vector<8x32xf32>
    %839 = vector.broadcast %612 : vector<1x32xf32> to vector<8x32xf32>
    %840 = arith.addf %838, %839 : vector<8x32xf32>
    %cst_360 = arith.constant dense<0.000000e+00> : vector<8x64xf32>
    %841 = tpu.matmul %840, %605, %cst_360 {dimension_numbers = #tpu.dot_dimension_numbers<[1], [0], [0], [1], [0, 0, 1, 1], [], []>} : vector<8x32xf32>, vector<32x64xf32>, vector<8x64xf32> -> vector<8x64xf32>
    %842 = vector.broadcast %606 : vector<1x64xf32> to vector<8x64xf32>
    %843 = arith.addf %841, %842 : vector<8x64xf32>
    %cst_361 = arith.constant 0.000000e+00 : f32
    %844 = vector.broadcast %cst_361 : f32 to vector<8x64xf32>
    %845 = arith.maximumf %843, %844 : vector<8x64xf32>
    %cst_362 = arith.constant dense<0.000000e+00> : vector<8x32xf32>
    %846 = tpu.matmul %845, %607, %cst_362 {dimension_numbers = #tpu.dot_dimension_numbers<[1], [0], [0], [1], [0, 0, 1, 1], [], []>} : vector<8x64xf32>, vector<64x32xf32>, vector<8x32xf32> -> vector<8x32xf32>
    %847 = vector.broadcast %608 : vector<1x32xf32> to vector<8x32xf32>
    %848 = arith.addf %846, %847 : vector<8x32xf32>
    %849 = arith.addf %840, %848 : vector<8x32xf32>
    %cst_363 = arith.constant dense<0.000000e+00> : vector<8xf32>
    %850 = vector.multi_reduction <add>, %849, %cst_363 [1] : vector<8x32xf32> to vector<8xf32>
    %851 = vector.shape_cast %850 : vector<8xf32> to vector<8x1xf32>
    %cst_364 = arith.constant 3.200000e+01 : f32
    %852 = vector.broadcast %cst_364 : f32 to vector<8x1xf32>
    %853 = arith.divf %851, %852 : vector<8x1xf32>
    %854 = vector.broadcast %853 : vector<8x1xf32> to vector<8x32xf32>
    %855 = arith.subf %849, %854 : vector<8x32xf32>
    %856 = arith.mulf %855, %855 : vector<8x32xf32>
    %cst_365 = arith.constant dense<0.000000e+00> : vector<8xf32>
    %857 = vector.multi_reduction <add>, %856, %cst_365 [1] : vector<8x32xf32> to vector<8xf32>
    %858 = vector.shape_cast %857 : vector<8xf32> to vector<8x1xf32>
    %cst_366 = arith.constant 3.200000e+01 : f32
    %859 = vector.broadcast %cst_366 : f32 to vector<8x1xf32>
    %860 = arith.divf %858, %859 : vector<8x1xf32>
    %cst_367 = arith.constant 9.99999974E-6 : f32
    %861 = vector.broadcast %cst_367 : f32 to vector<8x1xf32>
    %862 = arith.addf %860, %861 : vector<8x1xf32>
    %863 = math.rsqrt %862 : vector<8x1xf32>
    %864 = vector.broadcast %863 : vector<8x1xf32> to vector<8x32xf32>
    %865 = arith.mulf %855, %864 : vector<8x32xf32>
    %866 = vector.broadcast %613 : vector<1x32xf32> to vector<8x32xf32>
    %867 = arith.mulf %865, %866 : vector<8x32xf32>
    %868 = vector.broadcast %614 : vector<1x32xf32> to vector<8x32xf32>
    %869 = arith.addf %867, %868 : vector<8x32xf32>
    %cst_368 = arith.constant dense<0.000000e+00> : vector<8x1xf32>
    %870 = tpu.matmul %869, %12, %cst_368 {dimension_numbers = #tpu.dot_dimension_numbers<[1], [0], [0], [1], [0, 0, 1, 1], [], []>} : vector<8x32xf32>, vector<32x1xf32>, vector<8x1xf32> -> vector<8x1xf32>
    %871 = vector.broadcast %13 : vector<1x1xf32> to vector<8x1xf32>
    %872 = arith.addf %870, %871 : vector<8x1xf32>
    %c0_369 = arith.constant 0 : index
    %c0_370 = arith.constant 0 : index
    %c0_371 = arith.constant 0 : index
    %873 = vector.load %arg77[%c0_369, %c0_370, %c0_371] : memref<1x8x1xf32, #tpu.memory_space<vmem>>, vector<1x8x1xf32>
    %874 = vector.shape_cast %873 : vector<1x8x1xf32> to vector<8x1xf32>
    %875 = vector.shape_cast %872 : vector<8x1xf32> to vector<1x8x1xf32>
    tpu.vector_store %arg77[%c0_369, %c0_370, %c0_371], %875 {strides = array<i32>} : memref<1x8x1xf32, #tpu.memory_space<vmem>>, vector<1x8x1xf32>,
    return
  }
  func.func @transform_0(%arg0: i32) -> (i32, i32, i32) {
    %c0_i32 = arith.constant 0 : i32
    %c0_i32_0 = arith.constant 0 : i32
    %c0_i32_1 = arith.constant 0 : i32
    return %arg0, %c0_i32, %c0_i32_0 : i32, i32, i32
  }
  func.func @transform_1(%arg0: i32) -> (i32, i32, i32) {
    %c0_i32 = arith.constant 0 : i32
    %c0_i32_0 = arith.constant 0 : i32
    %c0_i32_1 = arith.constant 0 : i32
    return %arg0, %c0_i32, %c0_i32_0 : i32, i32, i32
  }
  func.func @transform_2(%arg0: i32) -> (i32, i32) {
    %c0_i32 = arith.constant 0 : i32
    %c0_i32_0 = arith.constant 0 : i32
    %c0_i32_1 = arith.constant 0 : i32
    return %c0_i32, %c0_i32_0 : i32, i32
  }
  func.func @transform_3(%arg0: i32) -> (i32, i32) {
    %c0_i32 = arith.constant 0 : i32
    %c0_i32_0 = arith.constant 0 : i32
    %c0_i32_1 = arith.constant 0 : i32
    return %c0_i32, %c0_i32_0 : i32, i32
  }
  func.func @transform_4(%arg0: i32) -> (i32, i32) {
    %c0_i32 = arith.constant 0 : i32
    %c0_i32_0 = arith.constant 0 : i32
    %c0_i32_1 = arith.constant 0 : i32
    return %c0_i32, %c0_i32_0 : i32, i32
  }
  func.func @transform_5(%arg0: i32) -> (i32, i32) {
    %c0_i32 = arith.constant 0 : i32
    %c0_i32_0 = arith.constant 0 : i32
    %c0_i32_1 = arith.constant 0 : i32
    return %c0_i32, %c0_i32_0 : i32, i32
  }
  func.func @transform_6(%arg0: i32) -> (i32, i32) {
    %c0_i32 = arith.constant 0 : i32
    %c0_i32_0 = arith.constant 0 : i32
    %c0_i32_1 = arith.constant 0 : i32
    return %c0_i32, %c0_i32_0 : i32, i32
  }
  func.func @transform_7(%arg0: i32) -> (i32, i32) {
    %c0_i32 = arith.constant 0 : i32
    %c0_i32_0 = arith.constant 0 : i32
    %c0_i32_1 = arith.constant 0 : i32
    return %c0_i32, %c0_i32_0 : i32, i32
  }
  func.func @transform_8(%arg0: i32) -> (i32, i32) {
    %c0_i32 = arith.constant 0 : i32
    %c0_i32_0 = arith.constant 0 : i32
    %c0_i32_1 = arith.constant 0 : i32
    return %c0_i32, %c0_i32_0 : i32, i32
  }
  func.func @transform_9(%arg0: i32) -> (i32, i32) {
    %c0_i32 = arith.constant 0 : i32
    %c0_i32_0 = arith.constant 0 : i32
    %c0_i32_1 = arith.constant 0 : i32
    return %c0_i32, %c0_i32_0 : i32, i32
  }
  func.func @transform_10(%arg0: i32) -> (i32, i32) {
    %c0_i32 = arith.constant 0 : i32
    %c0_i32_0 = arith.constant 0 : i32
    %c0_i32_1 = arith.constant 0 : i32
    return %c0_i32, %c0_i32_0 : i32, i32
  }
  func.func @transform_11(%arg0: i32) -> (i32, i32) {
    %c0_i32 = arith.constant 0 : i32
    %c0_i32_0 = arith.constant 0 : i32
    %c0_i32_1 = arith.constant 0 : i32
    return %c0_i32, %c0_i32_0 : i32, i32
  }
  func.func @transform_12(%arg0: i32) -> (i32, i32) {
    %c0_i32 = arith.constant 0 : i32
    %c0_i32_0 = arith.constant 0 : i32
    %c0_i32_1 = arith.constant 0 : i32
    return %c0_i32, %c0_i32_0 : i32, i32
  }
  func.func @transform_13(%arg0: i32) -> (i32, i32) {
    %c0_i32 = arith.constant 0 : i32
    %c0_i32_0 = arith.constant 0 : i32
    %c0_i32_1 = arith.constant 0 : i32
    return %c0_i32, %c0_i32_0 : i32, i32
  }
  func.func @transform_14(%arg0: i32) -> (i32, i32) {
    %c0_i32 = arith.constant 0 : i32
    %c0_i32_0 = arith.constant 0 : i32
    %c0_i32_1 = arith.constant 0 : i32
    return %c0_i32, %c0_i32_0 : i32, i32
  }
  func.func @transform_15(%arg0: i32) -> (i32, i32) {
    %c0_i32 = arith.constant 0 : i32
    %c0_i32_0 = arith.constant 0 : i32
    %c0_i32_1 = arith.constant 0 : i32
    return %c0_i32, %c0_i32_0 : i32, i32
  }
  func.func @transform_16(%arg0: i32) -> (i32, i32) {
    %c0_i32 = arith.constant 0 : i32
    %c0_i32_0 = arith.constant 0 : i32
    %c0_i32_1 = arith.constant 0 : i32
    return %c0_i32, %c0_i32_0 : i32, i32
  }
  func.func @transform_17(%arg0: i32) -> (i32, i32) {
    %c0_i32 = arith.constant 0 : i32
    %c0_i32_0 = arith.constant 0 : i32
    %c0_i32_1 = arith.constant 0 : i32
    return %c0_i32, %c0_i32_0 : i32, i32
  }
  func.func @transform_18(%arg0: i32) -> (i32, i32) {
    %c0_i32 = arith.constant 0 : i32
    %c0_i32_0 = arith.constant 0 : i32
    %c0_i32_1 = arith.constant 0 : i32
    return %c0_i32, %c0_i32_0 : i32, i32
  }
  func.func @transform_19(%arg0: i32) -> (i32, i32) {
    %c0_i32 = arith.constant 0 : i32
    %c0_i32_0 = arith.constant 0 : i32
    %c0_i32_1 = arith.constant 0 : i32
    return %c0_i32, %c0_i32_0 : i32, i32
  }
  func.func @transform_20(%arg0: i32) -> (i32, i32) {
    %c0_i32 = arith.constant 0 : i32
    %c0_i32_0 = arith.constant 0 : i32
    %c0_i32_1 = arith.constant 0 : i32
    return %c0_i32, %c0_i32_0 : i32, i32
  }
  func.func @transform_21(%arg0: i32) -> (i32, i32) {
    %c0_i32 = arith.constant 0 : i32
    %c0_i32_0 = arith.constant 0 : i32
    %c0_i32_1 = arith.constant 0 : i32
    return %c0_i32, %c0_i32_0 : i32, i32
  }
  func.func @transform_22(%arg0: i32) -> (i32, i32) {
    %c0_i32 = arith.constant 0 : i32
    %c0_i32_0 = arith.constant 0 : i32
    %c0_i32_1 = arith.constant 0 : i32
    return %c0_i32, %c0_i32_0 : i32, i32
  }
  func.func @transform_23(%arg0: i32) -> (i32, i32) {
    %c0_i32 = arith.constant 0 : i32
    %c0_i32_0 = arith.constant 0 : i32
    %c0_i32_1 = arith.constant 0 : i32
    return %c0_i32, %c0_i32_0 : i32, i32
  }
  func.func @transform_24(%arg0: i32) -> (i32, i32) {
    %c0_i32 = arith.constant 0 : i32
    %c0_i32_0 = arith.constant 0 : i32
    %c0_i32_1 = arith.constant 0 : i32
    return %c0_i32, %c0_i32_0 : i32, i32
  }
  func.func @transform_25(%arg0: i32) -> (i32, i32) {
    %c0_i32 = arith.constant 0 : i32
    %c0_i32_0 = arith.constant 0 : i32
    %c0_i32_1 = arith.constant 0 : i32
    return %c0_i32, %c0_i32_0 : i32, i32
  }
  func.func @transform_26(%arg0: i32) -> (i32, i32) {
    %c0_i32 = arith.constant 0 : i32
    %c0_i32_0 = arith.constant 0 : i32
    %c0_i32_1 = arith.constant 0 : i32
    return %c0_i32, %c0_i32_0 : i32, i32
  }
  func.func @transform_27(%arg0: i32) -> (i32, i32) {
    %c0_i32 = arith.constant 0 : i32
    %c0_i32_0 = arith.constant 0 : i32
    %c0_i32_1 = arith.constant 0 : i32
    return %c0_i32, %c0_i32_0 : i32, i32
  }
  func.func @transform_28(%arg0: i32) -> (i32, i32) {
    %c0_i32 = arith.constant 0 : i32
    %c0_i32_0 = arith.constant 0 : i32
    %c0_i32_1 = arith.constant 0 : i32
    return %c0_i32, %c0_i32_0 : i32, i32
  }
  func.func @transform_29(%arg0: i32) -> (i32, i32) {
    %c0_i32 = arith.constant 0 : i32
    %c0_i32_0 = arith.constant 0 : i32
    %c0_i32_1 = arith.constant 0 : i32
    return %c0_i32, %c0_i32_0 : i32, i32
  }
  func.func @transform_30(%arg0: i32) -> (i32, i32) {
    %c0_i32 = arith.constant 0 : i32
    %c0_i32_0 = arith.constant 0 : i32
    %c0_i32_1 = arith.constant 0 : i32
    return %c0_i32, %c0_i32_0 : i32, i32
  }
  func.func @transform_31(%arg0: i32) -> (i32, i32) {
    %c0_i32 = arith.constant 0 : i32
    %c0_i32_0 = arith.constant 0 : i32
    %c0_i32_1 = arith.constant 0 : i32
    return %c0_i32, %c0_i32_0 : i32, i32
  }
  func.func @transform_32(%arg0: i32) -> (i32, i32) {
    %c0_i32 = arith.constant 0 : i32
    %c0_i32_0 = arith.constant 0 : i32
    %c0_i32_1 = arith.constant 0 : i32
    return %c0_i32, %c0_i32_0 : i32, i32
  }
  func.func @transform_33(%arg0: i32) -> (i32, i32) {
    %c0_i32 = arith.constant 0 : i32
    %c0_i32_0 = arith.constant 0 : i32
    %c0_i32_1 = arith.constant 0 : i32
    return %c0_i32, %c0_i32_0 : i32, i32
  }
  func.func @transform_34(%arg0: i32) -> (i32, i32) {
    %c0_i32 = arith.constant 0 : i32
    %c0_i32_0 = arith.constant 0 : i32
    %c0_i32_1 = arith.constant 0 : i32
    return %c0_i32, %c0_i32_0 : i32, i32
  }
  func.func @transform_35(%arg0: i32) -> (i32, i32) {
    %c0_i32 = arith.constant 0 : i32
    %c0_i32_0 = arith.constant 0 : i32
    %c0_i32_1 = arith.constant 0 : i32
    return %c0_i32, %c0_i32_0 : i32, i32
  }
  func.func @transform_36(%arg0: i32) -> (i32, i32) {
    %c0_i32 = arith.constant 0 : i32
    %c0_i32_0 = arith.constant 0 : i32
    %c0_i32_1 = arith.constant 0 : i32
    return %c0_i32, %c0_i32_0 : i32, i32
  }
  func.func @transform_37(%arg0: i32) -> (i32, i32) {
    %c0_i32 = arith.constant 0 : i32
    %c0_i32_0 = arith.constant 0 : i32
    %c0_i32_1 = arith.constant 0 : i32
    return %c0_i32, %c0_i32_0 : i32, i32
  }
  func.func @transform_38(%arg0: i32) -> (i32, i32) {
    %c0_i32 = arith.constant 0 : i32
    %c0_i32_0 = arith.constant 0 : i32
    %c0_i32_1 = arith.constant 0 : i32
    return %c0_i32, %c0_i32_0 : i32, i32
  }
  func.func @transform_39(%arg0: i32) -> (i32, i32) {
    %c0_i32 = arith.constant 0 : i32
    %c0_i32_0 = arith.constant 0 : i32
    %c0_i32_1 = arith.constant 0 : i32
    return %c0_i32, %c0_i32_0 : i32, i32
  }
  func.func @transform_40(%arg0: i32) -> (i32, i32) {
    %c0_i32 = arith.constant 0 : i32
    %c0_i32_0 = arith.constant 0 : i32
    %c0_i32_1 = arith.constant 0 : i32
    return %c0_i32, %c0_i32_0 : i32, i32
  }
  func.func @transform_41(%arg0: i32) -> (i32, i32) {
    %c0_i32 = arith.constant 0 : i32
    %c0_i32_0 = arith.constant 0 : i32
    %c0_i32_1 = arith.constant 0 : i32
    return %c0_i32, %c0_i32_0 : i32, i32
  }
  func.func @transform_42(%arg0: i32) -> (i32, i32) {
    %c0_i32 = arith.constant 0 : i32
    %c0_i32_0 = arith.constant 0 : i32
    %c0_i32_1 = arith.constant 0 : i32
    return %c0_i32, %c0_i32_0 : i32, i32
  }
  func.func @transform_43(%arg0: i32) -> (i32, i32) {
    %c0_i32 = arith.constant 0 : i32
    %c0_i32_0 = arith.constant 0 : i32
    %c0_i32_1 = arith.constant 0 : i32
    return %c0_i32, %c0_i32_0 : i32, i32
  }
  func.func @transform_44(%arg0: i32) -> (i32, i32) {
    %c0_i32 = arith.constant 0 : i32
    %c0_i32_0 = arith.constant 0 : i32
    %c0_i32_1 = arith.constant 0 : i32
    return %c0_i32, %c0_i32_0 : i32, i32
  }
  func.func @transform_45(%arg0: i32) -> (i32, i32) {
    %c0_i32 = arith.constant 0 : i32
    %c0_i32_0 = arith.constant 0 : i32
    %c0_i32_1 = arith.constant 0 : i32
    return %c0_i32, %c0_i32_0 : i32, i32
  }
  func.func @transform_46(%arg0: i32) -> (i32, i32) {
    %c0_i32 = arith.constant 0 : i32
    %c0_i32_0 = arith.constant 0 : i32
    %c0_i32_1 = arith.constant 0 : i32
    return %c0_i32, %c0_i32_0 : i32, i32
  }
  func.func @transform_47(%arg0: i32) -> (i32, i32) {
    %c0_i32 = arith.constant 0 : i32
    %c0_i32_0 = arith.constant 0 : i32
    %c0_i32_1 = arith.constant 0 : i32
    return %c0_i32, %c0_i32_0 : i32, i32
  }
  func.func @transform_48(%arg0: i32) -> (i32, i32) {
    %c0_i32 = arith.constant 0 : i32
    %c0_i32_0 = arith.constant 0 : i32
    %c0_i32_1 = arith.constant 0 : i32
    return %c0_i32, %c0_i32_0 : i32, i32
  }
  func.func @transform_49(%arg0: i32) -> (i32, i32) {
    %c0_i32 = arith.constant 0 : i32
    %c0_i32_0 = arith.constant 0 : i32
    %c0_i32_1 = arith.constant 0 : i32
    return %c0_i32, %c0_i32_0 : i32, i32
  }
  func.func @transform_50(%arg0: i32) -> (i32, i32) {
    %c0_i32 = arith.constant 0 : i32
    %c0_i32_0 = arith.constant 0 : i32
    %c0_i32_1 = arith.constant 0 : i32
    return %c0_i32, %c0_i32_0 : i32, i32
  }
  func.func @transform_51(%arg0: i32) -> (i32, i32) {
    %c0_i32 = arith.constant 0 : i32
    %c0_i32_0 = arith.constant 0 : i32
    %c0_i32_1 = arith.constant 0 : i32
    return %c0_i32, %c0_i32_0 : i32, i32
  }
  func.func @transform_52(%arg0: i32) -> (i32, i32) {
    %c0_i32 = arith.constant 0 : i32
    %c0_i32_0 = arith.constant 0 : i32
    %c0_i32_1 = arith.constant 0 : i32
    return %c0_i32, %c0_i32_0 : i32, i32
  }
  func.func @transform_53(%arg0: i32) -> (i32, i32) {
    %c0_i32 = arith.constant 0 : i32
    %c0_i32_0 = arith.constant 0 : i32
    %c0_i32_1 = arith.constant 0 : i32
    return %c0_i32, %c0_i32_0 : i32, i32
  }
  func.func @transform_54(%arg0: i32) -> (i32, i32) {
    %c0_i32 = arith.constant 0 : i32
    %c0_i32_0 = arith.constant 0 : i32
    %c0_i32_1 = arith.constant 0 : i32
    return %c0_i32, %c0_i32_0 : i32, i32
  }
  func.func @transform_55(%arg0: i32) -> (i32, i32) {
    %c0_i32 = arith.constant 0 : i32
    %c0_i32_0 = arith.constant 0 : i32
    %c0_i32_1 = arith.constant 0 : i32
    return %c0_i32, %c0_i32_0 : i32, i32
  }
  func.func @transform_56(%arg0: i32) -> (i32, i32) {
    %c0_i32 = arith.constant 0 : i32
    %c0_i32_0 = arith.constant 0 : i32
    %c0_i32_1 = arith.constant 0 : i32
    return %c0_i32, %c0_i32_0 : i32, i32
  }
  func.func @transform_57(%arg0: i32) -> (i32, i32) {
    %c0_i32 = arith.constant 0 : i32
    %c0_i32_0 = arith.constant 0 : i32
    %c0_i32_1 = arith.constant 0 : i32
    return %c0_i32, %c0_i32_0 : i32, i32
  }
  func.func @transform_58(%arg0: i32) -> (i32, i32) {
    %c0_i32 = arith.constant 0 : i32
    %c0_i32_0 = arith.constant 0 : i32
    %c0_i32_1 = arith.constant 0 : i32
    return %c0_i32, %c0_i32_0 : i32, i32
  }
  func.func @transform_59(%arg0: i32) -> (i32, i32) {
    %c0_i32 = arith.constant 0 : i32
    %c0_i32_0 = arith.constant 0 : i32
    %c0_i32_1 = arith.constant 0 : i32
    return %c0_i32, %c0_i32_0 : i32, i32
  }
  func.func @transform_60(%arg0: i32) -> (i32, i32) {
    %c0_i32 = arith.constant 0 : i32
    %c0_i32_0 = arith.constant 0 : i32
    %c0_i32_1 = arith.constant 0 : i32
    return %c0_i32, %c0_i32_0 : i32, i32
  }
  func.func @transform_61(%arg0: i32) -> (i32, i32) {
    %c0_i32 = arith.constant 0 : i32
    %c0_i32_0 = arith.constant 0 : i32
    %c0_i32_1 = arith.constant 0 : i32
    return %c0_i32, %c0_i32_0 : i32, i32
  }
  func.func @transform_62(%arg0: i32) -> (i32, i32) {
    %c0_i32 = arith.constant 0 : i32
    %c0_i32_0 = arith.constant 0 : i32
    %c0_i32_1 = arith.constant 0 : i32
    return %c0_i32, %c0_i32_0 : i32, i32
  }
  func.func @transform_63(%arg0: i32) -> (i32, i32) {
    %c0_i32 = arith.constant 0 : i32
    %c0_i32_0 = arith.constant 0 : i32
    %c0_i32_1 = arith.constant 0 : i32
    return %c0_i32, %c0_i32_0 : i32, i32
  }
  func.func @transform_64(%arg0: i32) -> (i32, i32) {
    %c0_i32 = arith.constant 0 : i32
    %c0_i32_0 = arith.constant 0 : i32
    %c0_i32_1 = arith.constant 0 : i32
    return %c0_i32, %c0_i32_0 : i32, i32
  }
  func.func @transform_65(%arg0: i32) -> (i32, i32) {
    %c0_i32 = arith.constant 0 : i32
    %c0_i32_0 = arith.constant 0 : i32
    %c0_i32_1 = arith.constant 0 : i32
    return %c0_i32, %c0_i32_0 : i32, i32
  }
  func.func @transform_66(%arg0: i32) -> (i32, i32) {
    %c0_i32 = arith.constant 0 : i32
    %c0_i32_0 = arith.constant 0 : i32
    %c0_i32_1 = arith.constant 0 : i32
    return %c0_i32, %c0_i32_0 : i32, i32
  }
  func.func @transform_67(%arg0: i32) -> (i32, i32) {
    %c0_i32 = arith.constant 0 : i32
    %c0_i32_0 = arith.constant 0 : i32
    %c0_i32_1 = arith.constant 0 : i32
    return %c0_i32, %c0_i32_0 : i32, i32
  }
  func.func @transform_68(%arg0: i32) -> (i32, i32) {
    %c0_i32 = arith.constant 0 : i32
    %c0_i32_0 = arith.constant 0 : i32
    %c0_i32_1 = arith.constant 0 : i32
    return %c0_i32, %c0_i32_0 : i32, i32
  }
  func.func @transform_69(%arg0: i32) -> (i32, i32) {
    %c0_i32 = arith.constant 0 : i32
    %c0_i32_0 = arith.constant 0 : i32
    %c0_i32_1 = arith.constant 0 : i32
    return %c0_i32, %c0_i32_0 : i32, i32
  }
  func.func @transform_70(%arg0: i32) -> (i32, i32) {
    %c0_i32 = arith.constant 0 : i32
    %c0_i32_0 = arith.constant 0 : i32
    %c0_i32_1 = arith.constant 0 : i32
    return %c0_i32, %c0_i32_0 : i32, i32
  }
  func.func @transform_71(%arg0: i32) -> (i32, i32) {
    %c0_i32 = arith.constant 0 : i32
    %c0_i32_0 = arith.constant 0 : i32
    %c0_i32_1 = arith.constant 0 : i32
    return %c0_i32, %c0_i32_0 : i32, i32
  }
  func.func @transform_72(%arg0: i32) -> (i32, i32) {
    %c0_i32 = arith.constant 0 : i32
    %c0_i32_0 = arith.constant 0 : i32
    %c0_i32_1 = arith.constant 0 : i32
    return %c0_i32, %c0_i32_0 : i32, i32
  }
  func.func @transform_73(%arg0: i32) -> (i32, i32) {
    %c0_i32 = arith.constant 0 : i32
    %c0_i32_0 = arith.constant 0 : i32
    %c0_i32_1 = arith.constant 0 : i32
    return %c0_i32, %c0_i32_0 : i32, i32
  }
  func.func @transform_74(%arg0: i32) -> (i32, i32) {
    %c0_i32 = arith.constant 0 : i32
    %c0_i32_0 = arith.constant 0 : i32
    %c0_i32_1 = arith.constant 0 : i32
    return %c0_i32, %c0_i32_0 : i32, i32
  }
  func.func @transform_75(%arg0: i32) -> (i32, i32) {
    %c0_i32 = arith.constant 0 : i32
    %c0_i32_0 = arith.constant 0 : i32
    %c0_i32_1 = arith.constant 0 : i32
    return %c0_i32, %c0_i32_0 : i32, i32
  }
  func.func @transform_76(%arg0: i32) -> (i32, i32, i32) {
    %c0_i32 = arith.constant 0 : i32
    %c0_i32_0 = arith.constant 0 : i32
    %c0_i32_1 = arith.constant 0 : i32
    return %arg0, %c0_i32, %c0_i32_0 : i32, i32, i32
  }
}

</mosaic_0001>

<bundles_post_ra>
// kernel: transformer_forward.1
= control target key start
LH: loop header
LB: loop body
LE: loop exit
PB: predicated region body
PF: predicated region fallthrough
CT: control target
= control target key end

     0   :  { %s14088_s6 = smov 1   ;;  %s14089_s10 = smov 2   ;;  %s15835_s0 = inlined_call_operand.smem [shape: u32[77], index: -1, kind: input, shape index: {}] }
   0x1   :  { %s14221_s5 = sld [smem:[%s15835_s0]]   ;;  %s14090_s14 = smov 3  }
   0x2   :  { %s14226_s9 = sld [smem:[%s15835_s0 + %s14088_s6]]   ;;  %s14091_s18 = smov 4  }
   0x3   :  { %s14231_s13 = sld [smem:[%s15835_s0 + %s14089_s10]]   ;;  %s14092_s22 = smov 5  }
   0x4   :  { %s14236_s17 = sld [smem:[%s15835_s0 + %s14090_s14]]   ;;  %s14093_s26 = smov 6  }
   0x5   :  { %s14241_s21 = sld [smem:[%s15835_s0 + %s14091_s18]]   ;;  %s14094_s30 = smov 7  }
   0x6   :  { %s14246_s25 = sld [smem:[%s15835_s0 + %s14092_s22]]   ;;  %s14095_s4 = smov 8  }
   0x7   :  { %15893 = sst [smem:[#allocation73_spill]] %s14221_s5  ;;  %s14096_s10 = smov 9  }
   0x8   :  { %15894 = sst [smem:[#allocation74_spill]] %s14226_s9  ;;  %s14097_s15 = smov 10  }
   0x9   :  { %15895 = sst [smem:[#allocation75_spill]] %s14231_s13  ;;  %s14098_s20 = smov 11  }
   0xa   :  { %15896 = sst [smem:[#allocation76_spill]] %s14236_s17  ;;  %s14100_s1 = smov 13  }
   0xb   :  { %15897 = sst [smem:[#allocation77_spill]] %s14241_s21  ;;  %s14101_s7 = smov 14  }
   0xc   :  { %15898 = sst [smem:[#allocation78_spill]] %s14246_s25  ;;  %s14103_s22 = smov 16  }
   0xd   :  { %s14251_s29 = sld [smem:[%s15835_s0 + %s14093_s26]]   ;;  %s14099_s26 = smov 12  }
   0xe   :  { %s14256_s3 = sld [smem:[%s15835_s0 + %s14094_s30]]   ;;  %s14104_s28 = smov 17  }
   0xf   :  { %s14261_s8 = sld [smem:[%s15835_s0 + %s14095_s4]]   ;;  %s14107_s23 = smov 20  }
  0x10   :  { %s14266_s14 = sld [smem:[%s15835_s0 + %s14096_s10]]   ;;  %s14111_s25 = smov 24  }
  0x11   :  { %s14271_s19 = sld [smem:[%s15835_s0 + %s14097_s15]]   ;;  %s14102_s15 = smov 15  }
  0x12   :  { %s11373_s24 = sld [smem:[%s15835_s0 + %s14098_s20]]   ;;  %s14113_s21 = smov 26  }
  0x13   :  { %15899 = sst [smem:[#allocation79_spill]] %s14251_s29 }
  0x14   :  { %15900 = sst [smem:[#allocation80_spill]] %s14256_s3 }
  0x15   :  { %15901 = sst [smem:[#allocation81_spill]] %s14261_s8 }
  0x16   :  { %15902 = sst [smem:[#allocation82_spill]] %s14266_s14 }
  0x17   :  { %15903 = sst [smem:[#allocation83_spill]] %s14271_s19  ;;  %s14110_s19 = smov 23  }
  0x18   :  { %s14279_s30 = sld [smem:[%s15835_s0 + %s14099_s26]]   ;;  %v158_v0 = vstv %s11373_s24  ;;  %s14108_s24 = smov 21  }
  0x19   :  { %s14284_s6 = sld [smem:[%s15835_s0 + %s14100_s1]]   ;;  %159 = vst [vmem:[#allocation2] sm:$0x1] %v158_v0 }
  0x1a   :  { %s14289_s12 = sld [smem:[%s15835_s0 + %s14101_s7]]   ;;  %s14105_s7 = smov 18  }
  0x1b   :  { %s14294_s20 = sld [smem:[%s15835_s0 + %s14102_s15]]   ;;  %s14106_s15 = smov 19  }
  0x1c   :  { %s14299_s27 = sld [smem:[%s15835_s0 + %s14103_s22]]  }
  0x1d   :  { %s14304_s4 = sld [smem:[%s15835_s0 + %s14104_s28]]  }
  0x1e   :  { %15904 = sst [smem:[#allocation84_spill]] %s14279_s30 }
  0x1f   :  { %15905 = sst [smem:[#allocation85_spill]] %s14284_s6 }
  0x20   :  { %15906 = sst [smem:[#allocation86_spill]] %s14289_s12 }
  0x21   :  { %15907 = sst [smem:[#allocation87_spill]] %s14294_s20 }
  0x22   :  { %15908 = sst [smem:[#allocation88_spill]] %s14299_s27 }
  0x23   :  { %15909 = sst [smem:[#allocation89_spill]] %s14304_s4 }
  0x24   :  { %s14309_s16 = sld [smem:[%s15835_s0 + %s14105_s7]]   ;;  %s14109_s7 = smov 22  }
  0x25   :  { %s14314_s22 = sld [smem:[%s15835_s0 + %s14106_s15]]  }
  0x26   :  { %s14319_s28 = sld [smem:[%s15835_s0 + %s14107_s23]]  }
  0x27   :  { %s14324_s10 = sld [smem:[%s15835_s0 + %s14108_s24]]   ;;  %s14112_s24 = smov 25  }
  0x28   :  { %s14329_s17 = sld [smem:[%s15835_s0 + %s14109_s7]]  }
  0x29   :  { %s14334_s9 = sld [smem:[%s15835_s0 + %s14110_s19]]   ;;  %s14114_s19 = smov 27  }
  0x2a   :  { %15910 = sst [smem:[#allocation90_spill]] %s14309_s16 }
  0x2b   :  { %15911 = sst [smem:[#allocation91_spill]] %s14314_s22 }
  0x2c   :  { %15912 = sst [smem:[#allocation92_spill]] %s14319_s28 }
  0x2d   :  { %15913 = sst [smem:[#allocation93_spill]] %s14324_s10 }
  0x2e   :  { %15914 = sst [smem:[#allocation94_spill]] %s14329_s17 }
  0x2f   :  { %15915 = sst [smem:[#allocation95_spill]] %s14334_s9 }
  0x30   :  { %s14339_s28 = sld [smem:[%s15835_s0 + %s14111_s25]]   ;;  %s14115_s25 = smov 28  }
  0x31   :  { %s14344_s16 = sld [smem:[%s15835_s0 + %s14112_s24]]   ;;  %s14116_s24 = smov 29  }
  0x32   :  { %s14349_s17 = sld [smem:[%s15835_s0 + %s14113_s21]]   ;;  %s14117_s21 = smov 30  }
  0x33   :  { %s14354_s9 = sld [smem:[%s15835_s0 + %s14114_s19]]   ;;  %s14118_s19 = smov 31  }
  0x36   :  { %15916 = sst [smem:[#allocation96_spill]] %s14339_s28 }
  0x37   :  { %15917 = sst [smem:[#allocation97_spill]] %s14344_s16 }
  0x38   :  { %15918 = sst [smem:[#allocation98_spill]] %s14349_s17 }
  0x39   :  { %15919 = sst [smem:[#allocation99_spill]] %s14354_s9 }
  0x3a   :  { %s14359_s28 = sld [smem:[%s15835_s0 + %s14115_s25]]   ;;  %s14119_s25 = smov 32  }
  0x3b   :  { %s14364_s16 = sld [smem:[%s15835_s0 + %s14116_s24]]   ;;  %s14120_s24 = smov 33  }
  0x3c   :  { %s14369_s17 = sld [smem:[%s15835_s0 + %s14117_s21]]   ;;  %s14121_s21 = smov 34  }
  0x3d   :  { %s14374_s9 = sld [smem:[%s15835_s0 + %s14118_s19]]   ;;  %s14122_s19 = smov 35  }
  0x40   :  { %15920 = sst [smem:[#allocation100_spill]] %s14359_s28 }
  0x41   :  { %15921 = sst [smem:[#allocation101_spill]] %s14364_s16 }
  0x42   :  { %15922 = sst [smem:[#allocation102_spill]] %s14369_s17 }
  0x43   :  { %15923 = sst [smem:[#allocation103_spill]] %s14374_s9 }
  0x44   :  { %s14379_s28 = sld [smem:[%s15835_s0 + %s14119_s25]]   ;;  %s14123_s25 = smov 36  }
  0x45   :  { %s14384_s16 = sld [smem:[%s15835_s0 + %s14120_s24]]   ;;  %s14124_s24 = smov 37  }
  0x46   :  { %s14389_s17 = sld [smem:[%s15835_s0 + %s14121_s21]]   ;;  %s14125_s21 = smov 38  }
  0x47   :  { %s14394_s9 = sld [smem:[%s15835_s0 + %s14122_s19]]   ;;  %s14126_s19 = smov 39  }
  0x4a   :  { %15924 = sst [smem:[#allocation104_spill]] %s14379_s28 }
  0x4b   :  { %15925 = sst [smem:[#allocation105_spill]] %s14384_s16 }
  0x4c   :  { %15926 = sst [smem:[#allocation106_spill]] %s14389_s17 }
  0x4d   :  { %15927 = sst [smem:[#allocation107_spill]] %s14394_s9 }
  0x4e   :  { %s14399_s28 = sld [smem:[%s15835_s0 + %s14123_s25]]   ;;  %s14127_s25 = smov 40  }
  0x4f   :  { %s14404_s16 = sld [smem:[%s15835_s0 + %s14124_s24]]   ;;  %s14128_s24 = smov 41  }
  0x50   :  { %s14409_s17 = sld [smem:[%s15835_s0 + %s14125_s21]]   ;;  %s14129_s21 = smov 42  }
  0x51   :  { %s14414_s9 = sld [smem:[%s15835_s0 + %s14126_s19]]   ;;  %s14130_s19 = smov 43  }
  0x52   :  { %s14424_s27 = sld [smem:[%s15835_s0 + %s14128_s24]]   ;;  %s14132_s24 = smov 45  }
  0x53   :  { %s14434_s20 = sld [smem:[%s15835_s0 + %s14130_s19]]   ;;  %s14134_s19 = smov 47  }
  0x54   :  { %15928 = sst [smem:[#allocation108_spill]] %s14399_s28 }
  0x55   :  { %15929 = sst [smem:[#allocation109_spill]] %s14404_s16 }
  0x56   :  { %15930 = sst [smem:[#allocation110_spill]] %s14409_s17 }
  0x57   :  { %15931 = sst [smem:[#allocation111_spill]] %s14414_s9 }
  0x58   :  { %s14419_s28 = sld [smem:[%s15835_s0 + %s14127_s25]]   ;;  %s14131_s25 = smov 44  }
  0x59   :  { %15933 = sst [smem:[#allocation113_spill]] %s14424_s27 }
  0x5a   :  { %s14429_s17 = sld [smem:[%s15835_s0 + %s14129_s21]]   ;;  %s14133_s21 = smov 46  }
  0x5b   :  { %s14444_s12 = sld [smem:[%s15835_s0 + %s14132_s24]]   ;;  %s14136_s24 = smov 49  }
  0x5c   :  { %s14454_s6 = sld [smem:[%s15835_s0 + %s14134_s19]]   ;;  %s14138_s19 = smov 51  }
  0x5d   :  { %s14464_s13 = sld [smem:[%s15835_s0 + %s14136_s24]]   ;;  %s14140_s24 = smov 53  }
  0x5e   :  { %15932 = sst [smem:[#allocation112_spill]] %s14419_s28 }
  0x5f   :  { %s14439_s28 = sld [smem:[%s15835_s0 + %s14131_s25]]   ;;  %s14135_s25 = smov 48  }
  0x60   :  { %15934 = sst [smem:[#allocation114_spill]] %s14429_s17 }
  0x61   :  { %15936 = sst [smem:[#allocation116_spill]] %s14444_s12 }
  0x62   :  { %s14449_s17 = sld [smem:[%s15835_s0 + %s14133_s21]]   ;;  %s14137_s21 = smov 50  }
  0x63   :  { %15938 = sst [smem:[#allocation118_spill]] %s14454_s6 }
  0x64   :  { %15940 = sst [smem:[#allocation120_spill]] %s14464_s13 }
  0x65   :  { %15935 = sst [smem:[#allocation115_spill]] %s14439_s28 }
  0x66   :  { %s14459_s28 = sld [smem:[%s15835_s0 + %s14135_s25]]   ;;  %s14139_s25 = smov 52  }
  0x67   :  { %s14474_s3 = sld [smem:[%s15835_s0 + %s14138_s19]]   ;;  %s14142_s19 = smov 55  }
  0x68   :  { %15937 = sst [smem:[#allocation117_spill]] %s14449_s17 }
  0x69   :  { %s14469_s17 = sld [smem:[%s15835_s0 + %s14137_s21]]   ;;  %s14141_s21 = smov 54  }
  0x6a   :  { %s14484_s30 = sld [smem:[%s15835_s0 + %s14140_s24]]   ;;  %s14144_s24 = smov 57  }
  0x6b   :  { %s14489_s5 = sld [smem:[%s15835_s0 + %s14141_s21]]   ;;  %s14145_s21 = smov 58  }
  0x6c   :  { %15939 = sst [smem:[#allocation119_spill]] %s14459_s28 }
  0x6d   :  { %15941 = sst [smem:[#allocation121_spill]] %s14474_s3 }
  0x6e   :  { %s14479_s28 = sld [smem:[%s15835_s0 + %s14139_s25]]   ;;  %s14143_s25 = smov 56  }
  0x6f   :  { %s14494_s3 = sld [smem:[%s15835_s0 + %s14142_s19]]   ;;  %s14146_s19 = smov 59  }
  0x70   :  { %15942 = sst [smem:[#allocation122_spill]] %s14484_s30 }
  0x71   :  { %15943 = sst [smem:[#allocation123_spill]] %s14489_s5 }
  0x72   :  { %s14499_s13 = sld [smem:[%s15835_s0 + %s14143_s25]]   ;;  %s14147_s25 = smov 60  }
  0x73   :  { %s14504_s30 = sld [smem:[%s15835_s0 + %s14144_s24]]   ;;  %s14148_s24 = smov 61  }
  0x74   :  { %s14509_s12 = sld [smem:[%s15835_s0 + %s14145_s21]]   ;;  %s14149_s21 = smov 62  }
  0x75   :  { %15944 = sst [smem:[#allocation124_spill]] %s14494_s3 }
  0x76   :  { %s14514_s3 = sld [smem:[%s15835_s0 + %s14146_s19]]   ;;  %s14150_s19 = smov 63  }
  0x77   :  { %s14524_s27 = sld [smem:[%s15835_s0 + %s14148_s24]]   ;;  %s14152_s24 = smov 65  }
  0x78   :  { %15945 = sst [smem:[#allocation125_spill]] %s14499_s13 }
  0x79   :  { %s14519_s13 = sld [smem:[%s15835_s0 + %s14147_s25]]   ;;  %s14151_s25 = smov 64  }
  0x7a   :  { %15946 = sst [smem:[#allocation126_spill]] %s14509_s12 }
  0x7b   :  { %s14529_s12 = sld [smem:[%s15835_s0 + %s14149_s21]]   ;;  %s14153_s21 = smov 66  }
  0x7c   :  { %15947 = sst [smem:[#allocation127_spill]] %s14514_s3 }
  0x7d   :  { %s14534_s3 = sld [smem:[%s15835_s0 + %s14150_s19]]   ;;  %s14154_s19 = smov 67  }
  0x7e   :  { %s14544_s16 = sld [smem:[%s15835_s0 + %s14152_s24]]   ;;  %s14156_s24 = smov 69  }
  0x7f   :  { %15948 = sst [smem:[#allocation128_spill]] %s14519_s13 }
  0x80   :  { %s14539_s13 = sld [smem:[%s15835_s0 + %s14151_s25]]   ;;  %s14155_s25 = smov 68  }
  0x81   :  { %15949 = sst [smem:[#allocation129_spill]] %s14529_s12 }
  0x82   :  { %s14549_s12 = sld [smem:[%s15835_s0 + %s14153_s21]]   ;;  %s14157_s21 = smov 70  }
  0x83   :  { %15950 = sst [smem:[#allocation130_spill]] %s14534_s3 }
  0x84   :  { %s14554_s22 = sld [smem:[%s15835_s0 + %s14154_s19]]   ;;  %s14158_s19 = smov 71  }
  0x85   :  { %s14564_s14 = sld [smem:[%s15835_s0 + %s14156_s24]]   ;;  %s14160_s24 = smov 73  }
  0x86   :  { %15951 = sst [smem:[#allocation131_spill]] %s14539_s13 }
  0x87   :  { %s14559_s13 = sld [smem:[%s15835_s0 + %s14155_s25]]   ;;  %s14159_s25 = smov 72  }
  0x88   :  { %15952 = sst [smem:[#allocation132_spill]] %s14549_s12 }
  0x89   :  { %s14569_s12 = sld [smem:[%s15835_s0 + %s14157_s21]]   ;;  %s14161_s21 = smov 74  }
  0x8a   :  { %15953 = sst [smem:[#allocation133_spill]] %s14554_s22 }
  0x8b   :  { %15955 = sst [smem:[#allocation135_spill]] %s14564_s14 }
  0x8c   :  { %s14574_s22 = sld [smem:[%s15835_s0 + %s14158_s19]]   ;;  %s14162_s19 = smov 75  }
  0x8d   :  { %15954 = sst [smem:[#allocation134_spill]] %s14559_s13 }
  0x8e   :  { %s14579_s13 = sld [smem:[%s15835_s0 + %s14159_s25]]   ;;  %s14163_s25 = smov 76  }
  0x8f   :  { %15956 = sst [smem:[#allocation136_spill]] %s14569_s12 }
  0x90   :  { %s14584_s29 = sld [smem:[%s15835_s0 + %s14160_s24]]  }
  0x91   :  { %s14589_s12 = sld [smem:[%s15835_s0 + %s14161_s21]]  }
  0x92   :  { %15957 = sst [smem:[#allocation137_spill]] %s14574_s22 }
  0x93   :  { %s14594_s22 = sld [smem:[%s15835_s0 + %s14162_s19]]  }
  0x94   :  { %15958 = sst [smem:[#allocation138_spill]] %s14579_s13 }
  0x95   :  { %s14599_s13 = sld [smem:[%s15835_s0 + %s14163_s25]]  }
  0x97   :  { %15959 = sst [smem:[#allocation139_spill]] %s14589_s12 }
  0x98   :  { %160 = vsyncpa [#allocation4], 0 }
  0x99   :  { %161 = vsyncpa [#allocation6], 0 }
  0x9a   :  { %162 = vsyncpa [#allocation9], 0 }
  0x9b   :  { %163 = vsyncpa [#allocation12], 0 }
  0x9c   :  { %164 = vsyncpa [#allocation15], 0 }
  0x9d   :  { %165 = vsyncpa [#allocation18], 0 }
  0x9e   :  { %166 = vsyncpa [#allocation21], 0 }
  0x9f   :  { %167 = vsyncpa [#allocation24], 0 }
  0xa0   :  { %168 = vsyncpa [#allocation27], 0 }
  0xa1   :  { %169 = vsyncpa [#allocation30], 0 }
  0xa2   :  { %170 = vsyncpa [#allocation33], 0 }
  0xa3   :  { %171 = vsyncpa [#allocation36], 0 }
  0xa4   :  { %172 = vsyncpa [#allocation39], 0 }
  0xa5   :  { %173 = vsyncpa [#allocation42], 0 }
  0xa6   :  { %174 = vsyncpa [#allocation45], 0 }
  0xa7   :  { %175 = vsyncpa [#allocation48], 0 }
  0xa8   :  { %176 = vsyncpa [#allocation51], 0 }
  0xa9   :  { %177 = vsyncpa [#allocation54], 0  ;;  %s14601_s0 = smov 0  }
  0xaa LB: > { %s14607_s24 = sadd.s32 4294967295, %s14086_s0   ;;  %p11441_p0 = scmp.ge.s32.totalorder %s14086_s0, 1  ;;  %s14086_s0 = sphi %s14601_s0, %s183_s0  }
  0xab   : > { %p1820_p1 = scmp.lt.s32.totalorder %s14086_s0, 3 }
  0xad   : > { %p14611_p2 = pnand %p11441_p0, %p1820_p1 }
  0xae   : > { %p12833_p3 = scmp.eq.s32.totalorder (!%p14611_p2), %s14607_s24, 0  ;;  %s14164_s2 = smov (!%p14611_p2), [#allocation5]  }
  0xaf   : > { %1824 = sbr.rel (%p14611_p2) target bundleno = 558 (0x22e), region = 12  ;;  %s1859_s21 = sshll.u32 (!%p14611_p2), %s14164_s2, 4  ;;  %s1860_s21 = int_to_ptr.vmem [resolvable:$true] %s1859_s21 }
  0xb0   : > { %s14165_s7 = smov (!%p14611_p2), [#allocation8]   ;;  %s13202_s19 = scalar_lea.vmem (!%p14611_p2), %s1860_s21, 64 }
  0xb1   : > { %s1902_s11 = sshll.u32 (!%p14611_p2), %s14165_s7, 4  ;;  %p13203_p4 = scmp.ne.s32.totalorder (!%p14611_p2), %s1860_s21, %s13202_s19  ;;  %s1903_s11 = int_to_ptr.vmem [resolvable:$true] %s1902_s11 }
  0xb2   : > { %p13209_p7 = scmp.lt.s32.totalorder (!%p14611_p2), %s1860_s21, %s1860_s21  ;;  %p13210_p8 = scmp.lt.s32.totalorder (!%p14611_p2), %s13202_s19, %s13202_s19 }
  0xb3   : > { %p13204_p5 = pnand (!%p14611_p2), %p13203_p4, %p12833_p3 }
  0xb4   : > { %p13211_p9 = por %p13210_p8, %p13209_p7 }
  0xb5   : > { %p13205_p6 = pneg %p13204_p5 }
  0xb7   : > { %p13212_p10 = pnand %p13211_p9, %p13205_p6 }
  0xb9   : > { %13215 = shalt.err (!%p13212_p10)
}
  0xba   : > { %s15961_s8 = sld [smem:[#allocation81_spill]]  ;;  %s13226_s15 = scalar_lea.vmem %s1903_s11, 16 }
  0xbb   : > { %p13227_p11 = scmp.ne.s32.totalorder %s1903_s11, %s13226_s15  ;;  %s13232_s18 = scalar_lea.vmem %s1903_s11, 32 }
  0xbc   : > { %p13233_p0 = scmp.lt.s32.totalorder %s1903_s11, %s1903_s11  ;;  %p13234_p1 = scmp.lt.s32.totalorder %s13232_s18, %s13226_s15 }
  0xbd   : > { %p13228_p12 = pnand %p13227_p11, %p12833_p3 }
  0xbe   : > { %p13235_p4 = por %p13234_p1, %p13233_p0 }
  0xbf   : > { %p13229_p13 = pneg %p13228_p12 }
  0xc0   : > { %12700 = dma.hbm_to_vmem [thread:$0]  (%p12833_p3), %s15961_s8, 64, %s1860_s21, [#allocation6]  }
  0xc1   : > { %p13236_p5 = pnand %p13235_p4, %p13229_p13 }
  0xc3   : > { %13239 = shalt.err (!%p13236_p5)
}
  0xc4   : > { %s15962_s4 = sld [smem:[#allocation89_spill]]  ;;  %s14166_s25 = smov [#allocation11]  }
  0xc5   : > { %s1930_s23 = sshll.u32 %s14166_s25, 4  ;;  %s14167_s26 = smov [#allocation14]   ;;  %s1931_s23 = int_to_ptr.vmem [resolvable:$true] %s1930_s23 }
  0xc6   : > { %s2000_s2 = sshll.u32 %s14167_s26, 4  ;;  %s13250_s21 = scalar_lea.vmem %s1931_s23, 16  ;;  %s2001_s2 = int_to_ptr.vmem [resolvable:$true] %s2000_s2 }
  0xc7   : > { %p13251_p6 = scmp.ne.s32.totalorder %s1931_s23, %s13250_s21  ;;  %s13256_s7 = scalar_lea.vmem %s1931_s23, 32 }
  0xc8   : > { %p13257_p9 = scmp.lt.s32.totalorder %s1931_s23, %s1931_s23  ;;  %p13258_p10 = scmp.lt.s32.totalorder %s13256_s7, %s13250_s21 }
  0xc9   : > { %p13252_p7 = pnand %p13251_p6, %p12833_p3 }
  0xca   : > { %12704 = dma.hbm_to_vmem [thread:$0]  (%p12833_p3), %s15962_s4, 16, %s1903_s11, [#allocation9]  }
  0xcb   : > { %p13253_p8 = pneg %p13252_p7  ;;  %p13259_p11 = por %p13258_p10, %p13257_p9 }
  0xcd   : > { %p13260_p12 = pnand %p13259_p11, %p13253_p8 }
  0xcf   : > { %13263 = shalt.err (!%p13260_p12)
}
  0xd0   : > { %s15963_s10 = sld [smem:[#allocation93_spill]]  ;;  %s13274_s11 = scalar_lea.vmem %s2001_s2, 16 }
  0xd1   : > { %p13275_p13 = scmp.ne.s32.totalorder %s2001_s2, %s13274_s11  ;;  %s13280_s19 = scalar_lea.vmem %s2001_s2, 32 }
  0xd2   : > { %p13281_p4 = scmp.lt.s32.totalorder %s2001_s2, %s2001_s2  ;;  %p13282_p5 = scmp.lt.s32.totalorder %s13280_s19, %s13274_s11 }
  0xd3   : > { %p13276_p0 = pnand %p13275_p13, %p12833_p3 }
  0xd4   : > { %p13283_p6 = por %p13282_p5, %p13281_p4 }
  0xd5   : > { %p13277_p1 = pneg %p13276_p0 }
  0xd6   : > { %12708 = dma.hbm_to_vmem [thread:$0]  (%p12833_p3), %s15963_s10, 16, %s1931_s23, [#allocation12]  }
  0xd7   : > { %p13284_p7 = pnand %p13283_p6, %p13277_p1 }
  0xd9   : > { %13287 = shalt.err (!%p13284_p7)
}
  0xda   : > { %s15964_s9 = sld [smem:[#allocation111_spill]]  ;;  %s14168_s15 = smov [#allocation17]  }
  0xdb   : > { %s2028_s18 = sshll.u32 %s14168_s15, 4  ;;  %s14169_s25 = smov [#allocation20]   ;;  %s2029_s18 = int_to_ptr.vmem [resolvable:$true] %s2028_s18 }
  0xdc   : > { %s2056_s23 = sshll.u32 %s14169_s25, 4  ;;  %s13298_s26 = scalar_lea.vmem %s2029_s18, 16  ;;  %s2057_s23 = int_to_ptr.vmem [resolvable:$true] %s2056_s23 }
  0xdd   : > { %p13299_p8 = scmp.ne.s32.totalorder %s2029_s18, %s13298_s26  ;;  %s13304_s21 = scalar_lea.vmem %s2029_s18, 32 }
  0xde   : > { %p13305_p11 = scmp.lt.s32.totalorder %s2029_s18, %s2029_s18  ;;  %p13306_p12 = scmp.lt.s32.totalorder %s13304_s21, %s13298_s26 }
  0xdf   : > { %p13300_p9 = pnand %p13299_p8, %p12833_p3 }
  0xe0   : > { %12712 = dma.hbm_to_vmem [thread:$0]  (%p12833_p3), %s15964_s9, 16, %s2001_s2, [#allocation15]  }
  0xe1   : > { %p13301_p10 = pneg %p13300_p9  ;;  %p13307_p13 = por %p13306_p12, %p13305_p11 }
  0xe3   : > { %p13308_p0 = pnand %p13307_p13, %p13301_p10 }
  0xe5   : > { %13311 = shalt.err (!%p13308_p0)
}
  0xe6   : > { %12716 = dma.hbm_to_vmem [thread:$0]  (%p12833_p3), %s14434_s20, 16, %s2029_s18, [#allocation18]  }
  0xe7   : > { %s13322_s2 = scalar_lea.vmem %s2057_s23, 16  ;;  %s13328_s7 = scalar_lea.vmem %s2057_s23, 32 }
  0xe8   : > { %p13323_p1 = scmp.ne.s32.totalorder %s2057_s23, %s13322_s2  ;;  %p13329_p6 = scmp.lt.s32.totalorder %s2057_s23, %s2057_s23 }
  0xe9   : > { %p13330_p7 = scmp.lt.s32.totalorder %s13328_s7, %s13322_s2 }
  0xea   : > { %p13324_p4 = pnand %p13323_p1, %p12833_p3 }
  0xeb   : > { %p13331_p8 = por %p13330_p7, %p13329_p6 }
  0xec   : > { %p13325_p5 = pneg %p13324_p4 }
  0xee   : > { %p13332_p9 = pnand %p13331_p8, %p13325_p5 }
  0xf0   : > { %13335 = shalt.err (!%p13332_p9)
}
  0xf1   : > { %s15965_s6 = sld [smem:[#allocation118_spill]]  ;;  %s14170_s11 = smov [#allocation23]  }
  0xf2   : > { %s2081_s19 = sshll.u32 %s14170_s11, 4  ;;  %s14171_s15 = smov [#allocation26]   ;;  %s2082_s19 = int_to_ptr.vmem [resolvable:$true] %s2081_s19 }
  0xf3   : > { %s2103_s18 = sshll.u32 %s14171_s15, 4  ;;  %s13346_s25 = scalar_lea.vmem %s2082_s19, 16  ;;  %s2104_s18 = int_to_ptr.vmem [resolvable:$true] %s2103_s18 }
  0xf4   : > { %p13347_p10 = scmp.ne.s32.totalorder %s2082_s19, %s13346_s25  ;;  %s13352_s26 = scalar_lea.vmem %s2082_s19, 32 }
  0xf5   : > { %p13353_p13 = scmp.lt.s32.totalorder %s2082_s19, %s2082_s19  ;;  %p13354_p0 = scmp.lt.s32.totalorder %s13352_s26, %s13346_s25 }
  0xf6   : > { %p13348_p11 = pnand %p13347_p10, %p12833_p3 }
  0xf7   : > { %12720 = dma.hbm_to_vmem [thread:$0]  (%p12833_p3), %s15965_s6, 16, %s2057_s23, [#allocation21]  }
  0xf8   : > { %p13349_p12 = pneg %p13348_p11  ;;  %p13355_p1 = por %p13354_p0, %p13353_p13 }
  0xfa   : > { %p13356_p4 = pnand %p13355_p1, %p13349_p12 }
  0xfc   : > { %13359 = shalt.err (!%p13356_p4)
}
  0xfd   : > { %12724 = dma.hbm_to_vmem [thread:$0]  (%p12833_p3), %s14469_s17, 16, %s2082_s19, [#allocation24]  }
  0xfe   : > { %s13370_s23 = scalar_lea.vmem %s2104_s18, 16  ;;  %s13376_s21 = scalar_lea.vmem %s2104_s18, 32 }
  0xff   : > { %p13371_p5 = scmp.ne.s32.totalorder %s2104_s18, %s13370_s23  ;;  %p13377_p8 = scmp.lt.s32.totalorder %s2104_s18, %s2104_s18 }
 0x100   : > { %p13378_p9 = scmp.lt.s32.totalorder %s13376_s21, %s13370_s23 }
 0x101   : > { %p13372_p6 = pnand %p13371_p5, %p12833_p3 }
 0x102   : > { %p13379_p10 = por %p13378_p9, %p13377_p8 }
 0x103   : > { %p13373_p7 = pneg %p13372_p6 }
 0x105   : > { %p13380_p11 = pnand %p13379_p10, %p13373_p7 }
 0x107   : > { %13383 = shalt.err (!%p13380_p11)
}
 0x108   : > { %12728 = dma.hbm_to_vmem [thread:$0]  (%p12833_p3), %s14479_s28, 16, %s2104_s18, [#allocation27]  }
 0x109   : > { %s14172_s2 = smov [#allocation29]   ;;  %s14173_s11 = smov [#allocation32]  }
 0x10a   : > { %s2125_s7 = sshll.u32 %s14172_s2, 4  ;;  %s2150_s19 = sshll.u32 %s14173_s11, 4  ;;  %s2126_s7 = int_to_ptr.vmem [resolvable:$true] %s2125_s7  ;;  %s2151_s19 = int_to_ptr.vmem [resolvable:$true] %s2150_s19 }
 0x10b   : > { %s13394_s15 = scalar_lea.vmem %s2126_s7, 16  ;;  %s13400_s25 = scalar_lea.vmem %s2126_s7, 32 }
 0x10c   : > { %p13395_p12 = scmp.ne.s32.totalorder %s2126_s7, %s13394_s15  ;;  %p13401_p1 = scmp.lt.s32.totalorder %s2126_s7, %s2126_s7 }
 0x10d   : > { %p13402_p4 = scmp.lt.s32.totalorder %s13400_s25, %s13394_s15 }
 0x10e   : > { %p13396_p13 = pnand %p13395_p12, %p12833_p3 }
 0x10f   : > { %p13403_p5 = por %p13402_p4, %p13401_p1 }
 0x110   : > { %p13397_p0 = pneg %p13396_p13 }
 0x112   : > { %p13404_p6 = pnand %p13403_p5, %p13397_p0 }
 0x114   : > { %13407 = shalt.err (!%p13404_p6)
}
 0x115   : > { %s15966_s5 = sld [smem:[#allocation123_spill]]  ;;  %s13418_s18 = scalar_lea.vmem %s2151_s19, 16 }
 0x116   : > { %p13419_p7 = scmp.ne.s32.totalorder %s2151_s19, %s13418_s18  ;;  %s13424_s26 = scalar_lea.vmem %s2151_s19, 32 }
 0x117   : > { %p13425_p10 = scmp.lt.s32.totalorder %s2151_s19, %s2151_s19  ;;  %p13426_p11 = scmp.lt.s32.totalorder %s13424_s26, %s13418_s18 }
 0x118   : > { %p13420_p8 = pnand %p13419_p7, %p12833_p3 }
 0x119   : > { %p13427_p12 = por %p13426_p11, %p13425_p10 }
 0x11a   : > { %p13421_p9 = pneg %p13420_p8 }
 0x11b   : > { %12732 = dma.hbm_to_vmem [thread:$0]  (%p12833_p3), %s15966_s5, 16, %s2126_s7, [#allocation30]  }
 0x11c   : > { %p13428_p13 = pnand %p13427_p12, %p13421_p9 }
 0x11e   : > { %13431 = shalt.err (!%p13428_p13)
}
 0x11f   : > { %12736 = dma.hbm_to_vmem [thread:$0]  (%p12833_p3), %s14504_s30, 16, %s2151_s19, [#allocation33]  }
 0x120   : > { %s14174_s23 = smov [#allocation35]   ;;  %s14175_s2 = smov [#allocation38]  }
 0x121   : > { %s2178_s21 = sshll.u32 %s14174_s23, 4  ;;  %s2202_s7 = sshll.u32 %s14175_s2, 4  ;;  %s2179_s21 = int_to_ptr.vmem [resolvable:$true] %s2178_s21  ;;  %s2203_s7 = int_to_ptr.vmem [resolvable:$true] %s2202_s7 }
 0x122   : > { %s13442_s11 = scalar_lea.vmem %s2179_s21, 16  ;;  %s13448_s15 = scalar_lea.vmem %s2179_s21, 32 }
 0x123   : > { %p13443_p0 = scmp.ne.s32.totalorder %s2179_s21, %s13442_s11  ;;  %p13449_p5 = scmp.lt.s32.totalorder %s2179_s21, %s2179_s21 }
 0x124   : > { %p13450_p6 = scmp.lt.s32.totalorder %s13448_s15, %s13442_s11 }
 0x125   : > { %p13444_p1 = pnand %p13443_p0, %p12833_p3 }
 0x126   : > { %p13451_p7 = por %p13450_p6, %p13449_p5 }
 0x127   : > { %p13445_p4 = pneg %p13444_p1 }
 0x129   : > { %p13452_p8 = pnand %p13451_p7, %p13445_p4 }
 0x12b   : > { %13455 = shalt.err (!%p13452_p8)
}
 0x12c   : > { %12740 = dma.hbm_to_vmem [thread:$0]  (%p12833_p3), %s14524_s27, 16, %s2179_s21, [#allocation36]  }
 0x12d   : > { %s13466_s19 = scalar_lea.vmem %s2203_s7, 16  ;;  %s13472_s25 = scalar_lea.vmem %s2203_s7, 32 }
 0x12e   : > { %p13467_p9 = scmp.ne.s32.totalorder %s2203_s7, %s13466_s19  ;;  %p13473_p12 = scmp.lt.s32.totalorder %s2203_s7, %s2203_s7 }
 0x12f   : > { %p13474_p13 = scmp.lt.s32.totalorder %s13472_s25, %s13466_s19 }
 0x130   : > { %p13468_p10 = pnand %p13467_p9, %p12833_p3 }
 0x131   : > { %p13475_p0 = por %p13474_p13, %p13473_p12 }
 0x132   : > { %p13469_p11 = pneg %p13468_p10 }
 0x134   : > { %p13476_p1 = pnand %p13475_p0, %p13469_p11 }
 0x136   : > { %13479 = shalt.err (!%p13476_p1)
}
 0x137   : > { %s15967_s3 = sld [smem:[#allocation130_spill]]  ;;  %s14176_s18 = smov [#allocation41]  }
 0x138   : > { %s2226_s26 = sshll.u32 %s14176_s18, 4  ;;  %s14177_s23 = smov [#allocation44]   ;;  %s2227_s26 = int_to_ptr.vmem [resolvable:$true] %s2226_s26 }
 0x139   : > { %s2254_s21 = sshll.u32 %s14177_s23, 4  ;;  %s13490_s2 = scalar_lea.vmem %s2227_s26, 16  ;;  %s2255_s21 = int_to_ptr.vmem [resolvable:$true] %s2254_s21 }
 0x13a   : > { %p13491_p4 = scmp.ne.s32.totalorder %s2227_s26, %s13490_s2  ;;  %s13496_s11 = scalar_lea.vmem %s2227_s26, 32 }
 0x13b   : > { %p13497_p7 = scmp.lt.s32.totalorder %s2227_s26, %s2227_s26  ;;  %p13498_p8 = scmp.lt.s32.totalorder %s13496_s11, %s13490_s2 }
 0x13c   : > { %p13492_p5 = pnand %p13491_p4, %p12833_p3 }
 0x13d   : > { %12744 = dma.hbm_to_vmem [thread:$0]  (%p12833_p3), %s15967_s3, 16, %s2203_s7, [#allocation39]  }
 0x13e   : > { %p13493_p6 = pneg %p13492_p5  ;;  %p13499_p9 = por %p13498_p8, %p13497_p7 }
 0x140   : > { %p13500_p10 = pnand %p13499_p9, %p13493_p6 }
 0x142   : > { %13503 = shalt.err (!%p13500_p10)
}
 0x143   : > { %12748 = dma.hbm_to_vmem [thread:$0]  (%p12833_p3), %s14544_s16, 16, %s2227_s26, [#allocation42]  }
 0x144   : > { %s13514_s7 = scalar_lea.vmem %s2255_s21, 16  ;;  %s13520_s15 = scalar_lea.vmem %s2255_s21, 32 }
 0x145   : > { %p13515_p11 = scmp.ne.s32.totalorder %s2255_s21, %s13514_s7  ;;  %p13521_p0 = scmp.lt.s32.totalorder %s2255_s21, %s2255_s21 }
 0x146   : > { %p13522_p1 = scmp.lt.s32.totalorder %s13520_s15, %s13514_s7 }
 0x147   : > { %p13516_p12 = pnand %p13515_p11, %p12833_p3 }
 0x148   : > { %p13523_p4 = por %p13522_p1, %p13521_p0 }
 0x149   : > { %p13517_p13 = pneg %p13516_p12 }
 0x14b   : > { %p13524_p5 = pnand %p13523_p4, %p13517_p13 }
 0x14d   : > { %13527 = shalt.err (!%p13524_p5)
}
 0x14e   : > { %s15968_s14 = sld [smem:[#allocation135_spill]]  ;;  %s14178_s19 = smov [#allocation47]  }
 0x14f   : > { %s2276_s25 = sshll.u32 %s14178_s19, 4  ;;  %s14179_s18 = smov [#allocation50]   ;;  %s2277_s25 = int_to_ptr.vmem [resolvable:$true] %s2276_s25 }
 0x150   : > { %s2298_s26 = sshll.u32 %s14179_s18, 4  ;;  %s13538_s23 = scalar_lea.vmem %s2277_s25, 16  ;;  %s2299_s26 = int_to_ptr.vmem [resolvable:$true] %s2298_s26 }
 0x151   : > { %p13539_p6 = scmp.ne.s32.totalorder %s2277_s25, %s13538_s23  ;;  %s13544_s2 = scalar_lea.vmem %s2277_s25, 32 }
 0x152   : > { %p13545_p9 = scmp.lt.s32.totalorder %s2277_s25, %s2277_s25  ;;  %p13546_p10 = scmp.lt.s32.totalorder %s13544_s2, %s13538_s23 }
 0x153   : > { %p13540_p7 = pnand %p13539_p6, %p12833_p3 }
 0x154   : > { %12752 = dma.hbm_to_vmem [thread:$0]  (%p12833_p3), %s15968_s14, 16, %s2255_s21, [#allocation45]  }
 0x155   : > { %p13541_p8 = pneg %p13540_p7  ;;  %p13547_p11 = por %p13546_p10, %p13545_p9 }
 0x157   : > { %p13548_p12 = pnand %p13547_p11, %p13541_p8 }
 0x159   : > { %13551 = shalt.err (!%p13548_p12)
}
 0x15a   : > { %s15969_s11 = sld [smem:[#allocation137_spill]]  ;;  %s13562_s21 = scalar_lea.vmem %s2299_s26, 16 }
 0x15b   : > { %p13563_p13 = scmp.ne.s32.totalorder %s2299_s26, %s13562_s21  ;;  %s13568_s7 = scalar_lea.vmem %s2299_s26, 32 }
 0x15c   : > { %p13569_p4 = scmp.lt.s32.totalorder %s2299_s26, %s2299_s26  ;;  %p13570_p5 = scmp.lt.s32.totalorder %s13568_s7, %s13562_s21 }
 0x15d   : > { %p13564_p0 = pnand %p13563_p13, %p12833_p3 }
 0x15e   : > { %p13571_p6 = por %p13570_p5, %p13569_p4 }
 0x15f   : > { %p13565_p1 = pneg %p13564_p0 }
 0x160   : > { %12756 = dma.hbm_to_vmem [thread:$0]  (%p12833_p3), %s15969_s11, 16, %s2277_s25, [#allocation48]  }
 0x161   : > { %p13572_p7 = pnand %p13571_p6, %p13565_p1 }
 0x163   : > { %13575 = shalt.err (!%p13572_p7)
}
 0x164   : > { %12760 = dma.hbm_to_vmem [thread:$0]  (%p12833_p3), %s14584_s29, 16, %s2299_s26, [#allocation51]  }
 0x165   : > { %s14180_s15 = smov [#allocation3]   ;;  %s14181_s25 = smov [#allocation7]  }
 0x166   : > { %s1845_s19 = sshll.u32 %s14180_s15, 4  ;;  %s1870_s18 = sshll.u32 %s14181_s25, 4  ;;  %s1846_s19 = int_to_ptr.vmem [resolvable:$true] %s1845_s19  ;;  %s1871_s18 = int_to_ptr.vmem [resolvable:$true] %s1870_s18 }
 0x167   : > { %s13586_s23 = scalar_lea.vmem %s1846_s19, 64  ;;  %p13593_p11 = scmp.lt.s32.totalorder %s1846_s19, %s1846_s19 }
 0x168   : > { %p13587_p8 = scmp.ne.s32.totalorder %s1846_s19, %s13586_s23  ;;  %p13594_p12 = scmp.lt.s32.totalorder %s13586_s23, %s13586_s23 }
 0x16a   : > { %p13588_p9 = pnand %p13587_p8, %p12833_p3  ;;  %p13595_p13 = por %p13594_p12, %p13593_p11 }
 0x16c   : > { %p13589_p10 = pneg %p13588_p9 }
 0x16e   : > { %p13596_p0 = pnand %p13595_p13, %p13589_p10 }
 0x170   : > { %13599 = shalt.err (!%p13596_p0)
}
 0x171   : > { %s15970_s2 = sld [smem:[#allocation79_spill]]  ;;  %s13610_s26 = scalar_lea.vmem %s1871_s18, 16 }
 0x172   : > { %p13611_p1 = scmp.ne.s32.totalorder %s1871_s18, %s13610_s26  ;;  %s13616_s11 = scalar_lea.vmem %s1871_s18, 32 }
 0x173   : > { %p13617_p6 = scmp.lt.s32.totalorder %s1871_s18, %s1871_s18  ;;  %p13618_p7 = scmp.lt.s32.totalorder %s13616_s11, %s13610_s26 }
 0x174   : > { %p13612_p4 = pnand %p13611_p1, %p12833_p3 }
 0x175   : > { %p13619_p8 = por %p13618_p7, %p13617_p6 }
 0x176   : > { %p13613_p5 = pneg %p13612_p4 }
 0x177   : > { %12698 = dma.hbm_to_vmem [thread:$0]  (%p12833_p3), %s15970_s2, 64, %s1846_s19, [#allocation4]  }
 0x178   : > { %p13620_p9 = pnand %p13619_p8, %p13613_p5 }
 0x17a   : > { %13623 = shalt.err (!%p13620_p9)
}
 0x17b   : > { %s15971_s21 = sld [smem:[#allocation82_spill]]  ;;  %s14182_s7 = smov [#allocation10]  }
 0x17c   : > { %s1916_s15 = sshll.u32 %s14182_s7, 4  ;;  %s14183_s25 = smov [#allocation13]   ;;  %s1917_s15 = int_to_ptr.vmem [resolvable:$true] %s1916_s15 }
 0x17d   : > { %s1986_s19 = sshll.u32 %s14183_s25, 4  ;;  %s13634_s23 = scalar_lea.vmem %s1917_s15, 16  ;;  %s1987_s19 = int_to_ptr.vmem [resolvable:$true] %s1986_s19 }
 0x17e   : > { %p13635_p10 = scmp.ne.s32.totalorder %s1917_s15, %s13634_s23  ;;  %s13640_s2 = scalar_lea.vmem %s1917_s15, 32 }
 0x17f   : > { %p13641_p13 = scmp.lt.s32.totalorder %s1917_s15, %s1917_s15  ;;  %p13642_p0 = scmp.lt.s32.totalorder %s13640_s2, %s13634_s23 }
 0x180   : > { %p13636_p11 = pnand %p13635_p10, %p12833_p3 }
 0x181   : > { %12702 = dma.hbm_to_vmem [thread:$0]  (%p12833_p3), %s15971_s21, 16, %s1871_s18, [#allocation6]  }
 0x182   : > { %p13637_p12 = pneg %p13636_p11  ;;  %p13643_p1 = por %p13642_p0, %p13641_p13 }
 0x184   : > { %p13644_p4 = pnand %p13643_p1, %p13637_p12 }
 0x186   : > { %13647 = shalt.err (!%p13644_p4)
}
 0x187   : > { %s15972_s18 = sld [smem:[#allocation91_spill]]  ;;  %s13658_s26 = scalar_lea.vmem %s1987_s19, 16 }
 0x188   : > { %p13659_p5 = scmp.ne.s32.totalorder %s1987_s19, %s13658_s26  ;;  %s13664_s11 = scalar_lea.vmem %s1987_s19, 32 }
 0x189   : > { %p13665_p8 = scmp.lt.s32.totalorder %s1987_s19, %s1987_s19  ;;  %p13666_p9 = scmp.lt.s32.totalorder %s13664_s11, %s13658_s26 }
 0x18a   : > { %p13660_p6 = pnand %p13659_p5, %p12833_p3 }
 0x18b   : > { %p13667_p10 = por %p13666_p9, %p13665_p8 }
 0x18c   : > { %p13661_p7 = pneg %p13660_p6 }
 0x18d   : > { %12706 = dma.hbm_to_vmem [thread:$0]  (%p12833_p3), %s15972_s18, 16, %s1917_s15, [#allocation9]  }
 0x18e   : > { %p13668_p11 = pnand %p13667_p10, %p13661_p7 }
 0x190   : > { %13671 = shalt.err (!%p13668_p11)
}
 0x191   : > { %s15973_s21 = sld [smem:[#allocation109_spill]]  ;;  %s14184_s7 = smov [#allocation16]  }
 0x192   : > { %s2014_s25 = sshll.u32 %s14184_s7, 4  ;;  %s14185_s23 = smov [#allocation19]   ;;  %s2015_s25 = int_to_ptr.vmem [resolvable:$true] %s2014_s25 }
 0x193   : > { %s2042_s15 = sshll.u32 %s14185_s23, 4  ;;  %s13682_s2 = scalar_lea.vmem %s2015_s25, 16  ;;  %s2043_s15 = int_to_ptr.vmem [resolvable:$true] %s2042_s15 }
 0x194   : > { %p13683_p12 = scmp.ne.s32.totalorder %s2015_s25, %s13682_s2  ;;  %s13688_s18 = scalar_lea.vmem %s2015_s25, 32 }
 0x195   : > { %p13689_p1 = scmp.lt.s32.totalorder %s2015_s25, %s2015_s25  ;;  %p13690_p4 = scmp.lt.s32.totalorder %s13688_s18, %s13682_s2 }
 0x196   : > { %p13684_p13 = pnand %p13683_p12, %p12833_p3 }
 0x197   : > { %12710 = dma.hbm_to_vmem [thread:$0]  (%p12833_p3), %s15973_s21, 16, %s1987_s19, [#allocation12]  }
 0x198   : > { %p13685_p0 = pneg %p13684_p13  ;;  %p13691_p5 = por %p13690_p4, %p13689_p1 }
 0x19a   : > { %p13692_p6 = pnand %p13691_p5, %p13685_p0 }
 0x19c   : > { %13695 = shalt.err (!%p13692_p6)
}
 0x19d   : > { %s15974_s19 = sld [smem:[#allocation113_spill]]  ;;  %s13706_s26 = scalar_lea.vmem %s2043_s15, 16 }
 0x19e   : > { %p13707_p7 = scmp.ne.s32.totalorder %s2043_s15, %s13706_s26  ;;  %s13712_s11 = scalar_lea.vmem %s2043_s15, 32 }
 0x19f   : > { %p13713_p10 = scmp.lt.s32.totalorder %s2043_s15, %s2043_s15  ;;  %p13714_p11 = scmp.lt.s32.totalorder %s13712_s11, %s13706_s26 }
 0x1a0   : > { %p13708_p8 = pnand %p13707_p7, %p12833_p3 }
 0x1a1   : > { %p13715_p12 = por %p13714_p11, %p13713_p10 }
 0x1a2   : > { %p13709_p9 = pneg %p13708_p8 }
 0x1a3   : > { %12714 = dma.hbm_to_vmem [thread:$0]  (%p12833_p3), %s15974_s19, 16, %s2015_s25, [#allocation15]  }
 0x1a4   : > { %p13716_p13 = pnand %p13715_p12, %p13709_p9 }
 0x1a6   : > { %13719 = shalt.err (!%p13716_p13)
}
 0x1a7   : > { %s15975_s21 = sld [smem:[#allocation116_spill]]  ;;  %s14186_s7 = smov [#allocation22]  }
 0x1a8   : > { %s2070_s23 = sshll.u32 %s14186_s7, 4  ;;  %s14187_s2 = smov [#allocation25]   ;;  %s2071_s23 = int_to_ptr.vmem [resolvable:$true] %s2070_s23 }
 0x1a9   : > { %s2092_s25 = sshll.u32 %s14187_s2, 4  ;;  %s13730_s18 = scalar_lea.vmem %s2071_s23, 16  ;;  %s2093_s25 = int_to_ptr.vmem [resolvable:$true] %s2092_s25 }
 0x1aa   : > { %p13731_p0 = scmp.ne.s32.totalorder %s2071_s23, %s13730_s18  ;;  %s13736_s19 = scalar_lea.vmem %s2071_s23, 32 }
 0x1ab   : > { %p13737_p5 = scmp.lt.s32.totalorder %s2071_s23, %s2071_s23  ;;  %p13738_p6 = scmp.lt.s32.totalorder %s13736_s19, %s13730_s18 }
 0x1ac   : > { %p13732_p1 = pnand %p13731_p0, %p12833_p3 }
 0x1ad   : > { %12718 = dma.hbm_to_vmem [thread:$0]  (%p12833_p3), %s15975_s21, 16, %s2043_s15, [#allocation18]  }
 0x1ae   : > { %p13733_p4 = pneg %p13732_p1  ;;  %p13739_p7 = por %p13738_p6, %p13737_p5 }
 0x1b0   : > { %p13740_p8 = pnand %p13739_p7, %p13733_p4 }
 0x1b2   : > { %13743 = shalt.err (!%p13740_p8)
}
 0x1b3   : > { %s15976_s15 = sld [smem:[#allocation120_spill]]  ;;  %s13754_s26 = scalar_lea.vmem %s2093_s25, 16 }
 0x1b4   : > { %p13755_p9 = scmp.ne.s32.totalorder %s2093_s25, %s13754_s26  ;;  %s13760_s11 = scalar_lea.vmem %s2093_s25, 32 }
 0x1b5   : > { %p13761_p12 = scmp.lt.s32.totalorder %s2093_s25, %s2093_s25  ;;  %p13762_p13 = scmp.lt.s32.totalorder %s13760_s11, %s13754_s26 }
 0x1b6   : > { %p13756_p10 = pnand %p13755_p9, %p12833_p3 }
 0x1b7   : > { %p13763_p0 = por %p13762_p13, %p13761_p12 }
 0x1b8   : > { %p13757_p11 = pneg %p13756_p10 }
 0x1b9   : > { %12722 = dma.hbm_to_vmem [thread:$0]  (%p12833_p3), %s15976_s15, 16, %s2071_s23, [#allocation21]  }
 0x1ba   : > { %p13764_p1 = pnand %p13763_p0, %p13757_p11 }
 0x1bc   : > { %13767 = shalt.err (!%p13764_p1)
}
 0x1bd   : > { %s15977_s21 = sld [smem:[#allocation121_spill]]  ;;  %s14188_s7 = smov [#allocation28]  }
 0x1be   : > { %s2114_s2 = sshll.u32 %s14188_s7, 4  ;;  %s14189_s18 = smov [#allocation31]   ;;  %s2115_s2 = int_to_ptr.vmem [resolvable:$true] %s2114_s2 }
 0x1bf   : > { %s2136_s23 = sshll.u32 %s14189_s18, 4  ;;  %s13778_s19 = scalar_lea.vmem %s2115_s2, 16  ;;  %s2137_s23 = int_to_ptr.vmem [resolvable:$true] %s2136_s23 }
 0x1c0   : > { %p13779_p4 = scmp.ne.s32.totalorder %s2115_s2, %s13778_s19  ;;  %s13784_s15 = scalar_lea.vmem %s2115_s2, 32 }
 0x1c1   : > { %p13785_p7 = scmp.lt.s32.totalorder %s2115_s2, %s2115_s2  ;;  %p13786_p8 = scmp.lt.s32.totalorder %s13784_s15, %s13778_s19 }
 0x1c2   : > { %p13780_p5 = pnand %p13779_p4, %p12833_p3 }
 0x1c3   : > { %12726 = dma.hbm_to_vmem [thread:$0]  (%p12833_p3), %s15977_s21, 16, %s2093_s25, [#allocation24]  }
 0x1c4   : > { %p13781_p6 = pneg %p13780_p5  ;;  %p13787_p9 = por %p13786_p8, %p13785_p7 }
 0x1c6   : > { %p13788_p10 = pnand %p13787_p9, %p13781_p6 }
 0x1c8   : > { %13791 = shalt.err (!%p13788_p10)
}
 0x1c9   : > { %s15978_s25 = sld [smem:[#allocation122_spill]]  ;;  %s13802_s26 = scalar_lea.vmem %s2137_s23, 16 }
 0x1ca   : > { %p13803_p11 = scmp.ne.s32.totalorder %s2137_s23, %s13802_s26  ;;  %s13808_s11 = scalar_lea.vmem %s2137_s23, 32 }
 0x1cb   : > { %p13809_p0 = scmp.lt.s32.totalorder %s2137_s23, %s2137_s23  ;;  %p13810_p1 = scmp.lt.s32.totalorder %s13808_s11, %s13802_s26 }
 0x1cc   : > { %p13804_p12 = pnand %p13803_p11, %p12833_p3 }
 0x1cd   : > { %p13811_p4 = por %p13810_p1, %p13809_p0 }
 0x1ce   : > { %p13805_p13 = pneg %p13804_p12 }
 0x1cf   : > { %12730 = dma.hbm_to_vmem [thread:$0]  (%p12833_p3), %s15978_s25, 16, %s2115_s2, [#allocation27]  }
 0x1d0   : > { %p13812_p5 = pnand %p13811_p4, %p13805_p13 }
 0x1d2   : > { %13815 = shalt.err (!%p13812_p5)
}
 0x1d3   : > { %s15979_s21 = sld [smem:[#allocation124_spill]]  ;;  %s14190_s7 = smov [#allocation34]  }
 0x1d4   : > { %s2164_s18 = sshll.u32 %s14190_s7, 4  ;;  %s14191_s19 = smov [#allocation37]   ;;  %s2165_s18 = int_to_ptr.vmem [resolvable:$true] %s2164_s18 }
 0x1d5   : > { %s2188_s2 = sshll.u32 %s14191_s19, 4  ;;  %s13826_s15 = scalar_lea.vmem %s2165_s18, 16  ;;  %s2189_s2 = int_to_ptr.vmem [resolvable:$true] %s2188_s2 }
 0x1d6   : > { %p13827_p6 = scmp.ne.s32.totalorder %s2165_s18, %s13826_s15  ;;  %s13832_s25 = scalar_lea.vmem %s2165_s18, 32 }
 0x1d7   : > { %p13833_p9 = scmp.lt.s32.totalorder %s2165_s18, %s2165_s18  ;;  %p13834_p10 = scmp.lt.s32.totalorder %s13832_s25, %s13826_s15 }
 0x1d8   : > { %p13828_p7 = pnand %p13827_p6, %p12833_p3 }
 0x1d9   : > { %12734 = dma.hbm_to_vmem [thread:$0]  (%p12833_p3), %s15979_s21, 16, %s2137_s23, [#allocation30]  }
 0x1da   : > { %p13829_p8 = pneg %p13828_p7  ;;  %p13835_p11 = por %p13834_p10, %p13833_p9 }
 0x1dc   : > { %p13836_p12 = pnand %p13835_p11, %p13829_p8 }
 0x1de   : > { %13839 = shalt.err (!%p13836_p12)
}
 0x1df   : > { %s15980_s23 = sld [smem:[#allocation127_spill]]  ;;  %s13850_s26 = scalar_lea.vmem %s2189_s2, 512 }
 0x1e0   : > { %p13851_p13 = scmp.ne.s32.totalorder %s2189_s2, %s13850_s26  ;;  %p13857_p4 = scmp.lt.s32.totalorder %s2189_s2, %s2189_s2 }
 0x1e1   : > { %p13858_p5 = scmp.lt.s32.totalorder %s13850_s26, %s13850_s26 }
 0x1e2   : > { %p13852_p0 = pnand %p13851_p13, %p12833_p3 }
 0x1e3   : > { %p13859_p6 = por %p13858_p5, %p13857_p4 }
 0x1e4   : > { %p13853_p1 = pneg %p13852_p0 }
 0x1e5   : > { %12738 = dma.hbm_to_vmem [thread:$0]  (%p12833_p3), %s15980_s23, 16, %s2165_s18, [#allocation33]  }
 0x1e6   : > { %p13860_p7 = pnand %p13859_p6, %p13853_p1 }
 0x1e8   : > { %13863 = shalt.err (!%p13860_p7)
}
 0x1e9   : > { %s14192_s11 = smov 128   ;;  %s15981_s21 = sld [smem:[#allocation129_spill]] }
 0x1ea   : > { %s14193_s7 = smov 8   ;;  %s14194_s19 = smov [#allocation40]  }
 0x1eb   : > { %s2212_s15 = sshll.u32 %s14194_s19, 4  ;;  %s14195_s18 = smov [#allocation43]   ;;  %s2213_s15 = int_to_ptr.vmem [resolvable:$true] %s2212_s15 }
 0x1ec   : > { %s2240_s25 = sshll.u32 %s14195_s18, 4  ;;  %s13874_s23 = scalar_lea.vmem %s2213_s15, 512  ;;  %s2241_s25 = int_to_ptr.vmem [resolvable:$true] %s2240_s25 }
 0x1ed   : > { %p13875_p8 = scmp.ne.s32.totalorder %s2213_s15, %s13874_s23  ;;  %p13881_p11 = scmp.lt.s32.totalorder %s2213_s15, %s2213_s15 }
 0x1ee   : > { %p13882_p12 = scmp.lt.s32.totalorder %s13874_s23, %s13874_s23 }
 0x1ef   : > { %12742 = dma.hbm_to_vmem [thread:$0]  (%p12833_p3), %s15981_s21, 512, %s2189_s2, [#allocation36], %s14192_s11, %s14192_s11, %s14193_s7  }
 0x1f0   : > { %p13876_p9 = pnand %p13875_p8, %p12833_p3  ;;  %p13883_p13 = por %p13882_p12, %p13881_p11 }
 0x1f2   : > { %p13877_p10 = pneg %p13876_p9 }
 0x1f4   : > { %p13884_p0 = pnand %p13883_p13, %p13877_p10 }
 0x1f6   : > { %13887 = shalt.err (!%p13884_p0)
}
 0x1f7   : > { %s15982_s26 = sld [smem:[#allocation131_spill]]  ;;  %s13898_s2 = scalar_lea.vmem %s2241_s25, 16 }
 0x1f8   : > { %p13899_p1 = scmp.ne.s32.totalorder %s2241_s25, %s13898_s2  ;;  %s13904_s21 = scalar_lea.vmem %s2241_s25, 32 }
 0x1f9   : > { %p13905_p6 = scmp.lt.s32.totalorder %s2241_s25, %s2241_s25  ;;  %p13906_p7 = scmp.lt.s32.totalorder %s13904_s21, %s13898_s2 }
 0x1fa   : > { %p13900_p4 = pnand %p13899_p1, %p12833_p3 }
 0x1fb   : > { %p13907_p8 = por %p13906_p7, %p13905_p6 }
 0x1fc   : > { %p13901_p5 = pneg %p13900_p4 }
 0x1fd   : > { %12746 = dma.hbm_to_vmem [thread:$0]  (%p12833_p3), %s15982_s26, 512, %s2213_s15, [#allocation39], %s14192_s11, %s14192_s11, %s14193_s7  }
 0x1fe   : > { %p13908_p9 = pnand %p13907_p8, %p13901_p5 }
 0x200   : > { %13911 = shalt.err (!%p13908_p9)
}
 0x201   : > { %s15983_s19 = sld [smem:[#allocation133_spill]]  ;;  %s14196_s18 = smov [#allocation46]  }
 0x202   : > { %s2265_s23 = sshll.u32 %s14196_s18, 4  ;;  %s14197_s3 = smov [#allocation49]   ;;  %s2266_s23 = int_to_ptr.vmem [resolvable:$true] %s2265_s23 }
 0x203   : > { %s2287_s11 = sshll.u32 %s14197_s3, 4  ;;  %s13922_s7 = scalar_lea.vmem %s2266_s23, 16  ;;  %s2288_s11 = int_to_ptr.vmem [resolvable:$true] %s2287_s11 }
 0x204   : > { %p13923_p10 = scmp.ne.s32.totalorder %s2266_s23, %s13922_s7  ;;  %s13928_s15 = scalar_lea.vmem %s2266_s23, 32 }
 0x205   : > { %p13929_p13 = scmp.lt.s32.totalorder %s2266_s23, %s2266_s23  ;;  %p13930_p0 = scmp.lt.s32.totalorder %s13928_s15, %s13922_s7 }
 0x206   : > { %p13924_p11 = pnand %p13923_p10, %p12833_p3 }
 0x207   : > { %12750 = dma.hbm_to_vmem [thread:$0]  (%p12833_p3), %s15983_s19, 16, %s2241_s25, [#allocation42]  }
 0x208   : > { %p13925_p12 = pneg %p13924_p11  ;;  %p13931_p1 = por %p13930_p0, %p13929_p13 }
 0x20a   : > { %p13932_p4 = pnand %p13931_p1, %p13925_p12 }
 0x20c   : > { %13935 = shalt.err (!%p13932_p4)
}
 0x20d   : > { %s15984_s25 = sld [smem:[#allocation136_spill]]  ;;  %s13946_s26 = scalar_lea.vmem %s2288_s11, 16 }
 0x20e   : > { %p13947_p5 = scmp.ne.s32.totalorder %s2288_s11, %s13946_s26  ;;  %s13952_s3 = scalar_lea.vmem %s2288_s11, 32 }
 0x20f   : > { %p13953_p8 = scmp.lt.s32.totalorder %s2288_s11, %s2288_s11  ;;  %p13954_p9 = scmp.lt.s32.totalorder %s13952_s3, %s13946_s26 }
 0x210   : > { %p13948_p6 = pnand %p13947_p5, %p12833_p3 }
 0x211   : > { %p13955_p10 = por %p13954_p9, %p13953_p8 }
 0x212   : > { %p13949_p7 = pneg %p13948_p6 }
 0x213   : > { %12754 = dma.hbm_to_vmem [thread:$0]  (%p12833_p3), %s15984_s25, 16, %s2266_s23, [#allocation45]  }
 0x214   : > { %p13956_p11 = pnand %p13955_p10, %p13949_p7 }
 0x216   : > { %13959 = shalt.err (!%p13956_p11)
}
 0x217   : > { %s15985_s2 = sld [smem:[#allocation138_spill]]  ;;  %s14198_s21 = smov [#allocation52]  }
 0x218   : > { %s2309_s19 = sshll.u32 %s14198_s21, 4  ;;  %s14199_s18 = smov [#allocation53]   ;;  %s2310_s19 = int_to_ptr.vmem [resolvable:$true] %s2309_s19 }
 0x219   : > { %s2320_s23 = sshll.u32 %s14199_s18, 4  ;;  %s13970_s7 = scalar_lea.vmem %s2310_s19, 16  ;;  %s2321_s23 = int_to_ptr.vmem [resolvable:$true] %s2320_s23 }
 0x21a   : > { %p13971_p12 = scmp.ne.s32.totalorder %s2310_s19, %s13970_s7  ;;  %s13976_s15 = scalar_lea.vmem %s2310_s19, 32 }
 0x21b   : > { %p13977_p1 = scmp.lt.s32.totalorder %s2310_s19, %s2310_s19  ;;  %p13978_p4 = scmp.lt.s32.totalorder %s13976_s15, %s13970_s7 }
 0x21c   : > { %p13972_p13 = pnand %p13971_p12, %p12833_p3 }
 0x21d   : > { %12758 = dma.hbm_to_vmem [thread:$0]  (%p12833_p3), %s15985_s2, 16, %s2288_s11, [#allocation48]  }
 0x21e   : > { %p13973_p0 = pneg %p13972_p13  ;;  %p13979_p5 = por %p13978_p4, %p13977_p1 }
 0x220   : > { %p13980_p6 = pnand %p13979_p5, %p13973_p0 }
 0x222   : > { %13983 = shalt.err (!%p13980_p6)
}
 0x223   : > { %s15986_s12 = sld [smem:[#allocation139_spill]]  ;;  %s13994_s11 = scalar_lea.vmem %s2321_s23, 16 }
 0x224   : > { %p13995_p7 = scmp.ne.s32.totalorder %s2321_s23, %s13994_s11  ;;  %s14000_s25 = scalar_lea.vmem %s2321_s23, 32 }
 0x225   : > { %p14001_p10 = scmp.lt.s32.totalorder %s2321_s23, %s2321_s23  ;;  %p14002_p11 = scmp.lt.s32.totalorder %s14000_s25, %s13994_s11 }
 0x226   : > { %p13996_p8 = pnand %p13995_p7, %p12833_p3 }
 0x227   : > { %p14003_p12 = por %p14002_p11, %p14001_p10 }
 0x228   : > { %p13997_p9 = pneg %p13996_p8 }
 0x229   : > { %12762 = dma.hbm_to_vmem [thread:$0]  (%p12833_p3), %s15986_s12, 16, %s2310_s19, [#allocation51]  }
 0x22a   : > { %p14004_p13 = pnand %p14003_p12, %p13997_p9 }
 0x22c   : > { %14007 = shalt.err (!%p14004_p13)
}
 0x22d   : > { %12764 = dma.hbm_to_vmem [thread:$0]  (%p12833_p3), %s14594_s22, 16, %s2321_s23, [#allocation54]  }
 0x22e PF: > { %2348 = sbr.rel (%p14611_p2) target bundleno = 19953 (0x4df1), region = 324  ;;  %p12867_p0 = scmp.eq.s32.totalorder (!%p14611_p2), %s14607_s24, 0 }
 0x233   : > { %14013 = dma.done.wait (%p12867_p0), [#allocation4], 64  }
 0x234   : > { %14015 = vsyncadd (%p12867_p0), [#allocation4], 4294967232 }
 0x235   : > { %14017 = dma.done.wait (%p12867_p0), [#allocation6], 80  }
 0x236   : > { %14019 = vsyncadd (%p12867_p0), [#allocation6], 4294967216 }
 0x237   : > { %14021 = dma.done.wait (%p12867_p0), [#allocation9], 32  }
 0x238   : > { %14023 = vsyncadd (%p12867_p0), [#allocation9], 4294967264 }
 0x239   : > { %14025 = dma.done.wait (%p12867_p0), [#allocation12], 32  }
 0x23a   : > { %14027 = vsyncadd (%p12867_p0), [#allocation12], 4294967264 }
 0x23b   : > { %14029 = dma.done.wait (%p12867_p0), [#allocation15], 32  }
 0x23c   : > { %14031 = vsyncadd (%p12867_p0), [#allocation15], 4294967264 }
 0x23d   : > { %14033 = dma.done.wait (%p12867_p0), [#allocation18], 32  }
 0x23e   : > { %14035 = vsyncadd (%p12867_p0), [#allocation18], 4294967264 }
 0x23f   : > { %14037 = dma.done.wait (%p12867_p0), [#allocation21], 32  }
 0x240   : > { %14039 = vsyncadd (%p12867_p0), [#allocation21], 4294967264 }
 0x241   : > { %14041 = dma.done.wait (%p12867_p0), [#allocation24], 32  }
 0x242   : > { %14043 = vsyncadd (%p12867_p0), [#allocation24], 4294967264 }
 0x243   : > { %14045 = dma.done.wait (%p12867_p0), [#allocation27], 32  }
 0x244   : > { %14047 = vsyncadd (%p12867_p0), [#allocation27], 4294967264 }
 0x245   : > { %14049 = dma.done.wait (%p12867_p0), [#allocation30], 32  }
 0x246   : > { %14051 = vsyncadd (%p12867_p0), [#allocation30], 4294967264 }
 0x247   : > { %14053 = dma.done.wait (%p12867_p0), [#allocation33], 32  }
 0x248   : > { %14055 = vsyncadd (%p12867_p0), [#allocation33], 4294967264 }
 0x249   : > { %14057 = dma.done.wait (%p12867_p0), [#allocation36], 528  }
 0x24a   : > { %14059 = vsyncadd (%p12867_p0), [#allocation36], 4294966768 }
 0x24b   : > { %14061 = dma.done.wait (%p12867_p0), [#allocation39], 528  }
 0x24c   : > { %14063 = vsyncadd (%p12867_p0), [#allocation39], 4294966768 }
 0x24d   : > { %14065 = dma.done.wait (%p12867_p0), [#allocation42], 32  }
 0x24e   : > { %14067 = vsyncadd (%p12867_p0), [#allocation42], 4294967264 }
 0x24f   : > { %14069 = dma.done.wait (%p12867_p0), [#allocation45], 32  }
 0x250   : > { %14071 = vsyncadd (%p12867_p0), [#allocation45], 4294967264 }
 0x251   : > { %14073 = dma.done.wait (%p12867_p0), [#allocation48], 32  }
 0x252   : > { %14075 = vsyncadd (%p12867_p0), [#allocation48], 4294967264 }
 0x253   : > { %14077 = dma.done.wait (%p12867_p0), [#allocation51], 32  }
 0x254   : > { %14079 = vsyncadd (%p12867_p0), [#allocation51], 4294967264 }
 0x255   : > { %14081 = dma.done.wait (%p12867_p0), [#allocation54], 16  }
 0x256   : > { %14083 = vsyncadd (%p12867_p0), [#allocation54], 4294967280  ;;  %s15987_s1 = sld [smem:[#allocation73_spill]]  ;;  %p2653_p2 = scmp.lt.s32.totalorder %s14607_s24, 1  ;;  %vm2696_vm0 = vcmask 1043456   ;;  %vm2689_vm1 = vcmask 31744  }
 0x257   : > { %s15988_s26 = sld [smem:[#allocation84_spill]]  ;;  %v2674_v1 = vld [vmem:[#allocation3] sm:$0xf]  ;;  %vm2811_vm2 = vcmask 261120   ;;  %vm2899_vm3 = vcmask 64512   ;;  %s15880_s23 = smov 88  }
 0x258   : > { %s16041_s24 = smov (!%p2653_p2, %s14607_s24), 1  ;;  %12044 = vmatprep.subr.msk.mxu0 %vm2696_vm0, %v2674_v1  ;;  %s15989_s21 = sld [smem:[#allocation80_spill]]  ;;  %vm2985_vm4 = vcmask 130048   ;;  %vm4177_vm5 = vcmask 523264   ;;  %vm14212_vm6 = vmmov 0   ;;  %vm10970_vm7 = vcmask 7168  }
 0x259   : > { %s11729_s3 = sshll.u32 %s16041_s24, 4  ;;  %12045 = vmatpush3.msk.msra.mxu0 %vm2696_vm0, %v2674_v1  ;;  %s15990_s19 = sld [smem:[#allocation75_spill]] }
 0x25a   : > { %s15991_s18 = sld [smem:[#allocation85_spill]]  ;;  %s15878_s7 = smov 96  }
 0x25b   : > { %s15874_s15 = smov 120   ;;  %s15876_s11 = smov 64  }
 0x25c   : > { %s2657_s2 = scalar_lea.vmem %s15987_s1, %s11729_s3  ;;  %s15872_s25 = smov 56  }
 0x25d   : > { %v2666_v2 = vld [vmem:[%s2657_s2] sm:$0xff]  ;;  %v2667_v3 = vld [vmem:[%s2657_s2 + $0x8] sm:$0xff]  ;;  %v2780_v4 = vld [vmem:[%s15988_s26 + $0x18] sm:$0xff]  ;;  %s15870_s1 = smov 80   ;;  %s15868_s3 = smov 112  }
 0x25e   : > { %12046 = vmatprep.mubr.msk.f32.mxu0 %vm2689_vm1, %v2666_v2  ;;  %12049 = vmatprep.subr.mxu1 %v2780_v4  ;;  %v2779_v5 = vld [vmem:[%s15988_s26 + $0x10] sm:$0xff]  ;;  %v2778_v6 = vld [vmem:[%s15988_s26 + $0x8] sm:$0xff]  ;;  %v2777_v7 = vld [vmem:[%s15988_s26] sm:$0xff]  ;;  %s15862_s2 = smov 72   ;;  %s16009_s4 = smov 40  }
 0x25f   : > { %12047 = vmatmul.mubr.msk.f32.vlgmr.msra.gmra.mxu0 %vm2689_vm1, %v2667_v3  ;;  %12050 = vmatpush3.msra.mxu1 %v2780_v4  ;;  %v11516_v8 = vld [vmem:[%s15989_s21] ss:$0 sm:$0xff]  ;;  %v2670_v13 = vld [vmem:[%s15990_s19 + $0x8] sm:$0xff]  ;;  %s15860_s21 = smov 104   ;;  %s16010_s5 = sld [smem:[#allocation99_spill]] }
 0x260   : > { %12051 = vmatprep.subr.mxu1 %v2779_v5  ;;  %v2669_v12 = vld [vmem:[%s15990_s19] sm:$0xff]  ;;  %s16011_s6 = sld [smem:[#allocation100_spill]]  ;;  %s15885_s10 = sshll.u32 %s16041_s24, 3 }
 0x261   : > { %12052 = vmatpush3.msra.mxu1 %v2779_v5  ;;  %v11520_v17 = vld [vmem:[%s15991_s18] ss:$0 sm:$0xff]  ;;  %s15992_s18 = sld [smem:[#allocation86_spill]] }
 0x262   : > { %12053 = vmatprep.subr.mxu1 %v2778_v6  ;;  %s16013_s8 = sld [smem:[#allocation104_spill]] }
 0x263   : > { %12054 = vmatpush3.msra.mxu1 %v2778_v6  ;;  %s16015_s9 = sld [smem:[#allocation74_spill]] }
 0x264   : > { %12055 = vmatprep.subr.mxu1 %v2777_v7  ;;  %s16016_s12 = sld [smem:[#allocation108_spill]] }
 0x265   : > { %12056 = vmatpush3.msra.mxu1 %v2777_v7 }
 0x269   : > { %s2661_s14 = scalar_lea.vmem %s16015_s9, %s15885_s10  ;;  %s16017_s9 = sld [smem:[#allocation101_spill]] }
 0x26a   : > { %s16023_s10 = sld [smem:[#allocation110_spill]] }
 0x31f   : > { %v12048_v9 = vpop.f32.mrf.mxu0 }
 0x320   : > { %v2772_v10 = vadd.f32 %v12048_v9, %v11516_v8 }
 0x321   : > { %v2766_v11 = vpop.f32.mrf.mxu0 }
 0x322   : > { %v2767_v14 = vadd.f32 %v11516_v8, %v2766_v11  ;;  %v14882_v16 = vadd.f32 %v2772_v10, %v2670_v13  ;;  %v2783_v8 = vld [vmem:[%s15992_s18 + $0x8] sm:$0xff] }
 0x324   : > { %v14880_v15 = vadd.f32 %v2767_v14, %v2669_v12  ;;  %v2782_v14 = vld [vmem:[%s15992_s18] sm:$0xff] }
 0x326   : > { %12057 = vmatprep.mubr.msk.f32.mxu1 %vm2811_vm2, %v14880_v15 }
 0x327   : > { %12058 = vmatmul.mubr.msk.f32.vlgmr.msra.gmra.mxu1 %vm2811_vm2, %v14882_v16 }
 0x3e7   : > { %v12059_v18 = vpop.f32.mrf.mxu1 }
 0x3e8   : > { %v14889_v19 = vadd.f32 %v12059_v18, %v11520_v17 }
 0x3e9   : > { %v2884_v20 = vpop.f32.mrf.mxu1 }
 0x3ea   : > { %v14891_v21 = vadd.f32 %v11520_v17, %v2884_v20  ;;  %3101 = vrot.lane.b32.xlu1 %v14889_v19, %s15880_s23  ;;  %2897 = vrot.lane.b32.xlu0 %v14889_v19, %s15878_s7 }
 0x3ec   : > { %12064 = vmatprep.mubr.msk.f32.mxu0 %vm2899_vm3, %v14891_v21 }
 0x3ee   : > { %3099 = vrot.lane.b32.xlu1 %v14891_v21, %s15880_s23  ;;  %2895 = vrot.lane.b32.xlu0 %v14891_v21, %s15878_s7 }
 0x3f2   : > { %3097 = vrot.lane.b32.xlu1 %v14889_v19, %s15874_s15  ;;  %3095 = vrot.lane.b32.xlu0 %v14891_v21, %s15874_s15  ;;  %s16000_s15 = sld [smem:[#allocation97_spill]] }
 0x45c   : > { %v2898_v22 = vpop.permute.xlu0 %2897  ;;  %v3102_v23 = vpop.permute.xlu1 %3101 }
 0x45d   : > { %12060 = vmatprep.subr.msk.mxu0 %vm2899_vm3, %v2898_v22 }
 0x45e   : > { %12061 = vmatpush3.xpose.msk.msra.mxu0 %vm2899_vm3, %v2898_v22 }
 0x460   : > { %v2896_v24 = vpop.permute.xlu0 %2895  ;;  %v3100_v26 = vpop.permute.xlu1 %3099 }
 0x461   : > { %12062 = vmatprep.subr.msk.mxu0 %vm2899_vm3, %v2896_v24 }
 0x462   : > { %12063 = vmatpush3.xpose.msk.msra.mxu0 %vm2899_vm3, %v2896_v24 }
 0x463   : > { %12074 = vmatprep.subr.msk.mxu0 %vm2899_vm3, %v3102_v23 }
 0x464   : > { %v3096_v25 = vpop.permute.xlu0 %3095  ;;  %v3098_v27 = vpop.permute.xlu1 %3097 }
 0x465   : > { %12065 = vmatmul.mubr.msk.f32.vlgmr.msra.gmra.mxu0 %vm2899_vm3, %v14889_v19 }
 0x466   : > { %12075 = vmatpush3.xpose.msk.msra.mxu0 %vm2899_vm3, %v3102_v23  ;;  %12078 = vmatprep.mubr.msk.f32.mxu0 %vm2899_vm3, %v3096_v25 }
 0x467   : > { %12076 = vmatprep.subr.msk.mxu0 %vm2899_vm3, %v3100_v26 }
 0x46a   : > { %12077 = vmatpush3.xpose.msk.msra.mxu0 %vm2899_vm3, %v3100_v26 }
 0x46b   : > { %12093 = vmatprep.subr.mxu0 %v2782_v14 }
 0x46d   : > { %12079 = vmatmul.mubr.msk.f32.vlgmr.msra.gmra.mxu0 %vm2899_vm3, %v3098_v27 }
 0x46e   : > { %12094 = vmatpush3.msra.mxu0 %v2782_v14 }
 0x525   : > { %v12066_v28 = vpop.f32.mrf.mxu0 }
 0x526   : > { %v2984_v29 = vmul.f32 0.35355338, %v12066_v28 }
 0x527   : > { %v2974_v30 = vpop.f32.mrf.mxu0 }
 0x528   : > { %v2983_v31 = vmul.f32 0.35355338, %v2974_v30  ;;  %v2989_v32 = vsel %vm2985_vm4, %v2984_v29, -inf }
 0x529   : > { %2990 = vmax.xlane.f32.xlu1 %v2989_v32 }
 0x52a   : > { %v2986_v33 = vsel %vm2985_vm4, %v2983_v31, -inf }
 0x52b   : > { %2987 = vmax.xlane.f32.xlu0 %v2986_v33 }
 0x52d   : > { %v12080_v34 = vpop.f32.mrf.mxu0 }
 0x52e   : > { %v3187_v37 = vmul.f32 0.35355338, %v12080_v34 }
 0x52f   : > { %v3177_v35 = vpop.f32.mrf.mxu0 }
 0x530   : > { %v3186_v36 = vmul.f32 0.35355338, %v3177_v35  ;;  %v3191_v39 = vsel %vm2985_vm4, %v3187_v37, -inf }
 0x532   : > { %v3188_v38 = vsel %vm2985_vm4, %v3186_v36, -inf }
 0x533   : > { %3189 = vmax.xlane.f32.xlu0 %v3188_v38 }
 0x537   : > { %3192 = vmax.xlane.f32.xlu0 %v3191_v39 }
 0x53a   : > { %3010 = vrot.lane.b32.xlu1 %v14889_v19, %s15876_s11 }
 0x5b2   : > { %v2991_v40 = vpop.xlane.xlu1 %2990 }
 0x5b3   : > { %v2993_v41 = vsub.f32 %v2984_v29, %v2991_v40 }
 0x5b4   : > { %v2988_v42 = vpop.xlane.xlu0 %2987 }
 0x5b5   : > { %v2996_v43 = vmul.f32 1.442695, %v2993_v41  ;;  %v2992_v44 = vsub.f32 %v2983_v31, %v2988_v42 }
 0x5b6   : > { %v3011_v45 = vpop.permute.xlu1 %3010 }
 0x5b7   : > { %13034 = vpow2.f32 %v2996_v43  ;;  %v2994_v46 = vmul.f32 1.442695, %v2992_v44  ;;  %12067 = vmatprep.subr.mxu1 %v3011_v45 }
 0x5b8   : > { %12068 = vmatpush3.msra.mxu1 %v3011_v45 }
 0x5b9   : > { %13036 = vpow2.f32 %v2994_v46 }
 0x5bc   : > { %v3190_v47 = vpop.xlane.xlu0 %3189 }
 0x5bd   : > { %v3194_v57 = vsub.f32 %v3186_v36, %v3190_v47 }
 0x5bf   : > { %v3196_v58 = vmul.f32 1.442695, %v3194_v57 }
 0x5c0   : > { %v3193_v48 = vpop.xlane.xlu0 %3192 }
 0x5c1   : > { %v3195_v49 = vsub.f32 %v3187_v37, %v3193_v48 }
 0x5c3   : > { %v3198_v50 = vmul.f32 1.442695, %v3195_v49 }
 0x5c4   : > { %v13035_v51 = vpop.eup %13034 }
 0x5c5   : > { %13038 = vpow2.f32 %v3198_v50  ;;  %v3001_v52 = vsel %vm2985_vm4, %v13035_v51, 0.0 }
 0x5c6   : > { %v13037_v53 = vpop.eup %13036  ;;  %3002 = vadd.xlane.f32.xlu0 %v3001_v52  ;;  %13040 = vpow2.f32 %v3196_v58 }
 0x5c7   : > { %v2998_v54 = vsel %vm2985_vm4, %v13037_v53, 0.0 }
 0x5c8   : > { %2999 = vadd.xlane.f32.xlu1 %v2998_v54 }
 0x5d2   : > { %v13039_v55 = vpop.eup %13038 }
 0x5d3   : > { %v3203_v56 = vsel %vm2985_vm4, %v13039_v55, 0.0  ;;  %v13041_v59 = vpop.eup %13040 }
 0x5d4   : > { %3204 = vadd.xlane.f32.xlu0 %v3203_v56  ;;  %v3200_v60 = vsel %vm2985_vm4, %v13041_v59, 0.0 }
 0x5d9   : > { %3212 = vrot.lane.b32.xlu1 %v14889_v19, %s15872_s25 }
 0x5ea   : > { %3008 = vrot.lane.b32.xlu0 %v14891_v21, %s15876_s11 }
 0x5ee   : > { %3465 = vrot.lane.b32.xlu0 %v14889_v19, %s15870_s1 }
 0x5f2   : > { %3459 = vrot.lane.b32.xlu0 %v14891_v21, %s15868_s3 }
 0x5f6   : > { %3750 = vrot.lane.b32.xlu0 %v14889_v19, %s15862_s2 }
 0x5fa   : > { %3744 = vrot.lane.b32.xlu0 %v14891_v21, %s15860_s21 }
 0x5fd   : > { %3201 = vadd.xlane.f32.xlu1 %v3200_v60 }
 0x60e   : > { %3210 = vrot.lane.b32.xlu1 %v14891_v21, %s15872_s25  ;;  %s15999_s25 = sld [smem:[#allocation95_spill]] }
 0x612   : > { %3463 = vrot.lane.b32.xlu1 %v14891_v21, %s15870_s1  ;;  %s15998_s1 = sld [smem:[#allocation94_spill]] }
 0x616   : > { %3461 = vrot.lane.b32.xlu1 %v14889_v19, %s15868_s3  ;;  %s15996_s3 = sld [smem:[#allocation92_spill]] }
 0x61a   : > { %3748 = vrot.lane.b32.xlu1 %v14891_v21, %s15862_s2  ;;  %s15864_s2 = smov 40  }
 0x61e   : > { %3746 = vrot.lane.b32.xlu1 %v14889_v19, %s15860_s21  ;;  %s15866_s21 = smov 48  }
 0x64f   : > { %v3003_v61 = vpop.xlane.xlu0 %3002 }
 0x650   : > { %13042 = vrcp.f32 %v3003_v61 }
 0x651   : > { %v3000_v62 = vpop.xlane.xlu1 %2999 }
 0x652   : > { %13044 = vrcp.f32 %v3000_v62 }
 0x655   : > { %v3213_v5 = vpop.permute.xlu1 %3212 }
 0x65d   : > { %v3205_v63 = vpop.xlane.xlu0 %3204  ;;  %v13043_v0 = vpop.eup %13042 }
 0x65e   : > { %v3007_v4 = vmul.f32 %v13043_v0, %v13035_v51  ;;  %13046 = vrcp.f32 %v3205_v63 }
 0x65f   : > { %v13045_v1 = vpop.eup %13044 }
 0x660   : > { %v3006_v2 = vmul.f32 %v13045_v1, %v13037_v53  ;;  %v2784_v1 = vld [vmem:[%s15992_s18 + $0x10] sm:$0xff] }
 0x661   : > { %v3009_v3 = vpop.permute.xlu0 %3008 }
 0x662   : > { %12069 = vmatprep.subr.mxu1 %v3009_v3  ;;  %12071 = vmatprep.mubr.msk.f32.mxu1 %vm2985_vm4, %v3006_v2 }
 0x663   : > { %12070 = vmatpush3.msra.mxu1 %v3009_v3 }
 0x664   : > { %12072 = vmatmul.mubr.msk.f32.vlgmr.msra.gmra.mxu1 %vm2985_vm4, %v3007_v4  ;;  %12081 = vmatprep.subr.mxu1 %v3213_v5 }
 0x665   : > { %12082 = vmatpush3.msra.mxu1 %v3213_v5  ;;  %v3466_v13 = vpop.permute.xlu0 %3465 }
 0x669   : > { %v3460_v20 = vpop.permute.xlu0 %3459 }
 0x66b   : > { %v13047_v9 = vpop.eup %13046 }
 0x66c   : > { %v3209_v12 = vmul.f32 %v13047_v9, %v13039_v55 }
 0x66d   : > { %v3751_v25 = vpop.permute.xlu0 %3750 }
 0x671   : > { %v3745_v27 = vpop.permute.xlu0 %3744 }
 0x686   : > { %v3202_v6 = vpop.xlane.xlu1 %3201 }
 0x687   : > { %13048 = vrcp.f32 %v3202_v6 }
 0x68a   : > { %v3211_v7 = vpop.permute.xlu1 %3210 }
 0x68b   : > { %12083 = vmatprep.subr.mxu1 %v3211_v7 }
 0x68c   : > { %12084 = vmatpush3.msra.mxu1 %v3211_v7 }
 0x68d   : > { %12088 = vmatprep.subr.mxu1 %v2783_v8 }
 0x68e   : > { %v3464_v23 = vpop.permute.xlu1 %3463 }
 0x692   : > { %v3462_v26 = vpop.permute.xlu1 %3461 }
 0x694   : > { %v13049_v10 = vpop.eup %13048 }
 0x695   : > { %v3208_v11 = vmul.f32 %v13049_v10, %v13041_v59 }
 0x696   : > { %v3749_v28 = vpop.permute.xlu1 %3748 }
 0x697   : > { %12085 = vmatprep.mubr.msk.f32.mxu1 %vm2985_vm4, %v3208_v11 }
 0x698   : > { %12086 = vmatmul.mubr.msk.f32.vlgmr.msra.gmra.mxu1 %vm2985_vm4, %v3209_v12 }
 0x699   : > { %12089 = vmatpush3.msra.mxu1 %v2783_v8 }
 0x69a   : > { %12098 = vmatprep.subr.msk.mxu1 %vm2899_vm3, %v3466_v13  ;;  %v3747_v29 = vpop.permute.xlu1 %3746 }
 0x724   : > { %v12073_v17 = vpop.f32.mrf.mxu1 }
 0x726   : > { %v3086_v18 = vpop.f32.mrf.mxu1 }
 0x727   : > { %12095 = vmatprep.mubr.msk.f32.mxu0 %vm2899_vm3, %v3086_v18 }
 0x728   : > { %12096 = vmatmul.mubr.msk.f32.vlgmr.msra.gmra.mxu0 %vm2899_vm3, %v12073_v17 }
 0x758   : > { %v12087_v22 = vpop.f32.mrf.mxu1 }
 0x75a   : > { %v3288_v24 = vpop.f32.mrf.mxu1 }
 0x75b   : > { %12090 = vmatprep.mubr.msk.f32.mxu1 %vm2899_vm3, %v3288_v24  ;;  %v2785_v24 = vld [vmem:[%s15992_s18 + $0x18] sm:$0xff] }
 0x75c   : > { %12091 = vmatmul.mubr.msk.f32.vlgmr.msra.gmra.mxu1 %vm2899_vm3, %v12087_v22 }
 0x75d   : > { %12099 = vmatpush3.xpose.msk.msra.mxu1 %vm2899_vm3, %v3466_v13  ;;  %12102 = vmatprep.mubr.msk.f32.mxu1 %vm2899_vm3, %v3460_v20 }
 0x75e   : > { %12100 = vmatprep.subr.msk.mxu1 %vm2899_vm3, %v3464_v23 }
 0x761   : > { %12101 = vmatpush3.xpose.msk.msra.mxu1 %vm2899_vm3, %v3464_v23 }
 0x762   : > { %12117 = vmatprep.subr.msk.mxu1 %vm2899_vm3, %v3751_v25 }
 0x764   : > { %12103 = vmatmul.mubr.msk.f32.vlgmr.msra.gmra.mxu1 %vm2899_vm3, %v3462_v26 }
 0x765   : > { %12118 = vmatpush3.xpose.msk.msra.mxu1 %vm2899_vm3, %v3751_v25  ;;  %12121 = vmatprep.mubr.msk.f32.mxu1 %vm2899_vm3, %v3745_v27 }
 0x766   : > { %12119 = vmatprep.subr.msk.mxu1 %vm2899_vm3, %v3749_v28 }
 0x769   : > { %12120 = vmatpush3.xpose.msk.msra.mxu1 %vm2899_vm3, %v3749_v28 }
 0x76c   : > { %12122 = vmatmul.mubr.msk.f32.vlgmr.msra.gmra.mxu1 %vm2899_vm3, %v3747_v29 }
 0x7e8   : > { %v12097_v30 = vpop.f32.mrf.mxu0 }
 0x7ea   : > { %v3450_v12 = vpop.f32.mrf.mxu0 }
 0x81c   : > { %v12092_v31 = vpop.f32.mrf.mxu1 }
 0x81d   : > { %v14973_v32 = vadd.f32 %v12097_v30, %v12092_v31 }
 0x81e   : > { %v14975_v33 = vpop.f32.mrf.mxu1 }
 0x81f   : > { %v3451_v26 = vadd.f32 %v3450_v12, %v14975_v33 }
 0x824   : > { %v12104_v34 = vpop.f32.mrf.mxu1 }
 0x825   : > { %v3551_v35 = vmul.f32 0.35355338, %v12104_v34 }
 0x826   : > { %v3541_v36 = vpop.f32.mrf.mxu1 }
 0x827   : > { %v3550_v37 = vmul.f32 0.35355338, %v3541_v36  ;;  %v3555_v38 = vsel %vm2985_vm4, %v3551_v35, -inf }
 0x828   : > { %3556 = vmax.xlane.f32.xlu1 %v3555_v38 }
 0x829   : > { %v3552_v39 = vsel %vm2985_vm4, %v3550_v37, -inf }
 0x82a   : > { %3553 = vmax.xlane.f32.xlu0 %v3552_v39 }
 0x82c   : > { %v12123_v40 = vpop.f32.mrf.mxu1 }
 0x82d   : > { %v3836_v59 = vmul.f32 0.35355338, %v12123_v40 }
 0x82e   : > { %v3826_v41 = vpop.f32.mrf.mxu1 }
 0x82f   : > { %v3835_v42 = vmul.f32 0.35355338, %v3826_v41  ;;  %v3840_v61 = vsel %vm2985_vm4, %v3836_v59, -inf }
 0x831   : > { %v3837_v43 = vsel %vm2985_vm4, %v3835_v42, -inf }
 0x839   : > { %3576 = vrot.lane.b32.xlu1 %v14889_v19, %s15866_s21 }
 0x85d   : > { %3838 = vmax.xlane.f32.xlu1 %v3837_v43 }
 0x8b1   : > { %v3557_v44 = vpop.xlane.xlu1 %3556 }
 0x8b2   : > { %v3559_v45 = vsub.f32 %v3551_v35, %v3557_v44 }
 0x8b3   : > { %v3554_v46 = vpop.xlane.xlu0 %3553 }
 0x8b4   : > { %v3562_v47 = vmul.f32 1.442695, %v3559_v45  ;;  %v3558_v48 = vsub.f32 %v3550_v37, %v3554_v46 }
 0x8b5   : > { %v3577_v49 = vpop.permute.xlu1 %3576 }
 0x8b6   : > { %13050 = vpow2.f32 %v3562_v47  ;;  %v3560_v50 = vmul.f32 1.442695, %v3558_v48  ;;  %12105 = vmatprep.subr.mxu0 %v3577_v49 }
 0x8b7   : > { %12106 = vmatpush3.msra.mxu0 %v3577_v49 }
 0x8b8   : > { %13052 = vpow2.f32 %v3560_v50 }
 0x8c3   : > { %v13051_v51 = vpop.eup %13050 }
 0x8c4   : > { %v3567_v52 = vsel %vm2985_vm4, %v13051_v51, 0.0 }
 0x8c5   : > { %v13053_v53 = vpop.eup %13052  ;;  %3568 = vadd.xlane.f32.xlu0 %v3567_v52 }
 0x8c6   : > { %v3564_v54 = vsel %vm2985_vm4, %v13053_v53, 0.0 }
 0x8c9   : > { %3565 = vadd.xlane.f32.xlu0 %v3564_v54 }
 0x8df   : > { %3574 = vrot.lane.b32.xlu0 %v14891_v21, %s15866_s21  ;;  %s15994_s21 = sld [smem:[#allocation88_spill]] }
 0x8e5   : > { %v2789_v52 = vld [vmem:[%s15994_s21 + $0x10] sm:$0xff]  ;;  %v2787_v54 = vld [vmem:[%s15994_s21] sm:$0xff] }
 0x8e6   : > { %v3839_v55 = vpop.xlane.xlu1 %3838 }
 0x8e7   : > { %v3843_v56 = vsub.f32 %v3835_v42, %v3839_v55 }
 0x8e9   : > { %v3845_v57 = vmul.f32 1.442695, %v3843_v56 }
 0x8eb   : > { %13054 = vpow2.f32 %v3845_v57 }
 0x8f8   : > { %v13055_v58 = vpop.eup %13054 }
 0x8f9   : > { %v3849_v60 = vsel %vm2985_vm4, %v13055_v58, 0.0 }
 0x8fa   : > { %3850 = vadd.xlane.f32.xlu1 %v3849_v60 }
 0x8fe   : > { %3841 = vmax.xlane.f32.xlu0 %v3840_v61 }
 0x90b   : > { %3861 = vrot.lane.b32.xlu1 %v14889_v19, %s15864_s2 }
 0x94e   : > { %v3569_v62 = vpop.xlane.xlu0 %3568 }
 0x94f   : > { %13056 = vrcp.f32 %v3569_v62 }
 0x952   : > { %v3566_v63 = vpop.xlane.xlu0 %3565 }
 0x953   : > { %13058 = vrcp.f32 %v3566_v63 }
 0x956   : > { %v3575_v0 = vpop.permute.xlu0 %3574 }
 0x957   : > { %12107 = vmatprep.subr.mxu0 %v3575_v0 }
 0x958   : > { %12108 = vmatpush3.msra.mxu0 %v3575_v0 }
 0x959   : > { %12112 = vmatprep.subr.mxu0 %v2784_v1 }
 0x95c   : > { %v13057_v2 = vpop.eup %13056 }
 0x95d   : > { %v3573_v5 = vmul.f32 %v13057_v2, %v13051_v51  ;;  %v2790_v51 = vld [vmem:[%s15994_s21 + $0x18] sm:$0xff]  ;;  %v11556_v2 = vld [vmem:[%s15996_s3] ss:$0 sm:$0xff]  ;;  %s15997_s3 = sld [smem:[#allocation96_spill]] }
 0x95e   : > { %12136 = vmatprep.subr.mxu1 %v2790_v51 }
 0x95f   : > { %12137 = vmatpush3.msra.mxu1 %v2790_v51 }
 0x960   : > { %v13059_v3 = vpop.eup %13058  ;;  %12138 = vmatprep.subr.mxu1 %v2789_v52 }
 0x961   : > { %v3572_v4 = vmul.f32 %v13059_v3, %v13053_v53  ;;  %v2788_v53 = vld [vmem:[%s15994_s21 + $0x8] sm:$0xff]  ;;  %12139 = vmatpush3.msra.mxu1 %v2789_v52  ;;  %v11564_v52 = vld [vmem:[%s15998_s1] ss:$0 sm:$0xff]  ;;  %s16003_s1 = smov 56  }
 0x962   : > { %12140 = vmatprep.subr.mxu1 %v2788_v53 }
 0x963   : > { %12109 = vmatprep.mubr.msk.f32.mxu0 %vm2985_vm4, %v3572_v4  ;;  %12141 = vmatpush3.msra.mxu1 %v2788_v53 }
 0x964   : > { %12110 = vmatmul.mubr.msk.f32.vlgmr.msra.gmra.mxu0 %vm2985_vm4, %v3573_v5  ;;  %12142 = vmatprep.subr.mxu1 %v2787_v54 }
 0x965   : > { %12113 = vmatpush3.msra.mxu0 %v2784_v1  ;;  %12143 = vmatpush3.msra.mxu1 %v2787_v54 }
 0x983   : > { %v3851_v6 = vpop.xlane.xlu1 %3850 }
 0x987   : > { %v3862_v19 = vpop.permute.xlu1 %3861  ;;  %v3842_v7 = vpop.xlane.xlu0 %3841 }
 0x988   : > { %v3844_v8 = vsub.f32 %v3836_v59, %v3842_v7  ;;  %12124 = vmatprep.subr.mxu0 %v3862_v19 }
 0x98a   : > { %v3847_v9 = vmul.f32 1.442695, %v3844_v8 }
 0x98c   : > { %13060 = vpow2.f32 %v3847_v9 }
 0x98d   : > { %13062 = vrcp.f32 %v3851_v6 }
 0x999   : > { %v13061_v10 = vpop.eup %13060 }
 0x99a   : > { %v3852_v11 = vsel %vm2985_vm4, %v13061_v10, 0.0  ;;  %v13063_v13 = vpop.eup %13062 }
 0x99b   : > { %3853 = vadd.xlane.f32.xlu0 %v3852_v11  ;;  %v3857_v20 = vmul.f32 %v13063_v13, %v13055_v58 }
 0x9b1   : > { %3859 = vrot.lane.b32.xlu0 %v14891_v21, %s15864_s2  ;;  %s15993_s2 = sld [smem:[#allocation87_spill]] }
 0x9b7   : > { %v11555_v34 = vld [vmem:[%s15993_s2] ss:$0 sm:$0xff]  ;;  %s15995_s2 = sld [smem:[#allocation90_spill]] }
 0x9bd   : > { %v2799_v55 = vld [vmem:[%s15995_s2 + $0x38] sm:$0xff]  ;;  %v2798_v56 = vld [vmem:[%s15995_s2 + $0x30] sm:$0xff]  ;;  %v2797_v57 = vld [vmem:[%s15995_s2 + $0x28] sm:$0xff] }
 0x9be   : > { %v2796_v58 = vld [vmem:[%s15995_s2 + $0x20] sm:$0xff]  ;;  %v2794_v11 = vld [vmem:[%s15995_s2 + $0x10] sm:$0xff]  ;;  %v2793_v12 = vld [vmem:[%s15995_s2 + $0x8] sm:$0xff] }
 0x9bf   : > { %v2792_v13 = vld [vmem:[%s15995_s2] sm:$0xff] }
 0xa24   : > { %v12111_v14 = vpop.f32.mrf.mxu0  ;;  %v3854_v17 = vpop.xlane.xlu0 %3853 }
 0xa25   : > { %13064 = vrcp.f32 %v3854_v17 }
 0xa26   : > { %v3652_v18 = vpop.f32.mrf.mxu0 }
 0xa27   : > { %12114 = vmatprep.mubr.msk.f32.mxu0 %vm2899_vm3, %v3652_v18 }
 0xa28   : > { %12115 = vmatmul.mubr.msk.f32.vlgmr.msra.gmra.mxu0 %vm2899_vm3, %v12111_v14  ;;  %v3860_v22 = vpop.permute.xlu0 %3859  ;;  %v11558_v14 = vld [vmem:[#allocation8] ss:$0 sm:$0xff] }
 0xa29   : > { %12125 = vmatpush3.msra.mxu0 %v3862_v19  ;;  %12128 = vmatprep.mubr.msk.f32.mxu0 %vm2985_vm4, %v3857_v20  ;;  %v11557_v19 = vld [vmem:[#allocation11] ss:$0 sm:$0xff] }
 0xa2a   : > { %12126 = vmatprep.subr.mxu0 %v3860_v22 }
 0xa2b   : > { %12127 = vmatpush3.msra.mxu0 %v3860_v22 }
 0xa2c   : > { %12131 = vmatprep.subr.mxu0 %v2785_v24 }
 0xa32   : > { %v13065_v21 = vpop.eup %13064 }
 0xa33   : > { %v3858_v23 = vmul.f32 %v13065_v21, %v13061_v10  ;;  %v2795_v10 = vld [vmem:[%s15995_s2 + $0x18] sm:$0xff]  ;;  %s16007_s2 = smov 104  }
 0xa35   : > { %12129 = vmatmul.mubr.msk.f32.vlgmr.msra.gmra.mxu0 %vm2985_vm4, %v3858_v23 }
 0xa36   : > { %12132 = vmatpush3.msra.mxu0 %v2785_v24  ;;  %v11561_v24 = vld [vmem:[#allocation10] ss:$0 sm:$0xff] }
 0xa37   : > { %12147 = vmatprep.subr.mxu0 %v2799_v55 }
 0xae8   : > { %v12116_v25 = vpop.f32.mrf.mxu0 }
 0xae9   : > { %v3743_v27 = vadd.f32 %v12116_v25, %v14973_v32 }
 0xaea   : > { %v3733_v28 = vpop.f32.mrf.mxu0 }
 0xaeb   : > { %v3742_v29 = vadd.f32 %v3733_v28, %v3451_v26 }
 0xaf5   : > { %v12130_v30 = vpop.f32.mrf.mxu0 }
 0xaf7   : > { %v3937_v31 = vpop.f32.mrf.mxu0 }
 0xaf8   : > { %12133 = vmatprep.mubr.msk.f32.mxu0 %vm2899_vm3, %v3937_v31 }
 0xaf9   : > { %12134 = vmatmul.mubr.msk.f32.vlgmr.msra.gmra.mxu0 %vm2899_vm3, %v12130_v30 }
 0xafa   : > { %12148 = vmatpush3.msra.mxu0 %v2799_v55 }
 0xafb   : > { %12149 = vmatprep.subr.mxu0 %v2798_v56 }
 0xafc   : > { %12150 = vmatpush3.msra.mxu0 %v2798_v56 }
 0xafd   : > { %12151 = vmatprep.subr.mxu0 %v2797_v57 }
 0xafe   : > { %12152 = vmatpush3.msra.mxu0 %v2797_v57  ;;  %v11565_v57 = vld [vmem:[%s15999_s25] ss:$0 sm:$0xff]  ;;  %s16002_s25 = sld [smem:[#allocation98_spill]] }
 0xaff   : > { %12153 = vmatprep.subr.mxu0 %v2796_v58 }
 0xb00   : > { %12154 = vmatpush3.msra.mxu0 %v2796_v58 }
 0xb01   : > { %12155 = vmatprep.subr.mxu0 %v2795_v10 }
 0xb02   : > { %12156 = vmatpush3.msra.mxu0 %v2795_v10 }
 0xb03   : > { %12157 = vmatprep.subr.mxu0 %v2794_v11 }
 0xb04   : > { %12158 = vmatpush3.msra.mxu0 %v2794_v11 }
 0xb05   : > { %12159 = vmatprep.subr.mxu0 %v2793_v12 }
 0xb06   : > { %12160 = vmatpush3.msra.mxu0 %v2793_v12 }
 0xb07   : > { %12161 = vmatprep.subr.mxu0 %v2792_v13 }
 0xb08   : > { %12162 = vmatpush3.msra.mxu0 %v2792_v13 }
 0xbb9   : > { %v12135_v35 = vpop.f32.mrf.mxu0 }
 0xbba   : > { %v4028_v36 = vadd.f32 %v12135_v35, %v3743_v27 }
 0xbbb   : > { %v4018_v37 = vpop.f32.mrf.mxu0 }
 0xbbc   : > { %v4036_v38 = vadd.f32 %v11555_v34, %v4028_v36  ;;  %v4027_v39 = vadd.f32 %v4018_v37, %v3742_v29 }
 0xbbe   : > { %v4035_v40 = vadd.f32 %v11555_v34, %v4027_v39  ;;  %v4038_v41 = vadd.f32 %v4036_v38, %v14882_v16 }
 0xbc0   : > { %v4042_v33 = vsel %vm2811_vm2, %v4038_v41, 0.0  ;;  %v4037_v32 = vadd.f32 %v4035_v40, %v14880_v15 }
 0xbc1   : > { %4043 = vadd.xlane.f32.xlu0 %v4042_v33 }
 0xbc2   : > { %v4039_v42 = vsel %vm2811_vm2, %v4037_v32, 0.0 }
 0xbc3   : > { %4040 = vadd.xlane.f32.xlu1 %v4039_v42 }
 0xc4a   : > { %v4044_v43 = vpop.xlane.xlu0 %4043 }
 0xc4b   : > { %v4047_v44 = vmul.f32 0.03125, %v4044_v43  ;;  %v4306_v43 = vld [vmem:[%s15997_s3 + $0x18] sm:$0xff] }
 0xc4c   : > { %v4041_v45 = vpop.xlane.xlu1 %4040  ;;  %12166 = vmatprep.subr.mxu1 %v4306_v43 }
 0xc4d   : > { %v4049_v46 = vsub.f32 %v4038_v41, %v4047_v44  ;;  %v4046_v47 = vmul.f32 0.03125, %v4041_v45  ;;  %v4305_v44 = vld [vmem:[%s15997_s3 + $0x10] sm:$0xff]  ;;  %v4304_v45 = vld [vmem:[%s15997_s3 + $0x8] sm:$0xff] }
 0xc4f   : > { %v4048_v48 = vsub.f32 %v4037_v32, %v4046_v47  ;;  %v4051_v49 = vmul.f32 %v4049_v46, %v4049_v46 }
 0xc51   : > { %v4055_v16 = vsel %vm2811_vm2, %v4051_v49, 0.0  ;;  %v4050_v50 = vmul.f32 %v4048_v48, %v4048_v48 }
 0xc52   : > { %4056 = vadd.xlane.f32.xlu0 %v4055_v16 }
 0xc53   : > { %v4052_v15 = vsel %vm2811_vm2, %v4050_v50, 0.0 }
 0xc54   : > { %4053 = vadd.xlane.f32.xlu1 %v4052_v15 }
 0xcdb   : > { %v4057_v59 = vpop.xlane.xlu0 %4056 }
 0xcdc   : > { %v4059_v60 = vmul.f32 0.03125, %v4057_v59 }
 0xcdd   : > { %v4054_v61 = vpop.xlane.xlu1 %4053 }
 0xcde   : > { %v4061_v62 = vadd.f32 1e-05, %v4059_v60  ;;  %v4058_v63 = vmul.f32 0.03125, %v4054_v61  ;;  %v11566_v61 = vld [vmem:[%s16000_s15] ss:$0 sm:$0xff]  ;;  %s16001_s15 = smov 120  }
 0xce0   : > { %13066 = vrsqrt.f32 %v4061_v62  ;;  %v4060_v0 = vadd.f32 1e-05, %v4058_v63 }
 0xce2   : > { %13068 = vrsqrt.f32 %v4060_v0 }
 0xced   : > { %v13067_v1 = vpop.eup %13066 }
 0xcee   : > { %v4065_v3 = vmul.f32 %v13067_v1, %v4049_v46  ;;  %v4303_v46 = vld [vmem:[%s15997_s3] sm:$0xff]  ;;  %s16008_s3 = smov 48  }
 0xcef   : > { %v13069_v4 = vpop.eup %13068 }
 0xcf0   : > { %v4064_v5 = vmul.f32 %v13069_v4, %v4048_v48  ;;  %v4073_v6 = vmul.f32 %v11556_v2, %v4065_v3 }
 0xcf2   : > { %v4072_v7 = vmul.f32 %v11556_v2, %v4064_v5  ;;  %v4081_v9 = vadd.f32 %v11557_v19, %v4073_v6 }
 0xcf4   : > { %v4080_v8 = vadd.f32 %v11557_v19, %v4072_v7 }
 0xcf6   : > { %12144 = vmatprep.mubr.msk.f32.mxu1 %vm2811_vm2, %v4080_v8 }
 0xcf7   : > { %12145 = vmatmul.mubr.msk.f32.vlgmr.msra.gmra.mxu1 %vm2811_vm2, %v4081_v9 }
 0xcf8   : > { %12167 = vmatpush3.msra.mxu1 %v4306_v43 }
 0xcf9   : > { %12168 = vmatprep.subr.mxu1 %v4305_v44 }
 0xcfa   : > { %12169 = vmatpush3.msra.mxu1 %v4305_v44 }
 0xcfb   : > { %12170 = vmatprep.subr.mxu1 %v4304_v45 }
 0xcfc   : > { %12171 = vmatpush3.msra.mxu1 %v4304_v45 }
 0xcfd   : > { %12172 = vmatprep.subr.mxu1 %v4303_v46 }
 0xcfe   : > { %12173 = vmatpush3.msra.mxu1 %v4303_v46 }
 0xdb7   : > { %v12146_v17 = vpop.f32.mrf.mxu1 }
 0xdb8   : > { %v4166_v18 = vadd.f32 %v12146_v17, %v11558_v14 }
 0xdb9   : > { %v4160_v20 = vpop.f32.mrf.mxu1 }
 0xdba   : > { %v4161_v22 = vadd.f32 %v11558_v14, %v4160_v20  ;;  %v4170_v23 = vmax.f32 %v4166_v18, 0.0 }
 0xdbc   : > { %v4169_v21 = vmax.f32 %v4161_v22, 0.0 }
 0xdbe   : > { %12163 = vmatprep.mubr.msk.f32.mxu0 %vm4177_vm5, %v4169_v21 }
 0xdbf   : > { %12164 = vmatmul.mubr.msk.f32.vlgmr.msra.gmra.mxu0 %vm4177_vm5, %v4170_v23 }
 0xe7f   : > { %v12165_v25 = vpop.f32.mrf.mxu0 }
 0xe80   : > { %v4256_v26 = vadd.f32 %v12165_v25, %v11561_v24 }
 0xe81   : > { %v4250_v27 = vpop.f32.mrf.mxu0 }
 0xe82   : > { %v4251_v28 = vadd.f32 %v11561_v24, %v4250_v27  ;;  %v4260_v29 = vadd.f32 %v4256_v26, %v4081_v9 }
 0xe84   : > { %v4264_v30 = vsel %vm2811_vm2, %v4260_v29, 0.0  ;;  %v4259_v31 = vadd.f32 %v4251_v28, %v4080_v8 }
 0xe85   : > { %4265 = vadd.xlane.f32.xlu0 %v4264_v30 }
 0xe86   : > { %v4261_v34 = vsel %vm2811_vm2, %v4259_v31, 0.0 }
 0xe87   : > { %4262 = vadd.xlane.f32.xlu1 %v4261_v34 }
 0xf0e   : > { %v4266_v35 = vpop.xlane.xlu0 %4265 }
 0xf0f   : > { %v4268_v36 = vmul.f32 0.03125, %v4266_v35 }
 0xf10   : > { %v4263_v37 = vpop.xlane.xlu1 %4262 }
 0xf11   : > { %v4270_v38 = vsub.f32 %v4260_v29, %v4268_v36  ;;  %v4267_v39 = vmul.f32 0.03125, %v4263_v37  ;;  %v4308_v36 = vld [vmem:[%s16002_s25] sm:$0xff] }
 0xf13   : > { %v4269_v40 = vsub.f32 %v4259_v31, %v4267_v39  ;;  %v4272_v41 = vmul.f32 %v4270_v38, %v4270_v38 }
 0xf15   : > { %v4276_v33 = vsel %vm2811_vm2, %v4272_v41, 0.0  ;;  %v4271_v32 = vmul.f32 %v4269_v40, %v4269_v40 }
 0xf16   : > { %4277 = vadd.xlane.f32.xlu0 %v4276_v33 }
 0xf17   : > { %v4273_v42 = vsel %vm2811_vm2, %v4271_v32, 0.0 }
 0xf18   : > { %4274 = vadd.xlane.f32.xlu1 %v4273_v42 }
 0xf9f   : > { %v4278_v47 = vpop.xlane.xlu0 %4277 }
 0xfa0   : > { %v4280_v48 = vmul.f32 0.03125, %v4278_v47 }
 0xfa1   : > { %v4275_v49 = vpop.xlane.xlu1 %4274 }
 0xfa2   : > { %v4282_v16 = vadd.f32 1e-05, %v4280_v48  ;;  %v4279_v50 = vmul.f32 0.03125, %v4275_v49 }
 0xfa4   : > { %13070 = vrsqrt.f32 %v4282_v16  ;;  %v4281_v15 = vadd.f32 1e-05, %v4279_v50 }
 0xfa6   : > { %13072 = vrsqrt.f32 %v4281_v15 }
 0xfb1   : > { %v13071_v51 = vpop.eup %13070 }
 0xfb2   : > { %v4286_v53 = vmul.f32 %v13071_v51, %v4270_v38 }
 0xfb3   : > { %v13073_v54 = vpop.eup %13072 }
 0xfb4   : > { %v4285_v55 = vmul.f32 %v13073_v54, %v4269_v40  ;;  %v4294_v56 = vmul.f32 %v11564_v52, %v4286_v53 }
 0xfb6   : > { %v4293_v58 = vmul.f32 %v11564_v52, %v4285_v55  ;;  %v15041_v60 = vadd.f32 %v11565_v57, %v4294_v56  ;;  %v4309_v55 = vld [vmem:[%s16002_s25 + $0x8] sm:$0xff] }
 0xfb8   : > { %v15039_v59 = vadd.f32 %v11565_v57, %v4293_v58 }
 0xfba   : > { %12174 = vmatprep.mubr.msk.f32.mxu1 %vm2811_vm2, %v15039_v59 }
 0xfbb   : > { %12175 = vmatmul.mubr.msk.f32.vlgmr.msra.gmra.mxu1 %vm2811_vm2, %v15041_v60 }
0x107b   : > { %v12176_v62 = vpop.f32.mrf.mxu1 }
0x107c   : > { %v15048_v63 = vadd.f32 %v12176_v62, %v11566_v61 }
0x107d   : > { %v4409_v0 = vpop.f32.mrf.mxu1 }
0x107e   : > { %v15050_v1 = vadd.f32 %v11566_v61, %v4409_v0  ;;  %4422 = vrot.lane.b32.xlu1 %v15048_v63, %s15878_s7 }
0x1080   : > { %4420 = vrot.lane.b32.xlu0 %v15050_v1, %s15878_s7  ;;  %12181 = vmatprep.mubr.msk.f32.mxu1 %vm2899_vm3, %v15050_v1  ;;  %s16005_s7 = smov 112  }
0x10f0   : > { %v4423_v2 = vpop.permute.xlu1 %4422 }
0x10f1   : > { %12177 = vmatprep.subr.msk.mxu1 %vm2899_vm3, %v4423_v2 }
0x10f2   : > { %12178 = vmatpush3.xpose.msk.msra.mxu1 %vm2899_vm3, %v4423_v2  ;;  %v4421_v3 = vpop.permute.xlu0 %4420 }
0x10f3   : > { %12179 = vmatprep.subr.msk.mxu1 %vm2899_vm3, %v4421_v3 }
0x10f6   : > { %12180 = vmatpush3.xpose.msk.msra.mxu1 %vm2899_vm3, %v4421_v3 }
0x10f9   : > { %12182 = vmatmul.mubr.msk.f32.vlgmr.msra.gmra.mxu1 %vm2899_vm3, %v15048_v63 }
0x11b9   : > { %v12183_v4 = vpop.f32.mrf.mxu1 }
0x11ba   : > { %v4508_v5 = vmul.f32 0.35355338, %v12183_v4 }
0x11bb   : > { %v4498_v6 = vpop.f32.mrf.mxu1 }
0x11bc   : > { %v4507_v19 = vmul.f32 0.35355338, %v4498_v6  ;;  %v4512_v7 = vsel %vm2985_vm4, %v4508_v5, -inf }
0x11bd   : > { %4513 = vmax.xlane.f32.xlu0 %v4512_v7 }
0x11be   : > { %v4509_v8 = vsel %vm2985_vm4, %v4507_v19, -inf }
0x11bf   : > { %4510 = vmax.xlane.f32.xlu1 %v4509_v8 }
0x11d0   : > { %4533 = vrot.lane.b32.xlu1 %v15048_v63, %s15876_s11 }
0x11d4   : > { %4624 = vrot.lane.b32.xlu1 %v15048_v63, %s15880_s23 }
0x11d8   : > { %4622 = vrot.lane.b32.xlu1 %v15050_v1, %s15880_s23  ;;  %s16006_s23 = smov 72  }
0x1246   : > { %v4514_v9 = vpop.xlane.xlu0 %4513 }
0x1247   : > { %v4516_v10 = vsub.f32 %v4508_v5, %v4514_v9 }
0x1248   : > { %v4511_v11 = vpop.xlane.xlu1 %4510 }
0x1249   : > { %v4519_v12 = vmul.f32 1.442695, %v4516_v10  ;;  %v4515_v13 = vsub.f32 %v4507_v19, %v4511_v11 }
0x124b   : > { %13074 = vpow2.f32 %v4519_v12  ;;  %v4517_v14 = vmul.f32 1.442695, %v4515_v13 }
0x124c   : > { %v4534_v17 = vpop.permute.xlu1 %4533 }
0x124d   : > { %13076 = vpow2.f32 %v4517_v14  ;;  %12184 = vmatprep.subr.mxu0 %v4534_v17 }
0x124e   : > { %12185 = vmatpush3.msra.mxu0 %v4534_v17 }
0x1250   : > { %v4625_v23 = vpop.permute.xlu1 %4624 }
0x1254   : > { %v4623_v24 = vpop.permute.xlu1 %4622 }
0x1258   : > { %v13075_v18 = vpop.eup %13074 }
0x1259   : > { %v4524_v20 = vsel %vm2985_vm4, %v13075_v18, 0.0 }
0x125a   : > { %v13077_v22 = vpop.eup %13076  ;;  %4525 = vadd.xlane.f32.xlu0 %v4524_v20 }
0x125b   : > { %v4521_v21 = vsel %vm2985_vm4, %v13077_v22, 0.0 }
0x125c   : > { %4522 = vadd.xlane.f32.xlu1 %v4521_v21 }
0x126d   : > { %4620 = vrot.lane.b32.xlu1 %v15048_v63, %s16001_s15 }
0x1270   : > { %4531 = vrot.lane.b32.xlu0 %v15050_v1, %s15876_s11  ;;  %s16004_s11 = smov 80  }
0x1274   : > { %4618 = vrot.lane.b32.xlu0 %v15050_v1, %s16001_s15 }
0x12e3   : > { %v4526_v25 = vpop.xlane.xlu0 %4525 }
0x12e4   : > { %13078 = vrcp.f32 %v4526_v25 }
0x12e5   : > { %v4523_v26 = vpop.xlane.xlu1 %4522 }
0x12e6   : > { %13080 = vrcp.f32 %v4523_v26 }
0x12e7   : > { %v4532_v27 = vpop.permute.xlu0 %4531 }
0x12e8   : > { %12186 = vmatprep.subr.mxu0 %v4532_v27 }
0x12e9   : > { %12187 = vmatpush3.msra.mxu0 %v4532_v27  ;;  %v4621_v35 = vpop.permute.xlu1 %4620 }
0x12ea   : > { %12191 = vmatprep.subr.msk.mxu0 %vm2899_vm3, %v4625_v23 }
0x12eb   : > { %v4619_v34 = vpop.permute.xlu0 %4618 }
0x12f1   : > { %v13079_v28 = vpop.eup %13078 }
0x12f2   : > { %v4530_v31 = vmul.f32 %v13079_v28, %v13075_v18 }
0x12f3   : > { %v13081_v29 = vpop.eup %13080 }
0x12f4   : > { %v4529_v30 = vmul.f32 %v13081_v29, %v13077_v22 }
0x12f6   : > { %12188 = vmatprep.mubr.msk.f32.mxu0 %vm2985_vm4, %v4529_v30 }
0x12f7   : > { %12189 = vmatmul.mubr.msk.f32.vlgmr.msra.gmra.mxu0 %vm2985_vm4, %v4530_v31 }
0x12f8   : > { %12192 = vmatpush3.xpose.msk.msra.mxu0 %vm2899_vm3, %v4625_v23  ;;  %12195 = vmatprep.mubr.msk.f32.mxu0 %vm2899_vm3, %v4619_v34 }
0x12f9   : > { %12193 = vmatprep.subr.msk.mxu0 %vm2899_vm3, %v4623_v24 }
0x12fc   : > { %12194 = vmatpush3.xpose.msk.msra.mxu0 %vm2899_vm3, %v4623_v24 }
0x12fd   : > { %12210 = vmatprep.subr.mxu0 %v4308_v36 }
0x12ff   : > { %12196 = vmatmul.mubr.msk.f32.vlgmr.msra.gmra.mxu0 %vm2899_vm3, %v4621_v35 }
0x1300   : > { %12211 = vmatpush3.msra.mxu0 %v4308_v36 }
0x13b7   : > { %v12190_v37 = vpop.f32.mrf.mxu0 }
0x13b9   : > { %v4609_v38 = vpop.f32.mrf.mxu0 }
0x13ba   : > { %12212 = vmatprep.mubr.msk.f32.mxu0 %vm2899_vm3, %v4609_v38 }
0x13bb   : > { %12213 = vmatmul.mubr.msk.f32.vlgmr.msra.gmra.mxu0 %vm2899_vm3, %v12190_v37 }
0x13bf   : > { %v12197_v39 = vpop.f32.mrf.mxu0 }
0x13c0   : > { %v4710_v40 = vmul.f32 0.35355338, %v12197_v39 }
0x13c1   : > { %v4700_v41 = vpop.f32.mrf.mxu0 }
0x13c2   : > { %v4709_v33 = vmul.f32 0.35355338, %v4700_v41  ;;  %v4714_v32 = vsel %vm2985_vm4, %v4710_v40, -inf }
0x13c3   : > { %4715 = vmax.xlane.f32.xlu1 %v4714_v32 }
0x13c4   : > { %v4711_v42 = vsel %vm2985_vm4, %v4709_v33, -inf }
0x13c5   : > { %4712 = vmax.xlane.f32.xlu0 %v4711_v42 }
0x13d4   : > { %4735 = vrot.lane.b32.xlu1 %v15048_v63, %s16003_s1 }
0x13d8   : > { %4988 = vrot.lane.b32.xlu1 %v15048_v63, %s16004_s11 }
0x13dc   : > { %4986 = vrot.lane.b32.xlu1 %v15050_v1, %s16004_s11 }
0x13e0   : > { %4984 = vrot.lane.b32.xlu1 %v15048_v63, %s16005_s7 }
0x13e4   : > { %5271 = vrot.lane.b32.xlu1 %v15050_v1, %s16006_s23 }
0x13e8   : > { %5269 = vrot.lane.b32.xlu1 %v15048_v63, %s16007_s2 }
0x144c   : > { %v4716_v43 = vpop.xlane.xlu1 %4715 }
0x144d   : > { %v4718_v44 = vsub.f32 %v4710_v40, %v4716_v43 }
0x144e   : > { %v4713_v45 = vpop.xlane.xlu0 %4712 }
0x144f   : > { %v4721_v46 = vmul.f32 1.442695, %v4718_v44  ;;  %v4717_v47 = vsub.f32 %v4709_v33, %v4713_v45  ;;  %v4310_v45 = vld [vmem:[%s16002_s25 + $0x10] sm:$0xff] }
0x1450   : > { %v4736_v48 = vpop.permute.xlu1 %4735 }
0x1451   : > { %13082 = vpow2.f32 %v4721_v46  ;;  %v4719_v49 = vmul.f32 1.442695, %v4717_v47  ;;  %12198 = vmatprep.subr.mxu1 %v4736_v48 }
0x1452   : > { %12199 = vmatpush3.msra.mxu1 %v4736_v48 }
0x1453   : > { %13084 = vpow2.f32 %v4719_v49 }
0x1454   : > { %v4989_v62 = vpop.permute.xlu1 %4988 }
0x1458   : > { %v4987_v3 = vpop.permute.xlu1 %4986 }
0x145c   : > { %v4985_v6 = vpop.permute.xlu1 %4984 }
0x145e   : > { %v13083_v16 = vpop.eup %13082 }
0x145f   : > { %v4726_v50 = vsel %vm2985_vm4, %v13083_v16, 0.0 }
0x1460   : > { %v13085_v15 = vpop.eup %13084  ;;  %4727 = vadd.xlane.f32.xlu0 %v4726_v50  ;;  %v5272_v7 = vpop.permute.xlu1 %5271 }
0x1461   : > { %v4723_v51 = vsel %vm2985_vm4, %v13085_v15, 0.0 }
0x1464   : > { %4724 = vadd.xlane.f32.xlu0 %v4723_v51  ;;  %v5270_v8 = vpop.permute.xlu1 %5269 }
0x147a   : > { %4733 = vrot.lane.b32.xlu0 %v15050_v1, %s16003_s1 }
0x147e   : > { %4982 = vrot.lane.b32.xlu0 %v15050_v1, %s16005_s7 }
0x1482   : > { %5273 = vrot.lane.b32.xlu0 %v15048_v63, %s16006_s23 }
0x1486   : > { %5267 = vrot.lane.b32.xlu0 %v15050_v1, %s16007_s2 }
0x14e9   : > { %v4728_v52 = vpop.xlane.xlu0 %4727 }
0x14ea   : > { %13086 = vrcp.f32 %v4728_v52 }
0x14ed   : > { %v4725_v53 = vpop.xlane.xlu0 %4724 }
0x14ee   : > { %13088 = vrcp.f32 %v4725_v53 }
0x14f1   : > { %v4734_v54 = vpop.permute.xlu0 %4733 }
0x14f2   : > { %12200 = vmatprep.subr.mxu1 %v4734_v54 }
0x14f3   : > { %12201 = vmatpush3.msra.mxu1 %v4734_v54  ;;  %v12214_v54 = vpop.f32.mrf.mxu0 }
0x14f4   : > { %12205 = vmatprep.subr.mxu1 %v4309_v55 }
0x14f5   : > { %v4983_v0 = vpop.permute.xlu0 %4982 }
0x14f7   : > { %v13087_v56 = vpop.eup %13086 }
0x14f8   : > { %v4732_v61 = vmul.f32 %v13087_v56, %v13083_v16 }
0x14f9   : > { %v5274_v5 = vpop.permute.xlu0 %5273 }
0x14fb   : > { %v13089_v57 = vpop.eup %13088 }
0x14fc   : > { %v4731_v58 = vmul.f32 %v13089_v57, %v13085_v15 }
0x14fd   : > { %v5268_v19 = vpop.permute.xlu0 %5267 }
0x14fe   : > { %12202 = vmatprep.mubr.msk.f32.mxu1 %vm2985_vm4, %v4731_v58 }
0x14ff   : > { %12203 = vmatmul.mubr.msk.f32.vlgmr.msra.gmra.mxu1 %vm2985_vm4, %v4732_v61 }
0x1500   : > { %12206 = vmatpush3.msra.mxu1 %v4309_v55  ;;  %v4973_v55 = vpop.f32.mrf.mxu0 }
0x1501   : > { %12215 = vmatprep.subr.msk.mxu1 %vm2899_vm3, %v4989_v62 }
0x15bf   : > { %v12204_v2 = vpop.f32.mrf.mxu1 }
0x15c1   : > { %v4811_v4 = vpop.f32.mrf.mxu1 }
0x15c2   : > { %12207 = vmatprep.mubr.msk.f32.mxu1 %vm2899_vm3, %v4811_v4 }
0x15c3   : > { %12208 = vmatmul.mubr.msk.f32.vlgmr.msra.gmra.mxu1 %vm2899_vm3, %v12204_v2 }
0x15c4   : > { %12216 = vmatpush3.xpose.msk.msra.mxu1 %vm2899_vm3, %v4989_v62  ;;  %12219 = vmatprep.mubr.msk.f32.mxu1 %vm2899_vm3, %v4983_v0 }
0x15c5   : > { %12217 = vmatprep.subr.msk.mxu1 %vm2899_vm3, %v4987_v3 }
0x15c8   : > { %12218 = vmatpush3.xpose.msk.msra.mxu1 %vm2899_vm3, %v4987_v3  ;;  %v4311_v3 = vld [vmem:[%s16002_s25 + $0x18] sm:$0xff] }
0x15c9   : > { %12234 = vmatprep.subr.msk.mxu1 %vm2899_vm3, %v5274_v5 }
0x15cb   : > { %12220 = vmatmul.mubr.msk.f32.vlgmr.msra.gmra.mxu1 %vm2899_vm3, %v4985_v6 }
0x15cc   : > { %12235 = vmatpush3.xpose.msk.msra.mxu1 %vm2899_vm3, %v5274_v5  ;;  %12238 = vmatprep.mubr.msk.f32.mxu1 %vm2899_vm3, %v5268_v19 }
0x15cd   : > { %12236 = vmatprep.subr.msk.mxu1 %vm2899_vm3, %v5272_v7 }
0x15d0   : > { %12237 = vmatpush3.xpose.msk.msra.mxu1 %vm2899_vm3, %v5272_v7 }
0x15d3   : > { %12239 = vmatmul.mubr.msk.f32.vlgmr.msra.gmra.mxu1 %vm2899_vm3, %v5270_v8 }
0x1683   : > { %v15132_v9 = vpop.f32.mrf.mxu1 }
0x1684   : > { %v4979_v4 = vadd.f32 %v12214_v54, %v15132_v9 }
0x1685   : > { %v15134_v10 = vpop.f32.mrf.mxu1 }
0x1686   : > { %v4974_v6 = vadd.f32 %v4973_v55, %v15134_v10  ;;  %v2676_v55 = vld [vmem:[#allocation5] sm:$0xf] }
0x168b   : > { %v12221_v11 = vpop.f32.mrf.mxu1 }
0x168c   : > { %v5074_v12 = vmul.f32 0.35355338, %v12221_v11 }
0x168d   : > { %v5064_v13 = vpop.f32.mrf.mxu1 }
0x168e   : > { %v5073_v14 = vmul.f32 0.35355338, %v5064_v13  ;;  %v5078_v17 = vsel %vm2985_vm4, %v5074_v12, -inf  ;;  %v11601_v13 = vld [vmem:[%s16010_s5] ss:$0 sm:$0xff]  ;;  %s16012_s5 = sld [smem:[#allocation102_spill]] }
0x168f   : > { %5079 = vmax.xlane.f32.xlu1 %v5078_v17 }
0x1690   : > { %v5075_v18 = vsel %vm2985_vm4, %v5073_v14, -inf }
0x1691   : > { %5076 = vmax.xlane.f32.xlu0 %v5075_v18 }
0x1693   : > { %v12240_v20 = vpop.f32.mrf.mxu1 }
0x1694   : > { %v5359_v41 = vmul.f32 0.35355338, %v12240_v20 }
0x1695   : > { %v5349_v22 = vpop.f32.mrf.mxu1 }
0x1696   : > { %v5358_v21 = vmul.f32 0.35355338, %v5349_v22  ;;  %v5363_v32 = vsel %vm2985_vm4, %v5359_v41, -inf }
0x1698   : > { %v5360_v23 = vsel %vm2985_vm4, %v5358_v21, -inf }
0x16a0   : > { %5099 = vrot.lane.b32.xlu1 %v15048_v63, %s16008_s3 }
0x16c4   : > { %5361 = vmax.xlane.f32.xlu1 %v5360_v23 }
0x1718   : > { %v5080_v24 = vpop.xlane.xlu1 %5079 }
0x1719   : > { %v5082_v25 = vsub.f32 %v5074_v12, %v5080_v24 }
0x171a   : > { %v5077_v26 = vpop.xlane.xlu0 %5076 }
0x171b   : > { %v5085_v27 = vmul.f32 1.442695, %v5082_v25  ;;  %v5081_v28 = vsub.f32 %v5073_v14, %v5077_v26 }
0x171c   : > { %v5100_v29 = vpop.permute.xlu1 %5099 }
0x171d   : > { %13090 = vpow2.f32 %v5085_v27  ;;  %v5083_v30 = vmul.f32 1.442695, %v5081_v28  ;;  %12222 = vmatprep.subr.mxu0 %v5100_v29 }
0x171e   : > { %12223 = vmatpush3.msra.mxu0 %v5100_v29 }
0x171f   : > { %13092 = vpow2.f32 %v5083_v30 }
0x172a   : > { %v13091_v31 = vpop.eup %13090 }
0x172b   : > { %v5090_v34 = vsel %vm2985_vm4, %v13091_v31, 0.0 }
0x172c   : > { %v13093_v35 = vpop.eup %13092  ;;  %5091 = vadd.xlane.f32.xlu0 %v5090_v34 }
0x172d   : > { %v5087_v36 = vsel %vm2985_vm4, %v13093_v35, 0.0 }
0x1730   : > { %5088 = vadd.xlane.f32.xlu0 %v5087_v36  ;;  %v4315_v36 = vld [vmem:[%s16011_s6 + $0x10] sm:$0xff] }
0x1746   : > { %5097 = vrot.lane.b32.xlu0 %v15050_v1, %s16008_s3 }
0x174d   : > { %v5362_v37 = vpop.xlane.xlu1 %5361 }
0x174e   : > { %v5366_v38 = vsub.f32 %v5358_v21, %v5362_v37  ;;  %v4314_v37 = vld [vmem:[%s16011_s6 + $0x8] sm:$0xff] }
0x1750   : > { %v5368_v39 = vmul.f32 1.442695, %v5366_v38  ;;  %v4313_v38 = vld [vmem:[%s16011_s6] sm:$0xff] }
0x1752   : > { %13094 = vpow2.f32 %v5368_v39  ;;  %v14211_v39 = vmov 0.0  }
0x175f   : > { %v13095_v40 = vpop.eup %13094 }
0x1760   : > { %v5372_v33 = vsel %vm2985_vm4, %v13095_v40, 0.0 }
0x1761   : > { %5373 = vadd.xlane.f32.xlu1 %v5372_v33  ;;  %v4323_v33 = vld [vmem:[%s16012_s5 + $0x28] sm:$0xff] }
0x1765   : > { %5364 = vmax.xlane.f32.xlu0 %v5363_v32  ;;  %v4322_v32 = vld [vmem:[%s16012_s5 + $0x20] sm:$0xff] }
0x1772   : > { %5384 = vrot.lane.b32.xlu1 %v15048_v63, %s16009_s4 }
0x17b5   : > { %v5092_v42 = vpop.xlane.xlu0 %5091 }
0x17b6   : > { %13096 = vrcp.f32 %v5092_v42 }
0x17b9   : > { %v5089_v43 = vpop.xlane.xlu0 %5088 }
0x17ba   : > { %13098 = vrcp.f32 %v5089_v43 }
0x17bd   : > { %v5098_v44 = vpop.permute.xlu0 %5097 }
0x17be   : > { %12224 = vmatprep.subr.mxu0 %v5098_v44 }
0x17bf   : > { %12225 = vmatpush3.msra.mxu0 %v5098_v44 }
0x17c0   : > { %12229 = vmatprep.subr.mxu0 %v4310_v45 }
0x17c3   : > { %v13097_v46 = vpop.eup %13096 }
0x17c4   : > { %v5096_v49 = vmul.f32 %v13097_v46, %v13091_v31 }
0x17c7   : > { %v13099_v47 = vpop.eup %13098 }
0x17c8   : > { %v5095_v48 = vmul.f32 %v13099_v47, %v13093_v35  ;;  %v4316_v35 = vld [vmem:[%s16011_s6 + $0x18] sm:$0xff]  ;;  %s16014_s6 = sld [smem:[#allocation105_spill]] }
0x17c9   : > { %12253 = vmatprep.subr.mxu1 %v4316_v35 }
0x17ca   : > { %12226 = vmatprep.mubr.msk.f32.mxu0 %vm2985_vm4, %v5095_v48  ;;  %12254 = vmatpush3.msra.mxu1 %v4316_v35 }
0x17cb   : > { %12227 = vmatmul.mubr.msk.f32.vlgmr.msra.gmra.mxu0 %vm2985_vm4, %v5096_v49  ;;  %12255 = vmatprep.subr.mxu1 %v4315_v36  ;;  %v11602_v49 = vld [vmem:[%s16013_s8] ss:$0 sm:$0xff]  ;;  %s16018_s8 = sld [smem:[#allocation76_spill]] }
0x17cc   : > { %12230 = vmatpush3.msra.mxu0 %v4310_v45  ;;  %12256 = vmatpush3.msra.mxu1 %v4315_v36 }
0x17cd   : > { %12257 = vmatprep.subr.mxu1 %v4314_v37 }
0x17ce   : > { %12258 = vmatpush3.msra.mxu1 %v4314_v37 }
0x17cf   : > { %12259 = vmatprep.subr.mxu1 %v4313_v38 }
0x17d0   : > { %12260 = vmatpush3.msra.mxu1 %v4313_v38 }
0x17d1   : > { %12283 = vmatprep.subr.mxu1 %v14211_v39 }
0x17ea   : > { %v5374_v16 = vpop.xlane.xlu1 %5373 }
0x17ee   : > { %v5385_v63 = vpop.permute.xlu1 %5384  ;;  %v5365_v50 = vpop.xlane.xlu0 %5364 }
0x17ef   : > { %v5367_v15 = vsub.f32 %v5359_v41, %v5365_v50  ;;  %12241 = vmatprep.subr.mxu0 %v5385_v63  ;;  %v4324_v41 = vld [vmem:[%s16012_s5 + $0x30] sm:$0xff] }
0x17f1   : > { %v5370_v51 = vmul.f32 1.442695, %v5367_v15 }
0x17f3   : > { %13100 = vpow2.f32 %v5370_v51  ;;  %v11603_v51 = vld [vmem:[%s16014_s6] ss:$0 sm:$0xff]  ;;  %s16020_s6 = smov 96  }
0x17f4   : > { %13102 = vrcp.f32 %v5374_v16 }
0x1800   : > { %v13101_v52 = vpop.eup %13100 }
0x1801   : > { %v5375_v53 = vsel %vm2985_vm4, %v13101_v52, 0.0  ;;  %v13103_v56 = vpop.eup %13102 }
0x1802   : > { %5376 = vadd.xlane.f32.xlu0 %v5375_v53  ;;  %v5380_v62 = vmul.f32 %v13103_v56, %v13095_v40  ;;  %v4325_v40 = vld [vmem:[%s16012_s5 + $0x38] sm:$0xff]  ;;  %v2668_v56 = vld [vmem:[%s2661_s14] sm:$0xff]  ;;  %s16019_s14 = smov 88  }
0x1818   : > { %5382 = vrot.lane.b32.xlu0 %v15050_v1, %s16009_s4 }
0x188b   : > { %v12228_v57 = vpop.f32.mrf.mxu0  ;;  %v5377_v58 = vpop.xlane.xlu0 %5376 }
0x188c   : > { %13104 = vrcp.f32 %v5377_v58  ;;  %v4320_v58 = vld [vmem:[%s16012_s5 + $0x10] sm:$0xff] }
0x188d   : > { %v5175_v61 = vpop.f32.mrf.mxu0 }
0x188e   : > { %12231 = vmatprep.mubr.msk.f32.mxu0 %vm2899_vm3, %v5175_v61  ;;  %v5910_v61 = vld [vmem:[%s16016_s12 + $0x18] sm:$0xff] }
0x188f   : > { %12232 = vmatmul.mubr.msk.f32.vlgmr.msra.gmra.mxu0 %vm2899_vm3, %v12228_v57  ;;  %v5383_v0 = vpop.permute.xlu0 %5382  ;;  %v4321_v57 = vld [vmem:[%s16012_s5 + $0x18] sm:$0xff] }
0x1890   : > { %12242 = vmatpush3.msra.mxu0 %v5385_v63  ;;  %12245 = vmatprep.mubr.msk.f32.mxu0 %vm2985_vm4, %v5380_v62  ;;  %v4319_v62 = vld [vmem:[%s16012_s5 + $0x8] sm:$0xff] }
0x1891   : > { %12243 = vmatprep.subr.mxu0 %v5383_v0 }
0x1892   : > { %12244 = vmatpush3.msra.mxu0 %v5383_v0  ;;  %v5909_v0 = vld [vmem:[%s16016_s12 + $0x10] sm:$0xff] }
0x1893   : > { %12248 = vmatprep.subr.mxu0 %v4311_v3 }
0x1899   : > { %v13105_v1 = vpop.eup %13104 }
0x189a   : > { %v5381_v2 = vmul.f32 %v13105_v1, %v13101_v52  ;;  %v4318_v1 = vld [vmem:[%s16012_s5] sm:$0xff]  ;;  %s16024_s5 = sld [smem:[#allocation103_spill]] }
0x189c   : > { %12246 = vmatmul.mubr.msk.f32.vlgmr.msra.gmra.mxu0 %vm2985_vm4, %v5381_v2  ;;  %v5908_v2 = vld [vmem:[%s16016_s12 + $0x8] sm:$0xff] }
0x189d   : > { %12249 = vmatpush3.msra.mxu0 %v4311_v3  ;;  %v5907_v3 = vld [vmem:[%s16016_s12] sm:$0xff]  ;;  %s16027_s12 = sld [smem:[#allocation107_spill]] }
0x189e   : > { %12264 = vmatprep.subr.mxu0 %v4325_v40 }
0x194f   : > { %v12233_v5 = vpop.f32.mrf.mxu0 }
0x1950   : > { %v5266_v19 = vadd.f32 %v12233_v5, %v4979_v4  ;;  %v11604_v4 = vld [vmem:[%s16017_s9] ss:$0 sm:$0xff]  ;;  %s16021_s9 = sld [smem:[#allocation77_spill]] }
0x1951   : > { %v5256_v7 = vpop.f32.mrf.mxu0 }
0x1952   : > { %v5265_v8 = vadd.f32 %v5256_v7, %v4974_v6  ;;  %v11612_v7 = vld [vmem:[#allocation7] ss:$0 sm:$0xff] }
0x195c   : > { %v12247_v11 = vpop.f32.mrf.mxu0 }
0x195e   : > { %v5460_v12 = vpop.f32.mrf.mxu0 }
0x195f   : > { %12250 = vmatprep.mubr.msk.f32.mxu0 %vm2899_vm3, %v5460_v12 }
0x1960   : > { %12251 = vmatmul.mubr.msk.f32.vlgmr.msra.gmra.mxu0 %vm2899_vm3, %v12247_v11  ;;  %v2671_v11 = vld [vmem:[%s16018_s8] sm:$0xff]  ;;  %s16022_s8 = smov 64  }
0x1961   : > { %12265 = vmatpush3.msra.mxu0 %v4325_v40 }
0x1962   : > { %12266 = vmatprep.subr.mxu0 %v4324_v41 }
0x1963   : > { %12267 = vmatpush3.msra.mxu0 %v4324_v41 }
0x1964   : > { %12268 = vmatprep.subr.mxu0 %v4323_v33 }
0x1965   : > { %12269 = vmatpush3.msra.mxu0 %v4323_v33 }
0x1966   : > { %12270 = vmatprep.subr.mxu0 %v4322_v32 }
0x1967   : > { %12271 = vmatpush3.msra.mxu0 %v4322_v32 }
0x1968   : > { %12272 = vmatprep.subr.mxu0 %v4321_v57 }
0x1969   : > { %12273 = vmatpush3.msra.mxu0 %v4321_v57 }
0x196a   : > { %12274 = vmatprep.subr.mxu0 %v4320_v58 }
0x196b   : > { %12275 = vmatpush3.msra.mxu0 %v4320_v58 }
0x196c   : > { %12276 = vmatprep.subr.mxu0 %v4319_v62 }
0x196d   : > { %12277 = vmatpush3.msra.mxu0 %v4319_v62 }
0x196e   : > { %12278 = vmatprep.subr.mxu0 %v4318_v1 }
0x196f   : > { %12279 = vmatpush3.msra.mxu0 %v4318_v1 }
0x1970   : > { %12299 = vmatprep.subr.mxu0 %v14211_v39 }
0x1a20   : > { %v12252_v14 = vpop.f32.mrf.mxu0 }
0x1a21   : > { %v5551_v17 = vadd.f32 %v12252_v14, %v5266_v19 }
0x1a22   : > { %v5541_v18 = vpop.f32.mrf.mxu0 }
0x1a23   : > { %v5559_v20 = vadd.f32 %v11601_v13, %v5551_v17  ;;  %v5550_v22 = vadd.f32 %v5541_v18, %v5265_v8 }
0x1a25   : > { %v5558_v21 = vadd.f32 %v11601_v13, %v5550_v22  ;;  %v5561_v9 = vadd.f32 %v5559_v20, %v15041_v60  ;;  %v11615_v22 = vld [vmem:[#allocation13] ss:$0 sm:$0xff] }
0x1a27   : > { %v5565_v10 = vsel %vm2811_vm2, %v5561_v9, 0.0  ;;  %v5560_v23 = vadd.f32 %v5558_v21, %v15039_v59 }
0x1a28   : > { %5566 = vadd.xlane.f32.xlu0 %v5565_v10 }
0x1a29   : > { %v5562_v24 = vsel %vm2811_vm2, %v5560_v23, 0.0 }
0x1a2a   : > { %5563 = vadd.xlane.f32.xlu1 %v5562_v24 }
0x1ab1   : > { %v5567_v25 = vpop.xlane.xlu0 %5566 }
0x1ab2   : > { %v5569_v26 = vmul.f32 0.03125, %v5567_v25 }
0x1ab3   : > { %v5564_v27 = vpop.xlane.xlu1 %5563 }
0x1ab4   : > { %v5571_v28 = vsub.f32 %v5561_v9, %v5569_v26  ;;  %v5568_v29 = vmul.f32 0.03125, %v5564_v27 }
0x1ab6   : > { %v5570_v30 = vsub.f32 %v5560_v23, %v5568_v29  ;;  %v5573_v31 = vmul.f32 %v5571_v28, %v5571_v28  ;;  %v15250_v29 = vld [vmem:[%s16021_s9] sm:$0xff] }
0x1ab8   : > { %v5577_v60 = vsel %vm2811_vm2, %v5573_v31, 0.0  ;;  %v5572_v34 = vmul.f32 %v5570_v30, %v5570_v30 }
0x1ab9   : > { %5578 = vadd.xlane.f32.xlu0 %v5577_v60 }
0x1aba   : > { %v5574_v59 = vsel %vm2811_vm2, %v5572_v34, 0.0 }
0x1abb   : > { %5575 = vadd.xlane.f32.xlu1 %v5574_v59 }
0x1b42   : > { %v5579_v42 = vpop.xlane.xlu0 %5578 }
0x1b43   : > { %v5581_v43 = vmul.f32 0.03125, %v5579_v42 }
0x1b44   : > { %v5576_v44 = vpop.xlane.xlu1 %5575 }
0x1b45   : > { %v5583_v45 = vadd.f32 1e-05, %v5581_v43  ;;  %v5580_v46 = vmul.f32 0.03125, %v5576_v44 }
0x1b47   : > { %13106 = vrsqrt.f32 %v5583_v45  ;;  %v5582_v47 = vadd.f32 1e-05, %v5580_v46 }
0x1b49   : > { %13108 = vrsqrt.f32 %v5582_v47 }
0x1b54   : > { %v13107_v48 = vpop.eup %13106 }
0x1b55   : > { %v5587_v16 = vmul.f32 %v13107_v48, %v5571_v28 }
0x1b56   : > { %v13109_v63 = vpop.eup %13108 }
0x1b57   : > { %v5586_v50 = vmul.f32 %v13109_v63, %v5570_v30  ;;  %v5595_v15 = vmul.f32 %v11602_v49, %v5587_v16 }
0x1b59   : > { %v5594_v52 = vmul.f32 %v11602_v49, %v5586_v50  ;;  %v15185_v54 = vadd.f32 %v11603_v51, %v5595_v15 }
0x1b5b   : > { %v15183_v53 = vadd.f32 %v11603_v51, %v5594_v52 }
0x1b5d   : > { %12261 = vmatprep.mubr.msk.f32.mxu1 %vm2811_vm2, %v15183_v53 }
0x1b5e   : > { %12262 = vmatmul.mubr.msk.f32.vlgmr.msra.gmra.mxu1 %vm2811_vm2, %v15185_v54 }
0x1b5f   : > { %12284 = vmatpush3.msk.msra.mxu1 %vm2696_vm0, %v2676_v55  ;;  %12285 = vmatprep.mubr.msk.f32.mxu1 %vm14212_vm6, %v14211_v39  ;;  %v5912_v55 = vld [vmem:[%s16023_s10] sm:$0xff] }
0x1b60   : > { %12288 = vmatprep.subr.mxu1 %v14211_v39 }
0x1b62   : > { %12286 = vmatmul.mubr.msk.f32.vlgmr.msra.gmra.mxu1 %vm2689_vm1, %v2668_v56  ;;  %v5913_v56 = vld [vmem:[%s16023_s10 + $0x8] sm:$0xff] }
0x1b63   : > { %12296 = vmatprep.mubr.msk.f32.mxu1 %vm14212_vm6, %v14211_v39  ;;  %12289 = vmatpush3.msra.mxu1 %v5910_v61 }
0x1b64   : > { %12290 = vmatprep.subr.mxu1 %v14211_v39 }
0x1b65   : > { %12291 = vmatpush3.msra.mxu1 %v5909_v0 }
0x1b66   : > { %12292 = vmatprep.subr.mxu1 %v14211_v39 }
0x1b67   : > { %12293 = vmatpush3.msra.mxu1 %v5908_v2 }
0x1b68   : > { %12294 = vmatprep.subr.mxu1 %v14211_v39 }
0x1b69   : > { %12295 = vmatpush3.msra.mxu1 %v5907_v3 }
0x1b6a   : > { %12304 = vmatprep.subr.mxu1 %v14211_v39 }
0x1c1e   : > { %v12263_v5 = vpop.f32.mrf.mxu1 }
0x1c1f   : > { %v5688_v6 = vadd.f32 %v12263_v5, %v11604_v4 }
0x1c20   : > { %v5682_v19 = vpop.f32.mrf.mxu1 }
0x1c21   : > { %v5683_v8 = vadd.f32 %v11604_v4, %v5682_v19  ;;  %v5692_v17 = vmax.f32 %v5688_v6, 0.0 }
0x1c22   : > { %v5902_v12 = vpop.f32.mrf.mxu1 }
0x1c23   : > { %v5691_v13 = vmax.f32 %v5683_v8, 0.0  ;;  %v5903_v14 = vadd.f32 %v11612_v7, %v5902_v12 }
0x1c24   : > { %v12287_v18 = vpop.f32.mrf.mxu1 }
0x1c25   : > { %v15216_v20 = vadd.f32 %v5903_v14, %v2671_v11  ;;  %12280 = vmatprep.mubr.msk.f32.mxu0 %vm4177_vm5, %v5691_v13 }
0x1c26   : > { %12281 = vmatmul.mubr.msk.f32.vlgmr.msra.gmra.mxu0 %vm4177_vm5, %v5692_v17 }
0x1c27   : > { %12297 = vmatmul.mubr.msk.f32.vlgmr.msra.gmra.mxu1 %vm2811_vm2, %v15216_v20  ;;  %12301 = vmatprep.mubr.msk.f32.mxu0 %vm14212_vm6, %v14211_v39 }
0x1c28   : > { %12306 = vmatprep.mubr.msk.f32.mxu1 %vm14212_vm6, %v14211_v39 }
0x1ce6   : > { %v15245_v26 = vpop.f32.mrf.mxu0 }
0x1ce7   : > { %v6027_v21 = vpop.f32.mrf.mxu1 }
0x1ce8   : > { %v15226_v9 = vadd.f32 %v11615_v22, %v6027_v21  ;;  %v15247_v27 = vpop.f32.mrf.mxu0 }
0x1ce9   : > { %v12298_v10 = vpop.f32.mrf.mxu1 }
0x1cea   : > { %6199 = vrot.lane.b32.xlu0 %v15226_v9, %s16019_s14  ;;  %6032 = vrot.lane.b32.xlu1 %v15226_v9, %s16020_s6 }
0x1cee   : > { %6197 = vrot.lane.b32.xlu1 %v15226_v9, %s16001_s15 }
0x1d5c   : > { %v6033_v23 = vpop.permute.xlu1 %6032  ;;  %v6200_v24 = vpop.permute.xlu0 %6199 }
0x1d5d   : > { %12300 = vmatpush3.xpose.msk.msra.mxu0 %vm2899_vm3, %v6033_v23 }
0x1d5e   : > { %12309 = vmatprep.subr.mxu0 %v14211_v39 }
0x1d60   : > { %12302 = vmatmul.mubr.msk.f32.vlgmr.msra.gmra.mxu0 %vm2899_vm3, %v15226_v9  ;;  %v6198_v25 = vpop.permute.xlu1 %6197 }
0x1d61   : > { %12310 = vmatpush3.xpose.msk.msra.mxu0 %vm2899_vm3, %v6200_v24  ;;  %12311 = vmatprep.mubr.msk.f32.mxu0 %vm14212_vm6, %v14211_v39 }
0x1d62   : > { %12319 = vmatprep.subr.mxu0 %v14211_v39 }
0x1d64   : > { %12312 = vmatmul.mubr.msk.f32.vlgmr.msra.gmra.mxu0 %vm2899_vm3, %v6198_v25 }
0x1d65   : > { %12321 = vmatprep.mubr.msk.f32.mxu0 %vm14212_vm6, %v14211_v39  ;;  %12320 = vmatpush3.msra.mxu0 %v5913_v56 }
0x1d66   : > { %12329 = vmatprep.subr.mxu0 %v14211_v39 }
0x1e20   : > { %v6104_v28 = vpop.f32.mrf.mxu0 }
0x1e21   : > { %v6108_v30 = vmul.f32 0.35355338, %v6104_v28 }
0x1e22   : > { %v12303_v31 = vpop.f32.mrf.mxu0 }
0x1e23   : > { %v6109_v60 = vadd.f32 %v6108_v30, %v15250_v29  ;;  %v5914_v30 = vld [vmem:[%s16023_s10 + $0x10] sm:$0xff] }
0x1e24   : > { %v6271_v34 = vpop.f32.mrf.mxu0 }
0x1e25   : > { %v6275_v59 = vmul.f32 0.35355338, %v6271_v34  ;;  %v6110_v35 = vsel %vm2899_vm3, %v6109_v60, -inf }
0x1e26   : > { %6111 = vmax.xlane.f32.xlu1 %v6110_v35  ;;  %v12313_v36 = vpop.f32.mrf.mxu0 }
0x1e27   : > { %v6276_v37 = vadd.f32 %v6275_v59, %v15250_v29 }
0x1e29   : > { %v6277_v38 = vsel %vm2899_vm3, %v6276_v37, -inf }
0x1e2a   : > { %6278 = vmax.xlane.f32.xlu0 %v6277_v38 }
0x1eaf   : > { %v6112_v40 = vpop.xlane.xlu1 %6111 }
0x1eb0   : > { %v6113_v41 = vsub.f32 %v6109_v60, %v6112_v40 }
0x1eb2   : > { %v6114_v33 = vmul.f32 1.442695, %v6113_v41 }
0x1eb3   : > { %v6279_v32 = vpop.xlane.xlu0 %6278 }
0x1eb4   : > { %13110 = vpow2.f32 %v6114_v33  ;;  %v6280_v42 = vsub.f32 %v6276_v37, %v6279_v32  ;;  %v11607_v32 = vld [vmem:[%s16024_s5] ss:$0 sm:$0xff]  ;;  %s16025_s5 = sld [smem:[#allocation114_spill]] }
0x1eb6   : > { %v6281_v43 = vmul.f32 1.442695, %v6280_v42  ;;  %v5772_v42 = vadd.f32 %v11607_v32, %v15247_v27 }
0x1eb8   : > { %13112 = vpow2.f32 %v6281_v43 }
0x1ec1   : > { %v13111_v44 = vpop.eup %13110 }
0x1ec2   : > { %v6116_v45 = vsel %vm2899_vm3, %v13111_v44, 0.0 }
0x1ec3   : > { %6117 = vadd.xlane.f32.xlu0 %v6116_v45 }
0x1ec5   : > { %v13113_v46 = vpop.eup %13112 }
0x1ec6   : > { %v6283_v47 = vsel %vm2899_vm3, %v13113_v46, 0.0 }
0x1ec7   : > { %6284 = vadd.xlane.f32.xlu1 %v6283_v47 }
0x1ed8   : > { %6288 = vrot.lane.b32.xlu1 %v15226_v9, %s16003_s1 }
0x1ed9   : > { %6121 = vrot.lane.b32.xlu0 %v15226_v9, %s16022_s8 }
0x1edc   : > { %6512 = vrot.lane.b32.xlu1 %v15226_v9, %s16004_s11 }
0x1edd   : > { %6510 = vrot.lane.b32.xlu0 %v15226_v9, %s16005_s7 }
0x1f4c   : > { %v6118_v48 = vpop.xlane.xlu0 %6117 }
0x1f4d   : > { %13114 = vrcp.f32 %v6118_v48 }
0x1f50   : > { %v6285_v49 = vpop.xlane.xlu1 %6284  ;;  %v6122_v16 = vpop.permute.xlu0 %6121 }
0x1f51   : > { %13116 = vrcp.f32 %v6285_v49  ;;  %12305 = vmatpush3.msra.mxu1 %v6122_v16  ;;  %v5915_v49 = vld [vmem:[%s16023_s10 + $0x18] sm:$0xff]  ;;  %s16026_s10 = sld [smem:[#allocation106_spill]] }
0x1f52   : > { %12314 = vmatprep.subr.mxu1 %v14211_v39 }
0x1f54   : > { %v6289_v15 = vpop.permute.xlu1 %6288  ;;  %v6511_v1 = vpop.permute.xlu0 %6510 }
0x1f58   : > { %v6513_v62 = vpop.permute.xlu1 %6512 }
0x1f5a   : > { %v13115_v63 = vpop.eup %13114 }
0x1f5b   : > { %v6120_v50 = vmul.f32 %v13115_v63, %v13111_v44  ;;  %v5780_v44 = vadd.f32 %v5772_v42, %v15183_v53 }
0x1f5d   : > { %12307 = vmatmul.mubr.msk.f32.vlgmr.msra.gmra.mxu1 %vm2899_vm3, %v6120_v50 }
0x1f5e   : > { %v13117_v51 = vpop.eup %13116  ;;  %12315 = vmatpush3.msra.mxu1 %v6289_v15  ;;  %12316 = vmatprep.mubr.msk.f32.mxu1 %vm14212_vm6, %v14211_v39 }
0x1f5f   : > { %v6287_v52 = vmul.f32 %v13117_v51, %v13113_v46  ;;  %12324 = vmatprep.subr.mxu1 %v14211_v39  ;;  %v5782_v46 = vsel %vm2811_vm2, %v5780_v44, 0.0 }
0x1f61   : > { %12317 = vmatmul.mubr.msk.f32.vlgmr.msra.gmra.mxu1 %vm2899_vm3, %v6287_v52 }
0x1f62   : > { %12326 = vmatprep.mubr.msk.f32.mxu1 %vm14212_vm6, %v14211_v39  ;;  %12325 = vmatpush3.msra.mxu1 %v5912_v55  ;;  %v11633_v55 = vld [vmem:[#allocation14] ss:$0 sm:$0xff] }
0x1f63   : > { %12334 = vmatprep.subr.mxu1 %v14211_v39 }
0x201d   : > { %v6193_v57 = vpop.f32.mrf.mxu1 }
0x201e   : > { %12327 = vmatmul.mubr.msk.f32.vlgmr.msra.gmra.mxu1 %vm2899_vm3, %v6193_v57 }
0x201f   : > { %v12308_v58 = vpop.f32.mrf.mxu1  ;;  %12336 = vmatprep.mubr.msk.f32.mxu1 %vm14212_vm6, %v14211_v39 }
0x2021   : > { %v6360_v61 = vpop.f32.mrf.mxu1 }
0x2022   : > { %12322 = vmatmul.mubr.msk.f32.vlgmr.msra.gmra.mxu0 %vm2899_vm3, %v6360_v61 }
0x2023   : > { %12330 = vmatpush3.xpose.msk.msra.mxu0 %vm2899_vm3, %v6513_v62  ;;  %v12318_v0 = vpop.f32.mrf.mxu1  ;;  %12331 = vmatprep.mubr.msk.f32.mxu0 %vm14212_vm6, %v14211_v39 }
0x2024   : > { %12339 = vmatprep.subr.mxu0 %v14211_v39 }
0x2026   : > { %12332 = vmatmul.mubr.msk.f32.vlgmr.msra.gmra.mxu0 %vm2899_vm3, %v6511_v1 }
0x2027   : > { %12341 = vmatprep.mubr.msk.f32.mxu0 %vm14212_vm6, %v14211_v39  ;;  %12340 = vmatpush3.msra.mxu0 %v5914_v30  ;;  %v11610_v30 = vld [vmem:[%s16026_s10] ss:$0 sm:$0xff]  ;;  %s16030_s10 = sld [smem:[#allocation115_spill]] }
0x2028   : > { %12349 = vmatprep.subr.mxu0 %v14211_v39 }
0x20de   : > { %v6506_v2 = vpop.f32.mrf.mxu1 }
0x20e0   : > { %v12328_v3 = vpop.f32.mrf.mxu1 }
0x20e2   : > { %v6433_v4 = vpop.f32.mrf.mxu0 }
0x20e3   : > { %v15289_v5 = vadd.f32 %v6506_v2, %v6433_v4 }
0x20e4   : > { %v12323_v6 = vpop.f32.mrf.mxu0 }
0x20e6   : > { %v6584_v19 = vpop.f32.mrf.mxu0 }
0x20e7   : > { %v6588_v7 = vmul.f32 0.35355338, %v6584_v19 }
0x20e8   : > { %v12333_v8 = vpop.f32.mrf.mxu0 }
0x20e9   : > { %v6589_v11 = vadd.f32 %v6588_v7, %v15250_v29  ;;  %v5925_v7 = vld [vmem:[%s16025_s5 + $0x18] sm:$0xff]  ;;  %v5924_v8 = vld [vmem:[%s16025_s5 + $0x10] sm:$0xff] }
0x20eb   : > { %v6590_v12 = vsel %vm2899_vm3, %v6589_v11, -inf }
0x20ec   : > { %6591 = vmax.xlane.f32.xlu1 %v6590_v12 }
0x20fd   : > { %6753 = vrot.lane.b32.xlu1 %v15226_v9, %s16006_s23 }
0x2101   : > { %6751 = vrot.lane.b32.xlu1 %v15226_v9, %s16007_s2 }
0x2175   : > { %v6592_v13 = vpop.xlane.xlu1 %6591 }
0x2176   : > { %v6593_v14 = vsub.f32 %v6589_v11, %v6592_v13  ;;  %v5923_v11 = vld [vmem:[%s16025_s5 + $0x8] sm:$0xff] }
0x2178   : > { %v6594_v17 = vmul.f32 1.442695, %v6593_v14 }
0x2179   : > { %v6754_v24 = vpop.permute.xlu1 %6753 }
0x217a   : > { %13118 = vpow2.f32 %v6594_v17 }
0x217d   : > { %v6752_v28 = vpop.permute.xlu1 %6751 }
0x2187   : > { %v13119_v18 = vpop.eup %13118 }
0x2188   : > { %v6596_v22 = vsel %vm2899_vm3, %v13119_v18, 0.0 }
0x2189   : > { %6597 = vadd.xlane.f32.xlu0 %v6596_v22 }
0x219f   : > { %6601 = vrot.lane.b32.xlu0 %v15226_v9, %s16008_s3 }
0x2212   : > { %v6598_v21 = vpop.xlane.xlu0 %6597 }
0x2213   : > { %13120 = vrcp.f32 %v6598_v21 }
0x2216   : > { %v6602_v10 = vpop.permute.xlu0 %6601 }
0x2217   : > { %12335 = vmatpush3.msra.mxu1 %v6602_v10 }
0x2218   : > { %12344 = vmatprep.subr.mxu1 %v14211_v39 }
0x2220   : > { %v13121_v23 = vpop.eup %13120 }
0x2221   : > { %v6600_v25 = vmul.f32 %v13121_v23, %v13119_v18 }
0x2223   : > { %12337 = vmatmul.mubr.msk.f32.vlgmr.msra.gmra.mxu1 %vm2899_vm3, %v6600_v25 }
0x2224   : > { %12345 = vmatpush3.xpose.msk.msra.mxu1 %vm2899_vm3, %v6754_v24  ;;  %12346 = vmatprep.mubr.msk.f32.mxu1 %vm14212_vm6, %v14211_v39 }
0x2225   : > { %12354 = vmatprep.subr.mxu1 %v14211_v39 }
0x2227   : > { %12347 = vmatmul.mubr.msk.f32.vlgmr.msra.gmra.mxu1 %vm2899_vm3, %v6752_v28 }
0x2228   : > { %12356 = vmatprep.mubr.msk.f32.mxu1 %vm14212_vm6, %v14211_v39  ;;  %12355 = vmatpush3.msra.mxu1 %v5915_v49  ;;  %v11638_v49 = vld [vmem:[#allocation17] ss:$0 sm:$0xff] }
0x2229   : > { %12370 = vmatprep.subr.mxu1 %v5925_v7 }
0x22e3   : > { %v6673_v31 = vpop.f32.mrf.mxu1 }
0x22e4   : > { %12342 = vmatmul.mubr.msk.f32.vlgmr.msra.gmra.mxu0 %vm2899_vm3, %v6673_v31 }
0x22e5   : > { %v12338_v60 = vpop.f32.mrf.mxu1  ;;  %12351 = vmatprep.mubr.msk.f32.mxu0 %vm14212_vm6, %v14211_v39 }
0x22e6   : > { %v11611_v60 = vld [vmem:[%s16027_s12] ss:$0 sm:$0xff]  ;;  %s16029_s12 = sld [smem:[#allocation78_spill]] }
0x22e7   : > { %v6825_v34 = vpop.f32.mrf.mxu1 }
0x22e8   : > { %v6829_v59 = vmul.f32 0.35355338, %v6825_v34 }
0x22e9   : > { %v12348_v35 = vpop.f32.mrf.mxu1 }
0x22ea   : > { %v6830_v36 = vadd.f32 %v6829_v59, %v15250_v29  ;;  %v5777_v29 = vadd.f32 %v15245_v26, %v11607_v32 }
0x22ec   : > { %v6831_v37 = vsel %vm2899_vm3, %v6830_v36, -inf }
0x22ed   : > { %6832 = vmax.xlane.f32.xlu0 %v6831_v37 }
0x2303   : > { %6842 = vrot.lane.b32.xlu0 %v15226_v9, %s16009_s4  ;;  %v5781_v9 = vadd.f32 %v5777_v29, %v15185_v54 }
0x2305   : > { %v5785_v47 = vsel %vm2811_vm2, %v5781_v9, 0.0 }
0x2376   : > { %v6833_v38 = vpop.xlane.xlu0 %6832 }
0x2377   : > { %v6834_v40 = vsub.f32 %v6830_v36, %v6833_v38 }
0x2379   : > { %v6835_v41 = vmul.f32 1.442695, %v6834_v40 }
0x237a   : > { %v6843_v33 = vpop.permute.xlu0 %6842 }
0x237b   : > { %13122 = vpow2.f32 %v6835_v41  ;;  %12350 = vmatpush3.msra.mxu0 %v6843_v33 }
0x237c   : > { %12359 = vmatprep.subr.mxu0 %v14211_v39 }
0x2388   : > { %v13123_v43 = vpop.eup %13122 }
0x2389   : > { %v6837_v45 = vsel %vm2899_vm3, %v13123_v43, 0.0 }
0x238a   : > { %6838 = vadd.xlane.f32.xlu1 %v6837_v45  ;;  %v11634_v45 = vld [vmem:[#allocation23] ss:$0 sm:$0xff] }
0x238e   : > { %5783 = vadd.xlane.f32.xlu1 %v5782_v46  ;;  %v11635_v46 = vld [vmem:[#allocation25] ss:$0 sm:$0xff] }
0x2392   : > { %5786 = vadd.xlane.f32.xlu1 %v5785_v47 }
0x23a4   : > { %v6746_v48 = vpop.f32.mrf.mxu0 }
0x23a5   : > { %v6750_v27 = vadd.f32 %v6746_v48, %v15289_v5 }
0x23a6   : > { %v12343_v16 = vpop.f32.mrf.mxu0 }
0x2413   : > { %v6839_v26 = vpop.xlane.xlu1 %6838 }
0x2414   : > { %13124 = vrcp.f32 %v6839_v26 }
0x2417   : > { %v5784_v15 = vpop.xlane.xlu1 %5783 }
0x2418   : > { %v5788_v51 = vmul.f32 0.03125, %v5784_v15 }
0x241a   : > { %v5790_v61 = vsub.f32 %v5780_v44, %v5788_v51  ;;  %v15385_v51 = vld [vmem:[%s16029_s12] sm:$0xff] }
0x241b   : > { %v5787_v52 = vpop.xlane.xlu1 %5786 }
0x241c   : > { %v5789_v62 = vmul.f32 0.03125, %v5787_v52  ;;  %v5792_v4 = vmul.f32 %v5790_v61, %v5790_v61 }
0x241e   : > { %v5791_v2 = vsub.f32 %v5781_v9, %v5789_v62  ;;  %v5794_v5 = vsel %vm2811_vm2, %v5792_v4, 0.0 }
0x2420   : > { %v5793_v6 = vmul.f32 %v5791_v2, %v5791_v2 }
0x2421   : > { %v13125_v53 = vpop.eup %13124 }
0x2422   : > { %v6841_v63 = vmul.f32 %v13125_v53, %v13123_v43  ;;  %v5797_v19 = vsel %vm2811_vm2, %v5793_v6, 0.0 }
0x2424   : > { %12352 = vmatmul.mubr.msk.f32.vlgmr.msra.gmra.mxu0 %vm2899_vm3, %v6841_v63  ;;  %v11636_v63 = vld [vmem:[#allocation16] ss:$0 sm:$0xff] }
0x2425   : > { %12367 = vmatprep.mubr.msk.f32.mxu0 %vm14212_vm6, %v14211_v39 }
0x24e4   : > { %v6914_v54 = vpop.f32.mrf.mxu0 }
0x24e5   : > { %12357 = vmatmul.mubr.msk.f32.vlgmr.msra.gmra.mxu1 %vm2899_vm3, %v6914_v54 }
0x24e6   : > { %v12353_v50 = vpop.f32.mrf.mxu0  ;;  %12371 = vmatpush3.msra.mxu1 %v5925_v7 }
0x24e7   : > { %12372 = vmatprep.subr.mxu1 %v5924_v8 }
0x24e8   : > { %12373 = vmatpush3.msra.mxu1 %v5924_v8 }
0x24e9   : > { %12374 = vmatprep.subr.mxu1 %v5923_v11 }
0x24ea   : > { %12375 = vmatpush3.msra.mxu1 %v5923_v11 }
0x25a5   : > { %v6987_v56 = vpop.f32.mrf.mxu1 }
0x25a6   : > { %v6991_v57 = vadd.f32 %v6987_v56, %v6750_v27 }
0x25a7   : > { %v12358_v58 = vpop.f32.mrf.mxu1 }
0x25a8   : > { %v6998_v0 = vadd.f32 %v11633_v55, %v6991_v57 }
0x25aa   : > { %v6999_v1 = vadd.f32 %v6998_v0, %v15216_v20  ;;  %v5922_v20 = vld [vmem:[%s16025_s5] sm:$0xff]  ;;  %s16028_s5 = sld [smem:[#allocation112_spill]] }
0x25ab   : > { %12376 = vmatprep.subr.mxu1 %v5922_v20 }
0x25ac   : > { %v7000_v3 = vsel %vm2811_vm2, %v6999_v1, 0.0  ;;  %12377 = vmatpush3.msra.mxu1 %v5922_v20  ;;  %v5927_v20 = vld [vmem:[%s16030_s10] sm:$0xff] }
0x25ad   : > { %7001 = vadd.xlane.f32.xlu1 %v7000_v3  ;;  %12388 = vmatprep.subr.mxu1 %v14211_v39 }
0x25b0   : > { %v5920_v40 = vld [vmem:[%s16028_s5 + $0x18] sm:$0xff]  ;;  %v5919_v41 = vld [vmem:[%s16028_s5 + $0x10] sm:$0xff]  ;;  %v5918_v33 = vld [vmem:[%s16028_s5 + $0x8] sm:$0xff] }
0x25b1   : > { %5795 = vadd.xlane.f32.xlu1 %v5794_v5  ;;  %12360 = vmatpush3.msra.mxu0 %v5920_v40  ;;  %v5917_v32 = vld [vmem:[%s16028_s5] sm:$0xff]  ;;  %v5928_v40 = vld [vmem:[%s16030_s10 + $0x8] sm:$0xff]  ;;  %s16031_s5 = sld [smem:[#allocation117_spill]] }
0x25b2   : > { %12361 = vmatprep.subr.mxu0 %v14211_v39 }
0x25b3   : > { %12362 = vmatpush3.msra.mxu0 %v5919_v41 }
0x25b4   : > { %12363 = vmatprep.subr.mxu0 %v14211_v39 }
0x25b5   : > { %5798 = vadd.xlane.f32.xlu1 %v5797_v19  ;;  %12364 = vmatpush3.msra.mxu0 %v5918_v33 }
0x25b6   : > { %12365 = vmatprep.subr.mxu0 %v14211_v39 }
0x25b7   : > { %12366 = vmatpush3.msra.mxu0 %v5917_v32 }
0x25b8   : > { %12381 = vmatprep.subr.mxu0 %v14211_v39 }
0x2636   : > { %v7002_v12 = vpop.xlane.xlu1 %7001 }
0x2637   : > { %v7003_v13 = vmul.f32 0.03125, %v7002_v12 }
0x2639   : > { %v7004_v14 = vsub.f32 %v6999_v1, %v7003_v13 }
0x263a   : > { %v5796_v17 = vpop.xlane.xlu1 %5795 }
0x263b   : > { %v5800_v18 = vmul.f32 0.03125, %v5796_v17  ;;  %v7005_v22 = vmul.f32 %v7004_v14, %v7004_v14 }
0x263d   : > { %v5802_v21 = vadd.f32 1e-05, %v5800_v18  ;;  %v7006_v10 = vsel %vm2811_vm2, %v7005_v22, 0.0 }
0x263e   : > { %7007 = vadd.xlane.f32.xlu0 %v7006_v10  ;;  %v5799_v23 = vpop.xlane.xlu1 %5798 }
0x263f   : > { %13126 = vrsqrt.f32 %v5802_v21  ;;  %v5801_v24 = vmul.f32 0.03125, %v5799_v23 }
0x2641   : > { %v5803_v25 = vadd.f32 1e-05, %v5801_v24 }
0x2643   : > { %13128 = vrsqrt.f32 %v5803_v25 }
0x264c   : > { %v13127_v28 = vpop.eup %13126 }
0x264d   : > { %v5806_v31 = vmul.f32 %v13127_v28, %v5790_v61 }
0x264f   : > { %v5814_v34 = vmul.f32 %v11610_v30, %v5806_v31 }
0x2650   : > { %v13129_v59 = vpop.eup %13128 }
0x2651   : > { %v5807_v35 = vmul.f32 %v13129_v59, %v5791_v2  ;;  %v15345_v36 = vadd.f32 %v11611_v60, %v5814_v34 }
0x2653   : > { %v5815_v37 = vmul.f32 %v11610_v30, %v5807_v35  ;;  %12378 = vmatprep.mubr.msk.f32.mxu1 %vm2811_vm2, %v15345_v36 }
0x2655   : > { %v15349_v38 = vadd.f32 %v11611_v60, %v5815_v37 }
0x2657   : > { %12379 = vmatmul.mubr.msk.f32.vlgmr.msra.gmra.mxu1 %vm2811_vm2, %v15349_v38 }
0x2658   : > { %12392 = vmatprep.mubr.msk.f32.mxu1 %vm14212_vm6, %v14211_v39 }
0x26c7   : > { %v7008_v42 = vpop.xlane.xlu0 %7007 }
0x26c8   : > { %v7009_v43 = vmul.f32 0.03125, %v7008_v42 }
0x26ca   : > { %v7010_v29 = vadd.f32 1e-05, %v7009_v43 }
0x26cc   : > { %13130 = vrsqrt.f32 %v7010_v29 }
0x26d9   : > { %v13131_v44 = vpop.eup %13130 }
0x26da   : > { %v7012_v9 = vmul.f32 %v13131_v44, %v7004_v14 }
0x26dc   : > { %v7019_v47 = vmul.f32 %v11634_v45, %v7012_v9 }
0x26de   : > { %v15363_v48 = vadd.f32 %v11635_v46, %v7019_v47 }
0x26e0   : > { %12368 = vmatmul.mubr.msk.f32.vlgmr.msra.gmra.mxu0 %vm2811_vm2, %v15363_v48 }
0x26e1   : > { %12385 = vmatprep.mubr.msk.f32.mxu0 %vm14212_vm6, %v14211_v39 }
0x2717   : > { %v12380_v27 = vpop.f32.mrf.mxu1 }
0x2718   : > { %v15369_v16 = vadd.f32 %v12380_v27, %v11638_v49 }
0x2719   : > { %v7184_v26 = vpop.f32.mrf.mxu1 }
0x271a   : > { %7368 = vrot.lane.b32.xlu0 %v15369_v16, %s16001_s15  ;;  %12382 = vmatpush3.xpose.msk.msra.mxu0 %vm2899_vm3, %v15369_v16  ;;  %v15376_v53 = vadd.f32 %v11638_v49, %v7184_v26 }
0x271b   : > { %12383 = vmatprep.subr.mxu0 %v14211_v39 }
0x271e   : > { %12384 = vmatpush3.xpose.msk.msra.mxu0 %vm2899_vm3, %v15376_v53 }
0x271f   : > { %12402 = vmatprep.subr.mxu0 %v14211_v39 }
0x278c   : > { %v7369_v8 = vpop.permute.xlu0 %7368 }
0x27a0   : > { %v7102_v54 = vpop.f32.mrf.mxu0 }
0x27a1   : > { %v7103_v50 = vadd.f32 %v11636_v63, %v7102_v54 }
0x27a2   : > { %v12369_v15 = vpop.f32.mrf.mxu0 }
0x27a3   : > { %12386 = vmatmul.mubr.msk.f32.vlgmr.msra.gmra.mxu0 %vm2899_vm3, %v7103_v50 }
0x27a4   : > { %12406 = vmatprep.mubr.msk.f32.mxu0 %vm14212_vm6, %v14211_v39 }
0x2863   : > { %v7268_v52 = vpop.f32.mrf.mxu0 }
0x2864   : > { %v7272_v55 = vmul.f32 0.35355338, %v7268_v52 }
0x2865   : > { %v12387_v56 = vpop.f32.mrf.mxu0 }
0x2866   : > { %v7273_v57 = vadd.f32 %v7272_v55, %v15385_v51 }
0x2868   : > { %v7274_v58 = vsel %vm2985_vm4, %v7273_v57, -inf }
0x2869   : > { %7275 = vmax.xlane.f32.xlu1 %v7274_v58 }
0x287a   : > { %7287 = vrot.lane.b32.xlu1 %v15369_v16, %s16020_s6 }
0x287e   : > { %7285 = vrot.lane.b32.xlu1 %v15376_v53, %s16020_s6 }
0x2882   : > { %7366 = vrot.lane.b32.xlu1 %v15376_v53, %s16001_s15 }
0x28f2   : > { %v7276_v61 = vpop.xlane.xlu1 %7275 }
0x28f3   : > { %v7277_v62 = vsub.f32 %v7273_v57, %v7276_v61 }
0x28f5   : > { %v7278_v0 = vmul.f32 1.442695, %v7277_v62 }
0x28f6   : > { %v7288_v1 = vpop.permute.xlu1 %7287 }
0x28f7   : > { %13132 = vpow2.f32 %v7278_v0  ;;  %12389 = vmatpush3.msra.mxu1 %v7288_v1 }
0x28f8   : > { %12390 = vmatprep.subr.mxu1 %v14211_v39 }
0x28fa   : > { %v7286_v2 = vpop.permute.xlu1 %7285 }
0x28fb   : > { %12391 = vmatpush3.msra.mxu1 %v7286_v2 }
0x28fc   : > { %12395 = vmatprep.subr.mxu1 %v14211_v39 }
0x28fe   : > { %v7367_v5 = vpop.permute.xlu1 %7366 }
0x2904   : > { %v13133_v3 = vpop.eup %13132 }
0x2905   : > { %v7280_v4 = vsel %vm2985_vm4, %v13133_v3, 0.0 }
0x2906   : > { %7281 = vadd.xlane.f32.xlu1 %v7280_v4 }
0x2917   : > { %7364 = vrot.lane.b32.xlu1 %v7103_v50, %s16001_s15 }
0x298f   : > { %v7282_v6 = vpop.xlane.xlu1 %7281 }
0x2990   : > { %13134 = vrcp.f32 %v7282_v6 }
0x2993   : > { %v7365_v11 = vpop.permute.xlu1 %7364 }
0x299d   : > { %v13135_v19 = vpop.eup %13134 }
0x299e   : > { %v7284_v7 = vmul.f32 %v13135_v19, %v13133_v3 }
0x29a0   : > { %12393 = vmatmul.mubr.msk.f32.vlgmr.msra.gmra.mxu1 %vm2985_vm4, %v7284_v7  ;;  %v5929_v7 = vld [vmem:[%s16030_s10 + $0x10] sm:$0xff] }
0x29a1   : > { %12396 = vmatpush3.xpose.msk.msra.mxu1 %vm2899_vm3, %v7369_v8  ;;  %12399 = vmatprep.mubr.msk.f32.mxu1 %vm14212_vm6, %v14211_v39 }
0x29a2   : > { %12397 = vmatprep.subr.mxu1 %v14211_v39 }
0x29a5   : > { %12398 = vmatpush3.xpose.msk.msra.mxu1 %vm2899_vm3, %v7367_v5 }
0x29a6   : > { %12414 = vmatprep.subr.mxu1 %v14211_v39 }
0x29a8   : > { %12400 = vmatmul.mubr.msk.f32.vlgmr.msra.gmra.mxu1 %vm2899_vm3, %v7365_v11 }
0x29a9   : > { %12416 = vmatprep.mubr.msk.f32.mxu1 %vm14212_vm6, %v14211_v39  ;;  %12415 = vmatpush3.msra.mxu1 %v5927_v20 }
0x29aa   : > { %12426 = vmatprep.subr.mxu1 %v14211_v39 }
0x2a60   : > { %v7360_v12 = vpop.f32.mrf.mxu1 }
0x2a61   : > { %12417 = vmatmul.mubr.msk.f32.vlgmr.msra.gmra.mxu1 %vm2899_vm3, %v7360_v12 }
0x2a62   : > { %v12394_v13 = vpop.f32.mrf.mxu1  ;;  %12430 = vmatprep.mubr.msk.f32.mxu1 %vm14212_vm6, %v14211_v39 }
0x2a68   : > { %v7442_v14 = vpop.f32.mrf.mxu1 }
0x2a69   : > { %v7446_v17 = vmul.f32 0.35355338, %v7442_v14 }
0x2a6a   : > { %v12401_v18 = vpop.f32.mrf.mxu1 }
0x2a6b   : > { %v7447_v22 = vadd.f32 %v7446_v17, %v15385_v51  ;;  %v5930_v17 = vld [vmem:[%s16030_s10 + $0x18] sm:$0xff]  ;;  %s16032_s10 = sld [smem:[#allocation119_spill]] }
0x2a6d   : > { %v7448_v21 = vsel %vm2985_vm4, %v7447_v22, -inf }
0x2a6e   : > { %7449 = vmax.xlane.f32.xlu1 %v7448_v21 }
0x2a7f   : > { %7461 = vrot.lane.b32.xlu1 %v15369_v16, %s16019_s14 }
0x2a83   : > { %7688 = vrot.lane.b32.xlu1 %v15369_v16, %s16005_s7 }
0x2a87   : > { %7686 = vrot.lane.b32.xlu1 %v15376_v53, %s16005_s7 }
0x2a8b   : > { %7684 = vrot.lane.b32.xlu1 %v7103_v50, %s16005_s7 }
0x2a8f   : > { %7936 = vrot.lane.b32.xlu1 %v15369_v16, %s16007_s2 }
0x2a93   : > { %7932 = vrot.lane.b32.xlu1 %v7103_v50, %s16007_s2 }
0x2af7   : > { %v7450_v10 = vpop.xlane.xlu1 %7449 }
0x2af8   : > { %v7451_v23 = vsub.f32 %v7447_v22, %v7450_v10 }
0x2afa   : > { %v7452_v24 = vmul.f32 1.442695, %v7451_v23 }
0x2afb   : > { %v7462_v25 = vpop.permute.xlu1 %7461 }
0x2afc   : > { %13136 = vpow2.f32 %v7452_v24  ;;  %12403 = vmatpush3.msra.mxu0 %v7462_v25  ;;  %v11661_v25 = vld [vmem:[#allocation19] ss:$0 sm:$0xff] }
0x2afd   : > { %12404 = vmatprep.subr.mxu0 %v14211_v39 }
0x2aff   : > { %v7689_v41 = vpop.permute.xlu1 %7688 }
0x2b03   : > { %v7687_v33 = vpop.permute.xlu1 %7686 }
0x2b07   : > { %v7685_v43 = vpop.permute.xlu1 %7684 }
0x2b09   : > { %v13137_v28 = vpop.eup %13136 }
0x2b0a   : > { %v7454_v30 = vsel %vm2985_vm4, %v13137_v28, 0.0 }
0x2b0b   : > { %7455 = vadd.xlane.f32.xlu0 %v7454_v30  ;;  %v7937_v29 = vpop.permute.xlu1 %7936 }
0x2b0f   : > { %v7933_v45 = vpop.permute.xlu1 %7932 }
0x2b21   : > { %7459 = vrot.lane.b32.xlu0 %v15376_v53, %s16019_s14  ;;  %v15430_v31 = vpop.f32.mrf.mxu1 }
0x2b23   : > { %v12418_v60 = vpop.f32.mrf.mxu1 }
0x2b25   : > { %7934 = vrot.lane.b32.xlu0 %v15376_v53, %s16007_s2 }
0x2b94   : > { %v7456_v34 = vpop.xlane.xlu0 %7455 }
0x2b95   : > { %13138 = vrcp.f32 %v7456_v34 }
0x2b98   : > { %v7460_v59 = vpop.permute.xlu0 %7459 }
0x2b99   : > { %12405 = vmatpush3.msra.mxu0 %v7460_v59 }
0x2b9a   : > { %12409 = vmatprep.subr.mxu0 %v14211_v39 }
0x2b9c   : > { %v7935_v44 = vpop.permute.xlu0 %7934 }
0x2ba2   : > { %v13139_v35 = vpop.eup %13138 }
0x2ba3   : > { %v7458_v37 = vmul.f32 %v13139_v35, %v13137_v28 }
0x2ba5   : > { %12407 = vmatmul.mubr.msk.f32.vlgmr.msra.gmra.mxu0 %vm2985_vm4, %v7458_v37 }
0x2ba6   : > { %12410 = vmatpush3.msra.mxu0 %v5928_v40  ;;  %12411 = vmatprep.mubr.msk.f32.mxu0 %vm14212_vm6, %v14211_v39 }
0x2ba7   : > { %12419 = vmatprep.subr.mxu0 %v14211_v39 }
0x2c65   : > { %v7534_v32 = vpop.f32.mrf.mxu0 }
0x2c66   : > { %12412 = vmatmul.mubr.msk.f32.vlgmr.msra.gmra.mxu0 %vm2899_vm3, %v7534_v32  ;;  %v5935_v32 = vld [vmem:[%s16031_s5 + $0x18] sm:$0xff] }
0x2c67   : > { %12420 = vmatpush3.xpose.msk.msra.mxu0 %vm2899_vm3, %v7689_v41  ;;  %v12408_v42 = vpop.f32.mrf.mxu0  ;;  %12423 = vmatprep.mubr.msk.f32.mxu0 %vm14212_vm6, %v14211_v39 }
0x2c68   : > { %12421 = vmatprep.subr.mxu0 %v14211_v39  ;;  %v5934_v42 = vld [vmem:[%s16031_s5 + $0x10] sm:$0xff] }
0x2c6b   : > { %12422 = vmatpush3.xpose.msk.msra.mxu0 %vm2899_vm3, %v7687_v33 }
0x2c6c   : > { %12438 = vmatprep.subr.mxu0 %v14211_v39 }
0x2c6e   : > { %12424 = vmatmul.mubr.msk.f32.vlgmr.msra.gmra.mxu0 %vm2899_vm3, %v7685_v43  ;;  %v5932_v43 = vld [vmem:[%s16031_s5] sm:$0xff] }
0x2c6f   : > { %12439 = vmatpush3.xpose.msk.msra.mxu0 %vm2899_vm3, %v7937_v29  ;;  %12442 = vmatprep.mubr.msk.f32.mxu0 %vm14212_vm6, %v14211_v39  ;;  %v5944_v29 = vld [vmem:[%s16032_s10 + $0x38] sm:$0xff] }
0x2c70   : > { %12440 = vmatprep.subr.mxu0 %v14211_v39 }
0x2c73   : > { %12441 = vmatpush3.xpose.msk.msra.mxu0 %vm2899_vm3, %v7935_v44  ;;  %v5943_v44 = vld [vmem:[%s16032_s10 + $0x30] sm:$0xff] }
0x2c74   : > { %12457 = vmatprep.subr.mxu0 %v14211_v39 }
0x2c76   : > { %12443 = vmatmul.mubr.msk.f32.vlgmr.msra.gmra.mxu0 %vm2899_vm3, %v7933_v45  ;;  %v5942_v45 = vld [vmem:[%s16032_s10 + $0x28] sm:$0xff] }
0x2c77   : > { %12465 = vmatprep.mubr.msk.f32.mxu0 %vm14212_vm6, %v14211_v39  ;;  %12458 = vmatpush3.msra.mxu0 %v5935_v32 }
0x2c78   : > { %12459 = vmatprep.subr.mxu0 %v14211_v39 }
0x2c79   : > { %12460 = vmatpush3.msra.mxu0 %v5934_v42 }
0x2c7a   : > { %12461 = vmatprep.subr.mxu0 %v14211_v39 }
0x2d26   : > { %v15457_v9 = vpop.f32.mrf.mxu0 }
0x2d27   : > { %v7681_v18 = vadd.f32 %v15430_v31, %v15457_v9  ;;  %v5941_v9 = vld [vmem:[%s16032_s10 + $0x20] sm:$0xff] }
0x2d28   : > { %v12413_v46 = vpop.f32.mrf.mxu0 }
0x2d29   : > { %v5940_v46 = vld [vmem:[%s16032_s10 + $0x18] sm:$0xff] }
0x2d2e   : > { %v7762_v47 = vpop.f32.mrf.mxu0 }
0x2d2f   : > { %v7766_v49 = vmul.f32 0.35355338, %v7762_v47 }
0x2d30   : > { %v12425_v27 = vpop.f32.mrf.mxu0 }
0x2d31   : > { %v7767_v26 = vadd.f32 %v7766_v49, %v15385_v51 }
0x2d33   : > { %v7768_v63 = vsel %vm2985_vm4, %v7767_v26, -inf }
0x2d34   : > { %7769 = vmax.xlane.f32.xlu0 %v7768_v63  ;;  %v11662_v63 = vld [vmem:[#allocation26] ss:$0 sm:$0xff] }
0x2d36   : > { %v8010_v54 = vpop.f32.mrf.mxu0 }
0x2d37   : > { %v8014_v15 = vmul.f32 0.35355338, %v8010_v54 }
0x2d38   : > { %v12444_v50 = vpop.f32.mrf.mxu0 }
0x2d39   : > { %v8015_v52 = vadd.f32 %v8014_v15, %v15385_v51  ;;  %v11663_v50 = vld [vmem:[#allocation28] ss:$0 sm:$0xff] }
0x2d3b   : > { %v8016_v55 = vsel %vm2985_vm4, %v8015_v52, -inf }
0x2d4a   : > { %7781 = vrot.lane.b32.xlu0 %v15369_v16, %s16004_s11 }
0x2d69   : > { %8017 = vmax.xlane.f32.xlu0 %v8016_v55  ;;  %v5939_v55 = vld [vmem:[%s16032_s10 + $0x10] sm:$0xff] }
0x2d7f   : > { %8029 = vrot.lane.b32.xlu0 %v15369_v16, %s16006_s23 }
0x2dbd   : > { %v7770_v56 = vpop.xlane.xlu0 %7769 }
0x2dbe   : > { %v7771_v57 = vsub.f32 %v7767_v26, %v7770_v56  ;;  %v5938_v56 = vld [vmem:[%s16032_s10 + $0x8] sm:$0xff] }
0x2dc0   : > { %v7772_v58 = vmul.f32 1.442695, %v7771_v57  ;;  %v5937_v57 = vld [vmem:[%s16032_s10] sm:$0xff] }
0x2dc1   : > { %v7782_v61 = vpop.permute.xlu0 %7781 }
0x2dc2   : > { %13140 = vpow2.f32 %v7772_v58  ;;  %12427 = vmatpush3.msra.mxu1 %v7782_v61  ;;  %v11664_v58 = vld [vmem:[#allocation20] ss:$0 sm:$0xff] }
0x2dc3   : > { %12428 = vmatprep.subr.mxu1 %v14211_v39 }
0x2dcf   : > { %v13141_v62 = vpop.eup %13140 }
0x2dd0   : > { %v7774_v0 = vsel %vm2985_vm4, %v13141_v62, 0.0 }
0x2dd1   : > { %7775 = vadd.xlane.f32.xlu1 %v7774_v0 }
0x2de2   : > { %7779 = vrot.lane.b32.xlu1 %v15376_v53, %s16004_s11 }
0x2df2   : > { %v8018_v51 = vpop.xlane.xlu0 %8017 }
0x2df3   : > { %v8019_v1 = vsub.f32 %v8015_v52, %v8018_v51 }
0x2df5   : > { %v8020_v2 = vmul.f32 1.442695, %v8019_v1  ;;  %v11666_v1 = vld [vmem:[#allocation22] ss:$0 sm:$0xff] }
0x2df6   : > { %v8030_v20 = vpop.permute.xlu0 %8029 }
0x2df7   : > { %13142 = vpow2.f32 %v8020_v2 }
0x2e04   : > { %v13143_v16 = vpop.eup %13142 }
0x2e05   : > { %v8022_v3 = vsel %vm2985_vm4, %v13143_v16, 0.0 }
0x2e06   : > { %8023 = vadd.xlane.f32.xlu1 %v8022_v3 }
0x2e17   : > { %8027 = vrot.lane.b32.xlu1 %v15376_v53, %s16006_s23 }
0x2e5a   : > { %v7776_v4 = vpop.xlane.xlu1 %7775 }
0x2e5b   : > { %13144 = vrcp.f32 %v7776_v4 }
0x2e5e   : > { %v7780_v5 = vpop.permute.xlu1 %7779 }
0x2e5f   : > { %12429 = vmatpush3.msra.mxu1 %v7780_v5 }
0x2e60   : > { %12433 = vmatprep.subr.mxu1 %v14211_v39 }
0x2e68   : > { %v13145_v6 = vpop.eup %13144 }
0x2e69   : > { %v7778_v19 = vmul.f32 %v13145_v6, %v13141_v62 }
0x2e6b   : > { %12431 = vmatmul.mubr.msk.f32.vlgmr.msra.gmra.mxu1 %vm2985_vm4, %v7778_v19 }
0x2e6c   : > { %12434 = vmatpush3.msra.mxu1 %v5929_v7  ;;  %12435 = vmatprep.mubr.msk.f32.mxu1 %vm14212_vm6, %v14211_v39 }
0x2e6d   : > { %12445 = vmatprep.subr.mxu1 %v14211_v39 }
0x2e8f   : > { %v8024_v8 = vpop.xlane.xlu1 %8023 }
0x2e90   : > { %13146 = vrcp.f32 %v8024_v8 }
0x2e93   : > { %v8028_v13 = vpop.permute.xlu1 %8027 }
0x2e9d   : > { %v13147_v53 = vpop.eup %13146 }
0x2e9e   : > { %v8026_v14 = vmul.f32 %v13147_v53, %v13143_v16 }
0x2f2b   : > { %v7854_v11 = vpop.f32.mrf.mxu1 }
0x2f2c   : > { %12436 = vmatmul.mubr.msk.f32.vlgmr.msra.gmra.mxu1 %vm2899_vm3, %v7854_v11 }
0x2f2d   : > { %12446 = vmatpush3.msra.mxu1 %v8030_v20  ;;  %v12432_v12 = vpop.f32.mrf.mxu1  ;;  %12449 = vmatprep.mubr.msk.f32.mxu1 %vm14212_vm6, %v14211_v39 }
0x2f2e   : > { %12447 = vmatprep.subr.mxu1 %v14211_v39 }
0x2f2f   : > { %12448 = vmatpush3.msra.mxu1 %v8028_v13 }
0x2f30   : > { %12450 = vmatmul.mubr.msk.f32.vlgmr.msra.gmra.mxu1 %vm2985_vm4, %v8026_v14  ;;  %12452 = vmatprep.subr.mxu1 %v14211_v39 }
0x2f31   : > { %12454 = vmatprep.mubr.msk.f32.mxu1 %vm14212_vm6, %v14211_v39  ;;  %12453 = vmatpush3.msra.mxu1 %v5930_v17 }
0x2f32   : > { %12468 = vmatprep.subr.mxu1 %v14211_v39 }
0x2fec   : > { %v7927_v22 = vpop.f32.mrf.mxu1 }
0x2fed   : > { %v7931_v21 = vadd.f32 %v7927_v22, %v7681_v18 }
0x2fee   : > { %v12437_v10 = vpop.f32.mrf.mxu1 }
0x2ff0   : > { %v8102_v23 = vpop.f32.mrf.mxu1 }
0x2ff1   : > { %12455 = vmatmul.mubr.msk.f32.vlgmr.msra.gmra.mxu1 %vm2899_vm3, %v8102_v23  ;;  %v11669_v23 = vld [vmem:[#allocation31] ss:$0 sm:$0xff] }
0x2ff2   : > { %v12451_v24 = vpop.f32.mrf.mxu1  ;;  %12484 = vmatprep.mubr.msk.f32.mxu1 %vm14212_vm6, %v14211_v39  ;;  %12469 = vmatpush3.msra.mxu1 %v5944_v29 }
0x2ff3   : > { %12470 = vmatprep.subr.mxu1 %v14211_v39 }
0x2ff4   : > { %12471 = vmatpush3.msra.mxu1 %v5943_v44 }
0x2ff5   : > { %12472 = vmatprep.subr.mxu1 %v14211_v39 }
0x2ff6   : > { %12473 = vmatpush3.msra.mxu1 %v5942_v45 }
0x2ff7   : > { %12474 = vmatprep.subr.mxu1 %v14211_v39 }
0x2ff8   : > { %12475 = vmatpush3.msra.mxu1 %v5941_v9 }
0x2ff9   : > { %12476 = vmatprep.subr.mxu1 %v14211_v39 }
0x2ffa   : > { %12477 = vmatpush3.msra.mxu1 %v5940_v46 }
0x2ffb   : > { %12478 = vmatprep.subr.mxu1 %v14211_v39 }
0x2ffc   : > { %12479 = vmatpush3.msra.mxu1 %v5939_v55 }
0x2ffd   : > { %12480 = vmatprep.subr.mxu1 %v14211_v39 }
0x2ffe   : > { %12481 = vmatpush3.msra.mxu1 %v5938_v56 }
0x2fff   : > { %12482 = vmatprep.subr.mxu1 %v14211_v39 }
0x3000   : > { %12483 = vmatpush3.msra.mxu1 %v5937_v57 }
0x3001   : > { %12503 = vmatprep.subr.mxu1 %v14211_v39 }
0x30b1   : > { %v8175_v28 = vpop.f32.mrf.mxu1 }
0x30b2   : > { %v8179_v30 = vadd.f32 %v8175_v28, %v7931_v21  ;;  %v11668_v21 = vld [vmem:[#allocation29] ss:$0 sm:$0xff]  ;;  %v11670_v28 = vld [vmem:[#allocation32] ss:$0 sm:$0xff] }
0x30b3   : > { %v12456_v60 = vpop.f32.mrf.mxu1 }
0x30b4   : > { %v8186_v34 = vadd.f32 %v11661_v25, %v8179_v30 }
0x30b6   : > { %v8187_v31 = vadd.f32 %v8186_v34, %v15363_v48  ;;  %v5933_v48 = vld [vmem:[%s16031_s5 + $0x8] sm:$0xff]  ;;  %s16033_s5 = sld [smem:[#allocation125_spill]] }
0x30b7   : > { %12462 = vmatpush3.msra.mxu0 %v5933_v48 }
0x30b8   : > { %v8188_v59 = vsel %vm2811_vm2, %v8187_v31, 0.0  ;;  %12463 = vmatprep.subr.mxu0 %v14211_v39 }
0x30b9   : > { %8189 = vadd.xlane.f32.xlu0 %v8188_v59  ;;  %12464 = vmatpush3.msra.mxu0 %v5932_v43 }
0x30ba   : > { %12487 = vmatprep.subr.mxu0 %v14211_v39 }
0x30bc   : > { %v8405_v11 = vld [vmem:[%s16033_s5 + $0x18] sm:$0xff]  ;;  %v8404_v20 = vld [vmem:[%s16033_s5 + $0x10] sm:$0xff]  ;;  %v8403_v12 = vld [vmem:[%s16033_s5 + $0x8] sm:$0xff] }
0x30bd   : > { %v8402_v13 = vld [vmem:[%s16033_s5] sm:$0xff] }
0x3142   : > { %v8190_v35 = vpop.xlane.xlu0 %8189 }
0x3143   : > { %v8191_v37 = vmul.f32 0.03125, %v8190_v35 }
0x3145   : > { %v8192_v40 = vsub.f32 %v8187_v31, %v8191_v37 }
0x3147   : > { %v8193_v41 = vmul.f32 %v8192_v40, %v8192_v40 }
0x3149   : > { %v8194_v33 = vsel %vm2811_vm2, %v8193_v41, 0.0 }
0x314a   : > { %8195 = vadd.xlane.f32.xlu1 %v8194_v33  ;;  %v15564_v33 = vld [vmem:[%s16021_s9] sm:$0xff] }
0x31d3   : > { %v8196_v47 = vpop.xlane.xlu1 %8195 }
0x31d4   : > { %v8197_v49 = vmul.f32 0.03125, %v8196_v47 }
0x31d6   : > { %v8198_v27 = vadd.f32 1e-05, %v8197_v49 }
0x31d8   : > { %13148 = vrsqrt.f32 %v8198_v27 }
0x31e5   : > { %v13149_v26 = vpop.eup %13148 }
0x31e6   : > { %v8200_v54 = vmul.f32 %v13149_v26, %v8192_v40 }
0x31e8   : > { %v8207_v15 = vmul.f32 %v11662_v63, %v8200_v54 }
0x31ea   : > { %v8214_v52 = vadd.f32 %v11663_v50, %v8207_v15 }
0x31ec   : > { %12466 = vmatmul.mubr.msk.f32.vlgmr.msra.gmra.mxu0 %vm2811_vm2, %v8214_v52 }
0x31ed   : > { %12495 = vmatprep.mubr.msk.f32.mxu0 %vm14212_vm6, %v14211_v39  ;;  %12488 = vmatpush3.msra.mxu0 %v8405_v11 }
0x31ee   : > { %12489 = vmatprep.subr.mxu0 %v14211_v39 }
0x31ef   : > { %12490 = vmatpush3.msra.mxu0 %v8404_v20 }
0x31f0   : > { %12491 = vmatprep.subr.mxu0 %v14211_v39 }
0x31f1   : > { %12492 = vmatpush3.msra.mxu0 %v8403_v12 }
0x31f2   : > { %12493 = vmatprep.subr.mxu0 %v14211_v39 }
0x31f3   : > { %12494 = vmatpush3.msra.mxu0 %v8402_v13 }
0x31f4   : > { %12498 = vmatprep.subr.mxu0 %v14211_v39 }
0x32ac   : > { %v8290_v61 = vpop.f32.mrf.mxu0 }
0x32ad   : > { %v8291_v62 = vadd.f32 %v11664_v58, %v8290_v61 }
0x32ae   : > { %v12467_v0 = vpop.f32.mrf.mxu0 }
0x32af   : > { %v8294_v51 = vmax.f32 %v8291_v62, 0.0 }
0x32b1   : > { %12485 = vmatmul.mubr.msk.f32.vlgmr.msra.gmra.mxu1 %vm4177_vm5, %v8294_v51 }
0x32b2   : > { %12505 = vmatprep.mubr.msk.f32.mxu1 %vm14212_vm6, %v14211_v39 }
0x3371   : > { %v8370_v2 = vpop.f32.mrf.mxu1 }
0x3372   : > { %v8371_v16 = vadd.f32 %v11666_v1, %v8370_v2 }
0x3373   : > { %v12486_v3 = vpop.f32.mrf.mxu1 }
0x3374   : > { %v8374_v4 = vadd.f32 %v8371_v16, %v8214_v52 }
0x3376   : > { %v8375_v5 = vsel %vm2811_vm2, %v8374_v4, 0.0 }
0x3377   : > { %8376 = vadd.xlane.f32.xlu0 %v8375_v5 }
0x3400   : > { %v8377_v6 = vpop.xlane.xlu0 %8376 }
0x3401   : > { %v8378_v19 = vmul.f32 0.03125, %v8377_v6 }
0x3403   : > { %v8379_v7 = vsub.f32 %v8374_v4, %v8378_v19 }
0x3405   : > { %v8380_v8 = vmul.f32 %v8379_v7, %v8379_v7 }
0x3407   : > { %v8381_v53 = vsel %vm2811_vm2, %v8380_v8, 0.0 }
0x3408   : > { %8382 = vadd.xlane.f32.xlu0 %v8381_v53 }
0x3491   : > { %v8383_v14 = vpop.xlane.xlu0 %8382 }
0x3492   : > { %v8384_v17 = vmul.f32 0.03125, %v8383_v14 }
0x3494   : > { %v8385_v18 = vadd.f32 1e-05, %v8384_v17 }
0x3496   : > { %13150 = vrsqrt.f32 %v8385_v18 }
0x34a3   : > { %v13151_v22 = vpop.eup %13150 }
0x34a4   : > { %v8387_v10 = vmul.f32 %v13151_v22, %v8379_v7 }
0x34a6   : > { %v8394_v24 = vmul.f32 %v11668_v21, %v8387_v10 }
0x34a8   : > { %v15538_v25 = vadd.f32 %v11669_v23, %v8394_v24 }
0x34aa   : > { %12496 = vmatmul.mubr.msk.f32.vlgmr.msra.gmra.mxu0 %vm2811_vm2, %v15538_v25 }
0x34ab   : > { %12500 = vmatprep.mubr.msk.f32.mxu0 %vm14212_vm6, %v14211_v39 }
0x356a   : > { %v8522_v30 = vpop.f32.mrf.mxu0 }
0x356b   : > { %v15544_v60 = vadd.f32 %v11670_v28, %v8522_v30 }
0x356c   : > { %v12497_v34 = vpop.f32.mrf.mxu0 }
0x356d   : > { %8694 = vrot.lane.b32.xlu1 %v15544_v60, %s16019_s14  ;;  %8527 = vrot.lane.b32.xlu0 %v15544_v60, %s16020_s6 }
0x3571   : > { %8692 = vrot.lane.b32.xlu1 %v15544_v60, %s16001_s15 }
0x35df   : > { %v8528_v31 = vpop.permute.xlu0 %8527  ;;  %v8695_v59 = vpop.permute.xlu1 %8694 }
0x35e0   : > { %12499 = vmatpush3.xpose.msk.msra.mxu0 %vm2899_vm3, %v8528_v31 }
0x35e1   : > { %12508 = vmatprep.subr.mxu0 %v14211_v39 }
0x35e3   : > { %12501 = vmatmul.mubr.msk.f32.vlgmr.msra.gmra.mxu0 %vm2899_vm3, %v15544_v60  ;;  %v8693_v35 = vpop.permute.xlu1 %8692 }
0x35e4   : > { %12509 = vmatpush3.xpose.msk.msra.mxu0 %vm2899_vm3, %v8695_v59  ;;  %12510 = vmatprep.mubr.msk.f32.mxu0 %vm14212_vm6, %v14211_v39 }
0x35e5   : > { %12518 = vmatprep.subr.mxu0 %v14211_v39 }
0x35e7   : > { %12511 = vmatmul.mubr.msk.f32.vlgmr.msra.gmra.mxu0 %vm2899_vm3, %v8693_v35 }
0x35e8   : > { %12520 = vmatprep.mubr.msk.f32.mxu0 %vm14212_vm6, %v14211_v39 }
0x36a3   : > { %v8599_v37 = vpop.f32.mrf.mxu0 }
0x36a4   : > { %v8603_v40 = vmul.f32 0.35355338, %v8599_v37 }
0x36a5   : > { %v12502_v41 = vpop.f32.mrf.mxu0 }
0x36a6   : > { %v8604_v32 = vadd.f32 %v15564_v33, %v8603_v40 }
0x36a7   : > { %v8766_v42 = vpop.f32.mrf.mxu0 }
0x36a8   : > { %v8770_v48 = vmul.f32 0.35355338, %v8766_v42  ;;  %v8605_v43 = vsel %vm2899_vm3, %v8604_v32, -inf }
0x36a9   : > { %8606 = vmax.xlane.f32.xlu1 %v8605_v43  ;;  %v12512_v29 = vpop.f32.mrf.mxu0 }
0x36aa   : > { %v8771_v44 = vadd.f32 %v15564_v33, %v8770_v48 }
0x36ac   : > { %v8772_v45 = vsel %vm2899_vm3, %v8771_v44, -inf }
0x36ad   : > { %8773 = vmax.xlane.f32.xlu0 %v8772_v45 }
0x36ba   : > { %8616 = vrot.lane.b32.xlu1 %v15544_v60, %s16022_s8  ;;  %s16034_s8 = sld [smem:[#allocation126_spill]] }
0x36be   : > { %9007 = vrot.lane.b32.xlu1 %v15544_v60, %s16004_s11 }
0x36c0   : > { %v8407_v51 = vld [vmem:[%s16034_s8] sm:$0xff]  ;;  %v8408_v1 = vld [vmem:[%s16034_s8 + $0x8] sm:$0xff]  ;;  %v8409_v35 = vld [vmem:[%s16034_s8 + $0x10] sm:$0xff] }
0x36c1   : > { %12519 = vmatpush3.msra.mxu0 %v8408_v1  ;;  %v11693_v1 = vld [vmem:[#allocation38] ss:$0 sm:$0xff] }
0x36c2   : > { %9005 = vrot.lane.b32.xlu1 %v15544_v60, %s16005_s7  ;;  %12528 = vmatprep.subr.mxu0 %v14211_v39 }
0x3732   : > { %v8607_v9 = vpop.xlane.xlu1 %8606 }
0x3733   : > { %v8608_v46 = vsub.f32 %v8604_v32, %v8607_v9 }
0x3735   : > { %v8609_v47 = vmul.f32 1.442695, %v8608_v46 }
0x3736   : > { %v8617_v49 = vpop.permute.xlu1 %8616  ;;  %v8774_v27 = vpop.xlane.xlu0 %8773 }
0x3737   : > { %13152 = vpow2.f32 %v8609_v47  ;;  %v8775_v26 = vsub.f32 %v8771_v44, %v8774_v27  ;;  %12504 = vmatpush3.msra.mxu1 %v8617_v49 }
0x3738   : > { %12513 = vmatprep.subr.mxu1 %v14211_v39 }
0x3739   : > { %v8776_v63 = vmul.f32 1.442695, %v8775_v26 }
0x373a   : > { %v9008_v16 = vpop.permute.xlu1 %9007 }
0x373b   : > { %13154 = vpow2.f32 %v8776_v63 }
0x373e   : > { %v9006_v6 = vpop.permute.xlu1 %9005 }
0x3744   : > { %v13153_v54 = vpop.eup %13152 }
0x3745   : > { %v8611_v50 = vsel %vm2899_vm3, %v13153_v54, 0.0 }
0x3746   : > { %8612 = vadd.xlane.f32.xlu0 %v8611_v50  ;;  %v8420_v50 = vld [vmem:[#allocation37 + $0x18] sm:$0xff] }
0x3748   : > { %v13155_v15 = vpop.eup %13154 }
0x3749   : > { %v8778_v52 = vsel %vm2899_vm3, %v13155_v15, 0.0 }
0x374a   : > { %8779 = vadd.xlane.f32.xlu0 %v8778_v52  ;;  %v8419_v52 = vld [vmem:[#allocation37 + $0x10] sm:$0xff] }
0x3760   : > { %8783 = vrot.lane.b32.xlu0 %v15544_v60, %s16003_s1 }
0x37cf   : > { %v8613_v55 = vpop.xlane.xlu0 %8612 }
0x37d0   : > { %13156 = vrcp.f32 %v8613_v55 }
0x37d3   : > { %v8780_v56 = vpop.xlane.xlu0 %8779 }
0x37d4   : > { %13158 = vrcp.f32 %v8780_v56  ;;  %v8418_v56 = vld [vmem:[#allocation37 + $0x8] sm:$0xff] }
0x37d7   : > { %v8784_v61 = vpop.permute.xlu0 %8783 }
0x37dd   : > { %v13157_v57 = vpop.eup %13156 }
0x37de   : > { %v8615_v58 = vmul.f32 %v13157_v57, %v13153_v54  ;;  %v8417_v57 = vld [vmem:[#allocation37] sm:$0xff] }
0x37e0   : > { %12506 = vmatmul.mubr.msk.f32.vlgmr.msra.gmra.mxu1 %vm2899_vm3, %v8615_v58  ;;  %v11688_v58 = vld [vmem:[#allocation34] ss:$0 sm:$0xff] }
0x37e1   : > { %v13159_v62 = vpop.eup %13158  ;;  %12514 = vmatpush3.msra.mxu1 %v8784_v61  ;;  %12515 = vmatprep.mubr.msk.f32.mxu1 %vm14212_vm6, %v14211_v39 }
0x37e2   : > { %v8782_v0 = vmul.f32 %v13159_v62, %v13155_v15  ;;  %12523 = vmatprep.subr.mxu1 %v14211_v39 }
0x37e4   : > { %12516 = vmatmul.mubr.msk.f32.vlgmr.msra.gmra.mxu1 %vm2899_vm3, %v8782_v0 }
0x37e5   : > { %12525 = vmatprep.mubr.msk.f32.mxu1 %vm14212_vm6, %v14211_v39  ;;  %12524 = vmatpush3.msra.mxu1 %v8407_v51 }
0x37e6   : > { %12533 = vmatprep.subr.mxu1 %v14211_v39 }
0x38a0   : > { %v8688_v2 = vpop.f32.mrf.mxu1 }
0x38a1   : > { %12526 = vmatmul.mubr.msk.f32.vlgmr.msra.gmra.mxu1 %vm2899_vm3, %v8688_v2 }
0x38a2   : > { %v12507_v3 = vpop.f32.mrf.mxu1  ;;  %12535 = vmatprep.mubr.msk.f32.mxu1 %vm14212_vm6, %v14211_v39 }
0x38a4   : > { %v8855_v4 = vpop.f32.mrf.mxu1 }
0x38a5   : > { %12521 = vmatmul.mubr.msk.f32.vlgmr.msra.gmra.mxu0 %vm2899_vm3, %v8855_v4 }
0x38a6   : > { %12529 = vmatpush3.xpose.msk.msra.mxu0 %vm2899_vm3, %v9008_v16  ;;  %v12517_v5 = vpop.f32.mrf.mxu1  ;;  %12530 = vmatprep.mubr.msk.f32.mxu0 %vm14212_vm6, %v14211_v39 }
0x38a7   : > { %12538 = vmatprep.subr.mxu0 %v14211_v39 }
0x38a9   : > { %12531 = vmatmul.mubr.msk.f32.vlgmr.msra.gmra.mxu0 %vm2899_vm3, %v9006_v6 }
0x38aa   : > { %12540 = vmatprep.mubr.msk.f32.mxu0 %vm14212_vm6, %v14211_v39  ;;  %12539 = vmatpush3.msra.mxu0 %v8409_v35 }
0x38ab   : > { %12548 = vmatprep.subr.mxu0 %v14211_v39 }
0x3961   : > { %v9001_v19 = vpop.f32.mrf.mxu1 }
0x3963   : > { %v12527_v7 = vpop.f32.mrf.mxu1 }
0x3965   : > { %v8928_v8 = vpop.f32.mrf.mxu0 }
0x3966   : > { %v9002_v53 = vadd.f32 %v9001_v19, %v8928_v8 }
0x3967   : > { %v12522_v11 = vpop.f32.mrf.mxu0 }
0x3969   : > { %v9079_v20 = vpop.f32.mrf.mxu0 }
0x396a   : > { %v9083_v12 = vmul.f32 0.35355338, %v9079_v20 }
0x396b   : > { %v12532_v13 = vpop.f32.mrf.mxu0 }
0x396c   : > { %v9084_v14 = vadd.f32 %v15564_v33, %v9083_v12 }
0x396e   : > { %v9085_v17 = vsel %vm2899_vm3, %v9084_v14, -inf }
0x396f   : > { %9086 = vmax.xlane.f32.xlu1 %v9085_v17 }
0x3980   : > { %9248 = vrot.lane.b32.xlu1 %v15544_v60, %s16006_s23 }
0x3984   : > { %9246 = vrot.lane.b32.xlu1 %v15544_v60, %s16007_s2 }
0x39f8   : > { %v9087_v18 = vpop.xlane.xlu1 %9086 }
0x39f9   : > { %v9088_v22 = vsub.f32 %v9084_v14, %v9087_v18 }
0x39fb   : > { %v9089_v21 = vmul.f32 1.442695, %v9088_v22  ;;  %v11689_v22 = vld [vmem:[#allocation46] ss:$0 sm:$0xff] }
0x39fc   : > { %v9249_v34 = vpop.permute.xlu1 %9248 }
0x39fd   : > { %13160 = vpow2.f32 %v9089_v21 }
0x3a00   : > { %v9247_v59 = vpop.permute.xlu1 %9246 }
0x3a0a   : > { %v13161_v10 = vpop.eup %13160 }
0x3a0b   : > { %v9091_v23 = vsel %vm2899_vm3, %v13161_v10, 0.0 }
0x3a0c   : > { %9092 = vadd.xlane.f32.xlu0 %v9091_v23 }
0x3a22   : > { %9096 = vrot.lane.b32.xlu0 %v15544_v60, %s16008_s3 }
0x3a95   : > { %v9093_v24 = vpop.xlane.xlu0 %9092 }
0x3a96   : > { %13162 = vrcp.f32 %v9093_v24 }
0x3a99   : > { %v9097_v28 = vpop.permute.xlu0 %9096 }
0x3a9a   : > { %12534 = vmatpush3.msra.mxu1 %v9097_v28  ;;  %v11691_v28 = vld [vmem:[#allocation35] ss:$0 sm:$0xff] }
0x3a9b   : > { %12543 = vmatprep.subr.mxu1 %v14211_v39 }
0x3aa3   : > { %v13163_v30 = vpop.eup %13162 }
0x3aa4   : > { %v9095_v31 = vmul.f32 %v13163_v30, %v13161_v10  ;;  %v11690_v10 = vld [vmem:[#allocation47] ss:$0 sm:$0xff] }
0x3aa6   : > { %12536 = vmatmul.mubr.msk.f32.vlgmr.msra.gmra.mxu1 %vm2899_vm3, %v9095_v31 }
0x3aa7   : > { %12544 = vmatpush3.xpose.msk.msra.mxu1 %vm2899_vm3, %v9249_v34  ;;  %12545 = vmatprep.mubr.msk.f32.mxu1 %vm14212_vm6, %v14211_v39 }
0x3aa8   : > { %12553 = vmatprep.subr.mxu1 %v14211_v39 }
0x3aaa   : > { %12546 = vmatmul.mubr.msk.f32.vlgmr.msra.gmra.mxu1 %vm2899_vm3, %v9247_v59 }
0x3aab   : > { %12555 = vmatprep.mubr.msk.f32.mxu1 %vm14212_vm6, %v14211_v39 }
0x3b66   : > { %v9168_v37 = vpop.f32.mrf.mxu1 }
0x3b67   : > { %12541 = vmatmul.mubr.msk.f32.vlgmr.msra.gmra.mxu0 %vm2899_vm3, %v9168_v37 }
0x3b68   : > { %v12537_v40 = vpop.f32.mrf.mxu1  ;;  %12550 = vmatprep.mubr.msk.f32.mxu0 %vm14212_vm6, %v14211_v39 }
0x3b69   : > { %v15687_v40 = vld [vmem:[%s16029_s12] sm:$0xff] }
0x3b6a   : > { %v9320_v41 = vpop.f32.mrf.mxu1 }
0x3b6b   : > { %v9324_v32 = vmul.f32 0.35355338, %v9320_v41 }
0x3b6c   : > { %v12547_v42 = vpop.f32.mrf.mxu1 }
0x3b6d   : > { %v9325_v48 = vadd.f32 %v15564_v33, %v9324_v32  ;;  %v8410_v33 = vld [vmem:[%s16034_s8 + $0x18] sm:$0xff] }
0x3b6e   : > { %12554 = vmatpush3.msra.mxu1 %v8410_v33 }
0x3b6f   : > { %v9326_v43 = vsel %vm2899_vm3, %v9325_v48, -inf  ;;  %12569 = vmatprep.subr.mxu1 %v8420_v50 }
0x3b70   : > { %9327 = vmax.xlane.f32.xlu0 %v9326_v43 }
0x3b86   : > { %9337 = vrot.lane.b32.xlu0 %v15544_v60, %s16009_s4  ;;  %s16035_s4 = sld [smem:[#allocation128_spill]] }
0x3b8c   : > { %v8414_v11 = vld [vmem:[%s16035_s4 + $0x10] sm:$0xff]  ;;  %v8413_v20 = vld [vmem:[%s16035_s4 + $0x8] sm:$0xff]  ;;  %v8412_v12 = vld [vmem:[%s16035_s4] sm:$0xff] }
0x3bf9   : > { %v9328_v29 = vpop.xlane.xlu0 %9327 }
0x3bfa   : > { %v9329_v44 = vsub.f32 %v9325_v48, %v9328_v29 }
0x3bfc   : > { %v9330_v45 = vmul.f32 1.442695, %v9329_v44 }
0x3bfd   : > { %v9338_v9 = vpop.permute.xlu0 %9337 }
0x3bfe   : > { %13164 = vpow2.f32 %v9330_v45  ;;  %12549 = vmatpush3.msra.mxu0 %v9338_v9 }
0x3bff   : > { %12558 = vmatprep.subr.mxu0 %v14211_v39 }
0x3c0b   : > { %v13165_v46 = vpop.eup %13164 }
0x3c0c   : > { %v9332_v47 = vsel %vm2899_vm3, %v13165_v46, 0.0 }
0x3c0d   : > { %9333 = vadd.xlane.f32.xlu1 %v9332_v47 }
0x3c27   : > { %v9241_v49 = vpop.f32.mrf.mxu0 }
0x3c28   : > { %v9245_v27 = vadd.f32 %v9241_v49, %v9002_v53  ;;  %v8415_v53 = vld [vmem:[%s16035_s4 + $0x18] sm:$0xff] }
0x3c29   : > { %v12542_v26 = vpop.f32.mrf.mxu0 }
0x3c2a   : > { %v8422_v26 = vld [vmem:[#allocation40] sm:$0xff] }
0x3c96   : > { %v9334_v63 = vpop.xlane.xlu1 %9333 }
0x3c97   : > { %13166 = vrcp.f32 %v9334_v63 }
0x3ca4   : > { %v13167_v60 = vpop.eup %13166 }
0x3ca5   : > { %v9336_v54 = vmul.f32 %v13167_v60, %v13165_v46 }
0x3ca7   : > { %12551 = vmatmul.mubr.msk.f32.vlgmr.msra.gmra.mxu0 %vm2899_vm3, %v9336_v54 }
0x3ca8   : > { %12566 = vmatprep.mubr.msk.f32.mxu0 %vm14212_vm6, %v14211_v39  ;;  %12559 = vmatpush3.msra.mxu0 %v8415_v53 }
0x3ca9   : > { %12560 = vmatprep.subr.mxu0 %v14211_v39 }
0x3caa   : > { %12561 = vmatpush3.msra.mxu0 %v8414_v11 }
0x3cab   : > { %12562 = vmatprep.subr.mxu0 %v14211_v39 }
0x3cac   : > { %12563 = vmatpush3.msra.mxu0 %v8413_v20 }
0x3cad   : > { %12564 = vmatprep.subr.mxu0 %v14211_v39 }
0x3cae   : > { %12565 = vmatpush3.msra.mxu0 %v8412_v12 }
0x3caf   : > { %12580 = vmatprep.subr.mxu0 %v14211_v39 }
0x3d67   : > { %v9409_v15 = vpop.f32.mrf.mxu0 }
0x3d68   : > { %12556 = vmatmul.mubr.msk.f32.vlgmr.msra.gmra.mxu1 %vm2899_vm3, %v9409_v15 }
0x3d69   : > { %12570 = vmatpush3.msra.mxu1 %v8420_v50  ;;  %v12552_v55 = vpop.f32.mrf.mxu0  ;;  %12577 = vmatprep.mubr.msk.f32.mxu1 %vm2811_vm2, %v15345_v36 }
0x3d6a   : > { %12571 = vmatprep.subr.mxu1 %v8419_v52 }
0x3d6b   : > { %12572 = vmatpush3.msra.mxu1 %v8419_v52 }
0x3d6c   : > { %12573 = vmatprep.subr.mxu1 %v8418_v56 }
0x3d6d   : > { %12574 = vmatpush3.msra.mxu1 %v8418_v56 }
0x3d6e   : > { %12575 = vmatprep.subr.mxu1 %v8417_v57 }
0x3d6f   : > { %12576 = vmatpush3.msra.mxu1 %v8417_v57 }
0x3d70   : > { %12578 = vmatmul.mubr.msk.f32.vlgmr.msra.gmra.mxu1 %vm2811_vm2, %v15349_v38  ;;  %12587 = vmatprep.subr.mxu1 %v14211_v39 }
0x3d71   : > { %12591 = vmatprep.mubr.msk.f32.mxu1 %vm14212_vm6, %v14211_v39 }
0x3e28   : > { %v9482_v61 = vpop.f32.mrf.mxu1 }
0x3e29   : > { %v9486_v62 = vadd.f32 %v9482_v61, %v9245_v27 }
0x3e2a   : > { %v12557_v36 = vpop.f32.mrf.mxu1 }
0x3e2b   : > { %v9493_v0 = vadd.f32 %v11688_v58, %v9486_v62 }
0x3e2d   : > { %v9494_v51 = vadd.f32 %v9493_v0, %v15538_v25 }
0x3e2f   : > { %v9495_v2 = vsel %vm2811_vm2, %v9494_v51, 0.0 }
0x3e30   : > { %v12579_v16 = vpop.f32.mrf.mxu1  ;;  %9496 = vadd.xlane.f32.xlu1 %v9495_v2 }
0x3e31   : > { %v15646_v3 = vadd.f32 %v12579_v16, %v11693_v1 }
0x3e32   : > { %v9673_v38 = vpop.f32.mrf.mxu1 }
0x3e33   : > { %9776 = vrot.lane.b32.xlu0 %v15646_v3, %s16020_s6  ;;  %v15652_v4 = vadd.f32 %v11693_v1, %v9673_v38 }
0x3e37   : > { %9857 = vrot.lane.b32.xlu0 %v15646_v3, %s16001_s15 }
0x3e3b   : > { %9855 = vrot.lane.b32.xlu0 %v15652_v4, %s16001_s15 }
0x3ea5   : > { %v9777_v25 = vpop.permute.xlu0 %9776 }
0x3ea6   : > { %12588 = vmatpush3.msra.mxu1 %v9777_v25  ;;  %v8423_v25 = vld [vmem:[#allocation40 + $0x8] sm:$0xff] }
0x3ea7   : > { %12589 = vmatprep.subr.mxu1 %v14211_v39 }
0x3ea9   : > { %v9858_v47 = vpop.permute.xlu0 %9857 }
0x3ead   : > { %v9856_v33 = vpop.permute.xlu0 %9855 }
0x3eb9   : > { %v9497_v5 = vpop.xlane.xlu1 %9496 }
0x3eba   : > { %v9498_v6 = vmul.f32 0.03125, %v9497_v5 }
0x3ebc   : > { %v9499_v19 = vsub.f32 %v9494_v51, %v9498_v6 }
0x3ebe   : > { %v9500_v7 = vmul.f32 %v9499_v19, %v9499_v19 }
0x3ec0   : > { %v9501_v8 = vsel %vm2811_vm2, %v9500_v7, 0.0 }
0x3ec1   : > { %9502 = vadd.xlane.f32.xlu1 %v9501_v8 }
0x3f4a   : > { %v9503_v13 = vpop.xlane.xlu1 %9502 }
0x3f4b   : > { %v9504_v14 = vmul.f32 0.03125, %v9503_v13 }
0x3f4d   : > { %v9505_v17 = vadd.f32 1e-05, %v9504_v14 }
0x3f4f   : > { %13168 = vrsqrt.f32 %v9505_v17 }
0x3f5c   : > { %v13169_v18 = vpop.eup %13168 }
0x3f5d   : > { %v9507_v21 = vmul.f32 %v13169_v18, %v9499_v19 }
0x3f5f   : > { %v9514_v23 = vmul.f32 %v11689_v22, %v9507_v21 }
0x3f61   : > { %v15666_v24 = vadd.f32 %v11690_v10, %v9514_v23 }
0x3f63   : > { %12567 = vmatmul.mubr.msk.f32.vlgmr.msra.gmra.mxu0 %vm2811_vm2, %v15666_v24 }
0x3f64   : > { %12581 = vmatpush3.xpose.msk.msra.mxu0 %vm2899_vm3, %v15646_v3  ;;  %12584 = vmatprep.mubr.msk.f32.mxu0 %vm14212_vm6, %v14211_v39 }
0x3f65   : > { %12582 = vmatprep.subr.mxu0 %v14211_v39 }
0x3f68   : > { %12583 = vmatpush3.xpose.msk.msra.mxu0 %vm2899_vm3, %v15652_v4 }
0x3f69   : > { %12601 = vmatprep.subr.mxu0 %v14211_v39 }
0x4023   : > { %v9597_v30 = vpop.f32.mrf.mxu0 }
0x4024   : > { %v15678_v34 = vadd.f32 %v11691_v28, %v9597_v30 }
0x4025   : > { %v12568_v31 = vpop.f32.mrf.mxu0 }
0x4026   : > { %9853 = vrot.lane.b32.xlu0 %v15678_v34, %s16001_s15  ;;  %12585 = vmatmul.mubr.msk.f32.vlgmr.msra.gmra.mxu0 %vm2899_vm3, %v15678_v34 }
0x4027   : > { %12605 = vmatprep.mubr.msk.f32.mxu0 %vm14212_vm6, %v14211_v39 }
0x4098   : > { %v9854_v27 = vpop.permute.xlu0 %9853 }
0x40e6   : > { %v9757_v59 = vpop.f32.mrf.mxu0 }
0x40e7   : > { %v9761_v35 = vmul.f32 0.35355338, %v9757_v59 }
0x40e8   : > { %v12586_v37 = vpop.f32.mrf.mxu0 }
0x40e9   : > { %v9762_v41 = vadd.f32 %v15687_v40, %v9761_v35 }
0x40eb   : > { %v9763_v32 = vsel %vm2985_vm4, %v9762_v41, -inf }
0x40ec   : > { %9764 = vmax.xlane.f32.xlu1 %v9763_v32 }
0x4175   : > { %v9765_v42 = vpop.xlane.xlu1 %9764 }
0x4176   : > { %v9766_v48 = vsub.f32 %v9762_v41, %v9765_v42 }
0x4178   : > { %v9767_v43 = vmul.f32 1.442695, %v9766_v48 }
0x417a   : > { %13170 = vpow2.f32 %v9767_v43 }
0x4187   : > { %v13171_v29 = vpop.eup %13170 }
0x4188   : > { %v9769_v44 = vsel %vm2985_vm4, %v13171_v29, 0.0 }
0x4189   : > { %9770 = vadd.xlane.f32.xlu1 %v9769_v44 }
0x419a   : > { %9774 = vrot.lane.b32.xlu1 %v15652_v4, %s16020_s6 }
0x4212   : > { %v9771_v45 = vpop.xlane.xlu1 %9770 }
0x4213   : > { %13172 = vrcp.f32 %v9771_v45 }
0x4216   : > { %v9775_v9 = vpop.permute.xlu1 %9774 }
0x4217   : > { %12590 = vmatpush3.msra.mxu1 %v9775_v9 }
0x4218   : > { %12594 = vmatprep.subr.mxu1 %v14211_v39 }
0x4220   : > { %v13173_v46 = vpop.eup %13172 }
0x4221   : > { %v9773_v49 = vmul.f32 %v13173_v46, %v13171_v29  ;;  %v8424_v46 = vld [vmem:[#allocation40 + $0x10] sm:$0xff] }
0x4223   : > { %12592 = vmatmul.mubr.msk.f32.vlgmr.msra.gmra.mxu1 %vm2985_vm4, %v9773_v49 }
0x4224   : > { %12595 = vmatpush3.xpose.msk.msra.mxu1 %vm2899_vm3, %v9858_v47  ;;  %12598 = vmatprep.mubr.msk.f32.mxu1 %vm14212_vm6, %v14211_v39 }
0x4225   : > { %12596 = vmatprep.subr.mxu1 %v14211_v39 }
0x4228   : > { %12597 = vmatpush3.xpose.msk.msra.mxu1 %vm2899_vm3, %v9856_v33 }
0x4229   : > { %12613 = vmatprep.subr.mxu1 %v14211_v39 }
0x422b   : > { %12599 = vmatmul.mubr.msk.f32.vlgmr.msra.gmra.mxu1 %vm2899_vm3, %v9854_v27 }
0x422c   : > { %12615 = vmatprep.mubr.msk.f32.mxu1 %vm14212_vm6, %v14211_v39  ;;  %12614 = vmatpush3.msra.mxu1 %v8422_v26 }
0x422d   : > { %12625 = vmatprep.subr.mxu1 %v14211_v39 }
0x42e3   : > { %v9849_v63 = vpop.f32.mrf.mxu1 }
0x42e4   : > { %12616 = vmatmul.mubr.msk.f32.vlgmr.msra.gmra.mxu1 %vm2899_vm3, %v9849_v63 }
0x42e5   : > { %v12593_v60 = vpop.f32.mrf.mxu1  ;;  %12629 = vmatprep.mubr.msk.f32.mxu1 %vm14212_vm6, %v14211_v39 }
0x42e6   : > { %v8425_v60 = vld [vmem:[#allocation40 + $0x18] sm:$0xff] }
0x42eb   : > { %v9931_v54 = vpop.f32.mrf.mxu1 }
0x42ec   : > { %v9935_v50 = vmul.f32 0.35355338, %v9931_v54 }
0x42ed   : > { %v12600_v15 = vpop.f32.mrf.mxu1 }
0x42ee   : > { %v9936_v52 = vadd.f32 %v15687_v40, %v9935_v50 }
0x42f0   : > { %v9937_v55 = vsel %vm2985_vm4, %v9936_v52, -inf }
0x42f1   : > { %9938 = vmax.xlane.f32.xlu0 %v9937_v55 }
0x4307   : > { %9950 = vrot.lane.b32.xlu0 %v15646_v3, %s16019_s14 }
0x430b   : > { %10177 = vrot.lane.b32.xlu0 %v15646_v3, %s16005_s7 }
0x430f   : > { %10173 = vrot.lane.b32.xlu0 %v15678_v34, %s16005_s7 }
0x4313   : > { %10423 = vrot.lane.b32.xlu0 %v15652_v4, %s16007_s2 }
0x437a   : > { %v9939_v56 = vpop.xlane.xlu0 %9938 }
0x437b   : > { %v9940_v57 = vsub.f32 %v9936_v52, %v9939_v56 }
0x437d   : > { %v9941_v58 = vmul.f32 1.442695, %v9940_v57  ;;  %v11716_v57 = vld [vmem:[#allocation41] ss:$0 sm:$0xff] }
0x437e   : > { %v9951_v61 = vpop.permute.xlu0 %9950 }
0x437f   : > { %13174 = vpow2.f32 %v9941_v58  ;;  %12602 = vmatpush3.msra.mxu0 %v9951_v61 }
0x4380   : > { %12603 = vmatprep.subr.mxu0 %v14211_v39 }
0x4382   : > { %v10178_v6 = vpop.permute.xlu0 %10177 }
0x4386   : > { %v10174_v8 = vpop.permute.xlu0 %10173 }
0x438a   : > { %v10424_v11 = vpop.permute.xlu0 %10423 }
0x438c   : > { %v13175_v62 = vpop.eup %13174 }
0x438d   : > { %v9943_v36 = vsel %vm2985_vm4, %v13175_v62, 0.0 }
0x438e   : > { %9944 = vadd.xlane.f32.xlu1 %v9943_v36 }
0x439f   : > { %9948 = vrot.lane.b32.xlu1 %v15652_v4, %s16019_s14 }
0x43a3   : > { %10175 = vrot.lane.b32.xlu1 %v15652_v4, %s16005_s7  ;;  %s16037_s7 = sld [smem:[#allocation134_spill]] }
0x43a4   : > { %v15725_v0 = vpop.f32.mrf.mxu1 }
0x43a6   : > { %v12617_v51 = vpop.f32.mrf.mxu1 }
0x43a7   : > { %10425 = vrot.lane.b32.xlu1 %v15646_v3, %s16007_s2 }
0x43ab   : > { %10421 = vrot.lane.b32.xlu1 %v15678_v34, %s16007_s2  ;;  %s16039_s2 = sshll.u32 %s16041_s24, 3 }
0x43ac   : > { %s2665_s3 = scalar_lea.vmem %s14599_s13, %s16039_s2 }
0x4417   : > { %v9945_v1 = vpop.xlane.xlu1 %9944 }
0x4418   : > { %13176 = vrcp.f32 %v9945_v1 }
0x441b   : > { %v9949_v2 = vpop.permute.xlu1 %9948 }
0x441c   : > { %12604 = vmatpush3.msra.mxu0 %v9949_v2 }
0x441d   : > { %12608 = vmatprep.subr.mxu0 %v14211_v39 }
0x441f   : > { %v10176_v7 = vpop.permute.xlu1 %10175 }
0x4423   : > { %v10426_v53 = vpop.permute.xlu1 %10425 }
0x4425   : > { %v13177_v16 = vpop.eup %13176 }
0x4426   : > { %v9947_v38 = vmul.f32 %v13177_v16, %v13175_v62 }
0x4427   : > { %v10422_v20 = vpop.permute.xlu1 %10421 }
0x4428   : > { %12606 = vmatmul.mubr.msk.f32.vlgmr.msra.gmra.mxu0 %vm2985_vm4, %v9947_v38 }
0x4429   : > { %12609 = vmatpush3.msra.mxu0 %v8423_v25  ;;  %12610 = vmatprep.mubr.msk.f32.mxu0 %vm14212_vm6, %v14211_v39 }
0x442a   : > { %12618 = vmatprep.subr.mxu0 %v14211_v39 }
0x44e8   : > { %v10023_v5 = vpop.f32.mrf.mxu0 }
0x44e9   : > { %12611 = vmatmul.mubr.msk.f32.vlgmr.msra.gmra.mxu0 %vm2899_vm3, %v10023_v5 }
0x44ea   : > { %12619 = vmatpush3.xpose.msk.msra.mxu0 %vm2899_vm3, %v10178_v6  ;;  %v12607_v19 = vpop.f32.mrf.mxu0  ;;  %12622 = vmatprep.mubr.msk.f32.mxu0 %vm14212_vm6, %v14211_v39 }
0x44eb   : > { %12620 = vmatprep.subr.mxu0 %v14211_v39 }
0x44ee   : > { %12621 = vmatpush3.xpose.msk.msra.mxu0 %vm2899_vm3, %v10176_v7  ;;  %v8439_v7 = vld [vmem:[%s16037_s7 + $0x38] sm:$0xff] }
0x44ef   : > { %12637 = vmatprep.subr.mxu0 %v14211_v39 }
0x44f1   : > { %12623 = vmatmul.mubr.msk.f32.vlgmr.msra.gmra.mxu0 %vm2899_vm3, %v10174_v8  ;;  %v8438_v8 = vld [vmem:[%s16037_s7 + $0x30] sm:$0xff] }
0x44f2   : > { %12638 = vmatpush3.xpose.msk.msra.mxu0 %vm2899_vm3, %v10426_v53  ;;  %12641 = vmatprep.mubr.msk.f32.mxu0 %vm14212_vm6, %v14211_v39  ;;  %v8437_v53 = vld [vmem:[%s16037_s7 + $0x28] sm:$0xff] }
0x44f3   : > { %12639 = vmatprep.subr.mxu0 %v14211_v39 }
0x44f6   : > { %12640 = vmatpush3.xpose.msk.msra.mxu0 %vm2899_vm3, %v10424_v11  ;;  %v8436_v11 = vld [vmem:[%s16037_s7 + $0x20] sm:$0xff] }
0x44f7   : > { %12656 = vmatprep.subr.mxu0 %v14211_v39 }
0x44f9   : > { %12642 = vmatmul.mubr.msk.f32.vlgmr.msra.gmra.mxu0 %vm2899_vm3, %v10422_v20  ;;  %v8435_v20 = vld [vmem:[%s16037_s7 + $0x18] sm:$0xff] }
0x44fa   : > { %12664 = vmatprep.mubr.msk.f32.mxu0 %vm14212_vm6, %v14211_v39 }
0x45a9   : > { %v15753_v12 = vpop.f32.mrf.mxu0 }
0x45aa   : > { %v10170_v54 = vadd.f32 %v15725_v0, %v15753_v12 }
0x45ab   : > { %v12612_v13 = vpop.f32.mrf.mxu0 }
0x45b1   : > { %v10251_v14 = vpop.f32.mrf.mxu0 }
0x45b2   : > { %v10255_v17 = vmul.f32 0.35355338, %v10251_v14 }
0x45b3   : > { %v12624_v18 = vpop.f32.mrf.mxu0 }
0x45b4   : > { %v10256_v22 = vadd.f32 %v15687_v40, %v10255_v17  ;;  %v11717_v18 = vld [vmem:[#allocation49] ss:$0 sm:$0xff] }
0x45b6   : > { %v10257_v21 = vsel %vm2985_vm4, %v10256_v22, -inf }
0x45b7   : > { %10258 = vmax.xlane.f32.xlu0 %v10257_v21  ;;  %v11718_v21 = vld [vmem:[#allocation50] ss:$0 sm:$0xff] }
0x45b9   : > { %v10499_v10 = vpop.f32.mrf.mxu0 }
0x45ba   : > { %v10503_v28 = vmul.f32 0.35355338, %v10499_v10 }
0x45bb   : > { %v12643_v23 = vpop.f32.mrf.mxu0 }
0x45bc   : > { %v10504_v30 = vadd.f32 %v15687_v40, %v10503_v28  ;;  %v8434_v28 = vld [vmem:[%s16037_s7 + $0x10] sm:$0xff] }
0x45be   : > { %v10505_v34 = vsel %vm2985_vm4, %v10504_v30, -inf }
0x45cd   : > { %10270 = vrot.lane.b32.xlu0 %v15646_v3, %s16004_s11 }
0x45ec   : > { %10506 = vmax.xlane.f32.xlu0 %v10505_v34  ;;  %v8432_v34 = vld [vmem:[%s16037_s7] sm:$0xff] }
0x4602   : > { %10518 = vrot.lane.b32.xlu0 %v15646_v3, %s16006_s23 }
0x4640   : > { %v10259_v31 = vpop.xlane.xlu0 %10258 }
0x4641   : > { %v10260_v59 = vsub.f32 %v10256_v22, %v10259_v31  ;;  %v11719_v31 = vld [vmem:[#allocation43] ss:$0 sm:$0xff] }
0x4643   : > { %v10261_v35 = vmul.f32 1.442695, %v10260_v59 }
0x4644   : > { %v10271_v37 = vpop.permute.xlu0 %10270 }
0x4645   : > { %13178 = vpow2.f32 %v10261_v35  ;;  %12626 = vmatpush3.msra.mxu1 %v10271_v37 }
0x4646   : > { %12627 = vmatprep.subr.mxu1 %v14211_v39 }
0x4652   : > { %v13179_v41 = vpop.eup %13178 }
0x4653   : > { %v10263_v32 = vsel %vm2985_vm4, %v13179_v41, 0.0 }
0x4654   : > { %10264 = vadd.xlane.f32.xlu1 %v10263_v32  ;;  %v11721_v32 = vld [vmem:[#allocation44] ss:$0 sm:$0xff] }
0x4665   : > { %10268 = vrot.lane.b32.xlu1 %v15652_v4, %s16004_s11  ;;  %s16038_s11 = sld [smem:[#allocation83_spill]] }
0x4675   : > { %v10507_v40 = vpop.xlane.xlu0 %10506 }
0x4676   : > { %v10508_v42 = vsub.f32 %v10504_v30, %v10507_v40  ;;  %v8433_v30 = vld [vmem:[%s16037_s7 + $0x8] sm:$0xff] }
0x4678   : > { %v10509_v48 = vmul.f32 1.442695, %v10508_v42 }
0x4679   : > { %v10519_v33 = vpop.permute.xlu0 %10518 }
0x467a   : > { %13180 = vpow2.f32 %v10509_v48 }
0x4687   : > { %v13181_v3 = vpop.eup %13180 }
0x4688   : > { %v10511_v43 = vsel %vm2985_vm4, %v13181_v3, 0.0 }
0x4689   : > { %10512 = vadd.xlane.f32.xlu1 %v10511_v43 }
0x469a   : > { %10516 = vrot.lane.b32.xlu1 %v15652_v4, %s16006_s23  ;;  %s16036_s23 = sld [smem:[#allocation132_spill]] }
0x46a0   : > { %v8430_v5 = vld [vmem:[%s16036_s23 + $0x18] sm:$0xff]  ;;  %v8429_v6 = vld [vmem:[%s16036_s23 + $0x10] sm:$0xff]  ;;  %v8427_v19 = vld [vmem:[%s16036_s23] sm:$0xff] }
0x46a1   : > { %12657 = vmatpush3.msra.mxu0 %v8430_v5 }
0x46a2   : > { %12658 = vmatprep.subr.mxu0 %v14211_v39 }
0x46a3   : > { %12659 = vmatpush3.msra.mxu0 %v8429_v6 }
0x46a4   : > { %12660 = vmatprep.subr.mxu0 %v14211_v39 }
0x46dd   : > { %v10265_v29 = vpop.xlane.xlu1 %10264 }
0x46de   : > { %13182 = vrcp.f32 %v10265_v29 }
0x46e1   : > { %v10269_v44 = vpop.permute.xlu1 %10268 }
0x46e2   : > { %12628 = vmatpush3.msra.mxu1 %v10269_v44 }
0x46e3   : > { %12632 = vmatprep.subr.mxu1 %v14211_v39 }
0x46eb   : > { %v13183_v45 = vpop.eup %13182 }
0x46ec   : > { %v10267_v9 = vmul.f32 %v13183_v45, %v13179_v41 }
0x46ee   : > { %12630 = vmatmul.mubr.msk.f32.vlgmr.msra.gmra.mxu1 %vm2985_vm4, %v10267_v9 }
0x46ef   : > { %12633 = vmatpush3.msra.mxu1 %v8424_v46  ;;  %12634 = vmatprep.mubr.msk.f32.mxu1 %vm14212_vm6, %v14211_v39 }
0x46f0   : > { %12644 = vmatprep.subr.mxu1 %v14211_v39 }
0x4712   : > { %v10513_v47 = vpop.xlane.xlu1 %10512 }
0x4713   : > { %13184 = vrcp.f32 %v10513_v47  ;;  %v2681_v47 = vld [vmem:[%s16038_s11 + $0x18] sm:$0xff] }
0x4716   : > { %v10517_v26 = vpop.permute.xlu1 %10516 }
0x4720   : > { %v13185_v4 = vpop.eup %13184 }
0x4721   : > { %v10515_v63 = vmul.f32 %v13185_v4, %v13181_v3  ;;  %v2680_v4 = vld [vmem:[%s16038_s11 + $0x10] sm:$0xff] }
0x47ae   : > { %v10343_v49 = vpop.f32.mrf.mxu1 }
0x47af   : > { %12635 = vmatmul.mubr.msk.f32.vlgmr.msra.gmra.mxu1 %vm2899_vm3, %v10343_v49  ;;  %v2679_v49 = vld [vmem:[%s16038_s11 + $0x8] sm:$0xff] }
0x47b0   : > { %12645 = vmatpush3.msra.mxu1 %v10519_v33  ;;  %v12631_v27 = vpop.f32.mrf.mxu1  ;;  %12648 = vmatprep.mubr.msk.f32.mxu1 %vm14212_vm6, %v14211_v39  ;;  %v2678_v33 = vld [vmem:[%s16038_s11] sm:$0xff] }
0x47b1   : > { %12646 = vmatprep.subr.mxu1 %v14211_v39 }
0x47b2   : > { %12647 = vmatpush3.msra.mxu1 %v10517_v26 }
0x47b3   : > { %12649 = vmatmul.mubr.msk.f32.vlgmr.msra.gmra.mxu1 %vm2985_vm4, %v10515_v63  ;;  %12651 = vmatprep.subr.mxu1 %v14211_v39 }
0x47b4   : > { %12653 = vmatprep.mubr.msk.f32.mxu1 %vm14212_vm6, %v14211_v39  ;;  %12652 = vmatpush3.msra.mxu1 %v8425_v60 }
0x47b5   : > { %12667 = vmatprep.subr.mxu1 %v14211_v39 }
0x486f   : > { %v10416_v50 = vpop.f32.mrf.mxu1 }
0x4870   : > { %v10420_v15 = vadd.f32 %v10416_v50, %v10170_v54  ;;  %v11723_v54 = vld [vmem:[#allocation52] ss:$0 sm:$0xff] }
0x4871   : > { %v12636_v52 = vpop.f32.mrf.mxu1 }
0x4873   : > { %v10591_v55 = vpop.f32.mrf.mxu1 }
0x4874   : > { %12654 = vmatmul.mubr.msk.f32.vlgmr.msra.gmra.mxu1 %vm2899_vm3, %v10591_v55 }
0x4875   : > { %v12650_v56 = vpop.f32.mrf.mxu1  ;;  %12683 = vmatprep.mubr.msk.f32.mxu1 %vm14212_vm6, %v14211_v39  ;;  %12668 = vmatpush3.msra.mxu1 %v8439_v7 }
0x4876   : > { %12669 = vmatprep.subr.mxu1 %v14211_v39  ;;  %v11725_v56 = vld [vmem:[#allocation2] ss:$0 sm:$0xff] }
0x4877   : > { %12670 = vmatpush3.msra.mxu1 %v8438_v8 }
0x4878   : > { %12671 = vmatprep.subr.mxu1 %v14211_v39 }
0x4879   : > { %12672 = vmatpush3.msra.mxu1 %v8437_v53 }
0x487a   : > { %12673 = vmatprep.subr.mxu1 %v14211_v39 }
0x487b   : > { %12674 = vmatpush3.msra.mxu1 %v8436_v11 }
0x487c   : > { %12675 = vmatprep.subr.mxu1 %v14211_v39 }
0x487d   : > { %12676 = vmatpush3.msra.mxu1 %v8435_v20 }
0x487e   : > { %12677 = vmatprep.subr.mxu1 %v14211_v39 }
0x487f   : > { %12678 = vmatpush3.msra.mxu1 %v8434_v28 }
0x4880   : > { %12679 = vmatprep.subr.mxu1 %v14211_v39 }
0x4881   : > { %12680 = vmatpush3.msra.mxu1 %v8433_v30 }
0x4882   : > { %12681 = vmatprep.subr.mxu1 %v14211_v39 }
0x4883   : > { %12682 = vmatpush3.msra.mxu1 %v8432_v34 }
0x4934   : > { %v10664_v58 = vpop.f32.mrf.mxu1 }
0x4935   : > { %v10668_v61 = vadd.f32 %v10664_v58, %v10420_v15  ;;  %v11724_v15 = vld [vmem:[#allocation53] ss:$0 sm:$0xff] }
0x4936   : > { %v12655_v62 = vpop.f32.mrf.mxu1 }
0x4937   : > { %v10675_v36 = vadd.f32 %v11716_v57, %v10668_v61 }
0x4939   : > { %v10676_v0 = vadd.f32 %v10675_v36, %v15666_v24  ;;  %v8428_v24 = vld [vmem:[%s16036_s23 + $0x8] sm:$0xff] }
0x493a   : > { %12661 = vmatpush3.msra.mxu0 %v8428_v24 }
0x493b   : > { %v10677_v51 = vsel %vm2811_vm2, %v10676_v0, 0.0  ;;  %12662 = vmatprep.subr.mxu0 %v14211_v39 }
0x493c   : > { %10678 = vadd.xlane.f32.xlu0 %v10677_v51  ;;  %12663 = vmatpush3.msra.mxu0 %v8427_v19 }
0x493d   : > { %12686 = vmatprep.subr.mxu0 %v14211_v39 }
0x49c5   : > { %v10679_v1 = vpop.xlane.xlu0 %10678 }
0x49c6   : > { %v10680_v2 = vmul.f32 0.03125, %v10679_v1 }
0x49c8   : > { %v10681_v16 = vsub.f32 %v10676_v0, %v10680_v2 }
0x49ca   : > { %v10682_v38 = vmul.f32 %v10681_v16, %v10681_v16 }
0x49cc   : > { %v10683_v25 = vsel %vm2811_vm2, %v10682_v38, 0.0 }
0x49cd   : > { %10684 = vadd.xlane.f32.xlu1 %v10683_v25 }
0x4a56   : > { %v10685_v12 = vpop.xlane.xlu1 %10684 }
0x4a57   : > { %v10686_v13 = vmul.f32 0.03125, %v10685_v12 }
0x4a59   : > { %v10687_v14 = vadd.f32 1e-05, %v10686_v13 }
0x4a5b   : > { %13186 = vrsqrt.f32 %v10687_v14 }
0x4a68   : > { %v13187_v17 = vpop.eup %13186 }
0x4a69   : > { %v10689_v22 = vmul.f32 %v13187_v17, %v10681_v16 }
0x4a6b   : > { %v10696_v10 = vmul.f32 %v11717_v18, %v10689_v22 }
0x4a6d   : > { %v10703_v23 = vadd.f32 %v11718_v21, %v10696_v10 }
0x4a6f   : > { %12665 = vmatmul.mubr.msk.f32.vlgmr.msra.gmra.mxu0 %vm2811_vm2, %v10703_v23 }
0x4a70   : > { %12694 = vmatprep.mubr.msk.f32.mxu0 %vm14212_vm6, %v14211_v39  ;;  %12687 = vmatpush3.msra.mxu0 %v2681_v47 }
0x4a71   : > { %12688 = vmatprep.subr.mxu0 %v14211_v39 }
0x4a72   : > { %12689 = vmatpush3.msra.mxu0 %v2680_v4 }
0x4a73   : > { %12690 = vmatprep.subr.mxu0 %v14211_v39 }
0x4a74   : > { %12691 = vmatpush3.msra.mxu0 %v2679_v49 }
0x4a75   : > { %12692 = vmatprep.subr.mxu0 %v14211_v39 }
0x4a76   : > { %12693 = vmatpush3.msra.mxu0 %v2678_v33 }
0x4b2f   : > { %v10779_v59 = vpop.f32.mrf.mxu0 }
0x4b30   : > { %v10780_v35 = vadd.f32 %v11719_v31, %v10779_v59 }
0x4b31   : > { %v12666_v37 = vpop.f32.mrf.mxu0 }
0x4b32   : > { %v10783_v41 = vmax.f32 %v10780_v35, 0.0 }
0x4b34   : > { %12684 = vmatmul.mubr.msk.f32.vlgmr.msra.gmra.mxu1 %vm4177_vm5, %v10783_v41 }
0x4bf4   : > { %v10859_v40 = vpop.f32.mrf.mxu1 }
0x4bf5   : > { %v10860_v42 = vadd.f32 %v11721_v32, %v10859_v40 }
0x4bf6   : > { %v12685_v48 = vpop.f32.mrf.mxu1 }
0x4bf7   : > { %v10863_v3 = vadd.f32 %v10860_v42, %v10703_v23 }
0x4bf9   : > { %v10864_v43 = vsel %vm2811_vm2, %v10863_v3, 0.0 }
0x4bfa   : > { %10865 = vadd.xlane.f32.xlu0 %v10864_v43 }
0x4c83   : > { %v10866_v29 = vpop.xlane.xlu0 %10865 }
0x4c84   : > { %v10867_v44 = vmul.f32 0.03125, %v10866_v29 }
0x4c86   : > { %v10868_v45 = vsub.f32 %v10863_v3, %v10867_v44 }
0x4c88   : > { %v10869_v9 = vmul.f32 %v10868_v45, %v10868_v45 }
0x4c8a   : > { %v10870_v46 = vsel %vm2811_vm2, %v10869_v9, 0.0 }
0x4c8b   : > { %10871 = vadd.xlane.f32.xlu0 %v10870_v46 }
0x4d14   : > { %v10872_v27 = vpop.xlane.xlu0 %10871 }
0x4d15   : > { %v10873_v26 = vmul.f32 0.03125, %v10872_v27 }
0x4d17   : > { %v10874_v63 = vadd.f32 1e-05, %v10873_v26 }
0x4d19   : > { %13188 = vrsqrt.f32 %v10874_v63 }
0x4d26   : > { %v13189_v60 = vpop.eup %13188 }
0x4d27   : > { %v10876_v50 = vmul.f32 %v13189_v60, %v10868_v45 }
0x4d29   : > { %v10883_v52 = vmul.f32 %v11723_v54, %v10876_v50 }
0x4d2b   : > { %v10890_v55 = vadd.f32 %v11724_v15, %v10883_v52 }
0x4d2d   : > { %12695 = vmatmul.mubr.msk.f32.vlgmr.msra.gmra.mxu0 %vm2811_vm2, %v10890_v55 }
0x4ded   : > { %v10966_v57 = vpop.f32.mrf.mxu0 }
0x4dee   : > { %v10967_v58 = vadd.f32 %v11725_v56, %v10966_v57 }
0x4def   : > { %v12696_v39 = vpop.f32.mrf.mxu0 }
0x4df0   : > { %10971 = vst.msk [vmem:[%s2665_s3] sm:$0xff] %vm10970_vm7, %v10967_v58 }
0x4df1 PF: > { %s183_s0 = sadd.s32 1, %s14086_s0  }
0x4df2   : > { %p180_p3 = scmp.ge.s32.totalorder %s183_s0, 4  }
0x4df4   :  { %182 = sbr.rel (!%p180_p3) target bundleno = 170 (0xaa), region = 570 }
0x4df9   :  { %10991 = vsyncpa [#allocation4], 1 }
0x4dfa   :  { %10993 = vsyncpa [#allocation4 + $0x1], 1 }
0x4dfb   :  { %10994 = vsyncpa [#allocation6], 1 }
0x4dfc   :  { %10995 = vsyncpa [#allocation9], 1 }
0x4dfd   :  { %10996 = vsyncpa [#allocation12], 1 }
0x4dfe   :  { %10997 = vsyncpa [#allocation15], 1 }
0x4dff   :  { %10998 = vsyncpa [#allocation18], 1 }
0x4e00   :  { %10999 = vsyncpa [#allocation21], 1 }
0x4e01   :  { %11000 = vsyncpa [#allocation24], 1 }
0x4e02   :  { %11001 = vsyncpa [#allocation27], 1 }
0x4e03   :  { %11002 = vsyncpa [#allocation30], 1 }
0x4e04   :  { %11003 = vsyncpa [#allocation33], 1 }
0x4e05   :  { %11004 = vsyncpa [#allocation36], 1 }
0x4e06   :  { %11005 = vsyncpa [#allocation39], 1 }
0x4e07   :  { %11006 = vsyncpa [#allocation42], 1 }
0x4e08   :  { %11007 = vsyncpa [#allocation45], 1 }
0x4e09   :  { %11008 = vsyncpa [#allocation48], 1 }
0x4e0a   :  { %11009 = vsyncpa [#allocation51], 1 }
0x4e0b   :  { %11010 = vsyncpa [#allocation54], 1 }

</bundles_post_ra>
